<compile_context>
chip_gen: v5e
topology: v5e:2x2
jax: 0.10.0
libtpu: 0.0.40
codegen_flags: <defaults>
</compile_context>

<pallas_src>
import numpy as np
import jax
import jax.numpy as jnp
from jax.experimental import pallas as pl
from jax.experimental.pallas import tpu as pltpu

# ----------------------------- mini-DenseNet config -----------------------------
GROWTH = 8
BN_SIZE = 4
INIT_FEATURES = 16
BLOCK_CONFIG = (2, 2)
NUM_CLASSES = 5
BN_EPS = 1e-5
PAD_ROWS = 16            # vertical zero-pad rows in the conv scratch (sublane aligned)


def _channel_schedule():
    """Per dense block: (input channels, buffer width = input + nlayers*GROWTH)."""
    sched = []
    c = INIT_FEATURES
    for bi, nlayers in enumerate(BLOCK_CONFIG):
        width = c + nlayers * GROWTH
        sched.append((c, width))
        c = width // 2 if bi != len(BLOCK_CONFIG) - 1 else width
    return sched, c


def _cparams(ngrid):
    return pltpu.CompilerParams(dimension_semantics=("parallel",) * ngrid)


# ----------------------------- host-side layout helpers -------------------------
def _im2col_stem(x):
    """7x7 stride-2 pad-3 patches: [N,H,W,3] -> [N,(H/2)*(W/2),147] bf16 (tiny for Cin=3)."""
    n, h, w, c = x.shape
    oh, ow = h // 2, w // 2
    xp = jnp.pad(x, ((0, 0), (3, 3), (3, 3), (0, 0)))
    slabs = [xp[:, i:i + 2 * oh:2, j:j + 2 * ow:2, :]
             for i in range(7) for j in range(7)]            # (i, j, cin) ordering
    patches = jnp.concatenate(slabs, axis=-1)                # [N, oh, ow, 147]
    return patches.reshape(n, oh * ow, 49 * c).astype(jnp.bfloat16)


def _tap_plan(k, stride, pad):
    """Map every pool tap (i, j) to (phase index, row shift a, col shift b)."""
    taps = []
    for i in range(k):
        for j in range(k):
            ui, uj = i - pad, j - pad
            pi, pj = ui % stride, uj % stride
            a, b = (ui - pi) // stride, (uj - pj) // stride
            taps.append((pi * stride + pj, a, b))
    return taps


def _phases_padded(x_nhwc, stride, pad_rows):
    """Stride-phase split (only used for the stride-2 stem maxpool; ~16 KB here)."""
    n, h, w, c = x_nhwc.shape
    ph, pw = h // stride, w // stride
    parts = [x_nhwc[:, p::stride, q::stride, :].reshape(n, ph * pw, c)
             for p in range(stride) for q in range(stride)]
    stacked = jnp.stack(parts, axis=0)
    if pad_rows:
        stacked = jnp.pad(stacked, ((0, 0), (0, 0), (pad_rows, pad_rows), (0, 0)))
    return stacked


def _avgpool2x2_matrix(ph, pw):
    """2x2/2 average pooling as a [S_out, S_in] matmul (exactly commutes with 1x1 conv)."""
    oh, ow = ph // 2, pw // 2
    m = np.zeros((oh * ow, ph * pw), np.float32)
    for oy in range(oh):
        for ox in range(ow):
            for dy in range(2):
                for dx in range(2):
                    m[oy * ow + ox, (2 * oy + dy) * pw + (2 * ox + dx)] = 0.25
    return jnp.asarray(m, dtype=jnp.bfloat16)


# ----------------------------- Pallas kernels ------------------------------------
def _stem_conv_kernel(x_ref, w_ref, b_ref, o_ref):
    """conv0 as im2col GEMM with folded-norm0 bias + ReLU epilogue."""
    acc = jnp.dot(x_ref[0], w_ref[...], preferred_element_type=jnp.float32)
    o_ref[0] = jnp.maximum(acc + b_ref[...], 0.0).astype(jnp.bfloat16)


def _make_stem_pool_kernel(taps, ph, pw, pad_rows, cin, cbuf):
    """3x3/2 maxpool on phase-split input; writes the zero-padded block-0 buffer.
    Zero-fill for out-of-image taps is exact because inputs are post-ReLU (>= 0)."""
    s = ph * pw

    def kernel(x_ref, o_ref):
        col = jax.lax.broadcasted_iota(jnp.int32, (s, 1), 0) % pw
        acc = None
        for (p, a, b) in taps:
            xt = x_ref[p, 0, pl.ds(pad_rows + a * pw + b, s), :]
            if b != 0:
                valid = jnp.logical_and(col + b >= 0, col + b < pw)
                xt = jnp.where(valid, xt, jnp.zeros_like(xt))
            acc = xt if acc is None else jnp.maximum(acc, xt)
        if cbuf > cin:
            acc = jnp.concatenate(
                [acc, jnp.zeros((s, cbuf - cin), acc.dtype)], axis=-1)
        o_ref[0] = acc

    return kernel


def _make_dense_layer_kernel(ph, pw, cbuf, bneck, growth, ch_off):
    """One dense layer, fully fused:
       norm1+ReLU -> 1x1 bottleneck GEMM -> norm2+ReLU -> 3x3 conv (in-VMEM im2col,
       single K=9*bneck contraction) -> write-through buffer with new channels."""
    s = ph * pw
    pad = PAD_ROWS

    def kernel(x_ref, w1_ref, s1_ref, b1_ref, s2_ref, b2_ref, w2_ref, o_ref, hbuf):
        x_bf = x_ref[0]                                       # [s, cbuf] bf16
        x = x_bf.astype(jnp.float32)
        # norm1 + ReLU (scale/shift zero-padded beyond the live channels) + 1x1 GEMM
        a1 = jnp.maximum(x * s1_ref[...] + b1_ref[...], 0.0)
        h = jnp.dot(a1.astype(jnp.bfloat16), w1_ref[...],
                    preferred_element_type=jnp.float32)       # [s, bneck]
        # norm2 + ReLU epilogue -> activation the 3x3 conv zero-pads
        a2 = jnp.maximum(h * s2_ref[...] + b2_ref[...], 0.0).astype(jnp.bfloat16)

        # padded VMEM buffer: zero rows realise the vertical conv padding
        hbuf[pl.ds(0, pad), :] = jnp.zeros((pad, bneck), jnp.bfloat16)
        hbuf[pl.ds(pad + s, pad), :] = jnp.zeros((pad, bneck), jnp.bfloat16)
        hbuf[pl.ds(pad, s), :] = a2

        col = jax.lax.broadcasted_iota(jnp.int32, (s, 1), 0) % pw
        not_first = col >= 1            # column shift b = -1 reads ox-1
        not_last = col <= pw - 2        # column shift b = +1 reads ox+1
        windows = []
        for a in (-1, 0, 1):
            for b in (-1, 0, 1):
                win = hbuf[pl.ds(pad + a * pw + b, s), :]
                if b == -1:
                    win = jnp.where(not_first, win, jnp.zeros_like(win))
                elif b == 1:
                    win = jnp.where(not_last, win, jnp.zeros_like(win))
                windows.append(win)
        xcat = jnp.concatenate(windows, axis=-1)              # [s, 9*bneck] in-VMEM im2col
        y = jnp.dot(xcat, w2_ref[...], preferred_element_type=jnp.float32)

        # single lane-dense store: existing channels + new GROWTH channels (+ zero tail)
        parts = [x_bf[:, :ch_off], y.astype(jnp.bfloat16)]
        if ch_off + growth < cbuf:
            parts.append(jnp.zeros((s, cbuf - ch_off - growth), jnp.bfloat16))
        o_ref[0] = jnp.concatenate(parts, axis=-1)

    return kernel


def _make_transition_kernel(cbuf_in, cout, cbuf_out):
    """norm+ReLU -> 2x2 avg-pool (as matmul) -> 1x1 conv, writing the next block buffer."""

    def kernel(x_ref, s_ref, b_ref, p_ref, w_ref, o_ref):
        x = x_ref[0].astype(jnp.float32)                      # [s_in, cbuf_in]
        a = jnp.maximum(x * s_ref[...] + b_ref[...], 0.0)
        pooled = jnp.dot(p_ref[...], a.astype(jnp.bfloat16),
                         preferred_element_type=jnp.float32)  # [s_out, cbuf_in]
        y = jnp.dot(pooled.astype(jnp.bfloat16), w_ref[...],
                    preferred_element_type=jnp.float32)       # [s_out, cout]
        if cbuf_out > cout:
            y = jnp.concatenate(
                [y, jnp.zeros((y.shape[0], cbuf_out - cout), jnp.float32)], axis=-1)
        o_ref[0] = y.astype(jnp.bfloat16)

    return kernel


def _head_kernel(x_ref, s_ref, b_ref, w_ref, bias_ref, o_ref):
    """Final BN+ReLU -> global average pool -> (replaced) Linear classifier, fused."""
    x = x_ref[...].astype(jnp.float32)                        # [N, S, C]
    y = jnp.maximum(x * s_ref[...] + b_ref[...], 0.0)
    pooled = jnp.mean(y, axis=1)                              # [N, C]
    o_ref[...] = jnp.dot(pooled.astype(jnp.bfloat16), w_ref[...],
                         preferred_element_type=jnp.float32) + bias_ref[...]


# ----------------------------- kernel wrappers ------------------------------------
def stem_conv(patches, w, bias):
    n, s, kdim = patches.shape
    cout = w.shape[1]
    return pl.pallas_call(
        _stem_conv_kernel,
        out_shape=jax.ShapeDtypeStruct((n, s, cout), jnp.bfloat16),
        grid=(n,),
        in_specs=[pl.BlockSpec((1, s, kdim), lambda i: (i, 0, 0)),
                  pl.BlockSpec((kdim, cout), lambda i: (0, 0)),
                  pl.BlockSpec((1, cout), lambda i: (0, 0))],
        out_specs=pl.BlockSpec((1, s, cout), lambda i: (i, 0, 0)),
        compiler_params=_cparams(1),
    )(patches, w, bias)


def stem_maxpool_to_buffer(conv_nhwc, cbuf):
    n, h, w, c = conv_nhwc.shape
    ph, pw = h // 2, w // 2
    s = ph * pw
    taps = _tap_plan(3, 2, 1)
    pad_rows = max(abs(a) * pw + abs(b) for _, a, b in taps)
    xp = _phases_padded(conv_nhwc, 2, pad_rows)               # [4, N, pad+S+pad, C] bf16
    kernel = _make_stem_pool_kernel(taps, ph, pw, pad_rows, c, cbuf)
    return pl.pallas_call(
        kernel,
        out_shape=jax.ShapeDtypeStruct((n, s, cbuf), jnp.bfloat16),
        grid=(n,),
        in_specs=[pl.BlockSpec((4, 1, xp.shape[2], c), lambda i: (0, i, 0, 0))],
        out_specs=pl.BlockSpec((1, s, cbuf), lambda i: (i, 0, 0)),
        compiler_params=_cparams(1),
    )(xp)


def dense_layer(buf, p, ph, pw, ch_off):
    n, s, cbuf = buf.shape
    bneck = p["w1"].shape[1]
    growth = p["w2"].shape[1]
    kernel = _make_dense_layer_kernel(ph, pw, cbuf, bneck, growth, ch_off)
    return pl.pallas_call(
        kernel,
        out_shape=jax.ShapeDtypeStruct((n, s, cbuf), jnp.bfloat16),
        grid=(n,),
        in_specs=[pl.BlockSpec((1, s, cbuf), lambda i: (i, 0, 0)),
                  pl.BlockSpec((cbuf, bneck), lambda i: (0, 0)),
                  pl.BlockSpec((1, cbuf), lambda i: (0, 0)),
                  pl.BlockSpec((1, cbuf), lambda i: (0, 0)),
                  pl.BlockSpec((1, bneck), lambda i: (0, 0)),
                  pl.BlockSpec((1, bneck), lambda i: (0, 0)),
                  pl.BlockSpec((9 * bneck, growth), lambda i: (0, 0))],
        out_specs=pl.BlockSpec((1, s, cbuf), lambda i: (i, 0, 0)),
        scratch_shapes=[pltpu.VMEM((s + 2 * PAD_ROWS, bneck), jnp.bfloat16)],
        input_output_aliases={0: 0},
        compiler_params=_cparams(1),
    )(buf, p["w1"], p["s1"], p["b1"], p["s2"], p["b2"], p["w2"])


def transition(buf, tp, ph, pw, cbuf_out):
    n, s, cbuf_in = buf.shape
    cout = tp["w"].shape[1]
    s_out = (ph // 2) * (pw // 2)
    pmat = _avgpool2x2_matrix(ph, pw)
    kernel = _make_transition_kernel(cbuf_in, cout, cbuf_out)
    return pl.pallas_call(
        kernel,
        out_shape=jax.ShapeDtypeStruct((n, s_out, cbuf_out), jnp.bfloat16),
        grid=(n,),
        in_specs=[pl.BlockSpec((1, s, cbuf_in), lambda i: (i, 0, 0)),
                  pl.BlockSpec((1, cbuf_in), lambda i: (0, 0)),
                  pl.BlockSpec((1, cbuf_in), lambda i: (0, 0)),
                  pl.BlockSpec((s_out, s), lambda i: (0, 0)),
                  pl.BlockSpec((cbuf_in, cout), lambda i: (0, 0))],
        out_specs=pl.BlockSpec((1, s_out, cbuf_out), lambda i: (i, 0, 0)),
        compiler_params=_cparams(1),
    )(buf, tp["s"], tp["b"], pmat, tp["w"])


def head_forward(buf, norm_s, norm_b, w, b):
    # TODO(synk): single-step grid leaves one v7x TensorCore idle for this tiny epilogue;
    #             split over N once the second-to-last output dim can be >= 8 per step.
    n, s, c = buf.shape
    ncls = w.shape[1]
    return pl.pallas_call(
        _head_kernel,
        out_shape=jax.ShapeDtypeStruct((n, ncls), jnp.float32),
        grid=(1,),
        in_specs=[pl.BlockSpec((n, s, c), lambda i: (0, 0, 0)),
                  pl.BlockSpec((1, 1, c), lambda i: (0, 0, 0)),
                  pl.BlockSpec((1, 1, c), lambda i: (0, 0, 0)),
                  pl.BlockSpec((c, ncls), lambda i: (0, 0)),
                  pl.BlockSpec((1, ncls), lambda i: (0, 0))],
        out_specs=pl.BlockSpec((n, ncls), lambda i: (0, 0)),
        compiler_params=_cparams(1),
    )(buf, norm_s.reshape(1, 1, c), norm_b.reshape(1, 1, c), w, b)


# ----------------------------- parameters ------------------------------------------
class _KeyGen:
    def __init__(self, key):
        self._key = key

    def __call__(self):
        self._key, k = jax.random.split(self._key)
        return k


def _conv_w(kg, cout, cin, kh, kw):
    fan = cin * kh * kw
    return jax.random.normal(kg(), (cout, cin, kh, kw), jnp.float32) * (2.0 / fan) ** 0.5


def _bn_folded(kg, c):
    gamma = jnp.ones((c,), jnp.float32)
    beta = jnp.zeros((c,), jnp.float32)
    mean = 0.1 * jax.random.normal(kg(), (c,), jnp.float32)
    var = jnp.ones((c,), jnp.float32) + 0.1 * jnp.abs(jax.random.normal(kg(), (c,), jnp.float32))
    scale = gamma / jnp.sqrt(var + BN_EPS)
    shift = beta - mean * scale
    return scale, shift


def init_params(key):
    kg = _KeyGen(key)
    sched, cfinal = _channel_schedule()
    bneck = BN_SIZE * GROWTH
    params = {}

    # stem: conv0 (7x7/2) with norm0 folded into the weights (conv -> BN order)
    w0 = _conv_w(kg, INIT_FEATURES, 3, 7, 7)
    s0, b0 = _bn_folded(kg, INIT_FEATURES)
    w0 = w0 * s0[:, None, None, None]
    params["conv0_w"] = (jnp.transpose(w0, (2, 3, 1, 0))
                         .reshape(49 * 3, INIT_FEATURES).astype(jnp.bfloat16))
    params["conv0_bias"] = b0.reshape(1, INIT_FEATURES)

    for bi, nlayers in enumerate(BLOCK_CONFIG):
        cin0, width = sched[bi]
        for li in range(nlayers):
            cin = cin0 + li * GROWTH
            s1, b1 = _bn_folded(kg, cin)
            w1 = _conv_w(kg, bneck, cin, 1, 1)[:, :, 0, 0]            # [bneck, cin]
            s2, b2 = _bn_folded(kg, bneck)
            w2 = _conv_w(kg, GROWTH, bneck, 3, 3)                     # [growth, bneck, 3, 3]
            params[f"block{bi}_layer{li}"] = {
                # norm1 scale/shift and w1 zero-padded to the block buffer width so the
                # kernel can stay lane-dense (padded channels contribute exactly 0).
                "s1": jnp.pad(s1, (0, width - cin)).reshape(1, width),
                "b1": jnp.pad(b1, (0, width - cin)).reshape(1, width),
                "w1": jnp.pad(w1.T, ((0, width - cin), (0, 0))).astype(jnp.bfloat16),
                "s2": s2.reshape(1, bneck),
                "b2": b2.reshape(1, bneck),
                # 3x3 taps flattened tap-major along K for the single in-VMEM im2col dot
                "w2": (jnp.transpose(w2, (2, 3, 1, 0))
                       .reshape(9 * bneck, GROWTH).astype(jnp.bfloat16)),
            }
        if bi != len(BLOCK_CONFIG) - 1:
            st, bt = _bn_folded(kg, width)
            wt = _conv_w(kg, width // 2, width, 1, 1)[:, :, 0, 0]     # [width/2, width]
            params[f"trans{bi}"] = {
                "s": st.reshape(1, width),
                "b": bt.reshape(1, width),
                "w": wt.T.astype(jnp.bfloat16),
            }

    sf, bfin = _bn_folded(kg, cfinal)
    params["norm_final_s"] = sf
    params["norm_final_b"] = bfin
    params["cls_w"] = (0.05 * jax.random.normal(kg(), (NUM_CLASSES, cfinal), jnp.float32)
                       ).T.astype(jnp.bfloat16)
    params["cls_b"] = jnp.zeros((1, NUM_CLASSES), jnp.float32)
    return params


# ----------------------------- forward pass ----------------------------------------
@jax.jit
def densenet_finetune_forward(params, x_nchw):
    x = jnp.transpose(x_nchw.astype(jnp.float32), (0, 2, 3, 1))      # NCHW -> NHWC
    n, h, w, _ = x.shape
    sched, _ = _channel_schedule()

    # stem: conv0 7x7/2 (norm0 folded, ReLU fused) as one GEMM kernel on host im2col
    patches = _im2col_stem(x)
    conv0 = stem_conv(patches, params["conv0_w"], params["conv0_bias"])
    oh, ow = h // 2, w // 2
    # stem maxpool 3x3/2 pad1, writing straight into the zero-padded block-0 buffer
    buf = stem_maxpool_to_buffer(conv0.reshape(n, oh, ow, INIT_FEATURES),
                                 cbuf=sched[0][1])
    ph, pw = oh // 2, ow // 2

    for bi, nlayers in enumerate(BLOCK_CONFIG):
        cin0, width = sched[bi]
        for li in range(nlayers):
            # one fused pallas_call per dense layer (bottleneck GEMM + 3x3 conv),
            # output aliased onto the pre-allocated block buffer (no concat copies)
            buf = dense_layer(buf, params[f"block{bi}_layer{li}"], ph, pw,
                              ch_off=cin0 + li * GROWTH)
        if bi != len(BLOCK_CONFIG) - 1:
            buf = transition(buf, params[f"trans{bi}"], ph, pw,
                             cbuf_out=sched[bi + 1][1])
            ph //= 2
            pw //= 2

    return head_forward(buf, params["norm_final_s"], params["norm_final_b"],
                        params["cls_w"], params["cls_b"])


# ----------------------------- main --------------------------------------------------
if __name__ == "__main__":
    key = jax.random.PRNGKey(0)
    k_param, k_input = jax.random.split(key)
    params = init_params(k_param)
    x = jax.random.normal(k_input, (2, 3, 32, 32), jnp.float32)      # NCHW, like PyTorch
    out = densenet_finetune_forward(params, x)
    out = jax.block_until_ready(out)
    assert out.shape == (2, NUM_CLASSES) and out.dtype == jnp.float32
    assert bool(jnp.all(jnp.isfinite(out)))
    print("KERNEL_OK")
</pallas_src>

<mosaic_0001>
module attributes {stable_mosaic.version = 11 : i64} {
  func.func @_stem_conv_kernel(%arg0: i32, %arg1: memref<1x256x147xbf16, #tpu.memory_space<vmem>>, %arg2: memref<147x16xbf16, #tpu.memory_space<vmem>>, %arg3: memref<1x16xf32, #tpu.memory_space<vmem>>, %arg4: memref<1x256x16xbf16, #tpu.memory_space<vmem>>) attributes {dimension_semantics = [#tpu.dimension_semantics<parallel>], iteration_bounds = array<i64: 2>, scalar_prefetch = 0 : i64, scratch_operands = 0 : i64, tpu.core_type = #tpu.core_type<tc>, window_params = [{transform_indices = @transform_0, window_bounds = array<i64: 1, 256, 147>}, {pipeline_mode = #tpu.pipeline_mode<synchronous>, transform_indices = @transform_1, window_bounds = array<i64: 147, 16>}, {pipeline_mode = #tpu.pipeline_mode<synchronous>, transform_indices = @transform_2, window_bounds = array<i64: 1, 16>}, {transform_indices = @transform_3, window_bounds = array<i64: 1, 256, 16>}]} {
    %c0 = arith.constant 0 : index
    %c0_0 = arith.constant 0 : index
    %c0_1 = arith.constant 0 : index
    %0 = vector.load %arg1[%c0, %c0_0, %c0_1] : memref<1x256x147xbf16, #tpu.memory_space<vmem>>, vector<1x256x147xbf16>
    %1 = vector.shape_cast %0 : vector<1x256x147xbf16> to vector<256x147xbf16>
    %c0_2 = arith.constant 0 : index
    %c0_3 = arith.constant 0 : index
    %2 = vector.load %arg2[%c0_2, %c0_3] : memref<147x16xbf16, #tpu.memory_space<vmem>>, vector<147x16xbf16>
    %cst = arith.constant dense<0.000000e+00> : vector<256x16xf32>
    %3 = tpu.matmul %1, %2, %cst {dimension_numbers = #tpu.dot_dimension_numbers<[1], [0], [0], [1], [0, 0, 1, 1], [], []>} : vector<256x147xbf16>, vector<147x16xbf16>, vector<256x16xf32> -> vector<256x16xf32>
    %c0_4 = arith.constant 0 : index
    %c0_5 = arith.constant 0 : index
    %4 = vector.load %arg3[%c0_4, %c0_5] : memref<1x16xf32, #tpu.memory_space<vmem>>, vector<1x16xf32>
    %5 = vector.broadcast %4 : vector<1x16xf32> to vector<256x16xf32>
    %6 = arith.addf %3, %5 : vector<256x16xf32>
    %cst_6 = arith.constant 0.000000e+00 : f32
    %7 = vector.broadcast %cst_6 : f32 to vector<256x16xf32>
    %8 = arith.maximumf %6, %7 : vector<256x16xf32>
    %9 = arith.truncf %8 : vector<256x16xf32> to vector<256x16xbf16>
    %c0_7 = arith.constant 0 : index
    %c0_8 = arith.constant 0 : index
    %c0_9 = arith.constant 0 : index
    %10 = vector.load %arg4[%c0_7, %c0_8, %c0_9] : memref<1x256x16xbf16, #tpu.memory_space<vmem>>, vector<1x256x16xbf16>
    %11 = vector.shape_cast %10 : vector<1x256x16xbf16> to vector<256x16xbf16>
    %12 = vector.shape_cast %9 : vector<256x16xbf16> to vector<1x256x16xbf16>
    tpu.vector_store %arg4[%c0_7, %c0_8, %c0_9], %12 {strides = array<i32>} : memref<1x256x16xbf16, #tpu.memory_space<vmem>>, vector<1x256x16xbf16>,
    return
  }
  func.func @transform_0(%arg0: i32) -> (i32, i32, i32) {
    %c0_i32 = arith.constant 0 : i32
    %c0_i32_0 = arith.constant 0 : i32
    %c0_i32_1 = arith.constant 0 : i32
    return %arg0, %c0_i32, %c0_i32_0 : i32, i32, i32
  }
  func.func @transform_1(%arg0: i32) -> (i32, i32) {
    %c0_i32 = arith.constant 0 : i32
    %c0_i32_0 = arith.constant 0 : i32
    %c0_i32_1 = arith.constant 0 : i32
    return %c0_i32, %c0_i32_0 : i32, i32
  }
  func.func @transform_2(%arg0: i32) -> (i32, i32) {
    %c0_i32 = arith.constant 0 : i32
    %c0_i32_0 = arith.constant 0 : i32
    %c0_i32_1 = arith.constant 0 : i32
    return %c0_i32, %c0_i32_0 : i32, i32
  }
  func.func @transform_3(%arg0: i32) -> (i32, i32, i32) {
    %c0_i32 = arith.constant 0 : i32
    %c0_i32_0 = arith.constant 0 : i32
    %c0_i32_1 = arith.constant 0 : i32
    return %arg0, %c0_i32, %c0_i32_0 : i32, i32, i32
  }
}

module attributes {stable_mosaic.version = 11 : i64} {
  func.func @kernel(%arg0: i32, %arg1: memref<4x1x82x16xbf16, #tpu.memory_space<vmem>>, %arg2: memref<1x64x32xbf16, #tpu.memory_space<vmem>>) attributes {dimension_semantics = [#tpu.dimension_semantics<parallel>], iteration_bounds = array<i64: 2>, scalar_prefetch = 0 : i64, scratch_operands = 0 : i64, tpu.core_type = #tpu.core_type<tc>, window_params = [{transform_indices = @transform_0, window_bounds = array<i64: 4, 1, 82, 16>}, {transform_indices = @transform_1, window_bounds = array<i64: 1, 64, 32>}]} {
    %0 = tpu.iota {dimensions = array<i32: 0>} : vector<64x1xi32>
    %c8_i32 = arith.constant 8 : i32
    %c0_i32 = arith.constant 0 : i32
    %1 = arith.cmpi eq, %c8_i32, %c0_i32 : i32
    %c1_i32 = arith.constant 1 : i32
    %2 = arith.select %1, %c1_i32, %c8_i32 : i32
    %3 = vector.broadcast %2 : i32 to vector<64x1xi32>
    %4 = arith.remsi %0, %3 : vector<64x1xi32>
    %c0_i32_0 = arith.constant 0 : i32
    %5 = vector.broadcast %c0_i32_0 : i32 to vector<64x1xi32>
    %6 = arith.cmpi ne, %4, %5 : vector<64x1xi32>
    %c0_i32_1 = arith.constant 0 : i32
    %7 = vector.broadcast %c0_i32_1 : i32 to vector<64x1xi32>
    %8 = arith.cmpi slt, %4, %7 : vector<64x1xi32>
    %c0_i32_2 = arith.constant 0 : i32
    %9 = arith.cmpi slt, %2, %c0_i32_2 : i32
    %10 = vector.broadcast %9 : i1 to vector<64x1xi1>
    %11 = vector.broadcast %10 : vector<64x1xi1> to vector<64x1xi1>
    %12 = arith.xori %8, %11 : vector<64x1xi1>
    %13 = arith.andi %12, %6 : vector<64x1xi1>
    %14 = vector.broadcast %2 : i32 to vector<64x1xi32>
    %15 = arith.addi %4, %14 : vector<64x1xi32>
    %16 = arith.select %13, %15, %4 : vector<64x1xi1>, vector<64x1xi32>
    %c3 = arith.constant 3 : index
    %c0 = arith.constant 0 : index
    %c0_3 = arith.constant 0 : index
    %c0_4 = arith.constant 0 : index
    %17 = vector.load %arg1[%c3, %c0, %c0_3, %c0_4] : memref<4x1x82x16xbf16, #tpu.memory_space<vmem>>, vector<1x1x64x16xbf16>
    %18 = vector.shape_cast %17 : vector<1x1x64x16xbf16> to vector<64x16xbf16>
    %c-1_i32 = arith.constant -1 : i32
    %19 = vector.broadcast %c-1_i32 : i32 to vector<64x1xi32>
    %20 = arith.addi %16, %19 : vector<64x1xi32>
    %c0_i32_5 = arith.constant 0 : i32
    %21 = vector.broadcast %c0_i32_5 : i32 to vector<64x1xi32>
    %22 = arith.cmpi sge, %20, %21 : vector<64x1xi32>
    %c-1_i32_6 = arith.constant -1 : i32
    %23 = vector.broadcast %c-1_i32_6 : i32 to vector<64x1xi32>
    %24 = arith.addi %16, %23 : vector<64x1xi32>
    %c8_i32_7 = arith.constant 8 : i32
    %25 = vector.broadcast %c8_i32_7 : i32 to vector<64x1xi32>
    %26 = arith.cmpi slt, %24, %25 : vector<64x1xi32>
    %27 = arith.andi %22, %26 : vector<64x1xi1>
    %cst = arith.constant 0.000000e+00 : bf16
    %28 = vector.broadcast %cst : bf16 to vector<64x16xbf16>
    %29 = vector.shape_cast %27 : vector<64x1xi1> to vector<64x1xi1>
    %30 = vector.broadcast %29 : vector<64x1xi1> to vector<64x16xi1>
    %31 = arith.select %30, %18, %28 : vector<64x16xi1>, vector<64x16xbf16>
    %c2 = arith.constant 2 : index
    %c0_8 = arith.constant 0 : index
    %c1 = arith.constant 1 : index
    %c0_9 = arith.constant 0 : index
    %32 = vector.load %arg1[%c2, %c0_8, %c1, %c0_9] : memref<4x1x82x16xbf16, #tpu.memory_space<vmem>>, vector<1x1x64x16xbf16>
    %33 = vector.shape_cast %32 : vector<1x1x64x16xbf16> to vector<64x16xbf16>
    %34 = arith.maximumf %31, %33 : vector<64x16xbf16>
    %c3_10 = arith.constant 3 : index
    %c0_11 = arith.constant 0 : index
    %c1_12 = arith.constant 1 : index
    %c0_13 = arith.constant 0 : index
    %35 = vector.load %arg1[%c3_10, %c0_11, %c1_12, %c0_13] : memref<4x1x82x16xbf16, #tpu.memory_space<vmem>>, vector<1x1x64x16xbf16>
    %36 = vector.shape_cast %35 : vector<1x1x64x16xbf16> to vector<64x16xbf16>
    %37 = arith.maximumf %34, %36 : vector<64x16xbf16>
    %c1_14 = arith.constant 1 : index
    %c0_15 = arith.constant 0 : index
    %c8 = arith.constant 8 : index
    %c0_16 = arith.constant 0 : index
    %38 = vector.load %arg1[%c1_14, %c0_15, %c8, %c0_16] : memref<4x1x82x16xbf16, #tpu.memory_space<vmem>>, vector<1x1x64x16xbf16>
    %39 = vector.shape_cast %38 : vector<1x1x64x16xbf16> to vector<64x16xbf16>
    %c-1_i32_17 = arith.constant -1 : i32
    %40 = vector.broadcast %c-1_i32_17 : i32 to vector<64x1xi32>
    %41 = arith.addi %16, %40 : vector<64x1xi32>
    %c0_i32_18 = arith.constant 0 : i32
    %42 = vector.broadcast %c0_i32_18 : i32 to vector<64x1xi32>
    %43 = arith.cmpi sge, %41, %42 : vector<64x1xi32>
    %c-1_i32_19 = arith.constant -1 : i32
    %44 = vector.broadcast %c-1_i32_19 : i32 to vector<64x1xi32>
    %45 = arith.addi %16, %44 : vector<64x1xi32>
    %c8_i32_20 = arith.constant 8 : i32
    %46 = vector.broadcast %c8_i32_20 : i32 to vector<64x1xi32>
    %47 = arith.cmpi slt, %45, %46 : vector<64x1xi32>
    %48 = arith.andi %43, %47 : vector<64x1xi1>
    %cst_21 = arith.constant 0.000000e+00 : bf16
    %49 = vector.broadcast %cst_21 : bf16 to vector<64x16xbf16>
    %50 = vector.shape_cast %48 : vector<64x1xi1> to vector<64x1xi1>
    %51 = vector.broadcast %50 : vector<64x1xi1> to vector<64x16xi1>
    %52 = arith.select %51, %39, %49 : vector<64x16xi1>, vector<64x16xbf16>
    %53 = arith.maximumf %37, %52 : vector<64x16xbf16>
    %c0_22 = arith.constant 0 : index
    %c0_23 = arith.constant 0 : index
    %c9 = arith.constant 9 : index
    %c0_24 = arith.constant 0 : index
    %54 = vector.load %arg1[%c0_22, %c0_23, %c9, %c0_24] : memref<4x1x82x16xbf16, #tpu.memory_space<vmem>>, vector<1x1x64x16xbf16>
    %55 = vector.shape_cast %54 : vector<1x1x64x16xbf16> to vector<64x16xbf16>
    %56 = arith.maximumf %53, %55 : vector<64x16xbf16>
    %c1_25 = arith.constant 1 : index
    %c0_26 = arith.constant 0 : index
    %c9_27 = arith.constant 9 : index
    %c0_28 = arith.constant 0 : index
    %57 = vector.load %arg1[%c1_25, %c0_26, %c9_27, %c0_28] : memref<4x1x82x16xbf16, #tpu.memory_space<vmem>>, vector<1x1x64x16xbf16>
    %58 = vector.shape_cast %57 : vector<1x1x64x16xbf16> to vector<64x16xbf16>
    %59 = arith.maximumf %56, %58 : vector<64x16xbf16>
    %c3_29 = arith.constant 3 : index
    %c0_30 = arith.constant 0 : index
    %c8_31 = arith.constant 8 : index
    %c0_32 = arith.constant 0 : index
    %60 = vector.load %arg1[%c3_29, %c0_30, %c8_31, %c0_32] : memref<4x1x82x16xbf16, #tpu.memory_space<vmem>>, vector<1x1x64x16xbf16>
    %61 = vector.shape_cast %60 : vector<1x1x64x16xbf16> to vector<64x16xbf16>
    %c-1_i32_33 = arith.constant -1 : i32
    %62 = vector.broadcast %c-1_i32_33 : i32 to vector<64x1xi32>
    %63 = arith.addi %16, %62 : vector<64x1xi32>
    %c0_i32_34 = arith.constant 0 : i32
    %64 = vector.broadcast %c0_i32_34 : i32 to vector<64x1xi32>
    %65 = arith.cmpi sge, %63, %64 : vector<64x1xi32>
    %c-1_i32_35 = arith.constant -1 : i32
    %66 = vector.broadcast %c-1_i32_35 : i32 to vector<64x1xi32>
    %67 = arith.addi %16, %66 : vector<64x1xi32>
    %c8_i32_36 = arith.constant 8 : i32
    %68 = vector.broadcast %c8_i32_36 : i32 to vector<64x1xi32>
    %69 = arith.cmpi slt, %67, %68 : vector<64x1xi32>
    %70 = arith.andi %65, %69 : vector<64x1xi1>
    %cst_37 = arith.constant 0.000000e+00 : bf16
    %71 = vector.broadcast %cst_37 : bf16 to vector<64x16xbf16>
    %72 = vector.shape_cast %70 : vector<64x1xi1> to vector<64x1xi1>
    %73 = vector.broadcast %72 : vector<64x1xi1> to vector<64x16xi1>
    %74 = arith.select %73, %61, %71 : vector<64x16xi1>, vector<64x16xbf16>
    %75 = arith.maximumf %59, %74 : vector<64x16xbf16>
    %c2_38 = arith.constant 2 : index
    %c0_39 = arith.constant 0 : index
    %c9_40 = arith.constant 9 : index
    %c0_41 = arith.constant 0 : index
    %76 = vector.load %arg1[%c2_38, %c0_39, %c9_40, %c0_41] : memref<4x1x82x16xbf16, #tpu.memory_space<vmem>>, vector<1x1x64x16xbf16>
    %77 = vector.shape_cast %76 : vector<1x1x64x16xbf16> to vector<64x16xbf16>
    %78 = arith.maximumf %75, %77 : vector<64x16xbf16>
    %c3_42 = arith.constant 3 : index
    %c0_43 = arith.constant 0 : index
    %c9_44 = arith.constant 9 : index
    %c0_45 = arith.constant 0 : index
    %79 = vector.load %arg1[%c3_42, %c0_43, %c9_44, %c0_45] : memref<4x1x82x16xbf16, #tpu.memory_space<vmem>>, vector<1x1x64x16xbf16>
    %80 = vector.shape_cast %79 : vector<1x1x64x16xbf16> to vector<64x16xbf16>
    %81 = arith.maximumf %78, %80 : vector<64x16xbf16>
    %cst_46 = arith.constant 0.000000e+00 : bf16
    %82 = vector.broadcast %cst_46 : bf16 to vector<64x16xbf16>
    %83 = tpu.concatenate %81, %82 in 1 : vector<64x16xbf16>, vector<64x16xbf16> -> vector<64x32xbf16>
    %c0_47 = arith.constant 0 : index
    %c0_48 = arith.constant 0 : index
    %c0_49 = arith.constant 0 : index
    %84 = vector.load %arg2[%c0_47, %c0_48, %c0_49] : memref<1x64x32xbf16, #tpu.memory_space<vmem>>, vector<1x64x32xbf16>
    %85 = vector.shape_cast %84 : vector<1x64x32xbf16> to vector<64x32xbf16>
    %86 = vector.shape_cast %83 : vector<64x32xbf16> to vector<1x64x32xbf16>
    tpu.vector_store %arg2[%c0_47, %c0_48, %c0_49], %86 {strides = array<i32>} : memref<1x64x32xbf16, #tpu.memory_space<vmem>>, vector<1x64x32xbf16>,
    return
  }
  func.func @transform_0(%arg0: i32) -> (i32, i32, i32, i32) {
    %c0_i32 = arith.constant 0 : i32
    %c0_i32_0 = arith.constant 0 : i32
    %c0_i32_1 = arith.constant 0 : i32
    %c0_i32_2 = arith.constant 0 : i32
    return %c0_i32, %arg0, %c0_i32_0, %c0_i32_1 : i32, i32, i32, i32
  }
  func.func @transform_1(%arg0: i32) -> (i32, i32, i32) {
    %c0_i32 = arith.constant 0 : i32
    %c0_i32_0 = arith.constant 0 : i32
    %c0_i32_1 = arith.constant 0 : i32
    return %arg0, %c0_i32, %c0_i32_0 : i32, i32, i32
  }
}

module attributes {stable_mosaic.version = 11 : i64} {
  func.func @kernel(%arg0: i32, %arg1: memref<1x64x32xbf16, #tpu.memory_space<vmem>>, %arg2: memref<32x32xbf16, #tpu.memory_space<vmem>>, %arg3: memref<1x32xf32, #tpu.memory_space<vmem>>, %arg4: memref<1x32xf32, #tpu.memory_space<vmem>>, %arg5: memref<1x32xf32, #tpu.memory_space<vmem>>, %arg6: memref<1x32xf32, #tpu.memory_space<vmem>>, %arg7: memref<288x8xbf16, #tpu.memory_space<vmem>>, %arg8: memref<1x64x32xbf16, #tpu.memory_space<vmem>>, %arg9: memref<96x32xbf16, #tpu.memory_space<vmem>>) attributes {dimension_semantics = [#tpu.dimension_semantics<parallel>], iteration_bounds = array<i64: 2>, scalar_prefetch = 0 : i64, scratch_operands = 1 : i64, tpu.core_type = #tpu.core_type<tc>, window_params = [{transform_indices = @transform_0, window_bounds = array<i64: 1, 64, 32>}, {pipeline_mode = #tpu.pipeline_mode<synchronous>, transform_indices = @transform_1, window_bounds = array<i64: 32, 32>}, {pipeline_mode = #tpu.pipeline_mode<synchronous>, transform_indices = @transform_2, window_bounds = array<i64: 1, 32>}, {pipeline_mode = #tpu.pipeline_mode<synchronous>, transform_indices = @transform_3, window_bounds = array<i64: 1, 32>}, {pipeline_mode = #tpu.pipeline_mode<synchronous>, transform_indices = @transform_4, window_bounds = array<i64: 1, 32>}, {pipeline_mode = #tpu.pipeline_mode<synchronous>, transform_indices = @transform_5, window_bounds = array<i64: 1, 32>}, {pipeline_mode = #tpu.pipeline_mode<synchronous>, transform_indices = @transform_6, window_bounds = array<i64: 288, 8>}, {transform_indices = @transform_7, window_bounds = array<i64: 1, 64, 32>}]} {
    %c0 = arith.constant 0 : index
    %c0_0 = arith.constant 0 : index
    %c0_1 = arith.constant 0 : index
    %0 = vector.load %arg1[%c0, %c0_0, %c0_1] : memref<1x64x32xbf16, #tpu.memory_space<vmem>>, vector<1x64x32xbf16>
    %1 = vector.shape_cast %0 : vector<1x64x32xbf16> to vector<64x32xbf16>
    %2 = arith.extf %1 : vector<64x32xbf16> to vector<64x32xf32>
    %c0_2 = arith.constant 0 : index
    %c0_3 = arith.constant 0 : index
    %3 = vector.load %arg3[%c0_2, %c0_3] : memref<1x32xf32, #tpu.memory_space<vmem>>, vector<1x32xf32>
    %4 = vector.broadcast %3 : vector<1x32xf32> to vector<64x32xf32>
    %5 = arith.mulf %2, %4 : vector<64x32xf32>
    %c0_4 = arith.constant 0 : index
    %c0_5 = arith.constant 0 : index
    %6 = vector.load %arg4[%c0_4, %c0_5] : memref<1x32xf32, #tpu.memory_space<vmem>>, vector<1x32xf32>
    %7 = vector.broadcast %6 : vector<1x32xf32> to vector<64x32xf32>
    %8 = arith.addf %5, %7 : vector<64x32xf32>
    %cst = arith.constant 0.000000e+00 : f32
    %9 = vector.broadcast %cst : f32 to vector<64x32xf32>
    %10 = arith.maximumf %8, %9 : vector<64x32xf32>
    %11 = arith.truncf %10 : vector<64x32xf32> to vector<64x32xbf16>
    %c0_6 = arith.constant 0 : index
    %c0_7 = arith.constant 0 : index
    %12 = vector.load %arg2[%c0_6, %c0_7] : memref<32x32xbf16, #tpu.memory_space<vmem>>, vector<32x32xbf16>
    %cst_8 = arith.constant dense<0.000000e+00> : vector<64x32xf32>
    %13 = tpu.matmul %11, %12, %cst_8 {dimension_numbers = #tpu.dot_dimension_numbers<[1], [0], [0], [1], [0, 0, 1, 1], [], []>} : vector<64x32xbf16>, vector<32x32xbf16>, vector<64x32xf32> -> vector<64x32xf32>
    %c0_9 = arith.constant 0 : index
    %c0_10 = arith.constant 0 : index
    %14 = vector.load %arg5[%c0_9, %c0_10] : memref<1x32xf32, #tpu.memory_space<vmem>>, vector<1x32xf32>
    %15 = vector.broadcast %14 : vector<1x32xf32> to vector<64x32xf32>
    %16 = arith.mulf %13, %15 : vector<64x32xf32>
    %c0_11 = arith.constant 0 : index
    %c0_12 = arith.constant 0 : index
    %17 = vector.load %arg6[%c0_11, %c0_12] : memref<1x32xf32, #tpu.memory_space<vmem>>, vector<1x32xf32>
    %18 = vector.broadcast %17 : vector<1x32xf32> to vector<64x32xf32>
    %19 = arith.addf %16, %18 : vector<64x32xf32>
    %cst_13 = arith.constant 0.000000e+00 : f32
    %20 = vector.broadcast %cst_13 : f32 to vector<64x32xf32>
    %21 = arith.maximumf %19, %20 : vector<64x32xf32>
    %22 = arith.truncf %21 : vector<64x32xf32> to vector<64x32xbf16>
    %cst_14 = arith.constant 0.000000e+00 : bf16
    %23 = vector.broadcast %cst_14 : bf16 to vector<16x32xbf16>
    %c0_15 = arith.constant 0 : index
    %c0_16 = arith.constant 0 : index
    %24 = vector.load %arg9[%c0_15, %c0_16] : memref<96x32xbf16, #tpu.memory_space<vmem>>, vector<16x32xbf16>
    tpu.vector_store %arg9[%c0_15, %c0_16], %23 {strides = array<i32>} : memref<96x32xbf16, #tpu.memory_space<vmem>>, vector<16x32xbf16>,
    %cst_17 = arith.constant 0.000000e+00 : bf16
    %25 = vector.broadcast %cst_17 : bf16 to vector<16x32xbf16>
    %c80 = arith.constant 80 : index
    %c0_18 = arith.constant 0 : index
    %26 = vector.load %arg9[%c80, %c0_18] : memref<96x32xbf16, #tpu.memory_space<vmem>>, vector<16x32xbf16>
    tpu.vector_store %arg9[%c80, %c0_18], %25 {strides = array<i32>} : memref<96x32xbf16, #tpu.memory_space<vmem>>, vector<16x32xbf16>,
    %c16 = arith.constant 16 : index
    %c0_19 = arith.constant 0 : index
    %27 = vector.load %arg9[%c16, %c0_19] : memref<96x32xbf16, #tpu.memory_space<vmem>>, vector<64x32xbf16>
    tpu.vector_store %arg9[%c16, %c0_19], %22 {strides = array<i32>} : memref<96x32xbf16, #tpu.memory_space<vmem>>, vector<64x32xbf16>,
    %28 = tpu.iota {dimensions = array<i32: 0>} : vector<64x1xi32>
    %c8_i32 = arith.constant 8 : i32
    %c0_i32 = arith.constant 0 : i32
    %29 = arith.cmpi eq, %c8_i32, %c0_i32 : i32
    %c1_i32 = arith.constant 1 : i32
    %30 = arith.select %29, %c1_i32, %c8_i32 : i32
    %31 = vector.broadcast %30 : i32 to vector<64x1xi32>
    %32 = arith.remsi %28, %31 : vector<64x1xi32>
    %c0_i32_20 = arith.constant 0 : i32
    %33 = vector.broadcast %c0_i32_20 : i32 to vector<64x1xi32>
    %34 = arith.cmpi ne, %32, %33 : vector<64x1xi32>
    %c0_i32_21 = arith.constant 0 : i32
    %35 = vector.broadcast %c0_i32_21 : i32 to vector<64x1xi32>
    %36 = arith.cmpi slt, %32, %35 : vector<64x1xi32>
    %c0_i32_22 = arith.constant 0 : i32
    %37 = arith.cmpi slt, %30, %c0_i32_22 : i32
    %38 = vector.broadcast %37 : i1 to vector<64x1xi1>
    %39 = vector.broadcast %38 : vector<64x1xi1> to vector<64x1xi1>
    %40 = arith.xori %36, %39 : vector<64x1xi1>
    %41 = arith.andi %40, %34 : vector<64x1xi1>
    %42 = vector.broadcast %30 : i32 to vector<64x1xi32>
    %43 = arith.addi %32, %42 : vector<64x1xi32>
    %44 = arith.select %41, %43, %32 : vector<64x1xi1>, vector<64x1xi32>
    %c1_i32_23 = arith.constant 1 : i32
    %45 = vector.broadcast %c1_i32_23 : i32 to vector<64x1xi32>
    %46 = arith.cmpi sge, %44, %45 : vector<64x1xi32>
    %c6_i32 = arith.constant 6 : i32
    %47 = vector.broadcast %c6_i32 : i32 to vector<64x1xi32>
    %48 = arith.cmpi sle, %44, %47 : vector<64x1xi32>
    %c7 = arith.constant 7 : index
    %c0_24 = arith.constant 0 : index
    %49 = vector.load %arg9[%c7, %c0_24] : memref<96x32xbf16, #tpu.memory_space<vmem>>, vector<64x32xbf16>
    %cst_25 = arith.constant 0.000000e+00 : bf16
    %50 = vector.broadcast %cst_25 : bf16 to vector<64x32xbf16>
    %51 = vector.shape_cast %46 : vector<64x1xi1> to vector<64x1xi1>
    %52 = vector.broadcast %51 : vector<64x1xi1> to vector<64x32xi1>
    %53 = arith.select %52, %49, %50 : vector<64x32xi1>, vector<64x32xbf16>
    %c8 = arith.constant 8 : index
    %c0_26 = arith.constant 0 : index
    %54 = vector.load %arg9[%c8, %c0_26] : memref<96x32xbf16, #tpu.memory_space<vmem>>, vector<64x32xbf16>
    %c9 = arith.constant 9 : index
    %c0_27 = arith.constant 0 : index
    %55 = vector.load %arg9[%c9, %c0_27] : memref<96x32xbf16, #tpu.memory_space<vmem>>, vector<64x32xbf16>
    %cst_28 = arith.constant 0.000000e+00 : bf16
    %56 = vector.broadcast %cst_28 : bf16 to vector<64x32xbf16>
    %57 = vector.shape_cast %48 : vector<64x1xi1> to vector<64x1xi1>
    %58 = vector.broadcast %57 : vector<64x1xi1> to vector<64x32xi1>
    %59 = arith.select %58, %55, %56 : vector<64x32xi1>, vector<64x32xbf16>
    %c15 = arith.constant 15 : index
    %c0_29 = arith.constant 0 : index
    %60 = vector.load %arg9[%c15, %c0_29] : memref<96x32xbf16, #tpu.memory_space<vmem>>, vector<64x32xbf16>
    %cst_30 = arith.constant 0.000000e+00 : bf16
    %61 = vector.broadcast %cst_30 : bf16 to vector<64x32xbf16>
    %62 = vector.shape_cast %46 : vector<64x1xi1> to vector<64x1xi1>
    %63 = vector.broadcast %62 : vector<64x1xi1> to vector<64x32xi1>
    %64 = arith.select %63, %60, %61 : vector<64x32xi1>, vector<64x32xbf16>
    %c16_31 = arith.constant 16 : index
    %c0_32 = arith.constant 0 : index
    %65 = vector.load %arg9[%c16_31, %c0_32] : memref<96x32xbf16, #tpu.memory_space<vmem>>, vector<64x32xbf16>
    %c17 = arith.constant 17 : index
    %c0_33 = arith.constant 0 : index
    %66 = vector.load %arg9[%c17, %c0_33] : memref<96x32xbf16, #tpu.memory_space<vmem>>, vector<64x32xbf16>
    %cst_34 = arith.constant 0.000000e+00 : bf16
    %67 = vector.broadcast %cst_34 : bf16 to vector<64x32xbf16>
    %68 = vector.shape_cast %48 : vector<64x1xi1> to vector<64x1xi1>
    %69 = vector.broadcast %68 : vector<64x1xi1> to vector<64x32xi1>
    %70 = arith.select %69, %66, %67 : vector<64x32xi1>, vector<64x32xbf16>
    %c23 = arith.constant 23 : index
    %c0_35 = arith.constant 0 : index
    %71 = vector.load %arg9[%c23, %c0_35] : memref<96x32xbf16, #tpu.memory_space<vmem>>, vector<64x32xbf16>
    %cst_36 = arith.constant 0.000000e+00 : bf16
    %72 = vector.broadcast %cst_36 : bf16 to vector<64x32xbf16>
    %73 = vector.shape_cast %46 : vector<64x1xi1> to vector<64x1xi1>
    %74 = vector.broadcast %73 : vector<64x1xi1> to vector<64x32xi1>
    %75 = arith.select %74, %71, %72 : vector<64x32xi1>, vector<64x32xbf16>
    %c24 = arith.constant 24 : index
    %c0_37 = arith.constant 0 : index
    %76 = vector.load %arg9[%c24, %c0_37] : memref<96x32xbf16, #tpu.memory_space<vmem>>, vector<64x32xbf16>
    %c25 = arith.constant 25 : index
    %c0_38 = arith.constant 0 : index
    %77 = vector.load %arg9[%c25, %c0_38] : memref<96x32xbf16, #tpu.memory_space<vmem>>, vector<64x32xbf16>
    %cst_39 = arith.constant 0.000000e+00 : bf16
    %78 = vector.broadcast %cst_39 : bf16 to vector<64x32xbf16>
    %79 = vector.shape_cast %48 : vector<64x1xi1> to vector<64x1xi1>
    %80 = vector.broadcast %79 : vector<64x1xi1> to vector<64x32xi1>
    %81 = arith.select %80, %77, %78 : vector<64x32xi1>, vector<64x32xbf16>
    %82 = tpu.concatenate %53, %54, %59, %64, %65, %70, %75, %76, %81 in 1 : vector<64x32xbf16>, vector<64x32xbf16>, vector<64x32xbf16>, vector<64x32xbf16>, vector<64x32xbf16>, vector<64x32xbf16>, vector<64x32xbf16>, vector<64x32xbf16>, vector<64x32xbf16> -> vector<64x288xbf16>
    %c0_40 = arith.constant 0 : index
    %c0_41 = arith.constant 0 : index
    %83 = vector.load %arg7[%c0_40, %c0_41] : memref<288x8xbf16, #tpu.memory_space<vmem>>, vector<288x8xbf16>
    %cst_42 = arith.constant dense<0.000000e+00> : vector<64x8xf32>
    %84 = tpu.matmul %82, %83, %cst_42 {dimension_numbers = #tpu.dot_dimension_numbers<[1], [0], [0], [1], [0, 0, 1, 1], [], []>} : vector<64x288xbf16>, vector<288x8xbf16>, vector<64x8xf32> -> vector<64x8xf32>
    %85 = vector.extract_strided_slice %1 {offsets = [0, 0], sizes = [64, 16], strides = [1, 1]} : vector<64x32xbf16> to vector<64x16xbf16>
    %86 = arith.truncf %84 : vector<64x8xf32> to vector<64x8xbf16>
    %cst_43 = arith.constant 0.000000e+00 : bf16
    %87 = vector.broadcast %cst_43 : bf16 to vector<64x8xbf16>
    %88 = tpu.concatenate %85, %86, %87 in 1 : vector<64x16xbf16>, vector<64x8xbf16>, vector<64x8xbf16> -> vector<64x32xbf16>
    %c0_44 = arith.constant 0 : index
    %c0_45 = arith.constant 0 : index
    %c0_46 = arith.constant 0 : index
    %89 = vector.load %arg8[%c0_44, %c0_45, %c0_46] : memref<1x64x32xbf16, #tpu.memory_space<vmem>>, vector<1x64x32xbf16>
    %90 = vector.shape_cast %89 : vector<1x64x32xbf16> to vector<64x32xbf16>
    %91 = vector.shape_cast %88 : vector<64x32xbf16> to vector<1x64x32xbf16>
    tpu.vector_store %arg8[%c0_44, %c0_45, %c0_46], %91 {strides = array<i32>} : memref<1x64x32xbf16, #tpu.memory_space<vmem>>, vector<1x64x32xbf16>,
    return
  }
  func.func @transform_0(%arg0: i32) -> (i32, i32, i32) {
    %c0_i32 = arith.constant 0 : i32
    %c0_i32_0 = arith.constant 0 : i32
    %c0_i32_1 = arith.constant 0 : i32
    return %arg0, %c0_i32, %c0_i32_0 : i32, i32, i32
  }
  func.func @transform_1(%arg0: i32) -> (i32, i32) {
    %c0_i32 = arith.constant 0 : i32
    %c0_i32_0 = arith.constant 0 : i32
    %c0_i32_1 = arith.constant 0 : i32
    return %c0_i32, %c0_i32_0 : i32, i32
  }
  func.func @transform_2(%arg0: i32) -> (i32, i32) {
    %c0_i32 = arith.constant 0 : i32
    %c0_i32_0 = arith.constant 0 : i32
    %c0_i32_1 = arith.constant 0 : i32
    return %c0_i32, %c0_i32_0 : i32, i32
  }
  func.func @transform_3(%arg0: i32) -> (i32, i32) {
    %c0_i32 = arith.constant 0 : i32
    %c0_i32_0 = arith.constant 0 : i32
    %c0_i32_1 = arith.constant 0 : i32
    return %c0_i32, %c0_i32_0 : i32, i32
  }
  func.func @transform_4(%arg0: i32) -> (i32, i32) {
    %c0_i32 = arith.constant 0 : i32
    %c0_i32_0 = arith.constant 0 : i32
    %c0_i32_1 = arith.constant 0 : i32
    return %c0_i32, %c0_i32_0 : i32, i32
  }
  func.func @transform_5(%arg0: i32) -> (i32, i32) {
    %c0_i32 = arith.constant 0 : i32
    %c0_i32_0 = arith.constant 0 : i32
    %c0_i32_1 = arith.constant 0 : i32
    return %c0_i32, %c0_i32_0 : i32, i32
  }
  func.func @transform_6(%arg0: i32) -> (i32, i32) {
    %c0_i32 = arith.constant 0 : i32
    %c0_i32_0 = arith.constant 0 : i32
    %c0_i32_1 = arith.constant 0 : i32
    return %c0_i32, %c0_i32_0 : i32, i32
  }
  func.func @transform_7(%arg0: i32) -> (i32, i32, i32) {
    %c0_i32 = arith.constant 0 : i32
    %c0_i32_0 = arith.constant 0 : i32
    %c0_i32_1 = arith.constant 0 : i32
    return %arg0, %c0_i32, %c0_i32_0 : i32, i32, i32
  }
}

module attributes {stable_mosaic.version = 11 : i64} {
  func.func @kernel(%arg0: i32, %arg1: memref<1x64x32xbf16, #tpu.memory_space<vmem>>, %arg2: memref<32x32xbf16, #tpu.memory_space<vmem>>, %arg3: memref<1x32xf32, #tpu.memory_space<vmem>>, %arg4: memref<1x32xf32, #tpu.memory_space<vmem>>, %arg5: memref<1x32xf32, #tpu.memory_space<vmem>>, %arg6: memref<1x32xf32, #tpu.memory_space<vmem>>, %arg7: memref<288x8xbf16, #tpu.memory_space<vmem>>, %arg8: memref<1x64x32xbf16, #tpu.memory_space<vmem>>, %arg9: memref<96x32xbf16, #tpu.memory_space<vmem>>) attributes {dimension_semantics = [#tpu.dimension_semantics<parallel>], iteration_bounds = array<i64: 2>, scalar_prefetch = 0 : i64, scratch_operands = 1 : i64, tpu.core_type = #tpu.core_type<tc>, window_params = [{transform_indices = @transform_0, window_bounds = array<i64: 1, 64, 32>}, {pipeline_mode = #tpu.pipeline_mode<synchronous>, transform_indices = @transform_1, window_bounds = array<i64: 32, 32>}, {pipeline_mode = #tpu.pipeline_mode<synchronous>, transform_indices = @transform_2, window_bounds = array<i64: 1, 32>}, {pipeline_mode = #tpu.pipeline_mode<synchronous>, transform_indices = @transform_3, window_bounds = array<i64: 1, 32>}, {pipeline_mode = #tpu.pipeline_mode<synchronous>, transform_indices = @transform_4, window_bounds = array<i64: 1, 32>}, {pipeline_mode = #tpu.pipeline_mode<synchronous>, transform_indices = @transform_5, window_bounds = array<i64: 1, 32>}, {pipeline_mode = #tpu.pipeline_mode<synchronous>, transform_indices = @transform_6, window_bounds = array<i64: 288, 8>}, {transform_indices = @transform_7, window_bounds = array<i64: 1, 64, 32>}]} {
    %c0 = arith.constant 0 : index
    %c0_0 = arith.constant 0 : index
    %c0_1 = arith.constant 0 : index
    %0 = vector.load %arg1[%c0, %c0_0, %c0_1] : memref<1x64x32xbf16, #tpu.memory_space<vmem>>, vector<1x64x32xbf16>
    %1 = vector.shape_cast %0 : vector<1x64x32xbf16> to vector<64x32xbf16>
    %2 = arith.extf %1 : vector<64x32xbf16> to vector<64x32xf32>
    %c0_2 = arith.constant 0 : index
    %c0_3 = arith.constant 0 : index
    %3 = vector.load %arg3[%c0_2, %c0_3] : memref<1x32xf32, #tpu.memory_space<vmem>>, vector<1x32xf32>
    %4 = vector.broadcast %3 : vector<1x32xf32> to vector<64x32xf32>
    %5 = arith.mulf %2, %4 : vector<64x32xf32>
    %c0_4 = arith.constant 0 : index
    %c0_5 = arith.constant 0 : index
    %6 = vector.load %arg4[%c0_4, %c0_5] : memref<1x32xf32, #tpu.memory_space<vmem>>, vector<1x32xf32>
    %7 = vector.broadcast %6 : vector<1x32xf32> to vector<64x32xf32>
    %8 = arith.addf %5, %7 : vector<64x32xf32>
    %cst = arith.constant 0.000000e+00 : f32
    %9 = vector.broadcast %cst : f32 to vector<64x32xf32>
    %10 = arith.maximumf %8, %9 : vector<64x32xf32>
    %11 = arith.truncf %10 : vector<64x32xf32> to vector<64x32xbf16>
    %c0_6 = arith.constant 0 : index
    %c0_7 = arith.constant 0 : index
    %12 = vector.load %arg2[%c0_6, %c0_7] : memref<32x32xbf16, #tpu.memory_space<vmem>>, vector<32x32xbf16>
    %cst_8 = arith.constant dense<0.000000e+00> : vector<64x32xf32>
    %13 = tpu.matmul %11, %12, %cst_8 {dimension_numbers = #tpu.dot_dimension_numbers<[1], [0], [0], [1], [0, 0, 1, 1], [], []>} : vector<64x32xbf16>, vector<32x32xbf16>, vector<64x32xf32> -> vector<64x32xf32>
    %c0_9 = arith.constant 0 : index
    %c0_10 = arith.constant 0 : index
    %14 = vector.load %arg5[%c0_9, %c0_10] : memref<1x32xf32, #tpu.memory_space<vmem>>, vector<1x32xf32>
    %15 = vector.broadcast %14 : vector<1x32xf32> to vector<64x32xf32>
    %16 = arith.mulf %13, %15 : vector<64x32xf32>
    %c0_11 = arith.constant 0 : index
    %c0_12 = arith.constant 0 : index
    %17 = vector.load %arg6[%c0_11, %c0_12] : memref<1x32xf32, #tpu.memory_space<vmem>>, vector<1x32xf32>
    %18 = vector.broadcast %17 : vector<1x32xf32> to vector<64x32xf32>
    %19 = arith.addf %16, %18 : vector<64x32xf32>
    %cst_13 = arith.constant 0.000000e+00 : f32
    %20 = vector.broadcast %cst_13 : f32 to vector<64x32xf32>
    %21 = arith.maximumf %19, %20 : vector<64x32xf32>
    %22 = arith.truncf %21 : vector<64x32xf32> to vector<64x32xbf16>
    %cst_14 = arith.constant 0.000000e+00 : bf16
    %23 = vector.broadcast %cst_14 : bf16 to vector<16x32xbf16>
    %c0_15 = arith.constant 0 : index
    %c0_16 = arith.constant 0 : index
    %24 = vector.load %arg9[%c0_15, %c0_16] : memref<96x32xbf16, #tpu.memory_space<vmem>>, vector<16x32xbf16>
    tpu.vector_store %arg9[%c0_15, %c0_16], %23 {strides = array<i32>} : memref<96x32xbf16, #tpu.memory_space<vmem>>, vector<16x32xbf16>,
    %cst_17 = arith.constant 0.000000e+00 : bf16
    %25 = vector.broadcast %cst_17 : bf16 to vector<16x32xbf16>
    %c80 = arith.constant 80 : index
    %c0_18 = arith.constant 0 : index
    %26 = vector.load %arg9[%c80, %c0_18] : memref<96x32xbf16, #tpu.memory_space<vmem>>, vector<16x32xbf16>
    tpu.vector_store %arg9[%c80, %c0_18], %25 {strides = array<i32>} : memref<96x32xbf16, #tpu.memory_space<vmem>>, vector<16x32xbf16>,
    %c16 = arith.constant 16 : index
    %c0_19 = arith.constant 0 : index
    %27 = vector.load %arg9[%c16, %c0_19] : memref<96x32xbf16, #tpu.memory_space<vmem>>, vector<64x32xbf16>
    tpu.vector_store %arg9[%c16, %c0_19], %22 {strides = array<i32>} : memref<96x32xbf16, #tpu.memory_space<vmem>>, vector<64x32xbf16>,
    %28 = tpu.iota {dimensions = array<i32: 0>} : vector<64x1xi32>
    %c8_i32 = arith.constant 8 : i32
    %c0_i32 = arith.constant 0 : i32
    %29 = arith.cmpi eq, %c8_i32, %c0_i32 : i32
    %c1_i32 = arith.constant 1 : i32
    %30 = arith.select %29, %c1_i32, %c8_i32 : i32
    %31 = vector.broadcast %30 : i32 to vector<64x1xi32>
    %32 = arith.remsi %28, %31 : vector<64x1xi32>
    %c0_i32_20 = arith.constant 0 : i32
    %33 = vector.broadcast %c0_i32_20 : i32 to vector<64x1xi32>
    %34 = arith.cmpi ne, %32, %33 : vector<64x1xi32>
    %c0_i32_21 = arith.constant 0 : i32
    %35 = vector.broadcast %c0_i32_21 : i32 to vector<64x1xi32>
    %36 = arith.cmpi slt, %32, %35 : vector<64x1xi32>
    %c0_i32_22 = arith.constant 0 : i32
    %37 = arith.cmpi slt, %30, %c0_i32_22 : i32
    %38 = vector.broadcast %37 : i1 to vector<64x1xi1>
    %39 = vector.broadcast %38 : vector<64x1xi1> to vector<64x1xi1>
    %40 = arith.xori %36, %39 : vector<64x1xi1>
    %41 = arith.andi %40, %34 : vector<64x1xi1>
    %42 = vector.broadcast %30 : i32 to vector<64x1xi32>
    %43 = arith.addi %32, %42 : vector<64x1xi32>
    %44 = arith.select %41, %43, %32 : vector<64x1xi1>, vector<64x1xi32>
    %c1_i32_23 = arith.constant 1 : i32
    %45 = vector.broadcast %c1_i32_23 : i32 to vector<64x1xi32>
    %46 = arith.cmpi sge, %44, %45 : vector<64x1xi32>
    %c6_i32 = arith.constant 6 : i32
    %47 = vector.broadcast %c6_i32 : i32 to vector<64x1xi32>
    %48 = arith.cmpi sle, %44, %47 : vector<64x1xi32>
    %c7 = arith.constant 7 : index
    %c0_24 = arith.constant 0 : index
    %49 = vector.load %arg9[%c7, %c0_24] : memref<96x32xbf16, #tpu.memory_space<vmem>>, vector<64x32xbf16>
    %cst_25 = arith.constant 0.000000e+00 : bf16
    %50 = vector.broadcast %cst_25 : bf16 to vector<64x32xbf16>
    %51 = vector.shape_cast %46 : vector<64x1xi1> to vector<64x1xi1>
    %52 = vector.broadcast %51 : vector<64x1xi1> to vector<64x32xi1>
    %53 = arith.select %52, %49, %50 : vector<64x32xi1>, vector<64x32xbf16>
    %c8 = arith.constant 8 : index
    %c0_26 = arith.constant 0 : index
    %54 = vector.load %arg9[%c8, %c0_26] : memref<96x32xbf16, #tpu.memory_space<vmem>>, vector<64x32xbf16>
    %c9 = arith.constant 9 : index
    %c0_27 = arith.constant 0 : index
    %55 = vector.load %arg9[%c9, %c0_27] : memref<96x32xbf16, #tpu.memory_space<vmem>>, vector<64x32xbf16>
    %cst_28 = arith.constant 0.000000e+00 : bf16
    %56 = vector.broadcast %cst_28 : bf16 to vector<64x32xbf16>
    %57 = vector.shape_cast %48 : vector<64x1xi1> to vector<64x1xi1>
    %58 = vector.broadcast %57 : vector<64x1xi1> to vector<64x32xi1>
    %59 = arith.select %58, %55, %56 : vector<64x32xi1>, vector<64x32xbf16>
    %c15 = arith.constant 15 : index
    %c0_29 = arith.constant 0 : index
    %60 = vector.load %arg9[%c15, %c0_29] : memref<96x32xbf16, #tpu.memory_space<vmem>>, vector<64x32xbf16>
    %cst_30 = arith.constant 0.000000e+00 : bf16
    %61 = vector.broadcast %cst_30 : bf16 to vector<64x32xbf16>
    %62 = vector.shape_cast %46 : vector<64x1xi1> to vector<64x1xi1>
    %63 = vector.broadcast %62 : vector<64x1xi1> to vector<64x32xi1>
    %64 = arith.select %63, %60, %61 : vector<64x32xi1>, vector<64x32xbf16>
    %c16_31 = arith.constant 16 : index
    %c0_32 = arith.constant 0 : index
    %65 = vector.load %arg9[%c16_31, %c0_32] : memref<96x32xbf16, #tpu.memory_space<vmem>>, vector<64x32xbf16>
    %c17 = arith.constant 17 : index
    %c0_33 = arith.constant 0 : index
    %66 = vector.load %arg9[%c17, %c0_33] : memref<96x32xbf16, #tpu.memory_space<vmem>>, vector<64x32xbf16>
    %cst_34 = arith.constant 0.000000e+00 : bf16
    %67 = vector.broadcast %cst_34 : bf16 to vector<64x32xbf16>
    %68 = vector.shape_cast %48 : vector<64x1xi1> to vector<64x1xi1>
    %69 = vector.broadcast %68 : vector<64x1xi1> to vector<64x32xi1>
    %70 = arith.select %69, %66, %67 : vector<64x32xi1>, vector<64x32xbf16>
    %c23 = arith.constant 23 : index
    %c0_35 = arith.constant 0 : index
    %71 = vector.load %arg9[%c23, %c0_35] : memref<96x32xbf16, #tpu.memory_space<vmem>>, vector<64x32xbf16>
    %cst_36 = arith.constant 0.000000e+00 : bf16
    %72 = vector.broadcast %cst_36 : bf16 to vector<64x32xbf16>
    %73 = vector.shape_cast %46 : vector<64x1xi1> to vector<64x1xi1>
    %74 = vector.broadcast %73 : vector<64x1xi1> to vector<64x32xi1>
    %75 = arith.select %74, %71, %72 : vector<64x32xi1>, vector<64x32xbf16>
    %c24 = arith.constant 24 : index
    %c0_37 = arith.constant 0 : index
    %76 = vector.load %arg9[%c24, %c0_37] : memref<96x32xbf16, #tpu.memory_space<vmem>>, vector<64x32xbf16>
    %c25 = arith.constant 25 : index
    %c0_38 = arith.constant 0 : index
    %77 = vector.load %arg9[%c25, %c0_38] : memref<96x32xbf16, #tpu.memory_space<vmem>>, vector<64x32xbf16>
    %cst_39 = arith.constant 0.000000e+00 : bf16
    %78 = vector.broadcast %cst_39 : bf16 to vector<64x32xbf16>
    %79 = vector.shape_cast %48 : vector<64x1xi1> to vector<64x1xi1>
    %80 = vector.broadcast %79 : vector<64x1xi1> to vector<64x32xi1>
    %81 = arith.select %80, %77, %78 : vector<64x32xi1>, vector<64x32xbf16>
    %82 = tpu.concatenate %53, %54, %59, %64, %65, %70, %75, %76, %81 in 1 : vector<64x32xbf16>, vector<64x32xbf16>, vector<64x32xbf16>, vector<64x32xbf16>, vector<64x32xbf16>, vector<64x32xbf16>, vector<64x32xbf16>, vector<64x32xbf16>, vector<64x32xbf16> -> vector<64x288xbf16>
    %c0_40 = arith.constant 0 : index
    %c0_41 = arith.constant 0 : index
    %83 = vector.load %arg7[%c0_40, %c0_41] : memref<288x8xbf16, #tpu.memory_space<vmem>>, vector<288x8xbf16>
    %cst_42 = arith.constant dense<0.000000e+00> : vector<64x8xf32>
    %84 = tpu.matmul %82, %83, %cst_42 {dimension_numbers = #tpu.dot_dimension_numbers<[1], [0], [0], [1], [0, 0, 1, 1], [], []>} : vector<64x288xbf16>, vector<288x8xbf16>, vector<64x8xf32> -> vector<64x8xf32>
    %85 = vector.extract_strided_slice %1 {offsets = [0, 0], sizes = [64, 24], strides = [1, 1]} : vector<64x32xbf16> to vector<64x24xbf16>
    %86 = arith.truncf %84 : vector<64x8xf32> to vector<64x8xbf16>
    %87 = tpu.concatenate %85, %86 in 1 : vector<64x24xbf16>, vector<64x8xbf16> -> vector<64x32xbf16>
    %c0_43 = arith.constant 0 : index
    %c0_44 = arith.constant 0 : index
    %c0_45 = arith.constant 0 : index
    %88 = vector.load %arg8[%c0_43, %c0_44, %c0_45] : memref<1x64x32xbf16, #tpu.memory_space<vmem>>, vector<1x64x32xbf16>
    %89 = vector.shape_cast %88 : vector<1x64x32xbf16> to vector<64x32xbf16>
    %90 = vector.shape_cast %87 : vector<64x32xbf16> to vector<1x64x32xbf16>
    tpu.vector_store %arg8[%c0_43, %c0_44, %c0_45], %90 {strides = array<i32>} : memref<1x64x32xbf16, #tpu.memory_space<vmem>>, vector<1x64x32xbf16>,
    return
  }
  func.func @transform_0(%arg0: i32) -> (i32, i32, i32) {
    %c0_i32 = arith.constant 0 : i32
    %c0_i32_0 = arith.constant 0 : i32
    %c0_i32_1 = arith.constant 0 : i32
    return %arg0, %c0_i32, %c0_i32_0 : i32, i32, i32
  }
  func.func @transform_1(%arg0: i32) -> (i32, i32) {
    %c0_i32 = arith.constant 0 : i32
    %c0_i32_0 = arith.constant 0 : i32
    %c0_i32_1 = arith.constant 0 : i32
    return %c0_i32, %c0_i32_0 : i32, i32
  }
  func.func @transform_2(%arg0: i32) -> (i32, i32) {
    %c0_i32 = arith.constant 0 : i32
    %c0_i32_0 = arith.constant 0 : i32
    %c0_i32_1 = arith.constant 0 : i32
    return %c0_i32, %c0_i32_0 : i32, i32
  }
  func.func @transform_3(%arg0: i32) -> (i32, i32) {
    %c0_i32 = arith.constant 0 : i32
    %c0_i32_0 = arith.constant 0 : i32
    %c0_i32_1 = arith.constant 0 : i32
    return %c0_i32, %c0_i32_0 : i32, i32
  }
  func.func @transform_4(%arg0: i32) -> (i32, i32) {
    %c0_i32 = arith.constant 0 : i32
    %c0_i32_0 = arith.constant 0 : i32
    %c0_i32_1 = arith.constant 0 : i32
    return %c0_i32, %c0_i32_0 : i32, i32
  }
  func.func @transform_5(%arg0: i32) -> (i32, i32) {
    %c0_i32 = arith.constant 0 : i32
    %c0_i32_0 = arith.constant 0 : i32
    %c0_i32_1 = arith.constant 0 : i32
    return %c0_i32, %c0_i32_0 : i32, i32
  }
  func.func @transform_6(%arg0: i32) -> (i32, i32) {
    %c0_i32 = arith.constant 0 : i32
    %c0_i32_0 = arith.constant 0 : i32
    %c0_i32_1 = arith.constant 0 : i32
    return %c0_i32, %c0_i32_0 : i32, i32
  }
  func.func @transform_7(%arg0: i32) -> (i32, i32, i32) {
    %c0_i32 = arith.constant 0 : i32
    %c0_i32_0 = arith.constant 0 : i32
    %c0_i32_1 = arith.constant 0 : i32
    return %arg0, %c0_i32, %c0_i32_0 : i32, i32, i32
  }
}

module attributes {stable_mosaic.version = 11 : i64} {
  func.func @kernel(%arg0: i32, %arg1: memref<1x64x32xbf16, #tpu.memory_space<vmem>>, %arg2: memref<1x32xf32, #tpu.memory_space<vmem>>, %arg3: memref<1x32xf32, #tpu.memory_space<vmem>>, %arg4: memref<16x64xbf16, #tpu.memory_space<vmem>>, %arg5: memref<32x16xbf16, #tpu.memory_space<vmem>>, %arg6: memref<1x16x32xbf16, #tpu.memory_space<vmem>>) attributes {dimension_semantics = [#tpu.dimension_semantics<parallel>], iteration_bounds = array<i64: 2>, scalar_prefetch = 0 : i64, scratch_operands = 0 : i64, tpu.core_type = #tpu.core_type<tc>, window_params = [{transform_indices = @transform_0, window_bounds = array<i64: 1, 64, 32>}, {pipeline_mode = #tpu.pipeline_mode<synchronous>, transform_indices = @transform_1, window_bounds = array<i64: 1, 32>}, {pipeline_mode = #tpu.pipeline_mode<synchronous>, transform_indices = @transform_2, window_bounds = array<i64: 1, 32>}, {pipeline_mode = #tpu.pipeline_mode<synchronous>, transform_indices = @transform_3, window_bounds = array<i64: 16, 64>}, {pipeline_mode = #tpu.pipeline_mode<synchronous>, transform_indices = @transform_4, window_bounds = array<i64: 32, 16>}, {transform_indices = @transform_5, window_bounds = array<i64: 1, 16, 32>}]} {
    %c0 = arith.constant 0 : index
    %c0_0 = arith.constant 0 : index
    %c0_1 = arith.constant 0 : index
    %0 = vector.load %arg1[%c0, %c0_0, %c0_1] : memref<1x64x32xbf16, #tpu.memory_space<vmem>>, vector<1x64x32xbf16>
    %1 = vector.shape_cast %0 : vector<1x64x32xbf16> to vector<64x32xbf16>
    %2 = arith.extf %1 : vector<64x32xbf16> to vector<64x32xf32>
    %c0_2 = arith.constant 0 : index
    %c0_3 = arith.constant 0 : index
    %3 = vector.load %arg2[%c0_2, %c0_3] : memref<1x32xf32, #tpu.memory_space<vmem>>, vector<1x32xf32>
    %4 = vector.broadcast %3 : vector<1x32xf32> to vector<64x32xf32>
    %5 = arith.mulf %2, %4 : vector<64x32xf32>
    %c0_4 = arith.constant 0 : index
    %c0_5 = arith.constant 0 : index
    %6 = vector.load %arg3[%c0_4, %c0_5] : memref<1x32xf32, #tpu.memory_space<vmem>>, vector<1x32xf32>
    %7 = vector.broadcast %6 : vector<1x32xf32> to vector<64x32xf32>
    %8 = arith.addf %5, %7 : vector<64x32xf32>
    %cst = arith.constant 0.000000e+00 : f32
    %9 = vector.broadcast %cst : f32 to vector<64x32xf32>
    %10 = arith.maximumf %8, %9 : vector<64x32xf32>
    %c0_6 = arith.constant 0 : index
    %c0_7 = arith.constant 0 : index
    %11 = vector.load %arg4[%c0_6, %c0_7] : memref<16x64xbf16, #tpu.memory_space<vmem>>, vector<16x64xbf16>
    %12 = arith.truncf %10 : vector<64x32xf32> to vector<64x32xbf16>
    %cst_8 = arith.constant dense<0.000000e+00> : vector<16x32xf32>
    %13 = tpu.matmul %11, %12, %cst_8 {dimension_numbers = #tpu.dot_dimension_numbers<[1], [0], [0], [1], [0, 0, 1, 1], [], []>} : vector<16x64xbf16>, vector<64x32xbf16>, vector<16x32xf32> -> vector<16x32xf32>
    %14 = arith.truncf %13 : vector<16x32xf32> to vector<16x32xbf16>
    %c0_9 = arith.constant 0 : index
    %c0_10 = arith.constant 0 : index
    %15 = vector.load %arg5[%c0_9, %c0_10] : memref<32x16xbf16, #tpu.memory_space<vmem>>, vector<32x16xbf16>
    %cst_11 = arith.constant dense<0.000000e+00> : vector<16x16xf32>
    %16 = tpu.matmul %14, %15, %cst_11 {dimension_numbers = #tpu.dot_dimension_numbers<[1], [0], [0], [1], [0, 0, 1, 1], [], []>} : vector<16x32xbf16>, vector<32x16xbf16>, vector<16x16xf32> -> vector<16x16xf32>
    %cst_12 = arith.constant 0.000000e+00 : f32
    %17 = vector.broadcast %cst_12 : f32 to vector<16x16xf32>
    %18 = tpu.concatenate %16, %17 in 1 : vector<16x16xf32>, vector<16x16xf32> -> vector<16x32xf32>
    %19 = arith.truncf %18 : vector<16x32xf32> to vector<16x32xbf16>
    %c0_13 = arith.constant 0 : index
    %c0_14 = arith.constant 0 : index
    %c0_15 = arith.constant 0 : index
    %20 = vector.load %arg6[%c0_13, %c0_14, %c0_15] : memref<1x16x32xbf16, #tpu.memory_space<vmem>>, vector<1x16x32xbf16>
    %21 = vector.shape_cast %20 : vector<1x16x32xbf16> to vector<16x32xbf16>
    %22 = vector.shape_cast %19 : vector<16x32xbf16> to vector<1x16x32xbf16>
    tpu.vector_store %arg6[%c0_13, %c0_14, %c0_15], %22 {strides = array<i32>} : memref<1x16x32xbf16, #tpu.memory_space<vmem>>, vector<1x16x32xbf16>,
    return
  }
  func.func @transform_0(%arg0: i32) -> (i32, i32, i32) {
    %c0_i32 = arith.constant 0 : i32
    %c0_i32_0 = arith.constant 0 : i32
    %c0_i32_1 = arith.constant 0 : i32
    return %arg0, %c0_i32, %c0_i32_0 : i32, i32, i32
  }
  func.func @transform_1(%arg0: i32) -> (i32, i32) {
    %c0_i32 = arith.constant 0 : i32
    %c0_i32_0 = arith.constant 0 : i32
    %c0_i32_1 = arith.constant 0 : i32
    return %c0_i32, %c0_i32_0 : i32, i32
  }
  func.func @transform_2(%arg0: i32) -> (i32, i32) {
    %c0_i32 = arith.constant 0 : i32
    %c0_i32_0 = arith.constant 0 : i32
    %c0_i32_1 = arith.constant 0 : i32
    return %c0_i32, %c0_i32_0 : i32, i32
  }
  func.func @transform_3(%arg0: i32) -> (i32, i32) {
    %c0_i32 = arith.constant 0 : i32
    %c0_i32_0 = arith.constant 0 : i32
    %c0_i32_1 = arith.constant 0 : i32
    return %c0_i32, %c0_i32_0 : i32, i32
  }
  func.func @transform_4(%arg0: i32) -> (i32, i32) {
    %c0_i32 = arith.constant 0 : i32
    %c0_i32_0 = arith.constant 0 : i32
    %c0_i32_1 = arith.constant 0 : i32
    return %c0_i32, %c0_i32_0 : i32, i32
  }
  func.func @transform_5(%arg0: i32) -> (i32, i32, i32) {
    %c0_i32 = arith.constant 0 : i32
    %c0_i32_0 = arith.constant 0 : i32
    %c0_i32_1 = arith.constant 0 : i32
    return %arg0, %c0_i32, %c0_i32_0 : i32, i32, i32
  }
}

module attributes {stable_mosaic.version = 11 : i64} {
  func.func @kernel(%arg0: i32, %arg1: memref<1x16x32xbf16, #tpu.memory_space<vmem>>, %arg2: memref<32x32xbf16, #tpu.memory_space<vmem>>, %arg3: memref<1x32xf32, #tpu.memory_space<vmem>>, %arg4: memref<1x32xf32, #tpu.memory_space<vmem>>, %arg5: memref<1x32xf32, #tpu.memory_space<vmem>>, %arg6: memref<1x32xf32, #tpu.memory_space<vmem>>, %arg7: memref<288x8xbf16, #tpu.memory_space<vmem>>, %arg8: memref<1x16x32xbf16, #tpu.memory_space<vmem>>, %arg9: memref<48x32xbf16, #tpu.memory_space<vmem>>) attributes {dimension_semantics = [#tpu.dimension_semantics<parallel>], iteration_bounds = array<i64: 2>, scalar_prefetch = 0 : i64, scratch_operands = 1 : i64, tpu.core_type = #tpu.core_type<tc>, window_params = [{transform_indices = @transform_0, window_bounds = array<i64: 1, 16, 32>}, {pipeline_mode = #tpu.pipeline_mode<synchronous>, transform_indices = @transform_1, window_bounds = array<i64: 32, 32>}, {pipeline_mode = #tpu.pipeline_mode<synchronous>, transform_indices = @transform_2, window_bounds = array<i64: 1, 32>}, {pipeline_mode = #tpu.pipeline_mode<synchronous>, transform_indices = @transform_3, window_bounds = array<i64: 1, 32>}, {pipeline_mode = #tpu.pipeline_mode<synchronous>, transform_indices = @transform_4, window_bounds = array<i64: 1, 32>}, {pipeline_mode = #tpu.pipeline_mode<synchronous>, transform_indices = @transform_5, window_bounds = array<i64: 1, 32>}, {pipeline_mode = #tpu.pipeline_mode<synchronous>, transform_indices = @transform_6, window_bounds = array<i64: 288, 8>}, {transform_indices = @transform_7, window_bounds = array<i64: 1, 16, 32>}]} {
    %c0 = arith.constant 0 : index
    %c0_0 = arith.constant 0 : index
    %c0_1 = arith.constant 0 : index
    %0 = vector.load %arg1[%c0, %c0_0, %c0_1] : memref<1x16x32xbf16, #tpu.memory_space<vmem>>, vector<1x16x32xbf16>
    %1 = vector.shape_cast %0 : vector<1x16x32xbf16> to vector<16x32xbf16>
    %2 = arith.extf %1 : vector<16x32xbf16> to vector<16x32xf32>
    %c0_2 = arith.constant 0 : index
    %c0_3 = arith.constant 0 : index
    %3 = vector.load %arg3[%c0_2, %c0_3] : memref<1x32xf32, #tpu.memory_space<vmem>>, vector<1x32xf32>
    %4 = vector.broadcast %3 : vector<1x32xf32> to vector<16x32xf32>
    %5 = arith.mulf %2, %4 : vector<16x32xf32>
    %c0_4 = arith.constant 0 : index
    %c0_5 = arith.constant 0 : index
    %6 = vector.load %arg4[%c0_4, %c0_5] : memref<1x32xf32, #tpu.memory_space<vmem>>, vector<1x32xf32>
    %7 = vector.broadcast %6 : vector<1x32xf32> to vector<16x32xf32>
    %8 = arith.addf %5, %7 : vector<16x32xf32>
    %cst = arith.constant 0.000000e+00 : f32
    %9 = vector.broadcast %cst : f32 to vector<16x32xf32>
    %10 = arith.maximumf %8, %9 : vector<16x32xf32>
    %11 = arith.truncf %10 : vector<16x32xf32> to vector<16x32xbf16>
    %c0_6 = arith.constant 0 : index
    %c0_7 = arith.constant 0 : index
    %12 = vector.load %arg2[%c0_6, %c0_7] : memref<32x32xbf16, #tpu.memory_space<vmem>>, vector<32x32xbf16>
    %cst_8 = arith.constant dense<0.000000e+00> : vector<16x32xf32>
    %13 = tpu.matmul %11, %12, %cst_8 {dimension_numbers = #tpu.dot_dimension_numbers<[1], [0], [0], [1], [0, 0, 1, 1], [], []>} : vector<16x32xbf16>, vector<32x32xbf16>, vector<16x32xf32> -> vector<16x32xf32>
    %c0_9 = arith.constant 0 : index
    %c0_10 = arith.constant 0 : index
    %14 = vector.load %arg5[%c0_9, %c0_10] : memref<1x32xf32, #tpu.memory_space<vmem>>, vector<1x32xf32>
    %15 = vector.broadcast %14 : vector<1x32xf32> to vector<16x32xf32>
    %16 = arith.mulf %13, %15 : vector<16x32xf32>
    %c0_11 = arith.constant 0 : index
    %c0_12 = arith.constant 0 : index
    %17 = vector.load %arg6[%c0_11, %c0_12] : memref<1x32xf32, #tpu.memory_space<vmem>>, vector<1x32xf32>
    %18 = vector.broadcast %17 : vector<1x32xf32> to vector<16x32xf32>
    %19 = arith.addf %16, %18 : vector<16x32xf32>
    %cst_13 = arith.constant 0.000000e+00 : f32
    %20 = vector.broadcast %cst_13 : f32 to vector<16x32xf32>
    %21 = arith.maximumf %19, %20 : vector<16x32xf32>
    %22 = arith.truncf %21 : vector<16x32xf32> to vector<16x32xbf16>
    %cst_14 = arith.constant 0.000000e+00 : bf16
    %23 = vector.broadcast %cst_14 : bf16 to vector<16x32xbf16>
    %c0_15 = arith.constant 0 : index
    %c0_16 = arith.constant 0 : index
    %24 = vector.load %arg9[%c0_15, %c0_16] : memref<48x32xbf16, #tpu.memory_space<vmem>>, vector<16x32xbf16>
    tpu.vector_store %arg9[%c0_15, %c0_16], %23 {strides = array<i32>} : memref<48x32xbf16, #tpu.memory_space<vmem>>, vector<16x32xbf16>,
    %cst_17 = arith.constant 0.000000e+00 : bf16
    %25 = vector.broadcast %cst_17 : bf16 to vector<16x32xbf16>
    %c32 = arith.constant 32 : index
    %c0_18 = arith.constant 0 : index
    %26 = vector.load %arg9[%c32, %c0_18] : memref<48x32xbf16, #tpu.memory_space<vmem>>, vector<16x32xbf16>
    tpu.vector_store %arg9[%c32, %c0_18], %25 {strides = array<i32>} : memref<48x32xbf16, #tpu.memory_space<vmem>>, vector<16x32xbf16>,
    %c16 = arith.constant 16 : index
    %c0_19 = arith.constant 0 : index
    %27 = vector.load %arg9[%c16, %c0_19] : memref<48x32xbf16, #tpu.memory_space<vmem>>, vector<16x32xbf16>
    tpu.vector_store %arg9[%c16, %c0_19], %22 {strides = array<i32>} : memref<48x32xbf16, #tpu.memory_space<vmem>>, vector<16x32xbf16>,
    %28 = tpu.iota {dimensions = array<i32: 0>} : vector<16x1xi32>
    %c4_i32 = arith.constant 4 : i32
    %c0_i32 = arith.constant 0 : i32
    %29 = arith.cmpi eq, %c4_i32, %c0_i32 : i32
    %c1_i32 = arith.constant 1 : i32
    %30 = arith.select %29, %c1_i32, %c4_i32 : i32
    %31 = vector.broadcast %30 : i32 to vector<16x1xi32>
    %32 = arith.remsi %28, %31 : vector<16x1xi32>
    %c0_i32_20 = arith.constant 0 : i32
    %33 = vector.broadcast %c0_i32_20 : i32 to vector<16x1xi32>
    %34 = arith.cmpi ne, %32, %33 : vector<16x1xi32>
    %c0_i32_21 = arith.constant 0 : i32
    %35 = vector.broadcast %c0_i32_21 : i32 to vector<16x1xi32>
    %36 = arith.cmpi slt, %32, %35 : vector<16x1xi32>
    %c0_i32_22 = arith.constant 0 : i32
    %37 = arith.cmpi slt, %30, %c0_i32_22 : i32
    %38 = vector.broadcast %37 : i1 to vector<16x1xi1>
    %39 = vector.broadcast %38 : vector<16x1xi1> to vector<16x1xi1>
    %40 = arith.xori %36, %39 : vector<16x1xi1>
    %41 = arith.andi %40, %34 : vector<16x1xi1>
    %42 = vector.broadcast %30 : i32 to vector<16x1xi32>
    %43 = arith.addi %32, %42 : vector<16x1xi32>
    %44 = arith.select %41, %43, %32 : vector<16x1xi1>, vector<16x1xi32>
    %c1_i32_23 = arith.constant 1 : i32
    %45 = vector.broadcast %c1_i32_23 : i32 to vector<16x1xi32>
    %46 = arith.cmpi sge, %44, %45 : vector<16x1xi32>
    %c2_i32 = arith.constant 2 : i32
    %47 = vector.broadcast %c2_i32 : i32 to vector<16x1xi32>
    %48 = arith.cmpi sle, %44, %47 : vector<16x1xi32>
    %c11 = arith.constant 11 : index
    %c0_24 = arith.constant 0 : index
    %49 = vector.load %arg9[%c11, %c0_24] : memref<48x32xbf16, #tpu.memory_space<vmem>>, vector<16x32xbf16>
    %cst_25 = arith.constant 0.000000e+00 : bf16
    %50 = vector.broadcast %cst_25 : bf16 to vector<16x32xbf16>
    %51 = vector.shape_cast %46 : vector<16x1xi1> to vector<16x1xi1>
    %52 = vector.broadcast %51 : vector<16x1xi1> to vector<16x32xi1>
    %53 = arith.select %52, %49, %50 : vector<16x32xi1>, vector<16x32xbf16>
    %c12 = arith.constant 12 : index
    %c0_26 = arith.constant 0 : index
    %54 = vector.load %arg9[%c12, %c0_26] : memref<48x32xbf16, #tpu.memory_space<vmem>>, vector<16x32xbf16>
    %c13 = arith.constant 13 : index
    %c0_27 = arith.constant 0 : index
    %55 = vector.load %arg9[%c13, %c0_27] : memref<48x32xbf16, #tpu.memory_space<vmem>>, vector<16x32xbf16>
    %cst_28 = arith.constant 0.000000e+00 : bf16
    %56 = vector.broadcast %cst_28 : bf16 to vector<16x32xbf16>
    %57 = vector.shape_cast %48 : vector<16x1xi1> to vector<16x1xi1>
    %58 = vector.broadcast %57 : vector<16x1xi1> to vector<16x32xi1>
    %59 = arith.select %58, %55, %56 : vector<16x32xi1>, vector<16x32xbf16>
    %c15 = arith.constant 15 : index
    %c0_29 = arith.constant 0 : index
    %60 = vector.load %arg9[%c15, %c0_29] : memref<48x32xbf16, #tpu.memory_space<vmem>>, vector<16x32xbf16>
    %cst_30 = arith.constant 0.000000e+00 : bf16
    %61 = vector.broadcast %cst_30 : bf16 to vector<16x32xbf16>
    %62 = vector.shape_cast %46 : vector<16x1xi1> to vector<16x1xi1>
    %63 = vector.broadcast %62 : vector<16x1xi1> to vector<16x32xi1>
    %64 = arith.select %63, %60, %61 : vector<16x32xi1>, vector<16x32xbf16>
    %c16_31 = arith.constant 16 : index
    %c0_32 = arith.constant 0 : index
    %65 = vector.load %arg9[%c16_31, %c0_32] : memref<48x32xbf16, #tpu.memory_space<vmem>>, vector<16x32xbf16>
    %c17 = arith.constant 17 : index
    %c0_33 = arith.constant 0 : index
    %66 = vector.load %arg9[%c17, %c0_33] : memref<48x32xbf16, #tpu.memory_space<vmem>>, vector<16x32xbf16>
    %cst_34 = arith.constant 0.000000e+00 : bf16
    %67 = vector.broadcast %cst_34 : bf16 to vector<16x32xbf16>
    %68 = vector.shape_cast %48 : vector<16x1xi1> to vector<16x1xi1>
    %69 = vector.broadcast %68 : vector<16x1xi1> to vector<16x32xi1>
    %70 = arith.select %69, %66, %67 : vector<16x32xi1>, vector<16x32xbf16>
    %c19 = arith.constant 19 : index
    %c0_35 = arith.constant 0 : index
    %71 = vector.load %arg9[%c19, %c0_35] : memref<48x32xbf16, #tpu.memory_space<vmem>>, vector<16x32xbf16>
    %cst_36 = arith.constant 0.000000e+00 : bf16
    %72 = vector.broadcast %cst_36 : bf16 to vector<16x32xbf16>
    %73 = vector.shape_cast %46 : vector<16x1xi1> to vector<16x1xi1>
    %74 = vector.broadcast %73 : vector<16x1xi1> to vector<16x32xi1>
    %75 = arith.select %74, %71, %72 : vector<16x32xi1>, vector<16x32xbf16>
    %c20 = arith.constant 20 : index
    %c0_37 = arith.constant 0 : index
    %76 = vector.load %arg9[%c20, %c0_37] : memref<48x32xbf16, #tpu.memory_space<vmem>>, vector<16x32xbf16>
    %c21 = arith.constant 21 : index
    %c0_38 = arith.constant 0 : index
    %77 = vector.load %arg9[%c21, %c0_38] : memref<48x32xbf16, #tpu.memory_space<vmem>>, vector<16x32xbf16>
    %cst_39 = arith.constant 0.000000e+00 : bf16
    %78 = vector.broadcast %cst_39 : bf16 to vector<16x32xbf16>
    %79 = vector.shape_cast %48 : vector<16x1xi1> to vector<16x1xi1>
    %80 = vector.broadcast %79 : vector<16x1xi1> to vector<16x32xi1>
    %81 = arith.select %80, %77, %78 : vector<16x32xi1>, vector<16x32xbf16>
    %82 = tpu.concatenate %53, %54, %59, %64, %65, %70, %75, %76, %81 in 1 : vector<16x32xbf16>, vector<16x32xbf16>, vector<16x32xbf16>, vector<16x32xbf16>, vector<16x32xbf16>, vector<16x32xbf16>, vector<16x32xbf16>, vector<16x32xbf16>, vector<16x32xbf16> -> vector<16x288xbf16>
    %c0_40 = arith.constant 0 : index
    %c0_41 = arith.constant 0 : index
    %83 = vector.load %arg7[%c0_40, %c0_41] : memref<288x8xbf16, #tpu.memory_space<vmem>>, vector<288x8xbf16>
    %cst_42 = arith.constant dense<0.000000e+00> : vector<16x8xf32>
    %84 = tpu.matmul %82, %83, %cst_42 {dimension_numbers = #tpu.dot_dimension_numbers<[1], [0], [0], [1], [0, 0, 1, 1], [], []>} : vector<16x288xbf16>, vector<288x8xbf16>, vector<16x8xf32> -> vector<16x8xf32>
    %85 = vector.extract_strided_slice %1 {offsets = [0, 0], sizes = [16, 16], strides = [1, 1]} : vector<16x32xbf16> to vector<16x16xbf16>
    %86 = arith.truncf %84 : vector<16x8xf32> to vector<16x8xbf16>
    %cst_43 = arith.constant 0.000000e+00 : bf16
    %87 = vector.broadcast %cst_43 : bf16 to vector<16x8xbf16>
    %88 = tpu.concatenate %85, %86, %87 in 1 : vector<16x16xbf16>, vector<16x8xbf16>, vector<16x8xbf16> -> vector<16x32xbf16>
    %c0_44 = arith.constant 0 : index
    %c0_45 = arith.constant 0 : index
    %c0_46 = arith.constant 0 : index
    %89 = vector.load %arg8[%c0_44, %c0_45, %c0_46] : memref<1x16x32xbf16, #tpu.memory_space<vmem>>, vector<1x16x32xbf16>
    %90 = vector.shape_cast %89 : vector<1x16x32xbf16> to vector<16x32xbf16>
    %91 = vector.shape_cast %88 : vector<16x32xbf16> to vector<1x16x32xbf16>
    tpu.vector_store %arg8[%c0_44, %c0_45, %c0_46], %91 {strides = array<i32>} : memref<1x16x32xbf16, #tpu.memory_space<vmem>>, vector<1x16x32xbf16>,
    return
  }
  func.func @transform_0(%arg0: i32) -> (i32, i32, i32) {
    %c0_i32 = arith.constant 0 : i32
    %c0_i32_0 = arith.constant 0 : i32
    %c0_i32_1 = arith.constant 0 : i32
    return %arg0, %c0_i32, %c0_i32_0 : i32, i32, i32
  }
  func.func @transform_1(%arg0: i32) -> (i32, i32) {
    %c0_i32 = arith.constant 0 : i32
    %c0_i32_0 = arith.constant 0 : i32
    %c0_i32_1 = arith.constant 0 : i32
    return %c0_i32, %c0_i32_0 : i32, i32
  }
  func.func @transform_2(%arg0: i32) -> (i32, i32) {
    %c0_i32 = arith.constant 0 : i32
    %c0_i32_0 = arith.constant 0 : i32
    %c0_i32_1 = arith.constant 0 : i32
    return %c0_i32, %c0_i32_0 : i32, i32
  }
  func.func @transform_3(%arg0: i32) -> (i32, i32) {
    %c0_i32 = arith.constant 0 : i32
    %c0_i32_0 = arith.constant 0 : i32
    %c0_i32_1 = arith.constant 0 : i32
    return %c0_i32, %c0_i32_0 : i32, i32
  }
  func.func @transform_4(%arg0: i32) -> (i32, i32) {
    %c0_i32 = arith.constant 0 : i32
    %c0_i32_0 = arith.constant 0 : i32
    %c0_i32_1 = arith.constant 0 : i32
    return %c0_i32, %c0_i32_0 : i32, i32
  }
  func.func @transform_5(%arg0: i32) -> (i32, i32) {
    %c0_i32 = arith.constant 0 : i32
    %c0_i32_0 = arith.constant 0 : i32
    %c0_i32_1 = arith.constant 0 : i32
    return %c0_i32, %c0_i32_0 : i32, i32
  }
  func.func @transform_6(%arg0: i32) -> (i32, i32) {
    %c0_i32 = arith.constant 0 : i32
    %c0_i32_0 = arith.constant 0 : i32
    %c0_i32_1 = arith.constant 0 : i32
    return %c0_i32, %c0_i32_0 : i32, i32
  }
  func.func @transform_7(%arg0: i32) -> (i32, i32, i32) {
    %c0_i32 = arith.constant 0 : i32
    %c0_i32_0 = arith.constant 0 : i32
    %c0_i32_1 = arith.constant 0 : i32
    return %arg0, %c0_i32, %c0_i32_0 : i32, i32, i32
  }
}

module attributes {stable_mosaic.version = 11 : i64} {
  func.func @kernel(%arg0: i32, %arg1: memref<1x16x32xbf16, #tpu.memory_space<vmem>>, %arg2: memref<32x32xbf16, #tpu.memory_space<vmem>>, %arg3: memref<1x32xf32, #tpu.memory_space<vmem>>, %arg4: memref<1x32xf32, #tpu.memory_space<vmem>>, %arg5: memref<1x32xf32, #tpu.memory_space<vmem>>, %arg6: memref<1x32xf32, #tpu.memory_space<vmem>>, %arg7: memref<288x8xbf16, #tpu.memory_space<vmem>>, %arg8: memref<1x16x32xbf16, #tpu.memory_space<vmem>>, %arg9: memref<48x32xbf16, #tpu.memory_space<vmem>>) attributes {dimension_semantics = [#tpu.dimension_semantics<parallel>], iteration_bounds = array<i64: 2>, scalar_prefetch = 0 : i64, scratch_operands = 1 : i64, tpu.core_type = #tpu.core_type<tc>, window_params = [{transform_indices = @transform_0, window_bounds = array<i64: 1, 16, 32>}, {pipeline_mode = #tpu.pipeline_mode<synchronous>, transform_indices = @transform_1, window_bounds = array<i64: 32, 32>}, {pipeline_mode = #tpu.pipeline_mode<synchronous>, transform_indices = @transform_2, window_bounds = array<i64: 1, 32>}, {pipeline_mode = #tpu.pipeline_mode<synchronous>, transform_indices = @transform_3, window_bounds = array<i64: 1, 32>}, {pipeline_mode = #tpu.pipeline_mode<synchronous>, transform_indices = @transform_4, window_bounds = array<i64: 1, 32>}, {pipeline_mode = #tpu.pipeline_mode<synchronous>, transform_indices = @transform_5, window_bounds = array<i64: 1, 32>}, {pipeline_mode = #tpu.pipeline_mode<synchronous>, transform_indices = @transform_6, window_bounds = array<i64: 288, 8>}, {transform_indices = @transform_7, window_bounds = array<i64: 1, 16, 32>}]} {
    %c0 = arith.constant 0 : index
    %c0_0 = arith.constant 0 : index
    %c0_1 = arith.constant 0 : index
    %0 = vector.load %arg1[%c0, %c0_0, %c0_1] : memref<1x16x32xbf16, #tpu.memory_space<vmem>>, vector<1x16x32xbf16>
    %1 = vector.shape_cast %0 : vector<1x16x32xbf16> to vector<16x32xbf16>
    %2 = arith.extf %1 : vector<16x32xbf16> to vector<16x32xf32>
    %c0_2 = arith.constant 0 : index
    %c0_3 = arith.constant 0 : index
    %3 = vector.load %arg3[%c0_2, %c0_3] : memref<1x32xf32, #tpu.memory_space<vmem>>, vector<1x32xf32>
    %4 = vector.broadcast %3 : vector<1x32xf32> to vector<16x32xf32>
    %5 = arith.mulf %2, %4 : vector<16x32xf32>
    %c0_4 = arith.constant 0 : index
    %c0_5 = arith.constant 0 : index
    %6 = vector.load %arg4[%c0_4, %c0_5] : memref<1x32xf32, #tpu.memory_space<vmem>>, vector<1x32xf32>
    %7 = vector.broadcast %6 : vector<1x32xf32> to vector<16x32xf32>
    %8 = arith.addf %5, %7 : vector<16x32xf32>
    %cst = arith.constant 0.000000e+00 : f32
    %9 = vector.broadcast %cst : f32 to vector<16x32xf32>
    %10 = arith.maximumf %8, %9 : vector<16x32xf32>
    %11 = arith.truncf %10 : vector<16x32xf32> to vector<16x32xbf16>
    %c0_6 = arith.constant 0 : index
    %c0_7 = arith.constant 0 : index
    %12 = vector.load %arg2[%c0_6, %c0_7] : memref<32x32xbf16, #tpu.memory_space<vmem>>, vector<32x32xbf16>
    %cst_8 = arith.constant dense<0.000000e+00> : vector<16x32xf32>
    %13 = tpu.matmul %11, %12, %cst_8 {dimension_numbers = #tpu.dot_dimension_numbers<[1], [0], [0], [1], [0, 0, 1, 1], [], []>} : vector<16x32xbf16>, vector<32x32xbf16>, vector<16x32xf32> -> vector<16x32xf32>
    %c0_9 = arith.constant 0 : index
    %c0_10 = arith.constant 0 : index
    %14 = vector.load %arg5[%c0_9, %c0_10] : memref<1x32xf32, #tpu.memory_space<vmem>>, vector<1x32xf32>
    %15 = vector.broadcast %14 : vector<1x32xf32> to vector<16x32xf32>
    %16 = arith.mulf %13, %15 : vector<16x32xf32>
    %c0_11 = arith.constant 0 : index
    %c0_12 = arith.constant 0 : index
    %17 = vector.load %arg6[%c0_11, %c0_12] : memref<1x32xf32, #tpu.memory_space<vmem>>, vector<1x32xf32>
    %18 = vector.broadcast %17 : vector<1x32xf32> to vector<16x32xf32>
    %19 = arith.addf %16, %18 : vector<16x32xf32>
    %cst_13 = arith.constant 0.000000e+00 : f32
    %20 = vector.broadcast %cst_13 : f32 to vector<16x32xf32>
    %21 = arith.maximumf %19, %20 : vector<16x32xf32>
    %22 = arith.truncf %21 : vector<16x32xf32> to vector<16x32xbf16>
    %cst_14 = arith.constant 0.000000e+00 : bf16
    %23 = vector.broadcast %cst_14 : bf16 to vector<16x32xbf16>
    %c0_15 = arith.constant 0 : index
    %c0_16 = arith.constant 0 : index
    %24 = vector.load %arg9[%c0_15, %c0_16] : memref<48x32xbf16, #tpu.memory_space<vmem>>, vector<16x32xbf16>
    tpu.vector_store %arg9[%c0_15, %c0_16], %23 {strides = array<i32>} : memref<48x32xbf16, #tpu.memory_space<vmem>>, vector<16x32xbf16>,
    %cst_17 = arith.constant 0.000000e+00 : bf16
    %25 = vector.broadcast %cst_17 : bf16 to vector<16x32xbf16>
    %c32 = arith.constant 32 : index
    %c0_18 = arith.constant 0 : index
    %26 = vector.load %arg9[%c32, %c0_18] : memref<48x32xbf16, #tpu.memory_space<vmem>>, vector<16x32xbf16>
    tpu.vector_store %arg9[%c32, %c0_18], %25 {strides = array<i32>} : memref<48x32xbf16, #tpu.memory_space<vmem>>, vector<16x32xbf16>,
    %c16 = arith.constant 16 : index
    %c0_19 = arith.constant 0 : index
    %27 = vector.load %arg9[%c16, %c0_19] : memref<48x32xbf16, #tpu.memory_space<vmem>>, vector<16x32xbf16>
    tpu.vector_store %arg9[%c16, %c0_19], %22 {strides = array<i32>} : memref<48x32xbf16, #tpu.memory_space<vmem>>, vector<16x32xbf16>,
    %28 = tpu.iota {dimensions = array<i32: 0>} : vector<16x1xi32>
    %c4_i32 = arith.constant 4 : i32
    %c0_i32 = arith.constant 0 : i32
    %29 = arith.cmpi eq, %c4_i32, %c0_i32 : i32
    %c1_i32 = arith.constant 1 : i32
    %30 = arith.select %29, %c1_i32, %c4_i32 : i32
    %31 = vector.broadcast %30 : i32 to vector<16x1xi32>
    %32 = arith.remsi %28, %31 : vector<16x1xi32>
    %c0_i32_20 = arith.constant 0 : i32
    %33 = vector.broadcast %c0_i32_20 : i32 to vector<16x1xi32>
    %34 = arith.cmpi ne, %32, %33 : vector<16x1xi32>
    %c0_i32_21 = arith.constant 0 : i32
    %35 = vector.broadcast %c0_i32_21 : i32 to vector<16x1xi32>
    %36 = arith.cmpi slt, %32, %35 : vector<16x1xi32>
    %c0_i32_22 = arith.constant 0 : i32
    %37 = arith.cmpi slt, %30, %c0_i32_22 : i32
    %38 = vector.broadcast %37 : i1 to vector<16x1xi1>
    %39 = vector.broadcast %38 : vector<16x1xi1> to vector<16x1xi1>
    %40 = arith.xori %36, %39 : vector<16x1xi1>
    %41 = arith.andi %40, %34 : vector<16x1xi1>
    %42 = vector.broadcast %30 : i32 to vector<16x1xi32>
    %43 = arith.addi %32, %42 : vector<16x1xi32>
    %44 = arith.select %41, %43, %32 : vector<16x1xi1>, vector<16x1xi32>
    %c1_i32_23 = arith.constant 1 : i32
    %45 = vector.broadcast %c1_i32_23 : i32 to vector<16x1xi32>
    %46 = arith.cmpi sge, %44, %45 : vector<16x1xi32>
    %c2_i32 = arith.constant 2 : i32
    %47 = vector.broadcast %c2_i32 : i32 to vector<16x1xi32>
    %48 = arith.cmpi sle, %44, %47 : vector<16x1xi32>
    %c11 = arith.constant 11 : index
    %c0_24 = arith.constant 0 : index
    %49 = vector.load %arg9[%c11, %c0_24] : memref<48x32xbf16, #tpu.memory_space<vmem>>, vector<16x32xbf16>
    %cst_25 = arith.constant 0.000000e+00 : bf16
    %50 = vector.broadcast %cst_25 : bf16 to vector<16x32xbf16>
    %51 = vector.shape_cast %46 : vector<16x1xi1> to vector<16x1xi1>
    %52 = vector.broadcast %51 : vector<16x1xi1> to vector<16x32xi1>
    %53 = arith.select %52, %49, %50 : vector<16x32xi1>, vector<16x32xbf16>
    %c12 = arith.constant 12 : index
    %c0_26 = arith.constant 0 : index
    %54 = vector.load %arg9[%c12, %c0_26] : memref<48x32xbf16, #tpu.memory_space<vmem>>, vector<16x32xbf16>
    %c13 = arith.constant 13 : index
    %c0_27 = arith.constant 0 : index
    %55 = vector.load %arg9[%c13, %c0_27] : memref<48x32xbf16, #tpu.memory_space<vmem>>, vector<16x32xbf16>
    %cst_28 = arith.constant 0.000000e+00 : bf16
    %56 = vector.broadcast %cst_28 : bf16 to vector<16x32xbf16>
    %57 = vector.shape_cast %48 : vector<16x1xi1> to vector<16x1xi1>
    %58 = vector.broadcast %57 : vector<16x1xi1> to vector<16x32xi1>
    %59 = arith.select %58, %55, %56 : vector<16x32xi1>, vector<16x32xbf16>
    %c15 = arith.constant 15 : index
    %c0_29 = arith.constant 0 : index
    %60 = vector.load %arg9[%c15, %c0_29] : memref<48x32xbf16, #tpu.memory_space<vmem>>, vector<16x32xbf16>
    %cst_30 = arith.constant 0.000000e+00 : bf16
    %61 = vector.broadcast %cst_30 : bf16 to vector<16x32xbf16>
    %62 = vector.shape_cast %46 : vector<16x1xi1> to vector<16x1xi1>
    %63 = vector.broadcast %62 : vector<16x1xi1> to vector<16x32xi1>
    %64 = arith.select %63, %60, %61 : vector<16x32xi1>, vector<16x32xbf16>
    %c16_31 = arith.constant 16 : index
    %c0_32 = arith.constant 0 : index
    %65 = vector.load %arg9[%c16_31, %c0_32] : memref<48x32xbf16, #tpu.memory_space<vmem>>, vector<16x32xbf16>
    %c17 = arith.constant 17 : index
    %c0_33 = arith.constant 0 : index
    %66 = vector.load %arg9[%c17, %c0_33] : memref<48x32xbf16, #tpu.memory_space<vmem>>, vector<16x32xbf16>
    %cst_34 = arith.constant 0.000000e+00 : bf16
    %67 = vector.broadcast %cst_34 : bf16 to vector<16x32xbf16>
    %68 = vector.shape_cast %48 : vector<16x1xi1> to vector<16x1xi1>
    %69 = vector.broadcast %68 : vector<16x1xi1> to vector<16x32xi1>
    %70 = arith.select %69, %66, %67 : vector<16x32xi1>, vector<16x32xbf16>
    %c19 = arith.constant 19 : index
    %c0_35 = arith.constant 0 : index
    %71 = vector.load %arg9[%c19, %c0_35] : memref<48x32xbf16, #tpu.memory_space<vmem>>, vector<16x32xbf16>
    %cst_36 = arith.constant 0.000000e+00 : bf16
    %72 = vector.broadcast %cst_36 : bf16 to vector<16x32xbf16>
    %73 = vector.shape_cast %46 : vector<16x1xi1> to vector<16x1xi1>
    %74 = vector.broadcast %73 : vector<16x1xi1> to vector<16x32xi1>
    %75 = arith.select %74, %71, %72 : vector<16x32xi1>, vector<16x32xbf16>
    %c20 = arith.constant 20 : index
    %c0_37 = arith.constant 0 : index
    %76 = vector.load %arg9[%c20, %c0_37] : memref<48x32xbf16, #tpu.memory_space<vmem>>, vector<16x32xbf16>
    %c21 = arith.constant 21 : index
    %c0_38 = arith.constant 0 : index
    %77 = vector.load %arg9[%c21, %c0_38] : memref<48x32xbf16, #tpu.memory_space<vmem>>, vector<16x32xbf16>
    %cst_39 = arith.constant 0.000000e+00 : bf16
    %78 = vector.broadcast %cst_39 : bf16 to vector<16x32xbf16>
    %79 = vector.shape_cast %48 : vector<16x1xi1> to vector<16x1xi1>
    %80 = vector.broadcast %79 : vector<16x1xi1> to vector<16x32xi1>
    %81 = arith.select %80, %77, %78 : vector<16x32xi1>, vector<16x32xbf16>
    %82 = tpu.concatenate %53, %54, %59, %64, %65, %70, %75, %76, %81 in 1 : vector<16x32xbf16>, vector<16x32xbf16>, vector<16x32xbf16>, vector<16x32xbf16>, vector<16x32xbf16>, vector<16x32xbf16>, vector<16x32xbf16>, vector<16x32xbf16>, vector<16x32xbf16> -> vector<16x288xbf16>
    %c0_40 = arith.constant 0 : index
    %c0_41 = arith.constant 0 : index
    %83 = vector.load %arg7[%c0_40, %c0_41] : memref<288x8xbf16, #tpu.memory_space<vmem>>, vector<288x8xbf16>
    %cst_42 = arith.constant dense<0.000000e+00> : vector<16x8xf32>
    %84 = tpu.matmul %82, %83, %cst_42 {dimension_numbers = #tpu.dot_dimension_numbers<[1], [0], [0], [1], [0, 0, 1, 1], [], []>} : vector<16x288xbf16>, vector<288x8xbf16>, vector<16x8xf32> -> vector<16x8xf32>
    %85 = vector.extract_strided_slice %1 {offsets = [0, 0], sizes = [16, 24], strides = [1, 1]} : vector<16x32xbf16> to vector<16x24xbf16>
    %86 = arith.truncf %84 : vector<16x8xf32> to vector<16x8xbf16>
    %87 = tpu.concatenate %85, %86 in 1 : vector<16x24xbf16>, vector<16x8xbf16> -> vector<16x32xbf16>
    %c0_43 = arith.constant 0 : index
    %c0_44 = arith.constant 0 : index
    %c0_45 = arith.constant 0 : index
    %88 = vector.load %arg8[%c0_43, %c0_44, %c0_45] : memref<1x16x32xbf16, #tpu.memory_space<vmem>>, vector<1x16x32xbf16>
    %89 = vector.shape_cast %88 : vector<1x16x32xbf16> to vector<16x32xbf16>
    %90 = vector.shape_cast %87 : vector<16x32xbf16> to vector<1x16x32xbf16>
    tpu.vector_store %arg8[%c0_43, %c0_44, %c0_45], %90 {strides = array<i32>} : memref<1x16x32xbf16, #tpu.memory_space<vmem>>, vector<1x16x32xbf16>,
    return
  }
  func.func @transform_0(%arg0: i32) -> (i32, i32, i32) {
    %c0_i32 = arith.constant 0 : i32
    %c0_i32_0 = arith.constant 0 : i32
    %c0_i32_1 = arith.constant 0 : i32
    return %arg0, %c0_i32, %c0_i32_0 : i32, i32, i32
  }
  func.func @transform_1(%arg0: i32) -> (i32, i32) {
    %c0_i32 = arith.constant 0 : i32
    %c0_i32_0 = arith.constant 0 : i32
    %c0_i32_1 = arith.constant 0 : i32
    return %c0_i32, %c0_i32_0 : i32, i32
  }
  func.func @transform_2(%arg0: i32) -> (i32, i32) {
    %c0_i32 = arith.constant 0 : i32
    %c0_i32_0 = arith.constant 0 : i32
    %c0_i32_1 = arith.constant 0 : i32
    return %c0_i32, %c0_i32_0 : i32, i32
  }
  func.func @transform_3(%arg0: i32) -> (i32, i32) {
    %c0_i32 = arith.constant 0 : i32
    %c0_i32_0 = arith.constant 0 : i32
    %c0_i32_1 = arith.constant 0 : i32
    return %c0_i32, %c0_i32_0 : i32, i32
  }
  func.func @transform_4(%arg0: i32) -> (i32, i32) {
    %c0_i32 = arith.constant 0 : i32
    %c0_i32_0 = arith.constant 0 : i32
    %c0_i32_1 = arith.constant 0 : i32
    return %c0_i32, %c0_i32_0 : i32, i32
  }
  func.func @transform_5(%arg0: i32) -> (i32, i32) {
    %c0_i32 = arith.constant 0 : i32
    %c0_i32_0 = arith.constant 0 : i32
    %c0_i32_1 = arith.constant 0 : i32
    return %c0_i32, %c0_i32_0 : i32, i32
  }
  func.func @transform_6(%arg0: i32) -> (i32, i32) {
    %c0_i32 = arith.constant 0 : i32
    %c0_i32_0 = arith.constant 0 : i32
    %c0_i32_1 = arith.constant 0 : i32
    return %c0_i32, %c0_i32_0 : i32, i32
  }
  func.func @transform_7(%arg0: i32) -> (i32, i32, i32) {
    %c0_i32 = arith.constant 0 : i32
    %c0_i32_0 = arith.constant 0 : i32
    %c0_i32_1 = arith.constant 0 : i32
    return %arg0, %c0_i32, %c0_i32_0 : i32, i32, i32
  }
}

module attributes {stable_mosaic.version = 11 : i64} {
  func.func @_head_kernel(%arg0: i32, %arg1: memref<2x16x32xbf16, #tpu.memory_space<vmem>>, %arg2: memref<1x1x32xf32, #tpu.memory_space<vmem>>, %arg3: memref<1x1x32xf32, #tpu.memory_space<vmem>>, %arg4: memref<32x5xbf16, #tpu.memory_space<vmem>>, %arg5: memref<1x5xf32, #tpu.memory_space<vmem>>, %arg6: memref<2x5xf32, #tpu.memory_space<vmem>>) attributes {dimension_semantics = [#tpu.dimension_semantics<parallel>], iteration_bounds = array<i64: 1>, scalar_prefetch = 0 : i64, scratch_operands = 0 : i64, tpu.core_type = #tpu.core_type<tc>, window_params = [{pipeline_mode = #tpu.pipeline_mode<synchronous>, transform_indices = @transform_0, window_bounds = array<i64: 2, 16, 32>}, {pipeline_mode = #tpu.pipeline_mode<synchronous>, transform_indices = @transform_1, window_bounds = array<i64: 1, 1, 32>}, {pipeline_mode = #tpu.pipeline_mode<synchronous>, transform_indices = @transform_2, window_bounds = array<i64: 1, 1, 32>}, {pipeline_mode = #tpu.pipeline_mode<synchronous>, transform_indices = @transform_3, window_bounds = array<i64: 32, 5>}, {pipeline_mode = #tpu.pipeline_mode<synchronous>, transform_indices = @transform_4, window_bounds = array<i64: 1, 5>}, {pipeline_mode = #tpu.pipeline_mode<synchronous>, transform_indices = @transform_5, window_bounds = array<i64: 2, 5>}]} {
    %c0 = arith.constant 0 : index
    %c0_0 = arith.constant 0 : index
    %c0_1 = arith.constant 0 : index
    %0 = vector.load %arg1[%c0, %c0_0, %c0_1] : memref<2x16x32xbf16, #tpu.memory_space<vmem>>, vector<2x16x32xbf16>
    %1 = arith.extf %0 : vector<2x16x32xbf16> to vector<2x16x32xf32>
    %c0_2 = arith.constant 0 : index
    %c0_3 = arith.constant 0 : index
    %c0_4 = arith.constant 0 : index
    %2 = vector.load %arg2[%c0_2, %c0_3, %c0_4] : memref<1x1x32xf32, #tpu.memory_space<vmem>>, vector<1x1x32xf32>
    %3 = vector.broadcast %2 : vector<1x1x32xf32> to vector<2x16x32xf32>
    %4 = arith.mulf %1, %3 : vector<2x16x32xf32>
    %c0_5 = arith.constant 0 : index
    %c0_6 = arith.constant 0 : index
    %c0_7 = arith.constant 0 : index
    %5 = vector.load %arg3[%c0_5, %c0_6, %c0_7] : memref<1x1x32xf32, #tpu.memory_space<vmem>>, vector<1x1x32xf32>
    %6 = vector.broadcast %5 : vector<1x1x32xf32> to vector<2x16x32xf32>
    %7 = arith.addf %4, %6 : vector<2x16x32xf32>
    %cst = arith.constant 0.000000e+00 : f32
    %8 = vector.broadcast %cst : f32 to vector<2x16x32xf32>
    %9 = arith.maximumf %7, %8 : vector<2x16x32xf32>
    %cst_8 = arith.constant dense<0.000000e+00> : vector<2x32xf32>
    %10 = vector.multi_reduction <add>, %9, %cst_8 [1] : vector<2x16x32xf32> to vector<2x32xf32>
    %cst_9 = arith.constant 1.600000e+01 : f32
    %11 = vector.broadcast %cst_9 : f32 to vector<2x32xf32>
    %12 = arith.divf %10, %11 : vector<2x32xf32>
    %13 = arith.truncf %12 : vector<2x32xf32> to vector<2x32xbf16>
    %c0_10 = arith.constant 0 : index
    %c0_11 = arith.constant 0 : index
    %14 = vector.load %arg4[%c0_10, %c0_11] : memref<32x5xbf16, #tpu.memory_space<vmem>>, vector<32x5xbf16>
    %cst_12 = arith.constant dense<0.000000e+00> : vector<2x5xf32>
    %15 = tpu.matmul %13, %14, %cst_12 {dimension_numbers = #tpu.dot_dimension_numbers<[1], [0], [0], [1], [0, 0, 1, 1], [], []>} : vector<2x32xbf16>, vector<32x5xbf16>, vector<2x5xf32> -> vector<2x5xf32>
    %c0_13 = arith.constant 0 : index
    %c0_14 = arith.constant 0 : index
    %16 = vector.load %arg5[%c0_13, %c0_14] : memref<1x5xf32, #tpu.memory_space<vmem>>, vector<1x5xf32>
    %17 = vector.broadcast %16 : vector<1x5xf32> to vector<2x5xf32>
    %18 = arith.addf %15, %17 : vector<2x5xf32>
    %c0_15 = arith.constant 0 : index
    %c0_16 = arith.constant 0 : index
    %19 = vector.load %arg6[%c0_15, %c0_16] : memref<2x5xf32, #tpu.memory_space<vmem>>, vector<2x5xf32>
    tpu.vector_store %arg6[%c0_15, %c0_16], %18 {strides = array<i32>} : memref<2x5xf32, #tpu.memory_space<vmem>>, vector<2x5xf32>,
    return
  }
  func.func @transform_0(%arg0: i32) -> (i32, i32, i32) {
    %c0_i32 = arith.constant 0 : i32
    %c0_i32_0 = arith.constant 0 : i32
    %c0_i32_1 = arith.constant 0 : i32
    %c0_i32_2 = arith.constant 0 : i32
    return %c0_i32, %c0_i32_0, %c0_i32_1 : i32, i32, i32
  }
  func.func @transform_1(%arg0: i32) -> (i32, i32, i32) {
    %c0_i32 = arith.constant 0 : i32
    %c0_i32_0 = arith.constant 0 : i32
    %c0_i32_1 = arith.constant 0 : i32
    %c0_i32_2 = arith.constant 0 : i32
    return %c0_i32, %c0_i32_0, %c0_i32_1 : i32, i32, i32
  }
  func.func @transform_2(%arg0: i32) -> (i32, i32, i32) {
    %c0_i32 = arith.constant 0 : i32
    %c0_i32_0 = arith.constant 0 : i32
    %c0_i32_1 = arith.constant 0 : i32
    %c0_i32_2 = arith.constant 0 : i32
    return %c0_i32, %c0_i32_0, %c0_i32_1 : i32, i32, i32
  }
  func.func @transform_3(%arg0: i32) -> (i32, i32) {
    %c0_i32 = arith.constant 0 : i32
    %c0_i32_0 = arith.constant 0 : i32
    %c0_i32_1 = arith.constant 0 : i32
    return %c0_i32, %c0_i32_0 : i32, i32
  }
  func.func @transform_4(%arg0: i32) -> (i32, i32) {
    %c0_i32 = arith.constant 0 : i32
    %c0_i32_0 = arith.constant 0 : i32
    %c0_i32_1 = arith.constant 0 : i32
    return %c0_i32, %c0_i32_0 : i32, i32
  }
  func.func @transform_5(%arg0: i32) -> (i32, i32) {
    %c0_i32 = arith.constant 0 : i32
    %c0_i32_0 = arith.constant 0 : i32
    %c0_i32_1 = arith.constant 0 : i32
    return %c0_i32, %c0_i32_0 : i32, i32
  }
}

</mosaic_0001>

<bundles_post_ra>
// kernel: densenet_finetune_forward.8
= control target key start
LH: loop header
LB: loop body
LE: loop exit
PB: predicated region body
PF: predicated region fallthrough
CT: control target
= control target key end

     0   :  { %s1097_s12 = smov 0   ;;  %s1339_s0 = inlined_call_operand.vmem [shape: bf16[2,256,147], index: 0, kind: input, shape index: {}]   ;;  %s1340_s1 = inlined_call_operand.vmem [shape: bf16[147,16], index: 1, kind: input, shape index: {}]   ;;  %s1341_s2 = inlined_call_operand.vmem [shape: f32[1,16], index: 2, kind: input, shape index: {}]   ;;  %s1342_s3 = inlined_call_operand.vmem [shape: bf16[2,256,16], index: 3, kind: output, shape index: {}]  }
   0x1 LB: > { %s814_s13 = sadd.s32 4294967295, %s1074_s12   ;;  %p818_p0 = scmp.ge.s32.totalorder %s1074_s12, 1  ;;  %s1074_s12 = sphi %s1097_s12, %s13_s12  }
   0x2   : > { %p137_p1 = scmp.lt.s32.totalorder %s1074_s12, 3 }
   0x4   : > { %p138_p2 = pnand %p818_p0, %p137_p1 }
   0x5   : > { %p161_p3 = scmp.lt.s32.totalorder (!%p138_p2), %s814_s13, 1 }
   0x6   : > { %141 = sbr.rel (%p138_p2) target bundleno = 304 (0x130), region = 32 }
   0xb   : > { %v1046_v0 = vld [vmem:[%s1340_s1 + $0x38] sm:$0xff]  ;;  %v222_v1 = vld [vmem:[%s1340_s1 + $0x48] sm:$0x3]  ;;  %vm477_vm0 = vcmask 1040384   ;;  %vm478_vm1 = vcmask 1041408   ;;  %v1045_v3 = vld [vmem:[%s1340_s1 + $0x30] sm:$0xff] }
   0xc   : > { %v408_v2 = vunpack.c.l.b16 %v222_v1  ;;  %484 = vmatpush.bf16.msra.mxu0 %v1046_v0  ;;  %1048 = vmatpush.bf16.msra.mxu2 %v1046_v0  ;;  %v1076_v4 = vmov 65535   ;;  %s1344_s13 = smov (!%p161_p3, %s814_s13), 1  ;;  %v1044_v9 = vld [vmem:[%s1340_s1 + $0x28] sm:$0xff]  ;;  %v1047_v10 = vld [vmem:[%s1340_s1 + $0x40] sm:$0xff]  ;;  %vm428_vm2 = vcmask 154624   ;;  %v1042_v18 = vld [vmem:[%s1340_s1 + $0x18] sm:$0xff] }
   0xd   : > { %v479_v5 = vsel %vm477_vm0, 4294967295, %v1076_v4  ;;  %s1005_s20 = sshll.u32 %s1344_s13, 8  ;;  %v1043_v15 = vld [vmem:[%s1340_s1 + $0x20] sm:$0xff]  ;;  %v1041_v19 = vld [vmem:[%s1340_s1 + $0x10] sm:$0xff]  ;;  %v1040_v20 = vld [vmem:[%s1340_s1 + $0x8] sm:$0xff]  ;;  %s1006_s15 = sshll.u32 %s1344_s13, 7 }
   0xe   : > { %v418_v6 = vpack.c.b16 %v408_v2, %v408_v2  ;;  %v480_v7 = vsel %vm478_vm1, %v479_v5, 0  ;;  %s1123_s25 = scalar_lea.vmem %s1339_s0, %s1005_s20  ;;  %v1039_v26 = vld [vmem:[%s1340_s1] sm:$0xff]  ;;  %s1233_s18 = scalar_lea.vmem %s1342_s3, %s1006_s15  ;;  %vm726_vm3 = vcmask 125952  }
   0xf   : > { %v1007_v11 = vld [vmem:[%s1123_s25 + $0x4] sm:$0xf]  ;;  %v827_v12 = vld [vmem:[%s1123_s25 + $0x8] sm:$0xf0]  ;;  %v1025_v13 = vld [vmem:[%s1123_s25 + $0x94] sm:$0xf] }
  0x10   : > { %v482_v8 = vand.u32 %v480_v7, %v418_v6  ;;  %485 = vmatpush.bf16.msra.mxu0 %v1045_v3  ;;  %1049 = vmatpush.bf16.msra.mxu2 %v1045_v3  ;;  %v830_v14 = vor.u32 %v1007_v11, %v827_v12  ;;  %v899_v16 = vld [vmem:[%s1123_s25 + $0x98] sm:$0xf0]  ;;  %v1009_v21 = vld [vmem:[%s1123_s25 + $0x14] sm:$0xf]  ;;  %v1027_v23 = vld [vmem:[%s1123_s25 + $0xa4] sm:$0xf] }
  0x11   : > { %v902_v17 = vor.u32 %v1025_v13, %v899_v16  ;;  %v835_v22 = vld [vmem:[%s1123_s25 + $0x18] sm:$0xf0]  ;;  %v907_v24 = vld [vmem:[%s1123_s25 + $0xa8] sm:$0xf0]  ;;  %v825_v27 = vld [vmem:[%s1123_s25] sm:$0xf] }
  0x12   : > { %579 = vmatpush.bf16.msra.mxu1 %v482_v8  ;;  %1056 = vmatpush.bf16.msra.mxu3 %v482_v8  ;;  %v838_v25 = vor.u32 %v1009_v21, %v835_v22  ;;  %v1008_v28 = vld [vmem:[%s1123_s25 + $0x4] sm:$0xf0]  ;;  %v889_v29 = vld [vmem:[%s1123_s25 + $0x80] sm:$0xf]  ;;  %v910_v31 = vor.u32 %v1027_v23, %v907_v24  ;;  %v1011_v34 = vld [vmem:[%s1123_s25 + $0x24] sm:$0xf] }
  0x13   : > { %v1024_v30 = vld [vmem:[%s1123_s25 + $0x84] sm:$0xf0]  ;;  %v826_v32 = vor.u32 %v1008_v28, %v825_v27  ;;  %v843_v35 = vld [vmem:[%s1123_s25 + $0x28] sm:$0xf0]  ;;  %v1029_v36 = vld [vmem:[%s1123_s25 + $0xb4] sm:$0xf] }
  0x14   : > { %486 = vmatpush.bf16.msra.mxu0 %v1044_v9  ;;  %1050 = vmatpush.bf16.msra.mxu2 %v1044_v9  ;;  %v890_v33 = vor.u32 %v1024_v30, %v889_v29  ;;  %v915_v37 = vld [vmem:[%s1123_s25 + $0xb8] sm:$0xf0]  ;;  %v846_v38 = vor.u32 %v1011_v34, %v843_v35  ;;  %v833_v39 = vld [vmem:[%s1123_s25 + $0x10] sm:$0xf]  ;;  %v1010_v40 = vld [vmem:[%s1123_s25 + $0x14] sm:$0xf0] }
  0x15   : > { %v897_v41 = vld [vmem:[%s1123_s25 + $0x90] sm:$0xf]  ;;  %v1026_v42 = vld [vmem:[%s1123_s25 + $0x94] sm:$0xf0]  ;;  %v918_v43 = vor.u32 %v1029_v36, %v915_v37  ;;  %v834_v44 = vor.u32 %v1010_v40, %v833_v39  ;;  %v1013_v46 = vld [vmem:[%s1123_s25 + $0x34] sm:$0xf] }
  0x16   : > { %580 = vmatpush.bf16.msra.mxu1 %v1047_v10  ;;  %1057 = vmatpush.bf16.msra.mxu3 %v1047_v10  ;;  %v898_v45 = vor.u32 %v1026_v42, %v897_v41  ;;  %v851_v47 = vld [vmem:[%s1123_s25 + $0x38] sm:$0xf0]  ;;  %v1031_v48 = vld [vmem:[%s1123_s25 + $0xc4] sm:$0xf]  ;;  %v923_v49 = vld [vmem:[%s1123_s25 + $0xc8] sm:$0xf0] }
  0x17   : > { %v854_v50 = vor.u32 %v1013_v46, %v851_v47  ;;  %v841_v51 = vld [vmem:[%s1123_s25 + $0x20] sm:$0xf]  ;;  %v1012_v52 = vld [vmem:[%s1123_s25 + $0x24] sm:$0xf0]  ;;  %v926_v55 = vor.u32 %v1031_v48, %v923_v49  ;;  %v1015_v58 = vld [vmem:[%s1123_s25 + $0x44] sm:$0xf] }
  0x18   : > { %487 = vmatpush.bf16.msra.mxu0 %v1043_v15  ;;  %1051 = vmatpush.bf16.msra.mxu2 %v1043_v15  ;;  %v905_v53 = vld [vmem:[%s1123_s25 + $0xa0] sm:$0xf]  ;;  %v1028_v54 = vld [vmem:[%s1123_s25 + $0xa4] sm:$0xf0]  ;;  %v842_v56 = vor.u32 %v1012_v52, %v841_v51  ;;  %v859_v59 = vld [vmem:[%s1123_s25 + $0x48] sm:$0xf0] }
  0x19   : > { %987 = vmatmul.msk.bf16.vlgmr.msra.gmra.mxu1 %vm428_vm2, %v830_v14  ;;  %996 = vmatmul.msk.bf16.vlgmr.msra.gmra.mxu3 %vm428_vm2, %v902_v17  ;;  %v906_v57 = vor.u32 %v1028_v54, %v905_v53  ;;  %v1033_v60 = vld [vmem:[%s1123_s25 + $0xd4] sm:$0xf]  ;;  %v931_v61 = vld [vmem:[%s1123_s25 + $0xd8] sm:$0xf0]  ;;  %v862_v62 = vor.u32 %v1015_v58, %v859_v59  ;;  %v849_v63 = vld [vmem:[%s1123_s25 + $0x30] sm:$0xf] }
  0x1a   : > { %v1014_v0 = vld [vmem:[%s1123_s25 + $0x34] sm:$0xf0]  ;;  %v913_v1 = vld [vmem:[%s1123_s25 + $0xb0] sm:$0xf]  ;;  %v934_v3 = vor.u32 %v1033_v60, %v931_v61  ;;  %v1017_v6 = vld [vmem:[%s1123_s25 + $0x54] sm:$0xf] }
  0x1b   : > { %v1030_v2 = vld [vmem:[%s1123_s25 + $0xb4] sm:$0xf0]  ;;  %v850_v4 = vor.u32 %v1014_v0, %v849_v63  ;;  %v867_v7 = vld [vmem:[%s1123_s25 + $0x58] sm:$0xf0]  ;;  %v1035_v8 = vld [vmem:[%s1123_s25 + $0xe4] sm:$0xf] }
  0x1c   : > { %488 = vmatpush.bf16.msra.mxu0 %v1042_v18  ;;  %1052 = vmatpush.bf16.msra.mxu2 %v1042_v18  ;;  %v914_v5 = vor.u32 %v1030_v2, %v913_v1  ;;  %v939_v9 = vld [vmem:[%s1123_s25 + $0xe8] sm:$0xf0]  ;;  %v870_v10 = vor.u32 %v1017_v6, %v867_v7  ;;  %v857_v11 = vld [vmem:[%s1123_s25 + $0x40] sm:$0xf]  ;;  %v1016_v12 = vld [vmem:[%s1123_s25 + $0x44] sm:$0xf0] }
  0x1d   : > { %v921_v13 = vld [vmem:[%s1123_s25 + $0xc0] sm:$0xf]  ;;  %v1032_v14 = vld [vmem:[%s1123_s25 + $0xc4] sm:$0xf0]  ;;  %v942_v15 = vor.u32 %v1035_v8, %v939_v9  ;;  %v858_v16 = vor.u32 %v1016_v12, %v857_v11  ;;  %v1019_v18 = vld [vmem:[%s1123_s25 + $0x64] sm:$0xf] }
  0x1e   : > { %v922_v17 = vor.u32 %v1032_v14, %v921_v13  ;;  %v947_v21 = vld [vmem:[%s1123_s25 + $0xf8] sm:$0xf0]  ;;  %v865_v23 = vld [vmem:[%s1123_s25 + $0x50] sm:$0xf]  ;;  %v1018_v24 = vld [vmem:[%s1123_s25 + $0x54] sm:$0xf0] }
  0x1f   : > { %v866_v28 = vor.u32 %v1018_v24, %v865_v23  ;;  %v1021_v30 = vld [vmem:[%s1123_s25 + $0x74] sm:$0xf]  ;;  %v1020_v34 = vld [vmem:[%s1123_s25 + $0x64] sm:$0xf0]  ;;  %v937_v35 = vld [vmem:[%s1123_s25 + $0xe0] sm:$0xf] }
  0x20   : > { %489 = vmatpush.bf16.msra.mxu0 %v1041_v19  ;;  %1053 = vmatpush.bf16.msra.mxu2 %v1041_v19  ;;  %v875_v19 = vld [vmem:[%s1123_s25 + $0x68] sm:$0xf0]  ;;  %v1036_v36 = vld [vmem:[%s1123_s25 + $0xe4] sm:$0xf0]  ;;  %v1023_v39 = vld [vmem:[%s1123_s25 + $0x84] sm:$0xf] }
  0x21   : > { %v878_v22 = vor.u32 %v1019_v18, %v875_v19  ;;  %v891_v40 = vld [vmem:[%s1123_s25 + $0x88] sm:$0xf0]  ;;  %v881_v42 = vld [vmem:[%s1123_s25 + $0x70] sm:$0xf]  ;;  %v1038_v46 = vld [vmem:[%s1123_s25 + $0xf4] sm:$0xf0] }
  0x22   : > { %v894_v41 = vor.u32 %v1023_v39, %v891_v40  ;;  %v1226_v51 = vld [vmem:[%s1341_s2] ss:$0 sm:$0xff] }
  0x24   : > { %490 = vmatpush.bf16.msra.mxu0 %v1040_v20  ;;  %1054 = vmatpush.bf16.msra.mxu2 %v1040_v20  ;;  %v1037_v20 = vld [vmem:[%s1123_s25 + $0xf4] sm:$0xf] }
  0x25   : > { %v950_v27 = vor.u32 %v1037_v20, %v947_v21 }
  0x28   : > { %491 = vmatpush.bf16.msra.mxu0 %v1039_v26  ;;  %1055 = vmatpush.bf16.msra.mxu2 %v1039_v26  ;;  %v1034_v26 = vld [vmem:[%s1123_s25 + $0xd4] sm:$0xf0] }
  0x29   : > { %988 = vmatmul.msk.bf16.gmra.mxu1 %vm428_vm2, %v838_v25  ;;  %997 = vmatmul.msk.bf16.gmra.mxu3 %vm428_vm2, %v910_v31  ;;  %v929_v25 = vld [vmem:[%s1123_s25 + $0xd0] sm:$0xf]  ;;  %v883_v31 = vld [vmem:[%s1123_s25 + $0x78] sm:$0xf0] }
  0x2a   : > { %v930_v29 = vor.u32 %v1034_v26, %v929_v25 }
  0x2b   : > { %492 = vmatmul.bf16.vlgmr.msra.gmra.mxu0 %v826_v32  ;;  %532 = vmatmul.bf16.vlgmr.msra.gmra.mxu2 %v890_v33  ;;  %v886_v32 = vor.u32 %v1021_v30, %v883_v31  ;;  %v873_v33 = vld [vmem:[%s1123_s25 + $0x60] sm:$0xf] }
  0x2c   : > { %v874_v37 = vor.u32 %v1020_v34, %v873_v33 }
  0x39   : > { %989 = vmatmul.msk.bf16.gmra.mxu1 %vm428_vm2, %v846_v38  ;;  %998 = vmatmul.msk.bf16.gmra.mxu3 %vm428_vm2, %v918_v43  ;;  %v938_v38 = vor.u32 %v1036_v36, %v937_v35  ;;  %v1022_v43 = vld [vmem:[%s1123_s25 + $0x74] sm:$0xf0] }
  0x3a   : > { %v882_v47 = vor.u32 %v1022_v43, %v881_v42 }
  0x3b   : > { %497 = vmatmul.bf16.gmra.mxu0 %v834_v44  ;;  %537 = vmatmul.bf16.gmra.mxu2 %v898_v45  ;;  %v945_v45 = vld [vmem:[%s1123_s25 + $0xf0] sm:$0xf] }
  0x3c   : > { %v946_v48 = vor.u32 %v1038_v46, %v945_v45 }
  0x49   : > { %990 = vmatmul.msk.bf16.gmra.mxu1 %vm428_vm2, %v854_v50  ;;  %999 = vmatmul.msk.bf16.gmra.mxu3 %vm428_vm2, %v926_v55 }
  0x4b   : > { %502 = vmatmul.bf16.gmra.mxu0 %v842_v56  ;;  %542 = vmatmul.bf16.gmra.mxu2 %v906_v57 }
  0x59   : > { %991 = vmatmul.msk.bf16.gmra.mxu1 %vm428_vm2, %v862_v62  ;;  %1000 = vmatmul.msk.bf16.gmra.mxu3 %vm428_vm2, %v934_v3 }
  0x5b   : > { %507 = vmatmul.bf16.gmra.mxu0 %v850_v4  ;;  %547 = vmatmul.bf16.gmra.mxu2 %v914_v5 }
  0x69   : > { %992 = vmatmul.msk.bf16.gmra.mxu1 %vm428_vm2, %v870_v10  ;;  %1001 = vmatmul.msk.bf16.gmra.mxu3 %vm428_vm2, %v942_v15 }
  0x6b   : > { %512 = vmatmul.bf16.gmra.mxu0 %v858_v16  ;;  %552 = vmatmul.bf16.gmra.mxu2 %v922_v17 }
  0x79   : > { %993 = vmatmul.msk.bf16.gmra.mxu1 %vm428_vm2, %v878_v22  ;;  %1002 = vmatmul.msk.bf16.gmra.mxu3 %vm428_vm2, %v950_v27 }
  0x7b   : > { %517 = vmatmul.bf16.gmra.mxu0 %v866_v28  ;;  %557 = vmatmul.bf16.gmra.mxu2 %v930_v29 }
  0x89   : > { %994 = vmatmul.msk.bf16.gmra.mxu1 %vm428_vm2, %v886_v32 }
  0x8b   : > { %522 = vmatmul.bf16.gmra.mxu0 %v874_v37  ;;  %562 = vmatmul.bf16.gmra.mxu2 %v938_v38 }
  0x96   : > { %v582_v44 = vpop.f32.mrf.mxu1 }
  0x99   : > { %995 = vmatmul.msk.bf16.gmra.mxu1 %vm428_vm2, %v894_v41 }
  0x9b   : > { %527 = vmatmul.bf16.gmra.mxu0 %v882_v47  ;;  %567 = vmatmul.bf16.gmra.mxu2 %v946_v48 }
  0x9c   : > { %v627_v52 = vpop.f32.mrf.mxu3 }
  0x9e   : > { %v584_v49 = vpop.f32.mrf.mxu1 }
  0xa4   : > { %v629_v62 = vpop.f32.mrf.mxu3 }
  0xa6   : > { %v587_v50 = vpop.f32.mrf.mxu1 }
  0xa8   : > { %v493_v53 = vpop.f32.mrf.mxu0 }
  0xa9   : > { %v494_v54 = vadd.f32 %v1226_v51, %v493_v53 }
  0xab   : > { %v583_v55 = vadd.f32 %v582_v44, %v494_v54 }
  0xac   : > { %v632_v7 = vpop.f32.mrf.mxu3 }
  0xad   : > { %v662_v56 = vmax.f32 %v583_v55, 0.0 }
  0xae   : > { %v589_v57 = vpop.f32.mrf.mxu1  ;;  %v1235_v59 = vpop.f32.mrf.mxu2 }
  0xaf   : > { %v694_v58 = vpack.c.bf16 %v662_v56, %v662_v56 }
  0xb0   : > { %v495_v60 = vpop.f32.mrf.mxu0 }
  0xb1   : > { %727 = vst.msk [vmem:[%s1233_s18] sm:$0xf] %vm726_vm3, %v694_v58  ;;  %v496_v61 = vadd.f32 %v1226_v51, %v495_v60 }
  0xb3   : > { %v585_v63 = vadd.f32 %v584_v49, %v496_v61 }
  0xb4   : > { %v634_v20 = vpop.f32.mrf.mxu3 }
  0xb5   : > { %v663_v0 = vmax.f32 %v585_v63, 0.0 }
  0xb6   : > { %v592_v1 = vpop.f32.mrf.mxu1  ;;  %v1240_v3 = vpop.f32.mrf.mxu2 }
  0xb7   : > { %v695_v2 = vpack.c.bf16 %v663_v0, %v663_v0 }
  0xb8   : > { %v498_v4 = vpop.f32.mrf.mxu0 }
  0xb9   : > { %728 = vst.msk [vmem:[%s1233_s18 + $0x4] sm:$0xf] %vm726_vm3, %v695_v2  ;;  %v499_v5 = vadd.f32 %v1226_v51, %v498_v4 }
  0xbb   : > { %v588_v6 = vadd.f32 %v587_v50, %v499_v5 }
  0xbc   : > { %v637_v35 = vpop.f32.mrf.mxu3 }
  0xbd   : > { %v664_v8 = vmax.f32 %v588_v6, 0.0 }
  0xbe   : > { %v594_v9 = vpop.f32.mrf.mxu1  ;;  %v538_v11 = vpop.f32.mrf.mxu2 }
  0xbf   : > { %v696_v10 = vpack.c.bf16 %v664_v8, %v664_v8  ;;  %v539_v12 = vadd.f32 %v1226_v51, %v538_v11 }
  0xc0   : > { %v500_v13 = vpop.f32.mrf.mxu0 }
  0xc1   : > { %729 = vst.msk [vmem:[%s1233_s18 + $0x8] sm:$0xf] %vm726_vm3, %v696_v10  ;;  %v501_v14 = vadd.f32 %v1226_v51, %v500_v13  ;;  %v628_v15 = vadd.f32 %v627_v52, %v539_v12 }
  0xc3   : > { %v590_v16 = vadd.f32 %v589_v57, %v501_v14  ;;  %v680_v17 = vmax.f32 %v628_v15, 0.0 }
  0xc4   : > { %v639_v50 = vpop.f32.mrf.mxu3 }
  0xc5   : > { %v665_v18 = vmax.f32 %v590_v16, 0.0  ;;  %v712_v21 = vpack.c.bf16 %v680_v17, %v680_v17 }
  0xc6   : > { %v597_v19 = vpop.f32.mrf.mxu1  ;;  %v540_v23 = vpop.f32.mrf.mxu2 }
  0xc7   : > { %v697_v22 = vpack.c.bf16 %v665_v18, %v665_v18  ;;  %745 = vst.msk [vmem:[%s1233_s18 + $0x48] sm:$0xf] %vm726_vm3, %v712_v21  ;;  %v541_v24 = vadd.f32 %v1226_v51, %v540_v23 }
  0xc8   : > { %v503_v25 = vpop.f32.mrf.mxu0 }
  0xc9   : > { %730 = vst.msk [vmem:[%s1233_s18 + $0xc] sm:$0xf] %vm726_vm3, %v697_v22  ;;  %v504_v26 = vadd.f32 %v1226_v51, %v503_v25  ;;  %v630_v27 = vadd.f32 %v629_v62, %v541_v24 }
  0xcb   : > { %v593_v28 = vadd.f32 %v592_v1, %v504_v26  ;;  %v681_v29 = vmax.f32 %v630_v27, 0.0 }
  0xcc   : > { %v642_v2 = vpop.f32.mrf.mxu3 }
  0xcd   : > { %v666_v30 = vmax.f32 %v593_v28, 0.0  ;;  %v713_v32 = vpack.c.bf16 %v681_v29, %v681_v29 }
  0xce   : > { %v599_v31 = vpop.f32.mrf.mxu1  ;;  %v543_v34 = vpop.f32.mrf.mxu2 }
  0xcf   : > { %v698_v33 = vpack.c.bf16 %v666_v30, %v666_v30  ;;  %746 = vst.msk [vmem:[%s1233_s18 + $0x4c] sm:$0xf] %vm726_vm3, %v713_v32  ;;  %v544_v36 = vadd.f32 %v1226_v51, %v543_v34 }
  0xd0   : > { %v505_v37 = vpop.f32.mrf.mxu0 }
  0xd1   : > { %731 = vst.msk [vmem:[%s1233_s18 + $0x10] sm:$0xf] %vm726_vm3, %v698_v33  ;;  %v506_v38 = vadd.f32 %v1226_v51, %v505_v37  ;;  %v633_v39 = vadd.f32 %v632_v7, %v544_v36 }
  0xd3   : > { %v595_v40 = vadd.f32 %v594_v9, %v506_v38  ;;  %v682_v41 = vmax.f32 %v633_v39, 0.0 }
  0xd4   : > { %v644_v18 = vpop.f32.mrf.mxu3 }
  0xd5   : > { %v667_v42 = vmax.f32 %v595_v40, 0.0  ;;  %v714_v44 = vpack.c.bf16 %v682_v41, %v682_v41 }
  0xd6   : > { %v602_v43 = vpop.f32.mrf.mxu1  ;;  %v545_v46 = vpop.f32.mrf.mxu2 }
  0xd7   : > { %v699_v45 = vpack.c.bf16 %v667_v42, %v667_v42  ;;  %747 = vst.msk [vmem:[%s1233_s18 + $0x50] sm:$0xf] %vm726_vm3, %v714_v44  ;;  %v546_v47 = vadd.f32 %v1226_v51, %v545_v46 }
  0xd8   : > { %v508_v48 = vpop.f32.mrf.mxu0 }
  0xd9   : > { %732 = vst.msk [vmem:[%s1233_s18 + $0x14] sm:$0xf] %vm726_vm3, %v699_v45  ;;  %v509_v49 = vadd.f32 %v1226_v51, %v508_v48  ;;  %v635_v52 = vadd.f32 %v634_v20, %v546_v47 }
  0xdb   : > { %v598_v53 = vadd.f32 %v597_v19, %v509_v49  ;;  %v683_v54 = vmax.f32 %v635_v52, 0.0 }
  0xdc   : > { %v647_v33 = vpop.f32.mrf.mxu3 }
  0xdd   : > { %v668_v55 = vmax.f32 %v598_v53, 0.0  ;;  %v715_v57 = vpack.c.bf16 %v683_v54, %v683_v54 }
  0xde   : > { %v604_v56 = vpop.f32.mrf.mxu1  ;;  %v548_v60 = vpop.f32.mrf.mxu2 }
  0xdf   : > { %v700_v58 = vpack.c.bf16 %v668_v55, %v668_v55  ;;  %748 = vst.msk [vmem:[%s1233_s18 + $0x54] sm:$0xf] %vm726_vm3, %v715_v57  ;;  %v549_v61 = vadd.f32 %v1226_v51, %v548_v60 }
  0xe0   : > { %v510_v62 = vpop.f32.mrf.mxu0 }
  0xe1   : > { %733 = vst.msk [vmem:[%s1233_s18 + $0x18] sm:$0xf] %vm726_vm3, %v700_v58  ;;  %v511_v63 = vadd.f32 %v1226_v51, %v510_v62  ;;  %v638_v0 = vadd.f32 %v637_v35, %v549_v61 }
  0xe3   : > { %v600_v1 = vadd.f32 %v599_v31, %v511_v63  ;;  %v684_v4 = vmax.f32 %v638_v0, 0.0 }
  0xe4   : > { %v649_v48 = vpop.f32.mrf.mxu3 }
  0xe5   : > { %v669_v5 = vmax.f32 %v600_v1, 0.0  ;;  %v716_v7 = vpack.c.bf16 %v684_v4, %v684_v4 }
  0xe6   : > { %v607_v6 = vpop.f32.mrf.mxu1  ;;  %v550_v9 = vpop.f32.mrf.mxu2 }
  0xe7   : > { %v701_v8 = vpack.c.bf16 %v669_v5, %v669_v5  ;;  %749 = vst.msk [vmem:[%s1233_s18 + $0x58] sm:$0xf] %vm726_vm3, %v716_v7  ;;  %v551_v10 = vadd.f32 %v1226_v51, %v550_v9 }
  0xe8   : > { %v513_v11 = vpop.f32.mrf.mxu0 }
  0xe9   : > { %734 = vst.msk [vmem:[%s1233_s18 + $0x1c] sm:$0xf] %vm726_vm3, %v701_v8  ;;  %v514_v12 = vadd.f32 %v1226_v51, %v513_v11  ;;  %v640_v13 = vadd.f32 %v639_v50, %v551_v10 }
  0xeb   : > { %v603_v14 = vadd.f32 %v602_v43, %v514_v12  ;;  %v685_v15 = vmax.f32 %v640_v13, 0.0  ;;  %v534_v13 = vadd.f32 %v1226_v51, %v1235_v59 }
  0xec   : > { %v652_v0 = vpop.f32.mrf.mxu3 }
  0xed   : > { %v670_v16 = vmax.f32 %v603_v14, 0.0  ;;  %v717_v19 = vpack.c.bf16 %v685_v15, %v685_v15 }
  0xee   : > { %v609_v17 = vpop.f32.mrf.mxu1  ;;  %v553_v21 = vpop.f32.mrf.mxu2 }
  0xef   : > { %v702_v20 = vpack.c.bf16 %v670_v16, %v670_v16  ;;  %750 = vst.msk [vmem:[%s1233_s18 + $0x5c] sm:$0xf] %vm726_vm3, %v717_v19  ;;  %v554_v22 = vadd.f32 %v1226_v51, %v553_v21 }
  0xf0   : > { %v515_v23 = vpop.f32.mrf.mxu0 }
  0xf1   : > { %735 = vst.msk [vmem:[%s1233_s18 + $0x20] sm:$0xf] %vm726_vm3, %v702_v20  ;;  %v516_v24 = vadd.f32 %v1226_v51, %v515_v23  ;;  %v643_v25 = vadd.f32 %v642_v2, %v554_v22 }
  0xf3   : > { %v605_v26 = vadd.f32 %v604_v56, %v516_v24  ;;  %v686_v27 = vmax.f32 %v643_v25, 0.0 }
  0xf4   : > { %v654_v16 = vpop.f32.mrf.mxu3 }
  0xf5   : > { %v671_v28 = vmax.f32 %v605_v26, 0.0  ;;  %v718_v30 = vpack.c.bf16 %v686_v27, %v686_v27 }
  0xf6   : > { %v612_v29 = vpop.f32.mrf.mxu1  ;;  %v555_v32 = vpop.f32.mrf.mxu2 }
  0xf7   : > { %v703_v31 = vpack.c.bf16 %v671_v28, %v671_v28  ;;  %751 = vst.msk [vmem:[%s1233_s18 + $0x60] sm:$0xf] %vm726_vm3, %v718_v30  ;;  %v556_v34 = vadd.f32 %v1226_v51, %v555_v32  ;;  %v536_v28 = vadd.f32 %v1226_v51, %v1240_v3 }
  0xf8   : > { %v518_v35 = vpop.f32.mrf.mxu0 }
  0xf9   : > { %736 = vst.msk [vmem:[%s1233_s18 + $0x24] sm:$0xf] %vm726_vm3, %v703_v31  ;;  %v519_v36 = vadd.f32 %v1226_v51, %v518_v35  ;;  %v645_v37 = vadd.f32 %v644_v18, %v556_v34 }
  0xfb   : > { %v608_v38 = vadd.f32 %v607_v6, %v519_v36  ;;  %v687_v39 = vmax.f32 %v645_v37, 0.0 }
  0xfc   : > { %v657_v35 = vpop.f32.mrf.mxu3 }
  0xfd   : > { %v672_v40 = vmax.f32 %v608_v38, 0.0  ;;  %v719_v42 = vpack.c.bf16 %v687_v39, %v687_v39 }
  0xfe   : > { %v614_v41 = vpop.f32.mrf.mxu1  ;;  %v558_v44 = vpop.f32.mrf.mxu2 }
  0xff   : > { %v704_v43 = vpack.c.bf16 %v672_v40, %v672_v40  ;;  %752 = vst.msk [vmem:[%s1233_s18 + $0x64] sm:$0xf] %vm726_vm3, %v719_v42  ;;  %v559_v45 = vadd.f32 %v1226_v51, %v558_v44 }
 0x100   : > { %v520_v46 = vpop.f32.mrf.mxu0 }
 0x101   : > { %737 = vst.msk [vmem:[%s1233_s18 + $0x28] sm:$0xf] %vm726_vm3, %v704_v43  ;;  %v521_v47 = vadd.f32 %v1226_v51, %v520_v46  ;;  %v648_v49 = vadd.f32 %v647_v33, %v559_v45 }
 0x103   : > { %v610_v50 = vadd.f32 %v609_v17, %v521_v47  ;;  %v688_v52 = vmax.f32 %v648_v49, 0.0 }
 0x104   : > { %v659_v49 = vpop.f32.mrf.mxu3 }
 0x105   : > { %v673_v53 = vmax.f32 %v610_v50, 0.0  ;;  %v720_v55 = vpack.c.bf16 %v688_v52, %v688_v52 }
 0x106   : > { %v617_v54 = vpop.f32.mrf.mxu1  ;;  %v560_v57 = vpop.f32.mrf.mxu2 }
 0x107   : > { %v705_v56 = vpack.c.bf16 %v673_v53, %v673_v53  ;;  %753 = vst.msk [vmem:[%s1233_s18 + $0x68] sm:$0xf] %vm726_vm3, %v720_v55  ;;  %v561_v58 = vadd.f32 %v1226_v51, %v560_v57 }
 0x108   : > { %v523_v60 = vpop.f32.mrf.mxu0 }
 0x109   : > { %738 = vst.msk [vmem:[%s1233_s18 + $0x2c] sm:$0xf] %vm726_vm3, %v705_v56  ;;  %v524_v61 = vadd.f32 %v1226_v51, %v523_v60  ;;  %v650_v62 = vadd.f32 %v649_v48, %v561_v58 }
 0x10b   : > { %v613_v63 = vadd.f32 %v612_v29, %v524_v61  ;;  %v689_v1 = vmax.f32 %v650_v62, 0.0 }
 0x10d   : > { %v674_v2 = vmax.f32 %v613_v63, 0.0  ;;  %v721_v5 = vpack.c.bf16 %v689_v1, %v689_v1 }
 0x10e   : > { %v619_v4 = vpop.f32.mrf.mxu1  ;;  %v563_v7 = vpop.f32.mrf.mxu2 }
 0x10f   : > { %v706_v6 = vpack.c.bf16 %v674_v2, %v674_v2  ;;  %754 = vst.msk [vmem:[%s1233_s18 + $0x6c] sm:$0xf] %vm726_vm3, %v721_v5  ;;  %v564_v8 = vadd.f32 %v1226_v51, %v563_v7 }
 0x110   : > { %v525_v9 = vpop.f32.mrf.mxu0 }
 0x111   : > { %739 = vst.msk [vmem:[%s1233_s18 + $0x30] sm:$0xf] %vm726_vm3, %v706_v6  ;;  %v526_v10 = vadd.f32 %v1226_v51, %v525_v9  ;;  %v653_v11 = vadd.f32 %v652_v0, %v564_v8 }
 0x113   : > { %v615_v12 = vadd.f32 %v614_v41, %v526_v10  ;;  %v690_v14 = vmax.f32 %v653_v11, 0.0 }
 0x115   : > { %v675_v15 = vmax.f32 %v615_v12, 0.0  ;;  %v722_v18 = vpack.c.bf16 %v690_v14, %v690_v14 }
 0x116   : > { %v622_v17 = vpop.f32.mrf.mxu1  ;;  %v565_v21 = vpop.f32.mrf.mxu2 }
 0x117   : > { %v623_v19 = vadd.f32 %v622_v17, %v534_v13  ;;  %v707_v20 = vpack.c.bf16 %v675_v15, %v675_v15  ;;  %755 = vst.msk [vmem:[%s1233_s18 + $0x70] sm:$0xf] %vm726_vm3, %v722_v18  ;;  %v566_v23 = vadd.f32 %v1226_v51, %v565_v21 }
 0x118   : > { %v528_v24 = vpop.f32.mrf.mxu0 }
 0x119   : > { %v678_v22 = vmax.f32 %v623_v19, 0.0  ;;  %740 = vst.msk [vmem:[%s1233_s18 + $0x34] sm:$0xf] %vm726_vm3, %v707_v20  ;;  %v529_v59 = vadd.f32 %v1226_v51, %v528_v24  ;;  %v655_v26 = vadd.f32 %v654_v16, %v566_v23 }
 0x11b   : > { %v710_v25 = vpack.c.bf16 %v678_v22, %v678_v22  ;;  %v618_v27 = vadd.f32 %v617_v54, %v529_v59  ;;  %v691_v29 = vmax.f32 %v655_v26, 0.0 }
 0x11d   : > { %743 = vst.msk [vmem:[%s1233_s18 + $0x40] sm:$0xf] %vm726_vm3, %v710_v25  ;;  %v676_v30 = vmax.f32 %v618_v27, 0.0  ;;  %v723_v32 = vpack.c.bf16 %v691_v29, %v691_v29 }
 0x11e   : > { %v624_v31 = vpop.f32.mrf.mxu1  ;;  %v568_v36 = vpop.f32.mrf.mxu2 }
 0x11f   : > { %v625_v33 = vadd.f32 %v624_v31, %v536_v28  ;;  %v708_v34 = vpack.c.bf16 %v676_v30, %v676_v30  ;;  %756 = vst.msk [vmem:[%s1233_s18 + $0x74] sm:$0xf] %vm726_vm3, %v723_v32  ;;  %v569_v38 = vadd.f32 %v1226_v51, %v568_v36 }
 0x120   : > { %v530_v39 = vpop.f32.mrf.mxu0 }
 0x121   : > { %v679_v37 = vmax.f32 %v625_v33, 0.0  ;;  %741 = vst.msk [vmem:[%s1233_s18 + $0x38] sm:$0xf] %vm726_vm3, %v708_v34  ;;  %v531_v3 = vadd.f32 %v1226_v51, %v530_v39  ;;  %v658_v41 = vadd.f32 %v657_v35, %v569_v38 }
 0x123   : > { %v711_v40 = vpack.c.bf16 %v679_v37, %v679_v37  ;;  %v620_v42 = vadd.f32 %v619_v4, %v531_v3  ;;  %v692_v43 = vmax.f32 %v658_v41, 0.0 }
 0x125   : > { %744 = vst.msk [vmem:[%s1233_s18 + $0x44] sm:$0xf] %vm726_vm3, %v711_v40  ;;  %v677_v44 = vmax.f32 %v620_v42, 0.0  ;;  %v724_v45 = vpack.c.bf16 %v692_v43, %v692_v43 }
 0x126   : > { %v570_v47 = vpop.f32.mrf.mxu2 }
 0x127   : > { %v709_v46 = vpack.c.bf16 %v677_v44, %v677_v44  ;;  %757 = vst.msk [vmem:[%s1233_s18 + $0x78] sm:$0xf] %vm726_vm3, %v724_v45  ;;  %v571_v48 = vadd.f32 %v1226_v51, %v570_v47 }
 0x129   : > { %742 = vst.msk [vmem:[%s1233_s18 + $0x3c] sm:$0xf] %vm726_vm3, %v709_v46  ;;  %v660_v50 = vadd.f32 %v659_v49, %v571_v48 }
 0x12b   : > { %v693_v52 = vmax.f32 %v660_v50, 0.0 }
 0x12d   : > { %v725_v53 = vpack.c.bf16 %v693_v52, %v693_v52 }
 0x12f   : > { %758 = vst.msk [vmem:[%s1233_s18 + $0x7c] sm:$0xf] %vm726_vm3, %v725_v53 }
 0x130 PF: > { %s13_s12 = sadd.s32 1, %s1074_s12  }
 0x131   : > { %p10_p4 = scmp.ge.s32.totalorder %s13_s12, 4  }
 0x133   :  { %12 = sbr.rel (!%p10_p4) target bundleno = 1 (0x1), region = 62 }

// kernel: densenet_finetune_forward.9
= control target key start
LH: loop header
LB: loop body
LE: loop exit
PB: predicated region body
PF: predicated region fallthrough
CT: control target
= control target key end

     0   :  { %s1229_s6 = smov 0   ;;  %s1231_s7 = smov 0   ;;  %s1670_s0 = inlined_call_operand.vmem [shape: bf16[4,2,82,16], index: 0, kind: input, shape index: {}]   ;;  %s1671_s1 = inlined_call_operand.vmem [shape: bf16[2,64,32], index: 1, kind: output, shape index: {}]  }
   0x1   :  { %s1233_s8 = smov 0  }
   0x2 LB: > { %s1091_s9 = sadd.s32 4294967295, %s1217_s8   ;;  %s1246_s10 = sadd.s32 1, %s1217_s8   ;;  %s1217_s8 = sphi %s1233_s8, %s1691_s8   ;;  %s1213_s7 = sphi %s1231_s7, %s1690_s7   ;;  %s1209_s6 = sphi %s1229_s6, %s1689_s6  }
   0x3   : > { %s15_s11 = ssub.s32 %s1217_s8, %s1246_s10  ;;  %s18_s12 = sadd.s32 1, %s1213_s7 }
   0x4   : > { %p16_p0 = scmp.eq.s32.totalorder %s15_s11, 0  ;;  %p25_p1 = scmp.ne.s32.totalorder %s1213_s7, %s1209_s6 }
   0x5   : > { %p26_p2 = scmp.eq.s32.totalorder %s1217_s8, 0  ;;  %p1094_p4 = scmp.ge.s32.totalorder %s1217_s8, 2 }
   0x6   : > { %s1255_s13 = scalar_select %p16_p0, %s1213_s7, %s18_s12  }
   0x7   : > { %p27_p3 = por %p26_p2, %p25_p1  ;;  %77 = sbr.rel (%p1094_p4) target bundleno = 41 (0x29), region = 16 }
   0xc   : > { %80 = sbr.rel (!%p27_p3) target bundleno = 41 (0x29), region = 20  ;;  %s82_s14 = sand.u32 (%p27_p3), 1, %s1213_s7  }
   0xd   : > { %s1169_s15 = smul.u32 (%p27_p3), 44, %s1217_s8 }
   0xe   : > { %s1168_s16 = smul.u32 (%p27_p3), 176, %s82_s14 }
   0xf   : > { %s1263_s19 = scalar_lea.vmem (%p27_p3), %s1670_s0, %s1169_s15 }
  0x10   : > { %v104_v0 = vld [vmem:[%s1263_s19] sm:$0xff] (%p27_p3)   ;;  %v108_v1 = vld [vmem:[%s1263_s19 + $0x8] sm:$0xff] (%p27_p3)   ;;  %v112_v2 = vld [vmem:[%s1263_s19 + $0x10] sm:$0xff] (%p27_p3)   ;;  %s1268_s20 = scalar_lea.vmem (%p27_p3), [#allocation2], %s1168_s16 }
  0x11   : > { %105 = vst [vmem:[%s1268_s20] sm:$0xff] %v104_v0   ;;  %v116_v3 = vld [vmem:[%s1263_s19 + $0x18] sm:$0xff]   ;;  %v120_v4 = vld [vmem:[%s1263_s19 + $0x20] sm:$0xff]   ;;  %v124_v5 = vld [vmem:[%s1263_s19 + $0x28] sm:$0xf] }
  0x12   : > { %109 = vst [vmem:[%s1268_s20 + $0x8] sm:$0xff] %v108_v1   ;;  %v126_v6 = vld [vmem:[%s1263_s19 + $0x58] sm:$0xff]   ;;  %v130_v7 = vld [vmem:[%s1263_s19 + $0x60] sm:$0xff]   ;;  %v134_v8 = vld [vmem:[%s1263_s19 + $0x68] sm:$0xff]  }
  0x13   : > { %113 = vst [vmem:[%s1268_s20 + $0x10] sm:$0xff] %v112_v2   ;;  %v138_v9 = vld [vmem:[%s1263_s19 + $0x70] sm:$0xff]   ;;  %v142_v10 = vld [vmem:[%s1263_s19 + $0x78] sm:$0xff]   ;;  %v146_v11 = vld [vmem:[%s1263_s19 + $0x80] sm:$0xf] }
  0x14   : > { %117 = vst [vmem:[%s1268_s20 + $0x18] sm:$0xff] %v116_v3   ;;  %v148_v12 = vld [vmem:[%s1263_s19 + $0xb0] sm:$0xff]   ;;  %v152_v13 = vld [vmem:[%s1263_s19 + $0xb8] sm:$0xff]   ;;  %v156_v14 = vld [vmem:[%s1263_s19 + $0xc0] sm:$0xff]  }
  0x15   : > { %121 = vst [vmem:[%s1268_s20 + $0x20] sm:$0xff] %v120_v4   ;;  %v160_v15 = vld [vmem:[%s1263_s19 + $0xc8] sm:$0xff]   ;;  %v164_v16 = vld [vmem:[%s1263_s19 + $0xd0] sm:$0xff]   ;;  %v168_v17 = vld [vmem:[%s1263_s19 + $0xd8] sm:$0xf] }
  0x16   : > { %125 = vst [vmem:[%s1268_s20 + $0x28] sm:$0xf] %v124_v5  ;;  %v170_v18 = vld [vmem:[%s1263_s19 + $0x108] sm:$0xff]   ;;  %v174_v19 = vld [vmem:[%s1263_s19 + $0x110] sm:$0xff]   ;;  %v178_v20 = vld [vmem:[%s1263_s19 + $0x118] sm:$0xff]  }
  0x17   : > { %127 = vst [vmem:[%s1268_s20 + $0x2c] sm:$0xff] %v126_v6   ;;  %v182_v21 = vld [vmem:[%s1263_s19 + $0x120] sm:$0xff]   ;;  %v186_v22 = vld [vmem:[%s1263_s19 + $0x128] sm:$0xff]   ;;  %v190_v23 = vld [vmem:[%s1263_s19 + $0x130] sm:$0xf] }
  0x18   : > { %131 = vst [vmem:[%s1268_s20 + $0x34] sm:$0xff] %v130_v7  }
  0x19   : > { %135 = vst [vmem:[%s1268_s20 + $0x3c] sm:$0xff] %v134_v8  }
  0x1a   : > { %139 = vst [vmem:[%s1268_s20 + $0x44] sm:$0xff] %v138_v9  }
  0x1b   : > { %143 = vst [vmem:[%s1268_s20 + $0x4c] sm:$0xff] %v142_v10  }
  0x1c   : > { %147 = vst [vmem:[%s1268_s20 + $0x54] sm:$0xf] %v146_v11 }
  0x1d   : > { %149 = vst [vmem:[%s1268_s20 + $0x58] sm:$0xff] %v148_v12  }
  0x1e   : > { %153 = vst [vmem:[%s1268_s20 + $0x60] sm:$0xff] %v152_v13  }
  0x1f   : > { %157 = vst [vmem:[%s1268_s20 + $0x68] sm:$0xff] %v156_v14  }
  0x20   : > { %161 = vst [vmem:[%s1268_s20 + $0x70] sm:$0xff] %v160_v15  }
  0x21   : > { %165 = vst [vmem:[%s1268_s20 + $0x78] sm:$0xff] %v164_v16  }
  0x22   : > { %169 = vst [vmem:[%s1268_s20 + $0x80] sm:$0xf] %v168_v17 }
  0x23   : > { %171 = vst [vmem:[%s1268_s20 + $0x84] sm:$0xff] %v170_v18  }
  0x24   : > { %175 = vst [vmem:[%s1268_s20 + $0x8c] sm:$0xff] %v174_v19  }
  0x25   : > { %179 = vst [vmem:[%s1268_s20 + $0x94] sm:$0xff] %v178_v20  }
  0x26   : > { %183 = vst [vmem:[%s1268_s20 + $0x9c] sm:$0xff] %v182_v21  }
  0x27   : > { %187 = vst [vmem:[%s1268_s20 + $0xa4] sm:$0xff] %v186_v22  }
  0x28   : > { %191 = vst [vmem:[%s1268_s20 + $0xac] sm:$0xf] %v190_v23 }
  0x29 PF: > { %p1096_p5 = scmp.ge.s32.totalorder %s1217_s8, 1  ;;  %p302_p6 = scmp.lt.s32.totalorder %s1217_s8, 3 }
  0x2b   : > { %p303_p7 = pnand %p1096_p5, %p302_p6 }
  0x2c   : > { %s309_s21 = sand.u32 (!%p303_p7), 1, %s1209_s6   ;;  %p1438_p8 = scmp.lt.s32.totalorder (!%p303_p7), %s1091_s9, 1 }
  0x2d   : > { %306 = sbr.rel (%p303_p7) target bundleno = 148 (0x94), region = 61 }
  0x2e   : > { %s1170_s22 = smul.u32 (!%p303_p7), 176, %s309_s21 }
  0x30   : > { %s1323_s23 = scalar_lea.vmem (!%p303_p7), [#allocation2], %s1170_s22 }
  0x32   : > { %v334_v24 = vlaneseq  ;;  %v1099_v29 = vld [vmem:[%s1323_s23 + $0x84] sm:$0xf]  ;;  %v1327_v30 = vld [vmem:[%s1323_s23 + $0x88] sm:$0xf]  ;;  %v1330_v31 = vld [vmem:[%s1323_s23 + $0x8c] sm:$0xf] }
  0x33   : > { %vm548_vm0 = vcmask 1046528   ;;  %v599_v32 = vunpack.c.l.bf16 %v1099_v29  ;;  %v1161_v36 = vld [vmem:[%s1323_s23 + $0x58] sm:$0xff]   ;;  %v1162_v37 = vld [vmem:[%s1323_s23 + $0x60] sm:$0xff]   ;;  %v600_v38 = vunpack.c.l.bf16 %v1327_v30  ;;  %v1336_v39 = vld [vmem:[%s1323_s23 + $0x90] sm:$0xf]  ;;  %v601_v46 = vunpack.c.l.bf16 %v1330_v31  ;;  %s1693_s9 = smov (!%p1438_p8, %s1091_s9), 1 }
  0x34   : > { %v1318_v25 = vshrl.u32 %v334_v24, 7  ;;  %v1135_v40 = vunpack.c.l.bf16 %v1161_v36  ;;  %v1136_v41 = vunpack.c.h.bf16 %v1161_v36  ;;  %v1139_v42 = vunpack.c.l.bf16 %v1162_v37  ;;  %v1117_v59 = vld [vmem:[%s1323_s23 + $0x30] sm:$0xf]  ;;  %v1118_v1 = vld [vmem:[%s1323_s23 + $0x34] sm:$0xf]  ;;  %v1165_v11 = vld [vmem:[%s1323_s23 + $0x8] sm:$0xff]  }
  0x35   : > { %v1140_v43 = vunpack.c.h.bf16 %v1162_v37  ;;  %v602_v53 = vunpack.c.l.bf16 %v1336_v39  ;;  %v617_v62 = vrot.slane %v599_v32, 1  ;;  %v618_v63 = vrot.slane %v600_v38, 1  ;;  %v1119_v6 = vld [vmem:[%s1323_s23 + $0x38] sm:$0xf]  ;;  %v707_v15 = vld [vmem:[%s1323_s23 + $0x4] sm:$0xf] }
  0x36   : > { %v336_v26 = vadd.s32 8, %v1318_v25  ;;  %v337_v27 = vadd.s32 16, %v1318_v25  ;;  %v347_v28 = vand.u32 7, %v1318_v25  ;;  %v549_v48 = vrot.slane %v1135_v40, 1  ;;  %v1387_v16 = vld [vmem:[%s1323_s23 + $0x10] sm:$0xff]   ;;  %s1132_s25 = sshll.u32 %s1693_s9, 5 }
  0x37   : > { %v550_v49 = vrot.slane %v1136_v41, 1  ;;  %v552_v50 = vrot.slane %v1139_v42, 1  ;;  %v1343_v51 = vrot.slane %v1140_v43, 1  ;;  %v620_v0 = vrot.slane %v601_v46, 1  ;;  %s1517_s28 = scalar_lea.vmem %s1671_s1, %s1132_s25 }
  0x38   : > { %v354_v33 = vand.u32 7, %v336_v26  ;;  %v361_v34 = vand.u32 7, %v337_v27  ;;  %v448_v35 = vadd.s32 4294967295, %v347_v28  ;;  %v1372_v5 = vrot.slane %v602_v53, 1  ;;  %v1163_v53 = vld [vmem:[%s1323_s23 + $0x68] sm:$0xff]  }
  0x39   : > { %v551_v56 = vsel %vm548_vm0, %v549_v48, %v550_v49  ;;  %v1354_v57 = vsel %vm548_vm0, %v550_v49, %v552_v50  ;;  %v1358_v58 = vsel %vm548_vm0, %v552_v50, %v1343_v51  ;;  %v619_v8 = vsel %vm548_vm0, %v617_v62, %v618_v63  ;;  %v1414_v62 = vld [vmem:[%s1323_s23 + $0x94] sm:$0xf] }
  0x3a   : > { %v449_v44 = vadd.s32 4294967295, %v354_v33  ;;  %v450_v45 = vadd.s32 4294967295, %v361_v34  ;;  %vm456_vm1 = vcmp.ge.s32.totalorder %v448_v35, 0  ;;  %v1377_v9 = vsel %vm548_vm0, %v618_v63, %v620_v0 }
  0x3b   : > { %vm1339_vm2 = vmpackc.low %vm456_vm1, %vm456_vm1  ;;  %v1394_v21 = vsel %vm548_vm0, %v620_v0, %v1372_v5  ;;  %v1151_v23 = vunpack.c.l.bf16 %v1165_v11  ;;  %v1152_v24 = vunpack.c.h.bf16 %v1165_v11  ;;  %v1155_v28 = vunpack.c.l.bf16 %v1387_v16 }
  0x3c   : > { %vm457_vm3 = vcmp.ge.s32.totalorder %v449_v44, 0  ;;  %vm458_vm4 = vcmp.ge.s32.totalorder %v450_v45, 0  ;;  %v504_v52 = vsel %vm1339_vm2, %v1099_v29, 0  ;;  %v667_v10 = vsel %vm1339_vm2, %v1117_v59, 0 }
  0x3d   : > { %vm1348_vm5 = vmpackc.low %vm457_vm3, %vm457_vm3  ;;  %v522_v55 = vunpack.c.l.bf16 %v504_v52  ;;  %v683_v19 = vunpack.c.l.bf16 %v667_v10  ;;  %v724_v29 = vunpack.c.l.bf16 %v707_v15  ;;  %v743_v33 = vrot.slane %v1151_v23, 1  ;;  %v1120_v23 = vld [vmem:[%s1323_s23 + $0x3c] sm:$0xf] }
  0x3e   : > { %vm1361_vm6 = vmpackc.low %vm458_vm4, %vm458_vm4  ;;  %v505_v61 = vsel %vm1348_vm5, %v1327_v30, 0  ;;  %v668_v14 = vsel %vm1348_vm5, %v1118_v1, 0  ;;  %v745_v34 = vrot.slane %v1152_v24, 1  ;;  %v792_v35 = vunpack.c.l.bf16 %v1117_v59 }
  0x3f   : > { %v506_v2 = vsel %vm1361_vm6, %v1330_v31, 0  ;;  %v523_v3 = vunpack.c.l.bf16 %v505_v61  ;;  %v574_v4 = vmax.f32 %v522_v55, %v551_v56  ;;  %v669_v18 = vsel %vm1361_vm6, %v1119_v6, 0 }
  0x40   : > { %v524_v7 = vunpack.c.l.bf16 %v506_v2  ;;  %v684_v20 = vunpack.c.l.bf16 %v668_v14  ;;  %v685_v26 = vunpack.c.l.bf16 %v669_v18  ;;  %v742_v37 = vrot.slane %v724_v29, 1 }
  0x41   : > { %v575_v12 = vmax.f32 %v523_v3, %v1354_v57  ;;  %v642_v13 = vmax.f32 %v574_v4, %v619_v8  ;;  %v1399_v38 = vrot.slane %v1155_v28, 1  ;;  %v793_v40 = vunpack.c.l.bf16 %v1118_v1 }
  0x42   : > { %v576_v17 = vmax.f32 %v524_v7, %v1358_v58  ;;  %v746_v41 = vsel %vm548_vm0, %v743_v33, %v745_v34  ;;  %v794_v42 = vunpack.c.l.bf16 %v1119_v6  ;;  %v810_v43 = vrot.slane %v792_v35, 1 }
  0x43   : > { %v643_v22 = vmax.f32 %v575_v12, %v1377_v9  ;;  %v691_v27 = vmax.f32 %v642_v13, %v683_v19  ;;  %v852_v44 = vsel %vm1339_vm2, %v1327_v30, 0  ;;  %v744_v45 = vsel %vm548_vm0, %v742_v37, %v743_v33  ;;  %v1417_v30 = vld [vmem:[%s1323_s23 + $0x98] sm:$0xf] }
  0x44   : > { %v644_v36 = vmax.f32 %v576_v17, %v1394_v21  ;;  %v811_v48 = vrot.slane %v793_v40, 1  ;;  %v1406_v50 = vrot.slane %v794_v42, 1  ;;  %v853_v52 = vsel %vm1348_vm5, %v1330_v31, 0 }
  0x45   : > { %v692_v32 = vmax.f32 %v643_v22, %v684_v20  ;;  %v767_v49 = vmax.f32 %v691_v27, %v744_v45  ;;  %v868_v59 = vunpack.c.l.bf16 %v852_v44  ;;  %v869_v61 = vunpack.c.l.bf16 %v853_v52 }
  0x46   : > { %v693_v55 = vmax.f32 %v644_v36, %v685_v26  ;;  %v812_v56 = vsel %vm548_vm0, %v810_v43, %v811_v48  ;;  %v748_v47 = vsel %vm548_vm0, %v745_v34, %v1399_v38  ;;  %v814_v63 = vsel %vm548_vm0, %v811_v48, %v1406_v50  ;;  %v1452_v26 = vld [vmem:[%s1323_s23 + $0x18] sm:$0xff]  }
  0x47   : > { %v768_v46 = vmax.f32 %v692_v32, %v746_v41  ;;  %v835_v0 = vmax.f32 %v767_v49, %v812_v56  ;;  %v338_v54 = vadd.s32 24, %v1318_v25  ;;  %v339_v1 = vadd.s32 32, %v1318_v25 }
  0x48   : > { %v1143_v2 = vunpack.c.l.bf16 %v1163_v53  ;;  %v1144_v3 = vunpack.c.h.bf16 %v1163_v53  ;;  %v603_v7 = vunpack.c.l.bf16 %v1414_v62  ;;  %v604_v8 = vunpack.c.l.bf16 %v1417_v30 }
  0x49   : > { %v836_v31 = vmax.f32 %v768_v46, %v814_v63  ;;  %v876_v4 = vmax.f32 %v835_v0, %v868_v59  ;;  %v368_v6 = vand.u32 7, %v338_v54  ;;  %v375_v11 = vand.u32 7, %v339_v1 }
  0x4a   : > { %v556_v12 = vrot.slane %v1143_v2, 1  ;;  %v1427_v13 = vrot.slane %v1144_v3, 1  ;;  %v1429_v14 = vmax.f32 %v693_v55, %v748_v47  ;;  %v624_v18 = vrot.slane %v603_v7, 1 }
  0x4b   : > { %v877_v10 = vmax.f32 %v836_v31, %v869_v61  ;;  %v912_v15 = vmax.f32 %v876_v4, %v1354_v57  ;;  %v451_v17 = vadd.s32 4294967295, %v368_v6  ;;  %vm983_vm7 = vcmask 130048   ;;  %v1164_v6 = vld [vmem:[%s1323_s23 + $0x70] sm:$0xff]  }
  0x4c   : > { %v452_v20 = vadd.s32 4294967295, %v375_v11  ;;  %v1433_v22 = vrot.slane %v604_v8, 1  ;;  %v1445_v57 = vsel %vm548_vm0, %v1343_v51, %v556_v12  ;;  %v1121_v51 = vld [vmem:[%s1323_s23 + $0x40] sm:$0xf]  ;;  %v1156_v29 = vunpack.c.h.bf16 %v1387_v16  ;;  %v1521_v11 = vld [vmem:[%s1323_s23 + $0x9c] sm:$0xf] }
  0x4d   : > { %v913_v19 = vmax.f32 %v877_v10, %v1358_v58  ;;  %v947_v24 = vmax.f32 %v912_v15, %v1377_v9  ;;  %vm459_vm8 = vcmp.ge.s32.totalorder %v451_v17, 0  ;;  %v1449_v58 = vsel %vm548_vm0, %v556_v12, %v1427_v13 }
  0x4e   : > { %vm460_vm9 = vcmp.ge.s32.totalorder %v452_v20, 0  ;;  %vm1455_vm10 = vmpackc.low %vm459_vm8, %vm459_vm8  ;;  %v1461_v9 = vsel %vm548_vm0, %v1372_v5, %v624_v18  ;;  %v795_v35 = vunpack.c.l.bf16 %v1120_v23  ;;  %vm1021_vm12 = vcmask 257024  }
  0x4f   : > { %v948_v27 = vmax.f32 %v913_v19, %v1394_v21  ;;  %v955_v32 = vpack.c.bf16 %v947_v24, %v947_v24  ;;  %vm1465_vm11 = vmpackc.low %vm460_vm9, %vm460_vm9  ;;  %v507_v21 = vsel %vm1455_vm10, %v1336_v39, 0  ;;  %v670_v34 = vsel %vm1455_vm10, %v1120_v23, 0  ;;  %v1528_v23 = vld [vmem:[%s1323_s23 + $0xa0] sm:$0xf] }
  0x50   : > { %v508_v5 = vsel %vm1465_vm11, %v1414_v62, 0  ;;  %v525_v16 = vunpack.c.l.bf16 %v507_v21  ;;  %v1159_v37 = vunpack.c.l.bf16 %v1452_v26  ;;  %v1486_v42 = vsel %vm548_vm0, %v624_v18, %v1433_v22 }
  0x51   : > { %v956_v36 = vpack.c.bf16 %v948_v27, %v948_v27  ;;  %v971_v40 = vunpack.c.l.b16 %v955_v32  ;;  %v526_v41 = vunpack.c.l.bf16 %v508_v5  ;;  %v671_v43 = vsel %vm1465_vm11, %v1121_v51, 0 }
  0x52   : > { %v577_v45 = vmax.f32 %v525_v16, %v1445_v57  ;;  %v686_v46 = vunpack.c.l.bf16 %v670_v34  ;;  %v749_v48 = vrot.slane %v1156_v29, 1  ;;  %v796_v52 = vunpack.c.l.bf16 %v1121_v51 }
  0x53   : > { %v972_v44 = vunpack.c.l.b16 %v956_v36  ;;  %v578_v49 = vmax.f32 %v526_v41, %v1449_v58  ;;  %v815_v53 = vrot.slane %v795_v35, 1  ;;  %v854_v55 = vsel %vm1361_vm6, %v1336_v39, 0  ;;  %v1115_v35 = vld [vmem:[%s1323_s23 + $0x78] sm:$0x1] }
  0x54   : > { %v645_v59 = vmax.f32 %v577_v45, %v1461_v9  ;;  %v687_v61 = vunpack.c.l.bf16 %v671_v43  ;;  %v1496_v47 = vrot.slane %v1159_v37, 1  ;;  %v750_v63 = vsel %vm548_vm0, %v1399_v38, %v749_v48  ;;  %v1122_v45 = vld [vmem:[%s1323_s23 + $0x44] sm:$0xf]  ;;  %v1124_v43 = vld [vmem:[%s1323_s23 + $0x4c] sm:$0xf] }
  0x55   : > { %v979_v56 = vpack.c.b16 %v972_v44, %v971_v40  ;;  %v816_v0 = vsel %vm548_vm0, %v1406_v50, %v815_v53  ;;  %v1503_v54 = vrot.slane %v796_v52, 1  ;;  %v855_v39 = vsel %vm1455_vm10, %v1414_v62, 0 }
  0x56   : > { %v694_v31 = vmax.f32 %v645_v59, %v686_v46  ;;  %v837_v1 = vmax.f32 %v1429_v14, %v816_v0  ;;  %v870_v2 = vunpack.c.l.bf16 %v854_v55  ;;  %v646_v38 = vmax.f32 %v578_v49, %v1486_v42 }
  0x57   : > { %v986_v60 = vsel %vm983_vm7, %v979_v56, 0  ;;  %v818_v50 = vsel %vm548_vm0, %v815_v53, %v1503_v54  ;;  %v871_v7 = vunpack.c.l.bf16 %v855_v39  ;;  %v340_v10 = vadd.s32 40, %v1318_v25  ;;  %v714_v39 = vld [vmem:[%s1323_s23 + $0x20] sm:$0xf] }
  0x58   : > { %v997_v3 = vunpack.c.l.b16 %v986_v60  ;;  %v998_v4 = vunpack.c.h.b16 %v986_v60  ;;  %v770_v62 = vmax.f32 %v694_v31, %v750_v63  ;;  %v878_v8 = vmax.f32 %v837_v1, %v870_v2  ;;  %v1116_v1 = vld [vmem:[%s1323_s23 + $0xa4] sm:$0x1] }
  0x59   : > { %v752_v15 = vsel %vm548_vm0, %v749_v48, %v1496_v47  ;;  %v341_v17 = vadd.s32 48, %v1318_v25  ;;  %v382_v20 = vand.u32 7, %v340_v10  ;;  %v1147_v24 = vunpack.c.l.bf16 %v1164_v6 }
  0x5a   : > { %v1005_v12 = vpack.c.b16 %v997_v3, %v997_v3  ;;  %v1006_v14 = vpack.c.b16 %v998_v4, %v998_v4  ;;  %v838_v18 = vmax.f32 %v770_v62, %v818_v50  ;;  %v914_v19 = vmax.f32 %v878_v8, %v1445_v57 }
  0x5b   : > { %v695_v27 = vmax.f32 %v646_v38, %v687_v61  ;;  %v389_v28 = vand.u32 7, %v341_v17  ;;  %v1148_v51 = vunpack.c.h.bf16 %v1164_v6  ;;  %v605_v29 = vunpack.c.l.bf16 %v1521_v11 }
  0x5c   : > { %1022 = vst.msk [vmem:[%s1517_s28] sm:$0xf] %vm1021_vm12, %v1005_v12  ;;  %v879_v32 = vmax.f32 %v838_v18, %v871_v7  ;;  %v949_v21 = vmax.f32 %v914_v19, %v1461_v9  ;;  %v453_v34 = vadd.s32 4294967295, %v382_v20  ;;  %v560_v57 = vrot.slane %v1147_v24, 1 }
  0x5d   : > { %1023 = vst.msk [vmem:[%s1517_s28 + $0x4] sm:$0xf] %vm1021_vm12, %v1006_v14  ;;  %v454_v36 = vadd.s32 4294967295, %v389_v28  ;;  %v1537_v5 = vrot.slane %v1148_v51, 1  ;;  %v606_v16 = vunpack.c.l.bf16 %v1528_v23  ;;  %v1541_v41 = vmax.f32 %v695_v27, %v752_v15 }
  0x5e   : > { %v915_v37 = vmax.f32 %v879_v32, %v1449_v58  ;;  %v957_v40 = vpack.c.bf16 %v949_v21, %v949_v21  ;;  %vm461_vm13 = vcmp.ge.s32.totalorder %v453_v34, 0  ;;  %v538_v9 = vunpack.c.l.bf16 %v1115_v35 }
  0x5f   : > { %vm462_vm14 = vcmp.ge.s32.totalorder %v454_v36, 0  ;;  %vm1543_vm15 = vmpackc.low %vm461_vm13, %vm461_vm13  ;;  %v1549_v44 = vsel %vm548_vm0, %v1427_v13, %v560_v57  ;;  %v1562_v49 = vsel %vm548_vm0, %v560_v57, %v1537_v5  ;;  %v628_v52 = vrot.slane %v605_v29, 1  ;;  %v1123_v13 = vld [vmem:[%s1323_s23 + $0x48] sm:$0xf] }
  0x60   : > { %v950_v46 = vmax.f32 %v915_v37, %v1486_v42  ;;  %vm1553_vm1 = vmpackc.low %vm462_vm14, %vm462_vm14  ;;  %v509_v48 = vsel %vm1543_vm15, %v1417_v30, 0  ;;  %v973_v53 = vunpack.c.l.b16 %v957_v40  ;;  %v1568_v56 = vrot.slane %v606_v16, 1 }
  0x61   : > { %v510_v42 = vsel %vm1553_vm1, %v1521_v11, 0  ;;  %v527_v55 = vunpack.c.l.bf16 %v509_v48  ;;  %v1572_v63 = vsel %vm548_vm0, %v1433_v22, %v628_v52  ;;  %v672_v0 = vsel %vm1543_vm15, %v1122_v45, 0 }
  0x62   : > { %v958_v59 = vpack.c.bf16 %v950_v46, %v950_v46  ;;  %v528_v61 = vunpack.c.l.bf16 %v510_v42  ;;  %v564_v60 = vrot.slane %v538_v9, 1  ;;  %v1581_v2 = vsel %vm548_vm0, %v628_v52, %v1568_v56  ;;  %v1127_v9 = vld [vmem:[%s1323_s23 + $0x78] sm:$0xf]  ;;  %v715_v46 = vld [vmem:[%s1323_s23 + $0x24] sm:$0x1] }
  0x63   : > { %v579_v31 = vmax.f32 %v527_v55, %v1549_v44  ;;  %v673_v3 = vsel %vm1553_vm1, %v1123_v13, 0  ;;  %v688_v22 = vunpack.c.l.bf16 %v672_v0  ;;  %v1160_v62 = vunpack.c.h.bf16 %v1452_v26  ;;  %v1128_v52 = vld [vmem:[%s1323_s23 + $0x7c] sm:$0x1] }
  0x64   : > { %v974_v4 = vunpack.c.l.b16 %v958_v59  ;;  %v580_v38 = vmax.f32 %v528_v61, %v1562_v49  ;;  %v689_v50 = vunpack.c.l.bf16 %v673_v3  ;;  %v731_v7 = vunpack.c.l.bf16 %v714_v39 }
  0x65   : > { %v647_v6 = vmax.f32 %v579_v31, %v1572_v63  ;;  %v797_v8 = vunpack.c.l.bf16 %v1122_v45  ;;  %v607_v12 = vunpack.c.l.bf16 %v1116_v1  ;;  %v798_v15 = vunpack.c.l.bf16 %v1123_v13  ;;  %v1129_v1 = vld [vmem:[%s1323_s23 + $0xa8] sm:$0x1] }
  0x66   : > { %v980_v10 = vpack.c.b16 %v974_v4, %v973_v53  ;;  %v648_v14 = vmax.f32 %v580_v38, %v1581_v2  ;;  %v753_v18 = vrot.slane %v1160_v62, 1  ;;  %v1589_v19 = vrot.slane %v731_v7, 1  ;;  %v1125_v4 = vld [vmem:[%s1323_s23 + $0x50] sm:$0x1] }
  0x67   : > { %v696_v17 = vmax.f32 %v647_v6, %v688_v22  ;;  %v819_v20 = vrot.slane %v797_v8, 1  ;;  %v821_v28 = vrot.slane %v798_v15, 1  ;;  %v856_v26 = vsel %vm1465_vm11, %v1417_v30, 0  ;;  %v1126_v6 = vld [vmem:[%s1323_s23 + $0xa4] sm:$0xf] }
  0x68   : > { %v988_v24 = vsel %vm983_vm7, %v980_v10, 0  ;;  %v697_v27 = vmax.f32 %v648_v14, %v689_v50  ;;  %v754_v32 = vsel %vm548_vm0, %v1496_v47, %v753_v18  ;;  %v857_v21 = vsel %vm1543_vm15, %v1521_v11, 0 }
  0x69   : > { %v999_v51 = vunpack.c.l.b16 %v988_v24  ;;  %v1000_v29 = vunpack.c.h.b16 %v988_v24  ;;  %v756_v34 = vsel %vm548_vm0, %v753_v18, %v1589_v19  ;;  %v772_v35 = vmax.f32 %v696_v17, %v754_v32 }
  0x6a   : > { %v820_v30 = vsel %vm548_vm0, %v1503_v54, %v819_v20  ;;  %v822_v33 = vsel %vm548_vm0, %v819_v20, %v821_v28  ;;  %v872_v16 = vunpack.c.l.bf16 %v856_v26  ;;  %v873_v40 = vunpack.c.l.bf16 %v857_v21 }
  0x6b   : > { %v1007_v57 = vpack.c.b16 %v999_v51, %v999_v51  ;;  %v1008_v36 = vpack.c.b16 %v1000_v29, %v1000_v29  ;;  %v839_v47 = vmax.f32 %v1541_v41, %v820_v30  ;;  %v840_v37 = vmax.f32 %v772_v35, %v822_v33 }
  0x6c   : > { %v342_v11 = vadd.s32 56, %v1318_v25  ;;  %v565_v54 = vsel %vm548_vm0, %v1537_v5, %v564_v60  ;;  %v799_v48 = vunpack.c.l.bf16 %v1124_v43  ;;  %v773_v41 = vmax.f32 %v697_v27, %v756_v34 }
  0x6d   : > { %1024 = vst.msk [vmem:[%s1517_s28 + $0x8] sm:$0xf] %vm1021_vm12, %v1007_v57  ;;  %v880_v45 = vmax.f32 %v839_v47, %v872_v16  ;;  %v881_v13 = vmax.f32 %v840_v37, %v873_v40  ;;  %v858_v25 = vsel %vm1553_vm1, %v1528_v23, 0  ;;  %v632_v42 = vrot.slane %v607_v12, 1 }
  0x6e   : > { %1025 = vst.msk [vmem:[%s1517_s28 + $0xc] sm:$0xf] %vm1021_vm12, %v1008_v36  ;;  %v396_v53 = vand.u32 7, %v342_v11  ;;  %v823_v59 = vrot.slane %v799_v48, 1  ;;  %v902_v61 = vunpack.c.l.bf16 %v1127_v9  ;;  %v732_v60 = vunpack.c.l.bf16 %v715_v46 }
  0x6f   : > { %v916_v55 = vmax.f32 %v880_v45, %v1549_v44  ;;  %v917_v0 = vmax.f32 %v881_v13, %v1562_v49  ;;  %v903_v31 = vunpack.c.l.bf16 %v1128_v52  ;;  %v874_v22 = vunpack.c.l.bf16 %v858_v25 }
  0x70   : > { %v455_v39 = vadd.s32 4294967295, %v396_v53  ;;  %v824_v38 = vsel %vm548_vm0, %v821_v28, %v823_v59  ;;  %v906_v58 = vrot.slane %v902_v61, 1  ;;  %v938_v10 = vunpack.c.l.bf16 %v1129_v1 }
  0x71   : > { %v951_v3 = vmax.f32 %v916_v55, %v1572_v63  ;;  %v952_v50 = vmax.f32 %v917_v0, %v1581_v2  ;;  %v841_v44 = vmax.f32 %v773_v41, %v824_v38  ;;  %v908_v62 = vrot.slane %v903_v31, 1 }
  0x72   : > { %vm463_vm2 = vcmp.ge.s32.totalorder %v455_v39, 0  ;;  %v907_v8 = vsel %vm548_vm0, %v1537_v5, %v906_v58  ;;  %v937_v63 = vunpack.c.l.bf16 %v1126_v6  ;;  %v800_v15 = vunpack.c.l.bf16 %v1125_v4 }
  0x73   : > { %v959_v7 = vpack.c.bf16 %v951_v3, %v951_v3  ;;  %vm1628_vm3 = vmpackc.low %vm463_vm2, %vm463_vm2  ;;  %v960_v12 = vpack.c.bf16 %v952_v50, %v952_v50  ;;  %v633_v17 = vsel %vm548_vm0, %v1568_v56, %v632_v42  ;;  %v757_v24 = vrot.slane %v732_v60, 1 }
  0x74   : > { %v511_v14 = vsel %vm1628_vm3, %v1528_v23, 0  ;;  %v674_v2 = vsel %vm1628_vm3, %v1124_v43, 0  ;;  %v882_v28 = vmax.f32 %v841_v44, %v874_v22  ;;  %v909_v5 = vsel %vm548_vm0, %v906_v58, %v908_v62 }
  0x75   : > { %v975_v18 = vunpack.c.l.b16 %v959_v7  ;;  %v529_v20 = vunpack.c.l.bf16 %v511_v14  ;;  %v976_v27 = vunpack.c.l.b16 %v960_v12  ;;  %v941_v26 = vrot.slane %v937_v63, 1 }
  0x76   : > { %v690_v29 = vunpack.c.l.bf16 %v674_v2  ;;  %v943_v32 = vrot.slane %v938_v10, 1  ;;  %v825_v23 = vrot.slane %v800_v15, 1  ;;  %v918_v34 = vmax.f32 %v882_v28, %v907_v8 }
  0x77   : > { %v581_v51 = vmax.f32 %v529_v20, %v565_v54  ;;  %v981_v21 = vpack.c.b16 %v976_v27, %v975_v18  ;;  %v942_v35 = vsel %vm548_vm0, %v1568_v56, %v941_v26  ;;  %v758_v36 = vsel %vm548_vm0, %v1589_v19, %v757_v24 }
  0x78   : > { %v944_v33 = vsel %vm548_vm0, %v941_v26, %v943_v32  ;;  %v859_v47 = vsel %vm1628_vm3, %v1126_v6, 0  ;;  %v953_v16 = vmax.f32 %v918_v34, %v942_v35  ;;  %v826_v43 = vsel %vm548_vm0, %v823_v59, %v825_v23 }
  0x79   : > { %v649_v30 = vmax.f32 %v581_v51, %v633_v17  ;;  %v990_v57 = vsel %vm983_vm7, %v981_v21, 0  ;;  %v875_v45 = vunpack.c.l.bf16 %v859_v47 }
  0x7a   : > { %v1001_v37 = vunpack.c.l.b16 %v990_v57  ;;  %v1002_v40 = vunpack.c.h.b16 %v990_v57  ;;  %v961_v52 = vpack.c.bf16 %v953_v16, %v953_v16 }
  0x7b   : > { %v698_v11 = vmax.f32 %v649_v30, %v690_v29 }
  0x7c   : > { %v1009_v9 = vpack.c.b16 %v1001_v37, %v1001_v37  ;;  %v1010_v56 = vpack.c.b16 %v1002_v40, %v1002_v40  ;;  %v977_v53 = vunpack.c.l.b16 %v961_v52 }
  0x7d   : > { %v774_v54 = vmax.f32 %v698_v11, %v758_v36 }
  0x7e   : > { %1026 = vst.msk [vmem:[%s1517_s28 + $0x10] sm:$0xf] %vm1021_vm12, %v1009_v9 }
  0x7f   : > { %v842_v46 = vmax.f32 %v774_v54, %v826_v43  ;;  %1027 = vst.msk [vmem:[%s1517_s28 + $0x14] sm:$0xf] %vm1021_vm12, %v1010_v56 }
  0x81   : > { %v883_v19 = vmax.f32 %v842_v46, %v875_v45 }
  0x83   : > { %v919_v48 = vmax.f32 %v883_v19, %v909_v5 }
  0x85   : > { %v954_v41 = vmax.f32 %v919_v48, %v944_v33 }
  0x87   : > { %v962_v13 = vpack.c.bf16 %v954_v41, %v954_v41 }
  0x89   : > { %v978_v25 = vunpack.c.l.b16 %v962_v13 }
  0x8b   : > { %v982_v42 = vpack.c.b16 %v978_v25, %v977_v53 }
  0x8d   : > { %v992_v55 = vsel %vm983_vm7, %v982_v42, 0 }
  0x8e   : > { %v1003_v59 = vunpack.c.l.b16 %v992_v55  ;;  %v1004_v61 = vunpack.c.h.b16 %v992_v55 }
  0x90   : > { %v1011_v0 = vpack.c.b16 %v1003_v59, %v1003_v59  ;;  %v1012_v39 = vpack.c.b16 %v1004_v61, %v1004_v61 }
  0x92   : > { %1028 = vst.msk [vmem:[%s1517_s28 + $0x18] sm:$0xf] %vm1021_vm12, %v1011_v0 }
  0x93   : > { %1029 = vst.msk [vmem:[%s1517_s28 + $0x1c] sm:$0xf] %vm1021_vm12, %v1012_v39 }
  0x94 PF: > { %p8_p9 = scmp.ge.s32.totalorder %s1246_s10, 4   ;;  %s1689_s6 = smov %s1213_s7 }
  0x95   : > { %s1690_s7 = smov %s1255_s13  ;;  %s1691_s8 = smov %s1246_s10 }
  0x96   :  { %10 = sbr.rel (!%p8_p9) target bundleno = 2 (0x2), region = 103 }

// kernel: densenet_finetune_forward.12
= control target key start
LH: loop header
LB: loop body
LE: loop exit
PB: predicated region body
PF: predicated region fallthrough
CT: control target
= control target key end

     0   :  { %s498_s18 = smov 0   ;;  %s534_s0 = inlined_call_operand.vmem [shape: bf16[2,64,32], index: 0, kind: input, shape index: {}]   ;;  %s535_s1 = inlined_call_operand.vmem [shape: f32[1,32], index: 1, kind: input, shape index: {}]   ;;  %s536_s2 = inlined_call_operand.vmem [shape: f32[1,32], index: 2, kind: input, shape index: {}]   ;;  %s537_s3 = inlined_call_operand.vmem [shape: bf16[16,64], index: 3, kind: input, shape index: {}]   ;;  %s538_s4 = inlined_call_operand.vmem [shape: bf16[32,16], index: 4, kind: input, shape index: {}]   ;;  %s539_s5 = inlined_call_operand.vmem [shape: bf16[2,16,32], index: 5, kind: output, shape index: {}]  }
   0x1 LB: > { %s401_s19 = sadd.s32 4294967295, %s466_s18   ;;  %p405_p0 = scmp.ge.s32.totalorder %s466_s18, 1  ;;  %s466_s18 = sphi %s498_s18, %s15_s18  }
   0x2   : > { %p187_p1 = scmp.lt.s32.totalorder %s466_s18, 3 }
   0x4   : > { %p188_p2 = pnand %p405_p0, %p187_p1 }
   0x5   : > { %p215_p3 = scmp.lt.s32.totalorder (!%p188_p2), %s401_s19, 1 }
   0x6   : > { %191 = sbr.rel (%p188_p2) target bundleno = 314 (0x13a), region = 40 }
   0xb   : > { %s541_s19 = smov (!%p215_p3, %s401_s19), 1  ;;  %v458_v0 = vld [vmem:[%s535_s1] ss:$0 sm:$0xff]  ;;  %vm285_vm0 = vcmask 523264   ;;  %v430_v43 = vld [vmem:[%s538_s4 + $0x8] sm:$0xff]  ;;  %vm320_vm1 = vcmask 261120  }
   0xc   : > { %s426_s20 = sshll.u32 %s541_s19, 5  ;;  %v459_v6 = vld [vmem:[%s536_s2] ss:$0 sm:$0xff]  ;;  %330 = vmatpush.bf16.msra.mxu1 %v430_v43  ;;  %s427_s9 = sshll.u32 %s541_s19, 3  ;;  %vm338_vm2 = vcmask 130048   ;;  %vm343_vm3 = vcmask 257024  }
   0xd   : > { %s219_s23 = scalar_lea.vmem %s534_s0, %s426_s20  ;;  %v428_v42 = vld [vmem:[%s537_s3] sm:$0xff]  ;;  %s224_s12 = scalar_lea.vmem %s539_s5, %s427_s9 }
   0xe   : > { %v449_v1 = vld [vmem:[%s219_s23 + $0x18] sm:$0xff]   ;;  %v448_v2 = vld [vmem:[%s219_s23 + $0x10] sm:$0xff]   ;;  %v447_v3 = vld [vmem:[%s219_s23 + $0x8] sm:$0xff]  }
   0xf   : > { %v445_v4 = vunpack.c.l.bf16 %v449_v1  ;;  %v446_v5 = vunpack.c.h.bf16 %v449_v1  ;;  %v441_v7 = vunpack.c.l.bf16 %v448_v2  ;;  %v442_v8 = vunpack.c.h.bf16 %v448_v2  ;;  %v432_v9 = vld [vmem:[%s219_s23] sm:$0xff]  }
  0x10   : > { %v437_v10 = vunpack.c.l.bf16 %v447_v3  ;;  %v438_v11 = vunpack.c.h.bf16 %v447_v3  ;;  %v433_v12 = vunpack.c.l.bf16 %v432_v9  ;;  %v434_v13 = vunpack.c.h.bf16 %v432_v9  ;;  %v429_v44 = vld [vmem:[%s538_s4] sm:$0xff] }
  0x11   : > { %v252_v14 = vmul.f32 %v458_v0, %v445_v4  ;;  %v253_v15 = vmul.f32 %v458_v0, %v446_v5  ;;  %v250_v16 = vmul.f32 %v458_v0, %v441_v7  ;;  %v251_v17 = vmul.f32 %v458_v0, %v442_v8  ;;  %331 = vmatpush.bf16.msra.mxu1 %v429_v44 }
  0x12   : > { %v248_v18 = vmul.f32 %v458_v0, %v437_v10  ;;  %v249_v19 = vmul.f32 %v458_v0, %v438_v11  ;;  %v246_v26 = vmul.f32 %v458_v0, %v433_v12  ;;  %v247_v27 = vmul.f32 %v458_v0, %v434_v13 }
  0x13   : > { %v264_v20 = vadd.f32 %v459_v6, %v252_v14  ;;  %v265_v21 = vadd.f32 %v459_v6, %v253_v15  ;;  %v262_v22 = vadd.f32 %v459_v6, %v250_v16  ;;  %v263_v23 = vadd.f32 %v459_v6, %v251_v17 }
  0x14   : > { %v260_v24 = vadd.f32 %v459_v6, %v248_v18  ;;  %v261_v25 = vadd.f32 %v459_v6, %v249_v19  ;;  %v258_v33 = vadd.f32 %v459_v6, %v246_v26  ;;  %v259_v37 = vadd.f32 %v459_v6, %v247_v27 }
  0x15   : > { %v272_v28 = vmax.f32 %v264_v20, 0.0  ;;  %v273_v29 = vmax.f32 %v265_v21, 0.0  ;;  %v270_v30 = vmax.f32 %v262_v22, 0.0  ;;  %v271_v31 = vmax.f32 %v263_v23, 0.0 }
  0x16   : > { %v268_v35 = vmax.f32 %v260_v24, 0.0  ;;  %v269_v36 = vmax.f32 %v261_v25, 0.0  ;;  %v266_v39 = vmax.f32 %v258_v33, 0.0  ;;  %v267_v40 = vmax.f32 %v259_v37, 0.0 }
  0x17   : > { %v279_v32 = vpack.c.bf16 %v273_v29, %v272_v28  ;;  %v278_v34 = vpack.c.bf16 %v271_v31, %v270_v30 }
  0x18   : > { %v277_v38 = vpack.c.bf16 %v269_v36, %v268_v35  ;;  %v276_v41 = vpack.c.bf16 %v267_v40, %v266_v39 }
  0x19   : > { %293 = vmatpush.bf16.msra.mxu0 %v279_v32 }
  0x1d   : > { %294 = vmatpush.bf16.msra.mxu0 %v278_v34 }
  0x21   : > { %295 = vmatpush.bf16.msra.mxu0 %v277_v38 }
  0x25   : > { %296 = vmatpush.bf16.msra.mxu0 %v276_v41 }
  0x28   : > { %414 = vmatmul.msk.bf16.vlgmr.msra.gmra.mxu0 %vm285_vm0, %v428_v42 }
  0xa5   : > { %v298_v45 = vpop.f32.mrf.mxu0 }
  0xad   : > { %v300_v46 = vpop.f32.mrf.mxu0 }
  0xae   : > { %v303_v47 = vpack.c.bf16 %v300_v46, %v298_v45 }
  0xb0   : > { %423 = vmatmul.msk.bf16.vlgmr.msra.gmra.mxu1 %vm320_vm1, %v303_v47 }
 0x12d   : > { %v333_v48 = vpop.f32.mrf.mxu1 }
 0x12e   : > { %v339_v49 = vsel %vm338_vm2, %v333_v48, 0.0 }
 0x12f   : > { %v341_v50 = vpack.c.bf16 %v339_v49, %v339_v49 }
 0x131   : > { %344 = vst.msk [vmem:[%s224_s12] sm:$0xf] %vm343_vm3, %v341_v50 }
 0x135   : > { %v335_v51 = vpop.f32.mrf.mxu1 }
 0x136   : > { %v340_v52 = vsel %vm338_vm2, %v335_v51, 0.0 }
 0x137   : > { %v342_v53 = vpack.c.bf16 %v340_v52, %v340_v52 }
 0x139   : > { %345 = vst.msk [vmem:[%s224_s12 + $0x4] sm:$0xf] %vm343_vm3, %v342_v53 }
 0x13a PF: > { %s15_s18 = sadd.s32 1, %s466_s18  }
 0x13b   : > { %p12_p4 = scmp.ge.s32.totalorder %s15_s18, 4  }
 0x13d   :  { %14 = sbr.rel (!%p12_p4) target bundleno = 1 (0x1), region = 70 }

// kernel: densenet_finetune_forward.10
= control target key start
LH: loop header
LB: loop body
LE: loop exit
PB: predicated region body
PF: predicated region fallthrough
CT: control target
= control target key end

     0   :  { %s2139_s24 = smov 0   ;;  %s3363_s0 = inlined_call_operand.vmem [shape: bf16[2,64,32], index: 0, kind: input, shape index: {}, may-alias: {0,7}]   ;;  %s3364_s1 = inlined_call_operand.vmem [shape: bf16[32,32], index: 1, kind: input, shape index: {}]   ;;  %s3365_s2 = inlined_call_operand.vmem [shape: f32[1,32], index: 2, kind: input, shape index: {}]   ;;  %s3366_s3 = inlined_call_operand.vmem [shape: f32[1,32], index: 3, kind: input, shape index: {}]   ;;  %s3367_s4 = inlined_call_operand.vmem [shape: f32[1,32], index: 4, kind: input, shape index: {}]   ;;  %s3368_s5 = inlined_call_operand.vmem [shape: f32[1,32], index: 5, kind: input, shape index: {}]   ;;  %s3369_s6 = inlined_call_operand.vmem [shape: bf16[288,8], index: 6, kind: input, shape index: {}]   ;;  %s3370_s7 = inlined_call_operand.vmem [shape: bf16[2,64,32], index: 7, kind: output, shape index: {}, may-alias: {0,7}]  }
   0x1 LB: > { %s1928_s25 = sadd.s32 4294967295, %s2092_s24   ;;  %p1932_p0 = scmp.ge.s32.totalorder %s2092_s24, 1  ;;  %s2092_s24 = sphi %s2139_s24, %s17_s24  }
   0x2   : > { %p237_p1 = scmp.lt.s32.totalorder %s2092_s24, 3 }
   0x4   : > { %p238_p2 = pnand %p1932_p0, %p237_p1 }
   0x5   : > { %p269_p3 = scmp.lt.s32.totalorder (!%p238_p2), %s1928_s25, 1  ;;  %s2095_s19 = smov (!%p238_p2), 64  }
   0x6   : > { %241 = sbr.rel (%p238_p2) target bundleno = 653 (0x28d), region = 48  ;;  %s2096_s22 = smov (!%p238_p2), 32  }
   0x7   : > { %s2097_s27 = smov (!%p238_p2), 96   ;;  %s2098_s20 = smov (!%p238_p2), 16  }
   0xb   : > { %v2050_v0 = vld [vmem:[%s3364_s1 + $0x8] sm:$0xff]  ;;  %v2049_v1 = vld [vmem:[%s3364_s1] sm:$0xff]  ;;  %s3549_s25 = smov (!%p269_p3, %s1928_s25), 1  ;;  %vm3371_vm0 = vcmask 261120   ;;  %v445_v44 = vlaneseq  ;;  %v2094_v50 = vmov 0   ;;  %vm3374_vm9 = vcmask 257024  }
   0xc   : > { %369 = vmatpush.bf16.msra.mxu0 %v2050_v0  ;;  %s2043_s30 = sshll.u32 %s3549_s25, 5  ;;  %v2082_v2 = vld [vmem:[%s3365_s2] ss:$0 sm:$0xff]  ;;  %434 = vst.msk [vmem:[#allocation2 + $0x4] sm:$0xf] %vm3374_vm9, %v2094_v50 }
   0xd   : > { %s2161_s10 = scalar_lea.vmem %s3363_s0, %s2043_s30  ;;  %v2083_v6 = vld [vmem:[%s3366_s3] ss:$0 sm:$0xff]  ;;  %v2177_v45 = vshrl.u32 %v445_v44, 7  ;;  %433 = vst.msk [vmem:[#allocation2] sm:$0xf] %vm3374_vm9, %v2094_v50  ;;  %s3333_s23 = scalar_lea.vmem %s3370_s7, %s2043_s30 }
   0xe   : > { %v282_v3 = vld [vmem:[%s2161_s10] sm:$0xff]   ;;  %v284_v9 = vld [vmem:[%s2161_s10 + $0x8] sm:$0xff]   ;;  %v286_v23 = vld [vmem:[%s2161_s10 + $0x10] sm:$0xff]   ;;  %435 = vst.msk [vmem:[#allocation2 + $0x28] sm:$0xf] %vm3374_vm9, %v2094_v50 }
   0xf   : > { %v290_v4 = vunpack.c.l.bf16 %v282_v3  ;;  %v291_v5 = vunpack.c.h.bf16 %v282_v3  ;;  %v292_v14 = vunpack.c.l.bf16 %v284_v9  ;;  %v293_v15 = vunpack.c.h.bf16 %v284_v9  ;;  %v288_v33 = vld [vmem:[%s2161_s10 + $0x18] sm:$0xff]   ;;  %436 = vst.msk [vmem:[#allocation2 + $0x2c] sm:$0xf] %vm3374_vm9, %v2094_v50 }
  0x10   : > { %370 = vmatpush.bf16.msra.mxu0 %v2049_v1  ;;  %v294_v25 = vunpack.c.l.bf16 %v286_v23  ;;  %v295_v26 = vunpack.c.h.bf16 %v286_v23  ;;  %v296_v35 = vunpack.c.l.bf16 %v288_v33  ;;  %v297_v36 = vunpack.c.h.bf16 %v288_v33 }
  0x11   : > { %v302_v7 = vmul.f32 %v2082_v2, %v290_v4  ;;  %v303_v8 = vmul.f32 %v2082_v2, %v291_v5  ;;  %v304_v17 = vmul.f32 %v2082_v2, %v292_v14  ;;  %v305_v18 = vmul.f32 %v2082_v2, %v293_v15 }
  0x12   : > { %v306_v27 = vmul.f32 %v2082_v2, %v294_v25  ;;  %v307_v28 = vmul.f32 %v2082_v2, %v295_v26  ;;  %v308_v37 = vmul.f32 %v2082_v2, %v296_v35  ;;  %v309_v38 = vmul.f32 %v2082_v2, %v297_v36 }
  0x13   : > { %v314_v10 = vadd.f32 %v2083_v6, %v302_v7  ;;  %v315_v11 = vadd.f32 %v2083_v6, %v303_v8  ;;  %v316_v19 = vadd.f32 %v2083_v6, %v304_v17  ;;  %v317_v20 = vadd.f32 %v2083_v6, %v305_v18 }
  0x14   : > { %v318_v29 = vadd.f32 %v2083_v6, %v306_v27  ;;  %v319_v30 = vadd.f32 %v2083_v6, %v307_v28  ;;  %v320_v39 = vadd.f32 %v2083_v6, %v308_v37  ;;  %v321_v40 = vadd.f32 %v2083_v6, %v309_v38 }
  0x15   : > { %v322_v12 = vmax.f32 %v314_v10, 0.0  ;;  %v323_v13 = vmax.f32 %v315_v11, 0.0  ;;  %v324_v21 = vmax.f32 %v316_v19, 0.0  ;;  %v325_v22 = vmax.f32 %v317_v20, 0.0 }
  0x16   : > { %v326_v31 = vmax.f32 %v318_v29, 0.0  ;;  %v327_v32 = vmax.f32 %v319_v30, 0.0  ;;  %v328_v41 = vmax.f32 %v320_v39, 0.0  ;;  %v329_v42 = vmax.f32 %v321_v40, 0.0 }
  0x17   : > { %v330_v16 = vpack.c.bf16 %v323_v13, %v322_v12  ;;  %v331_v24 = vpack.c.bf16 %v325_v22, %v324_v21  ;;  %v447_v46 = vadd.s32 8, %v2177_v45  ;;  %v458_v47 = vand.u32 7, %v2177_v45 }
  0x18   : > { %v332_v34 = vpack.c.bf16 %v327_v32, %v326_v31  ;;  %v333_v43 = vpack.c.bf16 %v329_v42, %v328_v41  ;;  %v448_v53 = vadd.s32 16, %v2177_v45  ;;  %v449_v5 = vadd.s32 24, %v2177_v45 }
  0x19   : > { %1945 = vmatmul.msk.bf16.vlgmr.msra.gmra.mxu0 %vm3371_vm0, %v330_v16  ;;  %v465_v48 = vand.u32 7, %v447_v46  ;;  %vm550_vm1 = vcmp.ge.s32.totalorder %v458_v47, 1  ;;  %vm558_vm3 = vcmp.le.s32.totalorder %v458_v47, 6  ;;  %vm794_vm11 = vsmask.f32 256 }
  0x1a   : > { %vm591_vm2 = vmpackc.low %vm550_vm1, %vm550_vm1  ;;  %v472_v60 = vand.u32 7, %v448_v53  ;;  %vm795_vm12 = vsmask.f32 4368  ;;  %vm3372_vm14 = vsmask.f32 3328  ;;  %v479_v15 = vand.u32 7, %v449_v5 }
  0x1b   : > { %vm559_vm4 = vcmp.le.s32.totalorder %v465_v48, 6  ;;  %vm2181_vm5 = vcmp.ge.s32.totalorder %v465_v48, 1  ;;  %vm778_vm6 = vmpackc.low %vm558_vm3, %vm558_vm3  ;;  %v599_v51 = vsel %vm591_vm2, 65537, %v2094_v50  ;;  %vm608_vm15 = vsmask.f32 7440 }
  0x1c   : > { %vm779_vm7 = vmpackc.low %vm559_vm4, %vm559_vm4  ;;  %v786_v52 = vsel %vm778_vm6, 65537, %v2094_v50  ;;  %v611_v55 = vshll.u32 %v599_v51, 16  ;;  %v614_v56 = vshrl.u32 %v599_v51, 16  ;;  %vm2206_vm10 = vcmp.ge.s32.totalorder %v472_v60, 1  ;;  %v2281_v48 = vld [vmem:[%s3367_s4] ss:$0 sm:$0xff] }
  0x1d   : > { %vm592_vm8 = vmpackc.low %vm2181_vm5, %vm2181_vm5  ;;  %v787_v54 = vsel %vm779_vm7, 65537, %v2094_v50  ;;  %v798_v57 = vshrl.u32 %v786_v52, 16  ;;  %v801_v2 = vshll.u32 %v786_v52, 16  ;;  %vm2211_vm13 = vcmp.le.s32.totalorder %v472_v60, 6 }
  0x1e   : > { %v600_v58 = vsel %vm592_vm8, 65537, %v2094_v50  ;;  %v806_v59 = vshrl.u32 %v787_v54, 16  ;;  %v2199_v61 = vrot.slane %v611_v55, 5  ;;  %v616_v62 = vrot.slane %v614_v56, 4  ;;  %vm593_vm1 = vmpackc.low %vm2206_vm10, %vm2206_vm10 }
  0x1f   : > { %v620_v63 = vshll.u32 %v600_v58, 16  ;;  %v624_v0 = vshrl.u32 %v600_v58, 16  ;;  %v800_v1 = vrot.slane %v798_v57, 7  ;;  %v809_v4 = vshll.u32 %v787_v54, 16  ;;  %vm2218_vm2 = vmor %vm794_vm11, %vm795_vm12  ;;  %v2067_v54 = vld [vmem:[%s3369_s6 + $0x80] sm:$0xff] }
  0x20   : > { %v2203_v3 = vrot.slane %v806_v59, 7  ;;  %v617_v7 = vor.u32 %v616_v62, %v2199_v61  ;;  %vm780_vm3 = vmpackc.low %vm2211_vm13, %vm2211_vm13  ;;  %v2232_v19 = vunpack.c.l.b16 %v2094_v50  ;;  %vm2234_vm5 = vcmp.ge.s32.totalorder %v479_v15, 1  ;;  %v2305_v59 = vld [vmem:[%s3368_s5] ss:$0 sm:$0xff] }
  0x21   : > { %v622_v8 = vrot.slane %v620_v63, 5  ;;  %v626_v9 = vrot.slane %v624_v0, 4  ;;  %v803_v11 = vor.u32 %v801_v2, %v800_v1  ;;  %v804_v13 = vrot.slane %v800_v1, 4  ;;  %vm2227_vm4 = vmor %vm3372_vm14, %vm608_vm15  ;;  %v2316_v0 = vld [vmem:[#allocation2 + $0x4] sm:$0xf] }
  0x22   : > { %v811_v14 = vor.u32 %v809_v4, %v2203_v3  ;;  %v618_v16 = vrot.slane %v617_v7, 4  ;;  %v601_v22 = vsel %vm593_vm1, 65537, %v2094_v50  ;;  %vm2243_vm6 = vcmp.le.s32.totalorder %v479_v15, 6  ;;  %vm594_vm7 = vmpackc.low %vm2234_vm5, %vm2234_vm5 }
  0x23   : > { %v627_v18 = vor.u32 %v626_v9, %v622_v8  ;;  %v868_v20 = vunpack.c.l.b16 %v803_v11  ;;  %v788_v25 = vsel %vm780_vm3, 65537, %v2094_v50  ;;  %v450_v26 = vadd.s32 32, %v2177_v45  ;;  %vm781_vm10 = vmpackc.low %vm2243_vm6, %vm2243_vm6 }
  0x24   : > { %v2241_v23 = vsel %vm2218_vm2, %v804_v13, %v811_v14  ;;  %v2250_v27 = vunpack.c.h.b16 %v2094_v50  ;;  %v869_v28 = vunpack.c.h.b16 %v803_v11  ;;  %v623_v29 = vsel %vm2227_vm4, %v618_v16, %v622_v8  ;;  %v940_v8 = vld [vmem:[#allocation2 + $0x4] sm:$0x8] }
  0x25   : > { %v634_v30 = vshrl.u32 %v601_v22, 16  ;;  %v2257_v31 = vrot.slane %v627_v18, 4  ;;  %vm2260_vm8 = vcmp.ne.s32.totalorder %v868_v20, %v2232_v19  ;;  %v875_v33 = vunpack.c.l.b16 %v2241_v23 }
  0x26   : > { %v815_v35 = vshrl.u32 %v788_v25, 16  ;;  %v690_v36 = vunpack.c.h.b16 %v2199_v61  ;;  %v696_v37 = vunpack.c.l.b16 %v623_v29  ;;  %v630_v38 = vshll.u32 %v601_v22, 16 }
  0x27   : > { %v486_v39 = vand.u32 7, %v450_v26  ;;  %vm873_vm11 = vcmp.ne.s32.totalorder %v869_v28, %v2250_v27  ;;  %v697_v40 = vunpack.c.h.b16 %v623_v29  ;;  %v602_v41 = vsel %vm594_vm7, 65537, %v2094_v50 }
  0x28   : > { %v636_v42 = vrot.slane %v634_v30, 4  ;;  %v644_v44 = vshrl.u32 %v602_v41, 16  ;;  %v451_v46 = vadd.s32 40, %v2177_v45  ;;  %v876_v49 = vunpack.c.h.b16 %v2241_v23  ;;  %vm2293_vm15 = vmpackc.low %vm873_vm11, %vm2260_vm8 }
  0x29   : > { %1946 = vmatmul.msk.bf16.gmra.mxu0 %vm3371_vm0, %v331_v24  ;;  %vm2274_vm12 = vcmp.ge.s32.totalorder %v486_v39, 1  ;;  %v2289_v52 = vrot.slane %v815_v35, 7  ;;  %v818_v53 = vshll.u32 %v788_v25, 16  ;;  %vm2298_vm1 = vcmp.ne.s32.totalorder %v690_v36, %v2250_v27 }
  0x2a   : > { %v632_v56 = vrot.slane %v630_v38, 5  ;;  %v640_v57 = vshll.u32 %v602_v41, 16  ;;  %v493_v58 = vand.u32 7, %v451_v46  ;;  %v813_v60 = vrot.slane %v2203_v3, 4  ;;  %vm595_vm6 = vmpackc.low %vm2274_vm12, %vm2274_vm12 }
  0x2b   : > { %vm2309_vm3 = vcmp.ne.s32.totalorder %v696_v37, %v2232_v19  ;;  %vm562_vm5 = vcmp.le.s32.totalorder %v486_v39, 6  ;;  %vm2319_vm7 = vcmp.ne.s32.totalorder %v697_v40, %v2250_v27  ;;  %v603_v3 = vsel %vm595_vm6, 65537, %v2094_v50 }
  0x2c   : > { %v637_v2 = vor.u32 %v636_v42, %v632_v56  ;;  %vm782_vm8 = vmpackc.low %vm562_vm5, %vm562_vm5  ;;  %v646_v4 = vrot.slane %v644_v44, 4  ;;  %v3404_v6 = vmov 0  ;;  %v820_v7 = vor.u32 %v818_v53, %v2289_v52 }
  0x2d   : > { %v790_v9 = vsel %vm782_vm8, 65537, %v2094_v50  ;;  %vm2335_vm11 = vcmp.ge.s32.totalorder %v493_v58, 1  ;;  %v642_v11 = vrot.slane %v640_v57, 5  ;;  %v650_v14 = vshll.u32 %v603_v3, 16  ;;  %vm2364_vm5 = vmpackc.low %vm2319_vm7, %vm2309_vm3 }
  0x2e   : > { %v833_v13 = vshrl.u32 %v790_v9, 16  ;;  %v654_v15 = vshrl.u32 %v603_v3, 16  ;;  %vm2341_vm12 = vcmp.ne.s32.totalorder %v875_v33, %v2232_v19  ;;  %v931_v21 = vsel %vm2293_vm15, %v2316_v0, 0 }
  0x2f   : > { %v836_v26 = vshll.u32 %v790_v9, 16  ;;  %v647_v28 = vor.u32 %v646_v4, %v642_v11  ;;  %vm563_vm6 = vcmp.le.s32.totalorder %v493_v58, 6  ;;  %v821_v35 = vsel %vm2218_vm2, %v813_v60, %v820_v7 }
  0x30   : > { %v2358_v25 = vrot.slane %v833_v13, 7  ;;  %v656_v33 = vrot.slane %v654_v15, 4  ;;  %v638_v36 = vrot.slane %v637_v2, 4  ;;  %vm783_vm8 = vmpackc.low %vm563_vm6, %vm563_vm6  ;;  %v652_v37 = vrot.slane %v650_v14, 5 }
  0x31   : > { %v822_v39 = vrot.slane %v2289_v52, 4  ;;  %v791_v41 = vsel %vm783_vm8, 65537, %v2094_v50  ;;  %v1013_v51 = vunpack.c.l.b16 %v2316_v0  ;;  %v633_v52 = vsel %vm2227_vm4, %v2257_v31, %v632_v56 }
  0x32   : > { %v838_v44 = vor.u32 %v836_v26, %v2358_v25  ;;  %v657_v46 = vor.u32 %v656_v33, %v652_v37  ;;  %v648_v53 = vrot.slane %v647_v28, 4  ;;  %v1079_v55 = vunpack.c.l.b16 %v931_v21 }
  0x33   : > { %v2388_v57 = vsel %vm2227_vm4, %v638_v36, %v642_v11  ;;  %v842_v60 = vshrl.u32 %v791_v41, 16  ;;  %v883_v1 = vunpack.c.h.b16 %v821_v35  ;;  %v703_v2 = vunpack.c.l.b16 %v633_v52 }
  0x34   : > { %v658_v56 = vrot.slane %v657_v46, 4  ;;  %v710_v7 = vunpack.c.l.b16 %v2388_v57  ;;  %v845_v13 = vshll.u32 %v791_v41, 16  ;;  %v452_v14 = vadd.s32 48, %v2177_v45 }
  0x35   : > { %v2414_v11 = vrot.slane %v842_v60, 7  ;;  %v711_v21 = vunpack.c.h.b16 %v2388_v57 }
  0x37   : > { %v847_v41 = vor.u32 %v845_v13, %v2414_v11 }
  0x39   : > { %1947 = vmatmul.msk.bf16.gmra.mxu0 %vm3371_vm0, %v332_v34  ;;  %v689_v34 = vunpack.c.l.b16 %v2199_v61 }
  0x3b   : > { %vm2285_vm13 = vcmp.ne.s32.totalorder %v689_v34, %v2232_v19 }
  0x49   : > { %1948 = vmatmul.msk.bf16.gmra.mxu0 %vm3371_vm0, %v333_v43  ;;  %v789_v43 = vsel %vm781_vm10, 65537, %v2094_v50  ;;  %vm2329_vm10 = vmpackc.low %vm2298_vm1, %vm2285_vm13  ;;  %vm2346_vm13 = vcmp.ne.s32.totalorder %v876_v49, %v2250_v27 }
  0x4a   : > { %v824_v62 = vshrl.u32 %v789_v43, 16  ;;  %v3405_v6 = vsel %vm2329_vm10, 4294967295, %v3404_v6  ;;  %v827_v23 = vshll.u32 %v789_v43, 16  ;;  %vm596_vm1 = vmpackc.low %vm2335_vm11, %vm2335_vm11  ;;  %v942_v24 = vsel %vm2329_vm10, %v940_v8, 0 }
  0x4b   : > { %v2369_v32 = vsel %vm596_vm1, 65537, %v2094_v50  ;;  %v2390_v58 = vunpack.c.l.b16 %v942_v24  ;;  %v2404_v8 = vsel %vm2227_vm4, %v648_v53, %v652_v37  ;;  %vm2410_vm3 = vmpackc.low %vm2346_vm13, %vm2341_vm12  ;;  %vm2423_vm11 = vcmp.ne.s32.totalorder %v883_v1, %v2250_v27 }
  0x4c   : > { %v826_v22 = vrot.slane %v824_v62, 7  ;;  %v660_v47 = vshll.u32 %v2369_v32, 16  ;;  %v717_v33 = vunpack.c.l.b16 %v2404_v8  ;;  %vm2452_vm12 = vcmp.ne.s32.totalorder %v703_v2, %v2232_v19 }
  0x4e   : > { %v829_v40 = vor.u32 %v827_v23, %v826_v22  ;;  %v831_v43 = vrot.slane %v826_v22, 4  ;;  %v2399_v3 = vrot.slane %v660_v47, 5 }
  0x50   : > { %v830_v62 = vsel %vm2218_vm2, %v822_v39, %v829_v40  ;;  %v2397_v31 = vsel %vm2218_vm2, %v831_v43, %v838_v44  ;;  %v2435_v28 = vsel %vm2227_vm4, %v658_v56, %v2399_v3 }
  0x51   : > { %v889_v10 = vunpack.c.l.b16 %v830_v62  ;;  %v890_v20 = vunpack.c.h.b16 %v830_v62  ;;  %v896_v22 = vunpack.c.l.b16 %v2397_v31  ;;  %v897_v26 = vunpack.c.h.b16 %v2397_v31 }
  0x52   : > { %v725_v53 = vunpack.c.h.b16 %v2435_v28 }
  0x53   : > { %vm2464_vm1 = vcmp.ne.s32.totalorder %v889_v10, %v2232_v19  ;;  %vm2469_vm6 = vcmp.ne.s32.totalorder %v890_v20, %v2250_v27 }
  0x96   : > { %v372_v63 = vpop.f32.mrf.mxu0 }
  0x97   : > { %v396_v5 = vmul.f32 %v2281_v48, %v372_v63  ;;  %v882_v63 = vunpack.c.l.b16 %v821_v35 }
  0x99   : > { %v408_v16 = vadd.f32 %v2305_v59, %v396_v5  ;;  %v704_v5 = vunpack.c.h.b16 %v633_v52  ;;  %vm2418_vm7 = vcmp.ne.s32.totalorder %v882_v63, %v2232_v19 }
  0x9b   : > { %v416_v29 = vmax.f32 %v408_v16, 0.0  ;;  %vm2457_vm13 = vcmp.ne.s32.totalorder %v704_v5, %v2250_v27 }
  0x9d   : > { %v424_v38 = vpack.c.bf16 %v416_v29, %v416_v29  ;;  %v664_v29 = vshrl.u32 %v2369_v32, 16  ;;  %v2448_v32 = vadd.s32 56, %v2177_v45 }
  0x9e   : > { %v374_v42 = vpop.f32.mrf.mxu0 }
  0x9f   : > { %437 = vst.msk [vmem:[#allocation2 + $0x8] sm:$0xf] %vm3374_vm9, %v424_v38  ;;  %v397_v49 = vmul.f32 %v2281_v48, %v374_v42  ;;  %v840_v38 = vrot.slane %v2358_v25, 4  ;;  %v500_v42 = vand.u32 7, %v452_v14  ;;  %v718_v25 = vunpack.c.h.b16 %v2404_v8 }
  0xa0   : > { %v507_v5 = vand.u32 7, %v2448_v32  ;;  %v2068_v32 = vld [vmem:[%s3369_s6 + $0x88] sm:$0xff] }
  0xa1   : > { %v409_v61 = vadd.f32 %v2305_v59, %v397_v49  ;;  %v724_v49 = vunpack.c.l.b16 %v2435_v28  ;;  %vm2474_vm8 = vcmp.le.s32.totalorder %v500_v42, 6  ;;  %vm2506_vm0 = vcmp.ge.s32.totalorder %v500_v42, 1  ;;  %1739 = vmatpush.bf16.msra.mxu3 %v2068_v32 }
  0xa2   : > { %vm2502_vm14 = vcmp.le.s32.totalorder %v507_v5, 6 }
  0xa3   : > { %v417_v4 = vmax.f32 %v409_v61, 0.0  ;;  %v2478_v61 = vrot.slane %v664_v29, 4 }
  0xa5   : > { %v425_v15 = vpack.c.bf16 %v417_v4, %v417_v4  ;;  %v2489_v4 = vsel %vm2218_vm2, %v840_v38, %v847_v41  ;;  %v667_v38 = vor.u32 %v2478_v61, %v2399_v3  ;;  %1740 = vmatpush.bf16.msra.mxu3 %v2067_v54 }
  0xa6   : > { %v377_v23 = vpop.f32.mrf.mxu0  ;;  %v2429_v24 = vld [vmem:[#allocation2 + $0x8] sm:$0xf] }
  0xa7   : > { %438 = vst.msk [vmem:[#allocation2 + $0xc] sm:$0xf] %vm3374_vm9, %v425_v15  ;;  %v398_v35 = vmul.f32 %v2281_v48, %v377_v23  ;;  %v932_v36 = vsel %vm2410_vm3, %v2429_v24, 0  ;;  %v1014_v37 = vunpack.c.l.b16 %v2429_v24  ;;  %v961_v40 = vld [vmem:[#allocation2 + $0x8] sm:$0x8]  ;;  %v952_v56 = vsel %vm2293_vm15, %v2429_v24, 0 }
  0xa8   : > { %v1080_v39 = vunpack.c.l.b16 %v932_v36  ;;  %v963_v1 = vsel %vm2329_vm10, %v961_v40, 0  ;;  %v943_v15 = vsel %vm2364_vm5, %v2429_v24, 0  ;;  %vm3434_vm10 = vmpackc.low %vm2474_vm8, %vm2474_vm8  ;;  %vm2550_vm8 = vcmp.ne.s32.totalorder %v711_v21, %v2250_v27 }
  0xa9   : > { %v410_v43 = vadd.f32 %v2305_v59, %v398_v35  ;;  %v1021_v44 = vpack.c.b16 %v1014_v37, %v1013_v51  ;;  %v1238_v29 = vunpack.c.l.b16 %v963_v1  ;;  %v2526_v42 = vsel %vm3434_vm10, 65537, %v2094_v50 }
  0xaa   : > { %v1088_v45 = vpack.c.b16 %v1080_v39, %v1079_v55  ;;  %vm2545_vm10 = vcmp.ne.s32.totalorder %v710_v7, %v2232_v19 }
  0xab   : > { %v418_v62 = vmax.f32 %v410_v43, 0.0  ;;  %v1026_v55 = vshrl.u32 %v1021_v44, 16  ;;  %v1029_v63 = vshll.u32 %v1021_v44, 16  ;;  %v1196_v44 = vunpack.c.l.b16 %v952_v56 }
  0xac   : > { %v2482_v2 = vrot.slane %v1088_v45, 5 }
  0xad   : > { %v426_v10 = vpack.c.bf16 %v418_v62, %v418_v62  ;;  %v1028_v13 = vrot.slane %v1026_v55, 4  ;;  %v1031_v14 = vrot.slane %v1029_v63, 5  ;;  %v2554_v62 = vunpack.c.l.b16 %v943_v15 }
  0xae   : > { %1103 = vrot.lane.b32.xlu2 %v2482_v2, %s2095_s19  ;;  %v2500_v20 = vld [vmem:[#allocation2 + $0xc] sm:$0xf]  ;;  %v379_v23 = vpop.f32.mrf.mxu0  ;;  %v903_v55 = vunpack.c.l.b16 %v2489_v4  ;;  %v904_v63 = vunpack.c.h.b16 %v2489_v4  ;;  %v849_v15 = vrot.slane %v2414_v11, 4 }
  0xaf   : > { %439 = vst.msk [vmem:[#allocation2 + $0x10] sm:$0xf] %vm3374_vm9, %v426_v10  ;;  %v399_v39 = vmul.f32 %v2281_v48, %v379_v23  ;;  %v2514_v40 = vor.u32 %v1031_v14, %v1028_v13  ;;  %v1015_v41 = vunpack.c.l.b16 %v2500_v20  ;;  %v964_v3 = vsel %vm2364_vm5, %v2500_v20, 0  ;;  %vm2538_vm9 = vmpackc.low %vm2423_vm11, %vm2418_vm7 }
  0xb0   : > { %v953_v43 = vsel %vm2410_vm3, %v2500_v20, 0  ;;  %v1239_v57 = vunpack.c.l.b16 %v964_v3  ;;  %vm597_vm7 = vmpackc.low %vm2506_vm0, %vm2506_vm0  ;;  %v973_v21 = vsel %vm2293_vm15, %v2500_v20, 0  ;;  %v933_v13 = vsel %vm2538_vm9, %v2500_v20, 0 }
  0xb1   : > { %v411_v16 = vadd.f32 %v2305_v59, %v399_v39  ;;  %1060 = vrot.lane.b32.xlu0 %v2514_v40, %s2096_s22  ;;  %v2559_v18 = vpack.c.b16 %v1015_v41, %v1014_v37  ;;  %v1197_v7 = vunpack.c.l.b16 %v953_v43  ;;  %vm785_vm11 = vmpackc.low %vm2502_vm14, %vm2502_vm14  ;;  %v851_v37 = vshrl.u32 %v2526_v42, 16 }
  0xb2   : > { %v1247_v56 = vpack.c.b16 %v1239_v57, %v1238_v29  ;;  %vm2583_vm0 = vmpackc.low %vm2457_vm13, %vm2452_vm12  ;;  %vm2590_vm15 = vcmp.ge.s32.totalorder %v507_v5, 1  ;;  %v2595_v29 = vsel %vm597_vm7, 65537, %v2094_v50  ;;  %v793_v47 = vsel %vm785_vm11, 65537, %v2094_v50 }
  0xb3   : > { %v419_v1 = vmax.f32 %v411_v16, 0.0  ;;  %v1205_v10 = vpack.c.b16 %v1197_v7, %v1196_v44  ;;  %vm2602_vm12 = vmpackc.low %vm2469_vm6, %vm2464_vm1  ;;  %v944_v11 = vsel %vm2583_vm0, %v2500_v20, 0  ;;  %v2615_v5 = vrot.slane %v667_v38, 4 }
  0xb4   : > { %1252 = vrot.lane.b32.xlu1 %v1247_v56, %s2095_s19  ;;  %v1293_v51 = vunpack.c.l.b16 %v973_v21  ;;  %v2619_v32 = vunpack.c.l.b16 %v933_v13  ;;  %v2621_v3 = vrot.slane %v851_v37, 7  ;;  %v854_v43 = vshll.u32 %v2526_v42, 16 }
  0xb5   : > { %v427_v36 = vpack.c.bf16 %v419_v1, %v419_v1  ;;  %vm3447_vm13 = vcmask 257024   ;;  %v2629_v38 = vrot.slane %v1205_v10, 5  ;;  %vm2635_vm14 = vcmp.ne.s32.totalorder %v896_v22, %v2232_v19 }
  0xb6   : > { %v2617_v52 = vld [vmem:[#allocation2 + $0x10] sm:$0xf]  ;;  %v382_v39 = vpop.f32.mrf.mxu0  ;;  %vm2642_vm1 = vcmp.ne.s32.totalorder %v897_v26, %v2250_v27  ;;  %v2652_v22 = vunpack.c.l.b16 %v944_v11  ;;  %v860_v21 = vshrl.u32 %v793_v47, 16  ;;  %vm2663_vm7 = vcmp.ne.s32.totalorder %v717_v33, %v2232_v19 }
  0xb7   : > { %v974_v44 = vsel %vm2410_vm3, %v2617_v52, 0  ;;  %440 = vst.msk [vmem:[#allocation2 + $0x14] sm:$0xf] %vm3447_vm13, %v427_v36  ;;  %v400_v35 = vmul.f32 %v2281_v48, %v382_v39  ;;  %v1016_v16 = vunpack.c.l.b16 %v2617_v52  ;;  %vm598_vm3 = vmpackc.low %vm2590_vm15, %vm2590_vm15  ;;  %v934_v7 = vsel %vm2602_vm12, %v2617_v52, 0 }
  0xb8   : > { %v1294_v42 = vunpack.c.l.b16 %v974_v44  ;;  %v954_v26 = vsel %vm2538_vm9, %v2617_v52, 0  ;;  %v1082_v1 = vunpack.c.l.b16 %v934_v7  ;;  %vm2670_vm11 = vcmp.ne.s32.totalorder %v718_v25, %v2250_v27  ;;  %vm2687_vm13 = vmpackc.low %vm2550_vm8, %vm2545_vm10 }
  0xb9   : > { %v412_v37 = vadd.f32 %v2305_v59, %v400_v35  ;;  %1219 = vrot.lane.b32.xlu0 %v2629_v38, %s2096_s22  ;;  %v1022_v31 = vpack.c.b16 %v1016_v16, %v1015_v41  ;;  %v856_v41 = vor.u32 %v854_v43, %v2621_v3  ;;  %v863_v54 = vshll.u32 %v793_v47, 16 }
  0xba   : > { %v1302_v56 = vpack.c.b16 %v1294_v42, %v1293_v51  ;;  %v2681_v33 = vsel %vm598_vm3, 65537, %v2094_v50  ;;  %vm2692_vm6 = vcmp.ne.s32.totalorder %v903_v55, %v2232_v19  ;;  %vm2697_vm15 = vcmp.ne.s32.totalorder %v904_v63, %v2250_v27  ;;  %vm2754_vm3 = vmpackc.low %vm2642_vm1, %vm2635_vm14 }
  0xbb   : > { %v420_v36 = vmax.f32 %v412_v37, 0.0  ;;  %v1034_v11 = vshrl.u32 %v1022_v31, 16  ;;  %v1037_v51 = vshll.u32 %v1022_v31, 16  ;;  %v858_v23 = vrot.slane %v2621_v3, 4  ;;  %vm2809_vm1 = vmpackc.low %vm2697_vm15, %vm2692_vm6 }
  0xbc   : > { %v2702_v47 = vrot.slane %v1302_v56, 5  ;;  %v1198_v60 = vunpack.c.l.b16 %v954_v26  ;;  %v945_v61 = vsel %vm2687_vm13, %v2617_v52, 0  ;;  %v2707_v39 = vrot.slane %v860_v21, 7 }
  0xbd   : > { %v428_v55 = vpack.c.bf16 %v420_v36, %v420_v36  ;;  %v1036_v43 = vrot.slane %v1034_v11, 4  ;;  %v1039_v44 = vrot.slane %v1037_v51, 5  ;;  %v1089_v35 = vpack.c.b16 %v1082_v1, %v2619_v32 }
  0xbe   : > { %v384_v63 = vpop.f32.mrf.mxu0  ;;  %v2710_v42 = vld [vmem:[#allocation2 + $0x14] sm:$0xf]  ;;  %v965_v3 = vsel %vm2583_vm0, %v2617_v52, 0  ;;  %v1456_v7 = vshrl.u32 %v2702_v47, 16  ;;  %v1459_v37 = vshll.u32 %v2702_v47, 16  ;;  %v2719_v21 = vsel %vm2218_vm2, %v849_v15, %v856_v41 }
  0xbf   : > { %vm3462_vm10 = vcmask 257024   ;;  %v401_v31 = vmul.f32 %v2281_v48, %v384_v63  ;;  %v2723_v32 = vor.u32 %v1039_v44, %v1036_v43  ;;  %v1017_v26 = vunpack.c.l.b16 %v2710_v42 }
  0xc0   : > { %441 = vst.msk [vmem:[#allocation2 + $0x18] sm:$0xf] %vm3462_vm10, %v428_v55  ;;  %v955_v1 = vsel %vm2602_vm12, %v2710_v42, 0  ;;  %v966_v36 = vsel %vm2687_vm13, %v2710_v42, 0  ;;  %v2732_v11 = vunpack.c.l.b16 %v945_v61  ;;  %v865_v15 = vor.u32 %v863_v54, %v2707_v39 }
  0xc1   : > { %v1199_v56 = vunpack.c.l.b16 %v955_v1  ;;  %v413_v41 = vadd.f32 %v2305_v59, %v401_v31  ;;  %1274 = vrot.lane.b32.xlu2 %v2723_v32, %s2097_s27  ;;  %v2738_v51 = vpack.c.b16 %v1017_v26, %v1016_v16  ;;  %vm3463_vm8 = vsmask.f32 3328 }
  0xc2   : > { %v1041_v55 = vsel %vm3463_vm8, %v2514_v40, %v2723_v32  ;;  %v2743_v43 = vrot.slane %v1089_v35, 5  ;;  %v1241_v44 = vunpack.c.l.b16 %v966_v36  ;;  %v2746_v63 = vrot.slane %v1456_v7, 3 }
  0xc3   : > { %1062 = vrot.lane.b32.xlu1 %v1041_v55, %s2096_s22  ;;  %v1206_v61 = vpack.c.b16 %v1199_v56, %v1198_v60  ;;  %v2748_v54 = vrot.slane %v1459_v37, 4  ;;  %vm2761_vm10 = vcmp.ne.s32.totalorder %v724_v49, %v2232_v19  ;;  %vm2768_vm8 = vcmp.ne.s32.totalorder %v725_v53, %v2250_v27 }
  0xc4   : > { %v421_v57 = vmax.f32 %v413_v41, 0.0  ;;  %v975_v9 = vsel %vm2538_vm9, %v2710_v42, 0  ;;  %v1240_v35 = vunpack.c.l.b16 %v965_v3  ;;  %v670_v7 = vshll.u32 %v2595_v29, 16  ;;  %vm2790_vm9 = vmpackc.low %vm2670_vm11, %vm2663_vm7 }
  0xc5   : > { %v2776_v37 = vrot.slane %v1206_v61, 5  ;;  %v866_v28 = vsel %vm2218_vm2, %v858_v23, %v865_v15  ;;  %v910_v53 = vunpack.c.l.b16 %v2719_v21  ;;  %vm3470_vm14 = vcmask 1042432   ;;  %vm2859_vm15 = vmpackc.low %vm2768_vm8, %vm2761_vm10 }
  0xc6   : > { %v429_v31 = vpack.c.bf16 %v421_v57, %v421_v57  ;;  %v1096_v1 = vsel %vm3470_vm14, %v2482_v2, %v2743_v43  ;;  %v935_v12 = vsel %vm2754_vm3, %v2710_v42, 0  ;;  %v911_v23 = vunpack.c.h.b16 %v2719_v21  ;;  %v387_v3 = vpop.f32.mrf.mxu0  ;;  %vm3473_vm2 = vmmov %vm3470_vm14 }
  0xc7   : > { %v1212_v56 = vsel %vm3473_vm2, %v2629_v38, %v2776_v37  ;;  %v1295_v2 = vunpack.c.l.b16 %v975_v9  ;;  %v2801_v36 = vld [vmem:[#allocation2 + $0x18] sm:$0xf]  ;;  %v1248_v10 = vpack.c.b16 %v1241_v44, %v1240_v35  ;;  %vm3476_vm7 = vcmask 257024  }
  0xc8   : > { %442 = vst.msk [vmem:[#allocation2 + $0x1c] sm:$0xf] %vm3476_vm7, %v429_v31  ;;  %v402_v21 = vmul.f32 %v2281_v48, %v387_v3  ;;  %1221 = vrot.lane.b32.xlu0 %v1212_v56, %s2096_s22  ;;  %v976_v38 = vsel %vm2602_vm12, %v2801_v36, 0  ;;  %v3375_v41 = vunpack.c.l.b16 %v2801_v36  ;;  %v946_v25 = vsel %vm2790_vm9, %v2710_v42, 0 }
  0xc9   : > { %v1296_v50 = vunpack.c.l.b16 %v976_v38  ;;  %v956_v55 = vsel %vm2754_vm3, %v2801_v36, 0  ;;  %v2826_v61 = vunpack.c.l.b16 %v935_v12  ;;  %v917_v44 = vunpack.c.l.b16 %v866_v28 }
  0xca   : > { %v414_v57 = vadd.f32 %v2305_v59, %v402_v21  ;;  %v1023_v46 = vpack.c.b16 %v3375_v41, %v1017_v26  ;;  %v967_v9 = vsel %vm2790_vm9, %v2801_v36, 0  ;;  %v936_v35 = vsel %vm2809_vm1, %v2801_v36, 0 }
  0xcb   : > { %1254 = vrot.lane.b32.xlu1 %v1248_v10, %s2095_s19  ;;  %v1303_v31 = vpack.c.b16 %v1296_v50, %v1295_v2  ;;  %vm1424_vm12 = vsmask.f32 4352  ;;  %v918_v12 = vunpack.c.h.b16 %v866_v28  ;;  %v2838_v3 = vunpack.c.l.b16 %v946_v25 }
  0xcc   : > { %v674_v56 = vshrl.u32 %v2595_v29, 16  ;;  %v422_v21 = vmax.f32 %v414_v57, 0.0  ;;  %v1043_v38 = vshrl.u32 %v1023_v46, 16  ;;  %v1046_v26 = vshll.u32 %v1023_v46, 16 }
  0xcd   : > { %v672_v34 = vrot.slane %v670_v7, 5  ;;  %v2841_v41 = vrot.slane %v1303_v31, 5  ;;  %v1200_v49 = vunpack.c.l.b16 %v956_v55  ;;  %v2843_v13 = vunpack.c.l.b16 %v967_v9 }
  0xce   : > { %v1084_v14 = vunpack.c.l.b16 %v936_v35  ;;  %vm2846_vm6 = vcmp.ne.s32.totalorder %v910_v53, %v2232_v19  ;;  %vm2851_vm11 = vcmp.ne.s32.totalorder %v911_v23, %v2250_v27  ;;  %v430_v29 = vpack.c.bf16 %v422_v21, %v422_v21  ;;  %v389_v23 = vpop.f32.mrf.mxu0  ;;  %v2886_v35 = vld [vmem:[#allocation2 + $0x28] sm:$0xf] }
  0xcf   : > { %v1045_v2 = vrot.slane %v1043_v38, 4  ;;  %v1048_v25 = vrot.slane %v1046_v26, 5  ;;  %vm2864_vm14 = vcmp.ne.s32.totalorder %v917_v44, %v2232_v19  ;;  %v1309_v50 = vsel %vm3473_vm2, %v2702_v47, %v2841_v41  ;;  %v2871_v55 = vld [vmem:[#allocation2 + $0x1c] sm:$0xf] }
  0xd0   : > { %vm2874_vm7 = vcmp.ne.s32.totalorder %v918_v12, %v2250_v27  ;;  %v947_v60 = vsel %vm2859_vm15, %v2801_v36, 0  ;;  %v676_v44 = vrot.slane %v674_v56, 4  ;;  %vm3487_vm10 = vcmask 257024   ;;  %1105 = vrot.lane.b32.xlu0 %v1096_v1, %s2095_s19 }
  0xd1   : > { %443 = vst.msk [vmem:[#allocation2 + $0x20] sm:$0xf] %vm3487_vm10, %v430_v29  ;;  %v403_v57 = vmul.f32 %v2281_v48, %v389_v23  ;;  %v2884_v46 = vor.u32 %v1048_v25, %v1045_v2  ;;  %v1464_v47 = vshrl.u32 %v1309_v50, 16  ;;  %v1467_v9 = vshll.u32 %v1309_v50, 16  ;;  %vm2908_vm2 = vmpackc.low %vm2874_vm7, %vm2864_vm14 }
  0xd2   : > { %v957_v31 = vsel %vm2809_vm1, %v2871_v55, 0  ;;  %v968_v12 = vsel %vm2859_vm15, %v2871_v55, 0  ;;  %v1090_v56 = vpack.c.b16 %v1084_v14, %v2826_v61  ;;  %v673_v48 = vsel %vm2227_vm4, %v2615_v5, %v672_v34  ;;  %vm3494_vm14 = vmmov %vm3487_vm10 }
  0xd3   : > { %v415_v1 = vadd.f32 %v2305_v59, %v403_v57  ;;  %vm3488_vm8 = vsmask.f32 3328  ;;  %v1466_v38 = vrot.slane %v1464_v47, 3  ;;  %v1469_v26 = vrot.slane %v1467_v9, 4  ;;  %vm2954_vm7 = vmpackc.low %vm2851_vm11, %vm2846_vm6 }
  0xd4   : > { %v2902_v21 = vsel %vm3488_vm8, %v2723_v32, %v2884_v46  ;;  %v3491_v14 = vpack.c.b16 %v2554_v62, %v2390_v58  ;;  %v977_v59 = vsel %vm2754_vm3, %v2871_v55, 0  ;;  %v1201_v5 = vunpack.c.l.b16 %v957_v31 }
  0xd5   : > { %1276 = vrot.lane.b32.xlu2 %v2902_v21, %s2097_s27  ;;  %v1243_v32 = vunpack.c.l.b16 %v968_v12  ;;  %v980_v61 = vsel %vm2908_vm2, %v2886_v35, 0  ;;  %v423_v2 = vmax.f32 %v415_v1, 0.0  ;;  %v2924_v25 = vor.u32 %v1469_v26, %v1466_v38 }
  0xd6   : > { %1136 = vrot.lane.b32.xlu1 %v3491_v14, %s2097_s27  ;;  %v677_v53 = vor.u32 %v676_v44, %v672_v34  ;;  %v680_v58 = vshll.u32 %v2681_v33, 16  ;;  %v1207_v62 = vpack.c.b16 %v1201_v5, %v1200_v49  ;;  %v2927_v23 = vunpack.c.l.b16 %v947_v60 }
  0xd7   : > { %v731_v50 = vunpack.c.l.b16 %v673_v48  ;;  %v732_v40 = vunpack.c.h.b16 %v673_v48  ;;  %v431_v57 = vpack.c.bf16 %v423_v2, %v423_v2  ;;  %v3492_v16 = vor.u32 %v2748_v54, %v2746_v63 }
  0xd8   : > { %v678_v9 = vrot.slane %v677_v53, 4  ;;  %v2934_v31 = vrot.slane %v680_v58, 5  ;;  %vm3493_vm3 = vcmask 261120   ;;  %v2937_v34 = vrot.slane %v1207_v62, 5  ;;  %v2939_v49 = vld [vmem:[#allocation2 + $0x20] sm:$0xf] }
  0xd9   : > { %v1471_v47 = vsel %vm1424_vm12, %v3492_v16, %v2924_v25  ;;  %v1297_v44 = vunpack.c.l.b16 %v977_v59  ;;  %v2941_v60 = vrot.slane %v1090_v56, 5  ;;  %v1019_v12 = vunpack.c.l.b16 %v2871_v55  ;;  %444 = vst.msk [vmem:[#allocation2 + $0x24] sm:$0xf] %vm3494_vm14, %v431_v57 }
  0xda   : > { %2021 = vmatmul.msk.bf16.vlgmr.msra.gmra.mxu3 %vm3493_vm3, %v1471_v47  ;;  %v978_v63 = vsel %vm2809_vm1, %v2939_v49, 0  ;;  %v1249_v54 = vpack.c.b16 %v1243_v32, %v2843_v13  ;;  %v1020_v48 = vunpack.c.l.b16 %v2939_v49  ;;  %v683_v56 = vsel %vm2227_vm4, %v678_v9, %v2934_v31 }
  0xdb   : > { %vm3497_vm10 = vcmask 1042432   ;;  %v1298_v38 = vunpack.c.l.b16 %v978_v63  ;;  %v958_v13 = vsel %vm2954_vm7, %v2939_v49, 0  ;;  %v738_v10 = vunpack.c.l.b16 %v683_v56 }
  0xdc   : > { %v1214_v15 = vsel %vm3497_vm10, %v2776_v37, %v2937_v34  ;;  %v1024_v28 = vpack.c.b16 %v1020_v48, %v1019_v12  ;;  %vm735_vm1 = vcmp.ne.s32.totalorder %v731_v50, %v2232_v19  ;;  %vm736_vm4 = vcmp.ne.s32.totalorder %v732_v40, %v2250_v27  ;;  %vm3499_vm6 = vmmov %vm3497_vm10 }
  0xdd   : > { %1223 = vrot.lane.b32.xlu0 %v1214_v15, %s2096_s22  ;;  %v739_v17 = vunpack.c.h.b16 %v683_v56  ;;  %v3498_v37 = vpack.c.b16 %v2732_v11, %v2652_v22  ;;  %v1098_v26 = vsel %vm3499_vm6, %v2743_v43, %v2941_v60  ;;  %v1304_v14 = vpack.c.b16 %v1298_v38, %v1297_v44  ;;  %vm2986_vm11 = vmpackc.low %vm736_vm4, %vm735_vm1 }
  0xde   : > { %1256 = vrot.lane.b32.xlu1 %v1249_v54, %s2095_s19  ;;  %v1300_v59 = vunpack.c.l.b16 %v980_v61  ;;  %v1263_v5 = vunpack.c.l.b16 %v2886_v35  ;;  %v1052_v32 = vshrl.u32 %v1024_v28, 16  ;;  %v1055_v2 = vshll.u32 %v1024_v28, 16  ;;  %vm3506_vm14 = vmmov %vm3499_vm6 }
  0xdf   : > { %1138 = vrot.lane.b32.xlu2 %v3498_v37, %s2097_s27  ;;  %v1202_v53 = vunpack.c.l.b16 %v958_v13  ;;  %v938_v58 = vsel %vm2908_vm2, %v2939_v49, 0  ;;  %v1310_v62 = vrot.slane %v1304_v14, 5  ;;  %vm2991_vm8 = vcmp.ne.s32.totalorder %v738_v10, %v2232_v19 }
  0xe0   : > { %vm2996_vm3 = vcmp.ne.s32.totalorder %v739_v17, %v2250_v27  ;;  %v867_v61 = vrot.slane %v2707_v39, 4  ;;  %v1054_v50 = vrot.slane %v1052_v32, 4  ;;  %v1057_v40 = vrot.slane %v1055_v2, 5  ;;  %v3009_v9 = vld [vmem:[#allocation2 + $0x24] sm:$0xf] }
  0xe1   : > { %v969_v57 = vsel %vm2986_vm11, %v2939_v49, 0  ;;  %v937_v16 = vsel %vm2954_vm7, %v2871_v55, 0  ;;  %v1311_v47 = vsel %vm3506_vm14, %v2841_v41, %v1310_v62  ;;  %v1086_v44 = vunpack.c.l.b16 %v938_v58  ;;  %vm3020_vm10 = vmpackc.low %vm2996_vm3, %vm2991_vm8 }
  0xe2   : > { %v924_v63 = vunpack.c.l.b16 %v867_v61  ;;  %v925_v54 = vunpack.c.h.b16 %v867_v61  ;;  %v3011_v56 = vor.u32 %v1057_v40, %v1054_v50  ;;  %v1489_v39 = vshrl.u32 %v1311_v47, 16  ;;  %vm3513_vm8 = vmmov %vm3506_vm14 }
  0xe3   : > { %v1492_v15 = vshll.u32 %v1311_v47, 16  ;;  %v959_v38 = vsel %vm2908_vm2, %v3009_v9, 0  ;;  %v979_v41 = vsel %vm2954_vm7, %v3009_v9, 0  ;;  %v970_v28 = vsel %vm3020_vm10, %v3009_v9, 0  ;;  %vm3514_vm3 = vmmov %vm3513_vm8 }
  0xe4   : > { %v1203_v10 = vunpack.c.l.b16 %v959_v38  ;;  %v1147_v29 = vunpack.c.l.b16 %v3009_v9  ;;  %vm3509_vm2 = vsmask.f32 3328  ;;  %v1491_v37 = vrot.slane %v1489_v39, 3 }
  0xe5   : > { %1064 = vrot.lane.b32.xlu0 %v2902_v21, %s2096_s22  ;;  %v3036_v17 = vsel %vm3509_vm2, %v2884_v46, %v3011_v56  ;;  %v1494_v14 = vrot.slane %v1492_v15, 4  ;;  %v1299_v32 = vunpack.c.l.b16 %v979_v41  ;;  %v1245_v2 = vunpack.c.l.b16 %v970_v28  ;;  %v951_v21 = vld [vmem:[#allocation2 + $0x28] sm:$0x1]  ;;  %v972_v46 = vld [vmem:[#allocation2 + $0x2c] sm:$0x1]  ;;  %vm3516_vm2 = vmmov %vm3514_vm3 }
  0xe6   : > { %1107 = vrot.lane.b32.xlu1 %v1098_v26, %s2095_s19  ;;  %v1208_v1 = vpack.c.b16 %v1203_v10, %v1202_v53  ;;  %v1264_v58 = vpack.c.b16 %v1263_v5, %v1147_v29  ;;  %v1085_v11 = vunpack.c.l.b16 %v937_v16  ;;  %vm928_vm7 = vcmp.ne.s32.totalorder %v924_v63, %v2232_v19 }
  0xe7   : > { %1278 = vrot.lane.b32.xlu2 %v3036_v17, %s2097_s27  ;;  %v3043_v43 = vor.u32 %v1494_v14, %v1491_v37  ;;  %v1305_v61 = vpack.c.b16 %v1300_v59, %v1299_v32  ;;  %vm929_vm1 = vcmp.ne.s32.totalorder %v925_v54, %v2250_v27  ;;  %v1244_v26 = vunpack.c.l.b16 %v969_v57 }
  0xe8   : > { %v3047_v50 = vrot.slane %v1208_v1, 5  ;;  %v1266_v40 = vshrl.u32 %v1264_v58, 16  ;;  %v1269_v47 = vshll.u32 %v1264_v58, 16  ;;  %vm3049_vm4 = vmpackc.low %vm929_vm1, %vm928_vm7  ;;  %v1091_v16 = vpack.c.b16 %v1086_v44, %v1085_v11 }
  0xe9   : > { %v1496_v5 = vsel %vm1424_vm12, %v2924_v25, %v3043_v43  ;;  %v3056_v59 = vrot.slane %v1305_v61, 5  ;;  %v960_v63 = vsel %vm3049_vm4, %v951_v21, 0  ;;  %vm3512_vm6 = vcmask 261120   ;;  %v761_v61 = vld [vmem:[#allocation2 + $0x24] sm:$0x1] }
  0xea   : > { %2022 = vmatmul.msk.bf16.gmra.mxu3 %vm3512_vm6, %v1496_v5  ;;  %v1216_v57 = vsel %vm3513_vm8, %v2937_v34, %v3047_v50  ;;  %v1133_v54 = vpack.c.b16 %v2927_v23, %v2838_v3  ;;  %v1250_v39 = vpack.c.b16 %v1245_v2, %v1244_v26  ;;  %v981_v15 = vsel %vm3049_vm4, %v972_v46, 0  ;;  %v3074_v3 = vld [vmem:[#allocation2] sm:$0x8] }
  0xeb   : > { %v1268_v25 = vrot.slane %v1266_v40, 4  ;;  %v1271_v44 = vrot.slane %v1269_v47, 5  ;;  %v1313_v38 = vsel %vm3514_vm3, %v1310_v62, %v3056_v59  ;;  %v1204_v41 = vunpack.c.l.b16 %v960_v63 }
  0xec   : > { %v1514_v10 = vshrl.u32 %v1313_v38, 16  ;;  %v1517_v28 = vshll.u32 %v1313_v38, 16  ;;  %v1301_v37 = vunpack.c.l.b16 %v981_v15  ;;  %v684_v14 = vshrl.u32 %v2681_v33, 16 }
  0xed   : > { %1225 = vrot.lane.b32.xlu0 %v1216_v57, %s2096_s22  ;;  %v3072_v34 = vrot.slane %v1091_v16, 5  ;;  %v948_v23 = vsel %vm2986_vm11, %v2871_v55, 0  ;;  %v3081_v32 = vor.u32 %v1271_v44, %v1268_v25  ;;  %v1209_v1 = vpack.c.b16 %v1204_v41, %v1204_v41 }
  0xee   : > { %1258 = vrot.lane.b32.xlu1 %v1250_v39, %s2095_s19  ;;  %v686_v62 = vrot.slane %v684_v14, 4  ;;  %v949_v33 = vsel %vm3020_vm10, %v2939_v49, 0  ;;  %v1516_v2 = vrot.slane %v1514_v10, 3  ;;  %v1519_v58 = vrot.slane %v1517_v28, 4 }
  0xef   : > { %1140 = vrot.lane.b32.xlu2 %v1133_v54, %s2097_s27  ;;  %v1306_v11 = vpack.c.b16 %v1301_v37, %v1301_v37  ;;  %vm3515_vm14 = vnez %v3405_v6  ;;  %v1100_v26 = vsel %vm3516_vm2, %v2941_v60, %v3072_v34  ;;  %v1128_v40 = vunpack.c.l.b16 %v948_v23 }
  0xf0   : > { %v687_v21 = vor.u32 %v686_v62, %v2934_v31  ;;  %v752_v46 = vsel %vm3515_vm14, %v3074_v3, 0  ;;  %v1153_v47 = vshrl.u32 %v2559_v18, 16  ;;  %v1129_v5 = vunpack.c.l.b16 %v949_v33 }
  0xf1   : > { %v1156_v63 = vshll.u32 %v2559_v18, 16  ;;  %v754_v31 = vsel %vm2583_vm0, %v2429_v24, 0  ;;  %vm3517_vm7 = vsmask.f32 3328  ;;  %v1217_v57 = vrot.slane %v1209_v1, 5 }
  0xf2   : > { %v688_v16 = vrot.slane %v687_v21, 4  ;;  %v1273_v6 = vsel %vm3517_vm7, %v3011_v56, %v3081_v32  ;;  %v939_v54 = vsel %vm3049_vm4, %v761_v61, 0  ;;  %v755_v60 = vsel %vm2687_vm13, %v2500_v20, 0  ;;  %vm3520_vm4 = vmmov %vm3516_vm2 }
  0xf3   : > { %v3106_v39 = vor.u32 %v1519_v58, %v1516_v2  ;;  %v1314_v15 = vrot.slane %v1306_v11, 5  ;;  %v1155_v24 = vrot.slane %v1153_v47, 4  ;;  %v3110_v4 = vunpack.c.l.b16 %v754_v31 }
  0xf4   : > { %v745_v18 = vunpack.c.l.b16 %v688_v16  ;;  %v746_v25 = vunpack.c.h.b16 %v688_v16  ;;  %v3112_v44 = vunpack.c.l.b16 %v755_v60  ;;  %v1161_v53 = vshrl.u32 %v2738_v51, 16 }
  0xf5   : > { %1066 = vrot.lane.b32.xlu0 %v3036_v17, %s2096_s22  ;;  %v1158_v20 = vrot.slane %v1156_v63, 5  ;;  %v1164_v8 = vshll.u32 %v2738_v51, 16  ;;  %v756_v10 = vsel %vm2790_vm9, %v2617_v52, 0  ;;  %v1087_v51 = vunpack.c.l.b16 %v939_v54  ;;  %vm3521_vm9 = vmmov %vm3512_vm6 }
  0xf6   : > { %1109 = vrot.lane.b32.xlu1 %v1100_v26, %s2095_s19  ;;  %vm749_vm0 = vcmp.ne.s32.totalorder %v745_v18, %v2232_v19  ;;  %vm750_vm13 = vcmp.ne.s32.totalorder %v746_v25, %v2250_v27  ;;  %v1001_v38 = vpack.c.b16 %v3112_v44, %v3110_v4  ;;  %v1163_v41 = vrot.slane %v1161_v53, 4  ;;  %vm3523_vm6 = vmmov %vm3517_vm7 }
  0xf7   : > { %1280 = vrot.lane.b32.xlu2 %v1273_v6, %s2097_s27  ;;  %vm3120_vm1 = vmpackc.low %vm750_vm13, %vm749_vm0  ;;  %v757_v19 = vsel %vm2859_vm15, %v2710_v42, 0  ;;  %v1315_v28 = vsel %vm3520_vm4, %v3056_v59, %v1314_v15  ;;  %v1166_v37 = vrot.slane %v1164_v8, 5  ;;  %v1521_v14 = vsel %vm1424_vm12, %v3043_v43, %v3106_v39 }
  0xf8   : > { %v971_v27 = vsel %vm3120_vm1, %v2886_v35, 0  ;;  %v3140_v45 = vunpack.c.l.b16 %v756_v10  ;;  %v3142_v52 = vunpack.c.l.b16 %v757_v19  ;;  %v3145_v42 = vor.u32 %v1158_v20, %v1155_v24  ;;  %vm3522_vm15 = vmmov %vm3516_vm2  ;;  %v2063_v10 = vld [vmem:[%s3369_s6 + $0x60] sm:$0xff]  ;;  %v2056_v19 = vld [vmem:[%s3369_s6 + $0x28] sm:$0xff] }
  0xf9   : > { %v1246_v3 = vunpack.c.l.b16 %v971_v27  ;;  %v1167_v7 = vor.u32 %v1166_v37, %v1163_v41  ;;  %v758_v35 = vsel %vm2986_vm11, %v2801_v36, 0  ;;  %v759_v59 = vsel %vm3020_vm10, %v2871_v55, 0  ;;  %vm3526_vm11 = vmmov %vm3523_vm6  ;;  %v2058_v41 = vld [vmem:[%s3369_s6 + $0x38] sm:$0xff] }
  0xfa   : > { %2023 = vmatmul.msk.bf16.gmra.mxu3 %vm3521_vm9, %v1521_v14  ;;  %v1218_v43 = vsel %vm3522_vm15, %v3047_v50, %v1217_v57  ;;  %v1134_v23 = vpack.c.b16 %v1129_v5, %v1128_v40  ;;  %v1002_v1 = vpack.c.b16 %v3142_v52, %v3140_v45  ;;  %v3524_v2 = vunpack.c.l.b16 %v2801_v36  ;;  %vm3528_vm10 = vmmov %vm3521_vm9  ;;  %1675 = vmatpush.bf16.msra.mxu1 %v2058_v41  ;;  %v2062_v27 = vld [vmem:[%s3369_s6 + $0x58] sm:$0xff] }
  0xfb   : > { %v1251_v62 = vpack.c.b16 %v1246_v3, %v1246_v3  ;;  %v3159_v33 = vsel %vm3523_vm6, %v3145_v42, %v1167_v7  ;;  %v3165_v58 = vunpack.c.l.b16 %v758_v35  ;;  %v3167_v13 = vunpack.c.l.b16 %v759_v59  ;;  %vm3529_vm8 = vmmov %vm3523_vm6  ;;  %v2054_v14 = vld [vmem:[%s3369_s6 + $0x18] sm:$0xff]  ;;  %v2060_v3 = vld [vmem:[%s3369_s6 + $0x48] sm:$0xff] }
  0xfc   : > { %v1150_v22 = vpack.c.b16 %v1019_v12, %v3524_v2  ;;  %v1092_v50 = vpack.c.b16 %v1087_v51, %v1087_v51  ;;  %v1539_v11 = vshrl.u32 %v1315_v28, 16  ;;  %v1542_v21 = vshll.u32 %v1315_v28, 16  ;;  %v2055_v51 = vld [vmem:[%s3369_s6 + $0x20] sm:$0xff]  ;;  %v2061_v28 = vld [vmem:[%s3369_s6 + $0x50] sm:$0xff]  ;;  %vm3530_vm3 = vmmov %vm3521_vm9 }
  0xfd   : > { %1227 = vrot.lane.b32.xlu0 %v1218_v43, %s2096_s22  ;;  %v1003_v36 = vpack.c.b16 %v3167_v13, %v3165_v58  ;;  %v3174_v55 = vunpack.c.l.b16 %v752_v46  ;;  %v3525_v12 = vsel %vm2364_vm5, %v2316_v0, 0  ;;  %v760_v30 = vsel %vm3120_vm1, %v2939_v49, 0  ;;  %vm3527_vm5 = vmmov %vm3516_vm2  ;;  %v2053_v35 = vld [vmem:[%s3369_s6 + $0x10] sm:$0xff]  ;;  %v2059_v59 = vld [vmem:[%s3369_s6 + $0x40] sm:$0xff] }
  0xfe   : > { %1260 = vrot.lane.b32.xlu1 %v1251_v62, %s2095_s19  ;;  %v1170_v61 = vshrl.u32 %v1150_v22, 16  ;;  %v1173_v26 = vshll.u32 %v1150_v22, 16  ;;  %v3180_v40 = vunpack.c.l.b16 %v3525_v12  ;;  %v1101_v16 = vrot.slane %v1092_v50, 5  ;;  %v2051_v2 = vld [vmem:[%s3369_s6] sm:$0xff]  ;;  %vm3531_vm7 = vmmov %vm3530_vm3 }
  0xff   : > { %1142 = vrot.lane.b32.xlu2 %v1134_v23, %s2097_s27  ;;  %v1541_v63 = vrot.slane %v1539_v11, 3  ;;  %v1544_v31 = vrot.slane %v1542_v21, 4  ;;  %v950_v60 = vsel %vm3120_vm1, %v3009_v9, 0  ;;  %v1151_v25 = vpack.c.b16 %v1147_v29, %v1020_v48  ;;  %v2064_v48 = vld [vmem:[%s3369_s6 + $0x68] sm:$0xff]  ;;  %v2057_v29 = vld [vmem:[%s3369_s6 + $0x30] sm:$0xff]  ;;  %vm3532_vm0 = vmmov %vm3530_vm3 }
 0x100   : > { %v1172_v47 = vrot.slane %v1170_v61, 4  ;;  %v1175_v5 = vrot.slane %v1173_v26, 5  ;;  %v1000_v6 = vpack.c.b16 %v3180_v40, %v3174_v55  ;;  %v1102_v0 = vsel %vm3527_vm5, %v3072_v34, %v1101_v16  ;;  %1676 = vmatpush.bf16.msra.mxu1 %v2057_v29  ;;  %v2052_v23 = vld [vmem:[%s3369_s6 + $0x8] sm:$0xff]  ;;  %vm3533_vm13 = vmmov %vm3532_vm0 }
 0x101   : > { %v1545_v46 = vor.u32 %v1544_v31, %v1541_v63  ;;  %v1130_v15 = vunpack.c.l.b16 %v950_v60  ;;  %v1182_v24 = vshll.u32 %v1151_v25, 16  ;;  %vm1331_vm14 = vcmask 523264   ;;  %vm3534_vm4 = vmmov %vm3532_vm0 }
 0x102   : > { %v1176_v57 = vor.u32 %v1175_v5, %v1172_v47  ;;  %vm1342_vm2 = vcmask 785408   ;;  %vm3535_vm9 = vmmov %vm3532_vm0  ;;  %vm1831_vm1 = vcmask 195584  }
 0x103   : > { %v1546_v18 = vsel %vm1424_vm12, %v3106_v39, %v1545_v46  ;;  %v1135_v34 = vpack.c.b16 %v1130_v15, %v1130_v15  ;;  %v1179_v39 = vshrl.u32 %v1151_v25, 16  ;;  %v1184_v20 = vrot.slane %v1182_v24, 5  ;;  %vm3536_vm15 = vmmov %vm3532_vm0 }
 0x104   : > { %v3185_v54 = vsel %vm3526_vm11, %v1167_v7, %v1176_v57  ;;  %1677 = vmatpush.bf16.msra.mxu1 %v2056_v19  ;;  %vm3537_vm6 = vmmov %vm3532_vm0 }
 0x105   : > { %1068 = vrot.lane.b32.xlu0 %v3011_v56, %s2096_s22  ;;  %v2066_v56 = vld [vmem:[%s3369_s6 + $0x78] sm:$0xff]  ;;  %v1181_v53 = vrot.slane %v1179_v39, 4  ;;  %vm3538_vm11 = vmmov %vm3532_vm0 }
 0x106   : > { %1111 = vrot.lane.b32.xlu1 %v1102_v0, %s2095_s19  ;;  %1704 = vmatpush.bf16.msra.mxu2 %v2066_v56  ;;  %vm3539_vm5 = vmmov %vm3532_vm0 }
 0x107   : > { %1282 = vrot.lane.b32.xlu2 %v3081_v32, %s2097_s27  ;;  %v2065_v32 = vld [vmem:[%s3369_s6 + $0x70] sm:$0xff]  ;;  %v3214_v8 = vor.u32 %v1184_v20, %v1181_v53 }
 0x108   : > { %1678 = vmatpush.bf16.msra.mxu1 %v2055_v51  ;;  %v1104_v37 = vpop.permute.xlu2 %1103 }
 0x109   : > { %v3224_v9 = vsel %vm3529_vm8, %v1176_v57, %v3214_v8 }
 0x10a   : > { %2024 = vmatmul.msk.bf16.gmra.mxu3 %vm3528_vm10, %v1546_v18  ;;  %1705 = vmatpush.bf16.msra.mxu2 %v2065_v32  ;;  %vm3540_vm10 = vcmask 257024  }
 0x10b   : > { %vm3541_vm8 = vmmov %vm3540_vm10 }
 0x10c   : > { %1679 = vmatpush.bf16.msra.mxu1 %v2054_v14 }
 0x10e   : > { %1706 = vmatpush.bf16.msra.mxu2 %v2064_v48 }
 0x10f   : > { %1144 = vrot.lane.b32.xlu2 %v1135_v34, %s2097_s27 }
 0x110   : > { %1680 = vmatpush.bf16.msra.mxu1 %v2053_v35 }
 0x112   : > { %1707 = vmatpush.bf16.msra.mxu2 %v2063_v10 }
 0x114   : > { %1681 = vmatpush.bf16.msra.mxu1 %v2052_v23 }
 0x116   : > { %1708 = vmatpush.bf16.msra.mxu2 %v2062_v27 }
 0x118   : > { %1682 = vmatpush.bf16.msra.mxu1 %v2051_v2 }
 0x11a   : > { %1709 = vmatpush.bf16.msra.mxu2 %v2061_v28 }
 0x11b   : > { %v1275_v43 = vpop.permute.xlu2 %1274 }
 0x11e   : > { %1710 = vmatpush.bf16.msra.mxu2 %v2060_v3 }
 0x122   : > { %1711 = vmatpush.bf16.msra.mxu2 %v2059_v59 }
 0x123   : > { %v1061_v7 = vpop.permute.xlu0 %1060 }
 0x124   : > { %v1318_v18 = vsel %vm3532_vm0, %v1000_v6, %v1061_v7 }
 0x125   : > { %v1333_v55 = vsel %vm1331_vm14, %v1318_v18, %v1104_v37 }
 0x126   : > { %v1253_v62 = vpop.permute.xlu1 %1252 }
 0x12b   : > { %v1220_v22 = vpop.permute.xlu0 %1219 }
 0x12c   : > { %v1355_v11 = vsel %vm3530_vm3, %v3145_v42, %v1220_v22  ;;  %vm3542_vm3 = vmmov %vm3541_vm8 }
 0x12d   : > { %v1369_v61 = vsel %vm1331_vm14, %v1355_v11, %v1253_v62 }
 0x12e   : > { %v1379_v26 = vsel %vm1342_vm2, %v1369_v61, %v1275_v43 }
 0x12f   : > { %v1277_v50 = vpop.permute.xlu2 %1276  ;;  %v1440_v5 = vshrl.u32 %v1379_v26, 16  ;;  %v1443_v16 = vshll.u32 %v1379_v26, 16 }
 0x131   : > { %v1442_v60 = vrot.slane %v1440_v5, 3  ;;  %v1445_v15 = vrot.slane %v1443_v16, 4 }
 0x133   : > { %v1446_v53 = vor.u32 %v1445_v15, %v1442_v60 }
 0x135   : > { %v1063_v21 = vpop.permute.xlu1 %1062 }
 0x136   : > { %v1321_v56 = vsel %vm3533_vm13, %v1001_v38, %v1063_v21 }
 0x139   : > { %v1139_v12 = vpop.permute.xlu2 %1138 }
 0x13a   : > { %v1222_v47 = vpop.permute.xlu0 %1221 }
 0x13b   : > { %v1358_v63 = vsel %vm3531_vm7, %v3159_v33, %v1222_v47 }
 0x13d   : > { %v1255_v31 = vpop.permute.xlu1 %1254 }
 0x13e   : > { %v1371_v57 = vsel %vm1331_vm14, %v1358_v63, %v1255_v31 }
 0x13f   : > { %v1381_v0 = vsel %vm1342_vm2, %v1371_v57, %v1277_v50 }
 0x140   : > { %v1447_v42 = vshrl.u32 %v1381_v0, 16  ;;  %v1450_v46 = vshll.u32 %v1381_v0, 16 }
 0x141   : > { %v1279_v39 = vpop.permute.xlu2 %1278 }
 0x142   : > { %v1449_v33 = vrot.slane %v1447_v42, 3  ;;  %v1452_v34 = vrot.slane %v1450_v46, 4  ;;  %v1106_v25 = vpop.permute.xlu0 %1105 }
 0x143   : > { %v1335_v32 = vsel %vm1331_vm14, %v1321_v56, %v1106_v25 }
 0x144   : > { %v1346_v24 = vsel %vm1342_vm2, %v1335_v32, %v1139_v12  ;;  %v1453_v20 = vor.u32 %v1452_v34, %v1449_v33 }
 0x145   : > { %v1432_v41 = vshrl.u32 %v1346_v24, 16  ;;  %v1435_v48 = vshll.u32 %v1346_v24, 16 }
 0x146   : > { %v1454_v4 = vsel %vm1424_vm12, %v1446_v53, %v1453_v20 }
 0x147   : > { %v1434_v44 = vrot.slane %v1432_v41, 3  ;;  %v1437_v38 = vrot.slane %v1435_v48, 4  ;;  %1712 = vmatmul.bf16.vlgmr.msra.gmra.mxu2 %v1454_v4 }
 0x148   : > { %v1137_v40 = vpop.permute.xlu1 %1136 }
 0x149   : > { %v1344_v6 = vsel %vm1342_vm2, %v1333_v55, %v1137_v40  ;;  %v1438_v28 = vor.u32 %v1437_v38, %v1434_v44  ;;  %v1141_v35 = vpop.permute.xlu2 %1140 }
 0x14a   : > { %v1425_v29 = vshrl.u32 %v1344_v6, 16  ;;  %v1428_v10 = vshll.u32 %v1344_v6, 16 }
 0x14c   : > { %v1427_v19 = vrot.slane %v1425_v29, 3  ;;  %v1430_v27 = vrot.slane %v1428_v10, 4  ;;  %v999_v29 = vunpack.c.l.b16 %v760_v30 }
 0x14e   : > { %v1431_v51 = vor.u32 %v1430_v27, %v1427_v19 }
 0x14f   : > { %v1224_v14 = vpop.permute.xlu0 %1223 }
 0x150   : > { %v1361_v3 = vsel %vm3534_vm4, %v3185_v54, %v1224_v14  ;;  %v1257_v7 = vpop.permute.xlu1 %1256  ;;  %v1439_v37 = vsel %vm1424_vm12, %v1431_v51, %v1438_v28 }
 0x151   : > { %v1373_v59 = vsel %vm1331_vm14, %v1361_v3, %v1257_v7  ;;  %1683 = vmatmul.bf16.vlgmr.msra.gmra.mxu1 %v1439_v37  ;;  %v1281_v47 = vpop.permute.xlu2 %1280 }
 0x152   : > { %v1383_v43 = vsel %vm1342_vm2, %v1373_v59, %v1279_v39 }
 0x153   : > { %v1480_v23 = vshrl.u32 %v1383_v43, 16  ;;  %v1483_v62 = vshll.u32 %v1383_v43, 16 }
 0x155   : > { %v1482_v2 = vrot.slane %v1480_v23, 3  ;;  %v1485_v22 = vrot.slane %v1483_v62, 4 }
 0x157   : > { %v1065_v50 = vpop.permute.xlu0 %1064  ;;  %v1486_v11 = vor.u32 %v1485_v22, %v1482_v2 }
 0x158   : > { %v1324_v54 = vsel %vm3535_vm9, %v1002_v1, %v1065_v50  ;;  %v1108_v21 = vpop.permute.xlu1 %1107 }
 0x159   : > { %v1337_v61 = vsel %vm1331_vm14, %v1324_v54, %v1108_v21  ;;  %v1487_v26 = vsel %vm1424_vm12, %v1453_v20, %v1486_v11  ;;  %v1143_v18 = vpop.permute.xlu2 %1142 }
 0x15a   : > { %v1348_v12 = vsel %vm1342_vm2, %v1337_v61, %v1141_v35  ;;  %1717 = vmatmul.bf16.gmra.mxu2 %v1487_v26 }
 0x15b   : > { %v1472_v5 = vshrl.u32 %v1348_v12, 16  ;;  %v1475_v16 = vshll.u32 %v1348_v12, 16 }
 0x15d   : > { %v1474_v63 = vrot.slane %v1472_v5, 3  ;;  %v1477_v31 = vrot.slane %v1475_v16, 4  ;;  %v1742_v22 = vpop.f32.mrf.mxu3 }
 0x15f   : > { %v1226_v57 = vpop.permute.xlu0 %1225  ;;  %v1478_v0 = vor.u32 %v1477_v31, %v1474_v63 }
 0x160   : > { %v1364_v45 = vsel %vm3536_vm15, %v3224_v9, %v1226_v57  ;;  %v1259_v52 = vpop.permute.xlu1 %1258 }
 0x161   : > { %v1375_v1 = vsel %vm1331_vm14, %v1364_v45, %v1259_v52  ;;  %v1479_v42 = vsel %vm1424_vm12, %v1438_v28, %v1478_v0  ;;  %v1283_v40 = vpop.permute.xlu2 %1282  ;;  %v1004_v28 = vpack.c.b16 %v999_v29, %v999_v29 }
 0x162   : > { %v1385_v46 = vsel %vm1342_vm2, %v1375_v1, %v1281_v47  ;;  %1688 = vmatmul.bf16.gmra.mxu1 %v1479_v42 }
 0x163   : > { %v1505_v60 = vshrl.u32 %v1385_v46, 16  ;;  %v1508_v15 = vshll.u32 %v1385_v46, 16 }
 0x165   : > { %v1507_v56 = vrot.slane %v1505_v60, 3  ;;  %v1510_v33 = vrot.slane %v1508_v15, 4  ;;  %v1744_v50 = vpop.f32.mrf.mxu3 }
 0x167   : > { %v1067_v34 = vpop.permute.xlu0 %1066  ;;  %v1511_v25 = vor.u32 %v1510_v33, %v1507_v56 }
 0x168   : > { %v1327_v9 = vsel %vm3537_vm6, %v1003_v36, %v1067_v34  ;;  %v1110_v32 = vpop.permute.xlu1 %1109 }
 0x169   : > { %v1339_v39 = vsel %vm1331_vm14, %v1327_v9, %v1110_v32  ;;  %v1512_v24 = vsel %vm1424_vm12, %v1486_v11, %v1511_v25  ;;  %v1145_v37 = vpop.permute.xlu2 %1144 }
 0x16a   : > { %v1350_v53 = vsel %vm1342_vm2, %v1339_v39, %v1143_v18  ;;  %1722 = vmatmul.bf16.gmra.mxu2 %v1512_v24 }
 0x16b   : > { %v1497_v20 = vshrl.u32 %v1350_v53, 16  ;;  %v1500_v41 = vshll.u32 %v1350_v53, 16 }
 0x16d   : > { %v1499_v48 = vrot.slane %v1497_v20, 3  ;;  %v1502_v55 = vrot.slane %v1500_v41, 4  ;;  %v1747_v47 = vpop.f32.mrf.mxu3 }
 0x16f   : > { %v1228_v6 = vpop.permute.xlu0 %1227  ;;  %v1503_v4 = vor.u32 %v1502_v55, %v1499_v48 }
 0x170   : > { %v1367_v58 = vsel %vm3538_vm11, %v3214_v8, %v1228_v6  ;;  %v1261_v13 = vpop.permute.xlu1 %1260 }
 0x171   : > { %v1377_v36 = vsel %vm1331_vm14, %v1367_v58, %v1261_v13  ;;  %v1504_v44 = vsel %vm1424_vm12, %v1478_v0, %v1503_v4 }
 0x172   : > { %v1387_v38 = vsel %vm1342_vm2, %v1377_v36, %v1283_v40  ;;  %1693 = vmatmul.bf16.gmra.mxu1 %v1504_v44 }
 0x173   : > { %v1530_v10 = vshrl.u32 %v1387_v38, 16  ;;  %v1533_v19 = vshll.u32 %v1387_v38, 16 }
 0x175   : > { %v1532_v27 = vrot.slane %v1530_v10, 3  ;;  %v1535_v51 = vrot.slane %v1533_v19, 4  ;;  %v1749_v42 = vpop.f32.mrf.mxu3 }
 0x177   : > { %v1069_v14 = vpop.permute.xlu0 %1068  ;;  %v1536_v8 = vor.u32 %v1535_v51, %v1532_v27 }
 0x178   : > { %v1330_v3 = vsel %vm3539_vm5, %v1004_v28, %v1069_v14  ;;  %v1112_v7 = vpop.permute.xlu1 %1111 }
 0x179   : > { %v1341_v35 = vsel %vm1331_vm14, %v1330_v3, %v1112_v7  ;;  %v1537_v59 = vsel %vm1424_vm12, %v1511_v25, %v1536_v8  ;;  %vm3543_vm14 = vmmov %vm3542_vm3 }
 0x17a   : > { %v1352_v17 = vsel %vm1342_vm2, %v1341_v35, %v1145_v37  ;;  %1727 = vmatmul.bf16.gmra.mxu2 %v1537_v59  ;;  %vm3544_vm2 = vmmov %vm3542_vm3 }
 0x17b   : > { %v1522_v49 = vshrl.u32 %v1352_v17, 16  ;;  %v1525_v30 = vshll.u32 %v1352_v17, 16  ;;  %vm3545_vm7 = vmmov %vm3544_vm2 }
 0x17c   : > { %vm3546_vm0 = vmmov %vm3544_vm2 }
 0x17d   : > { %v1524_v43 = vrot.slane %v1522_v49, 3  ;;  %v1527_v23 = vrot.slane %v1525_v30, 4  ;;  %v1752_v25 = vpop.f32.mrf.mxu3  ;;  %vm3547_vm13 = vmmov %vm3546_vm0 }
 0x17f   : > { %v1528_v62 = vor.u32 %v1527_v23, %v1524_v43  ;;  %v2045_v43 = vld [vmem:[%s2161_s10] sm:$0xff] }
 0x181   : > { %v1529_v2 = vsel %vm1424_vm12, %v1503_v4, %v1528_v62  ;;  %vm1818_vm12 = vcmask 130048  }
 0x182   : > { %1698 = vmatmul.bf16.gmra.mxu1 %v1529_v2 }
 0x185   : > { %v1754_v48 = vpop.f32.mrf.mxu3 }
 0x18d   : > { %v1757_v10 = vpop.f32.mrf.mxu3 }
 0x195   : > { %v1759_v7 = vpop.f32.mrf.mxu3 }
 0x1ca   : > { %v1713_v11 = vpop.f32.mrf.mxu2 }
 0x1ce   : > { %v1684_v54 = vpop.f32.mrf.mxu1 }
 0x1cf   : > { %v1714_v21 = vadd.f32 %v1713_v11, %v1684_v54  ;;  %v2047_v11 = vld [vmem:[%s2161_s10 + $0x10] sm:$0xff]  ;;  %v2046_v54 = vld [vmem:[%s2161_s10 + $0x8] sm:$0xff] }
 0x1d1   : > { %v1743_v61 = vadd.f32 %v1742_v22, %v1714_v21  ;;  %v2048_v21 = vld [vmem:[%s2161_s10 + $0x18] sm:$0xff] }
 0x1d2   : > { %v1715_v26 = vpop.f32.mrf.mxu2 }
 0x1d3   : > { %v1762_v16 = vpack.c.bf16 %v1743_v61, %v1743_v61 }
 0x1d5   : > { %v1798_v57 = vunpack.c.l.b16 %v1762_v16 }
 0x1d6   : > { %v1686_v12 = vpop.f32.mrf.mxu1 }
 0x1d7   : > { %v1716_v5 = vadd.f32 %v1715_v26, %v1686_v12 }
 0x1d9   : > { %v1745_v63 = vadd.f32 %v1744_v50, %v1716_v5 }
 0x1db   : > { %v1763_v31 = vpack.c.bf16 %v1745_v63, %v1745_v63 }
 0x1dd   : > { %v1799_v0 = vunpack.c.l.b16 %v1763_v31  ;;  %v1718_v45 = vpop.f32.mrf.mxu2 }
 0x1df   : > { %v1689_v52 = vpop.f32.mrf.mxu1  ;;  %v1806_v1 = vpack.c.b16 %v1799_v0, %v1798_v57 }
 0x1e0   : > { %v1719_v46 = vadd.f32 %v1718_v45, %v1689_v52 }
 0x1e1   : > { %1810 = vrot.lane.b32.xlu0 %v1806_v1, %s2098_s20 }
 0x1e2   : > { %v1748_v15 = vadd.f32 %v1747_v47, %v1719_v46 }
 0x1e4   : > { %v1764_v33 = vpack.c.bf16 %v1748_v15, %v1748_v15 }
 0x1e5   : > { %v1720_v60 = vpop.f32.mrf.mxu2 }
 0x1e6   : > { %v1800_v39 = vunpack.c.l.b16 %v1764_v33 }
 0x1e7   : > { %v1691_v18 = vpop.f32.mrf.mxu1 }
 0x1e8   : > { %v1721_v56 = vadd.f32 %v1720_v60, %v1691_v18 }
 0x1ea   : > { %v1750_v34 = vadd.f32 %v1749_v42, %v1721_v56 }
 0x1ec   : > { %v1765_v9 = vpack.c.bf16 %v1750_v34, %v1750_v34 }
 0x1ed   : > { %v1723_v32 = vpop.f32.mrf.mxu2 }
 0x1ee   : > { %v1801_v24 = vunpack.c.l.b16 %v1765_v9 }
 0x1ef   : > { %v1694_v53 = vpop.f32.mrf.mxu1 }
 0x1f0   : > { %v1807_v20 = vpack.c.b16 %v1801_v24, %v1800_v39  ;;  %v1724_v41 = vadd.f32 %v1723_v32, %v1694_v53 }
 0x1f2   : > { %1812 = vrot.lane.b32.xlu1 %v1807_v20, %s2098_s20  ;;  %v1753_v40 = vadd.f32 %v1752_v25, %v1724_v41 }
 0x1f4   : > { %v1766_v58 = vpack.c.bf16 %v1753_v40, %v1753_v40 }
 0x1f5   : > { %v1725_v55 = vpop.f32.mrf.mxu2 }
 0x1f6   : > { %v1802_v38 = vunpack.c.l.b16 %v1766_v58 }
 0x1f7   : > { %v1696_v6 = vpop.f32.mrf.mxu1 }
 0x1f8   : > { %v1726_v4 = vadd.f32 %v1725_v55, %v1696_v6 }
 0x1fa   : > { %v1755_v13 = vadd.f32 %v1754_v48, %v1726_v4 }
 0x1fc   : > { %v1767_v36 = vpack.c.bf16 %v1755_v13, %v1755_v13 }
 0x1fd   : > { %v1728_v44 = vpop.f32.mrf.mxu2 }
 0x1fe   : > { %v1803_v29 = vunpack.c.l.b16 %v1767_v36 }
 0x1ff   : > { %v1699_v19 = vpop.f32.mrf.mxu1 }
 0x200   : > { %v1808_v27 = vpack.c.b16 %v1803_v29, %v1802_v38  ;;  %v1729_v51 = vadd.f32 %v1728_v44, %v1699_v19 }
 0x202   : > { %1814 = vrot.lane.b32.xlu2 %v1808_v27, %s2098_s20  ;;  %v1758_v28 = vadd.f32 %v1757_v10, %v1729_v51 }
 0x204   : > { %v1768_v37 = vpack.c.bf16 %v1758_v28, %v1758_v28 }
 0x205   : > { %v1730_v14 = vpop.f32.mrf.mxu2 }
 0x206   : > { %v1804_v17 = vunpack.c.l.b16 %v1768_v37 }
 0x207   : > { %v1701_v8 = vpop.f32.mrf.mxu1 }
 0x208   : > { %v1731_v3 = vadd.f32 %v1730_v14, %v1701_v8 }
 0x20a   : > { %v1760_v35 = vadd.f32 %v1759_v7, %v1731_v3 }
 0x20c   : > { %v1769_v59 = vpack.c.bf16 %v1760_v35, %v1760_v35 }
 0x20e   : > { %v1805_v49 = vunpack.c.l.b16 %v1769_v59 }
 0x210   : > { %v1809_v30 = vpack.c.b16 %v1805_v49, %v1804_v17 }
 0x212   : > { %1816 = vrot.lane.b32.xlu0 %v1809_v30, %s2098_s20 }
 0x253   : > { %v1811_v23 = vpop.permute.xlu0 %1810 }
 0x254   : > { %v1821_v62 = vsel %vm1818_vm12, %v2045_v43, %v1811_v23 }
 0x255   : > { %v1833_v2 = vsel %vm1831_vm1, %v1821_v62, 0 }
 0x256   : > { %v1841_v22 = vunpack.c.l.b16 %v1833_v2  ;;  %v1842_v50 = vunpack.c.h.b16 %v1833_v2 }
 0x258   : > { %v1849_v61 = vpack.c.b16 %v1841_v22, %v1841_v22  ;;  %v1850_v26 = vpack.c.b16 %v1842_v50, %v1842_v50 }
 0x25a   : > { %1865 = vst.msk [vmem:[%s3333_s23] sm:$0xf] %vm3540_vm10, %v1849_v61 }
 0x25b   : > { %1866 = vst.msk [vmem:[%s3333_s23 + $0x4] sm:$0xf] %vm3541_vm8, %v1850_v26 }
 0x25c   : > { %v1815_v12 = vpop.permute.xlu2 %1814 }
 0x25d   : > { %v1827_v47 = vsel %vm1818_vm12, %v2047_v11, %v1815_v12 }
 0x25e   : > { %v1835_v5 = vsel %vm1831_vm1, %v1827_v47, 0 }
 0x25f   : > { %v1845_v16 = vunpack.c.l.b16 %v1835_v5  ;;  %v1846_v63 = vunpack.c.h.b16 %v1835_v5 }
 0x261   : > { %v1853_v31 = vpack.c.b16 %v1845_v16, %v1845_v16  ;;  %v1854_v57 = vpack.c.b16 %v1846_v63, %v1846_v63 }
 0x263   : > { %1869 = vst.msk [vmem:[%s3333_s23 + $0x10] sm:$0xf] %vm3542_vm3, %v1853_v31 }
 0x264   : > { %v1813_v0 = vpop.permute.xlu1 %1812  ;;  %1870 = vst.msk [vmem:[%s3333_s23 + $0x14] sm:$0xf] %vm3543_vm14, %v1854_v57 }
 0x265   : > { %v1824_v45 = vsel %vm1818_vm12, %v2046_v54, %v1813_v0 }
 0x266   : > { %v1834_v52 = vsel %vm1831_vm1, %v1824_v45, 0 }
 0x267   : > { %v1843_v1 = vunpack.c.l.b16 %v1834_v52  ;;  %v1844_v42 = vunpack.c.h.b16 %v1834_v52 }
 0x269   : > { %v1851_v46 = vpack.c.b16 %v1843_v1, %v1843_v1  ;;  %v1852_v60 = vpack.c.b16 %v1844_v42, %v1844_v42 }
 0x26b   : > { %1867 = vst.msk [vmem:[%s3333_s23 + $0x8] sm:$0xf] %vm3544_vm2, %v1851_v46 }
 0x26c   : > { %1868 = vst.msk [vmem:[%s3333_s23 + $0xc] sm:$0xf] %vm3545_vm7, %v1852_v60 }
 0x284   : > { %v1817_v15 = vpop.permute.xlu0 %1816 }
 0x285   : > { %v1830_v18 = vsel %vm1818_vm12, %v2048_v21, %v1817_v15 }
 0x286   : > { %v1836_v56 = vsel %vm1831_vm1, %v1830_v18, 0 }
 0x287   : > { %v1847_v33 = vunpack.c.l.b16 %v1836_v56  ;;  %v1848_v34 = vunpack.c.h.b16 %v1836_v56 }
 0x289   : > { %v1855_v25 = vpack.c.b16 %v1847_v33, %v1847_v33  ;;  %v1856_v9 = vpack.c.b16 %v1848_v34, %v1848_v34 }
 0x28b   : > { %1871 = vst.msk [vmem:[%s3333_s23 + $0x18] sm:$0xf] %vm3546_vm0, %v1855_v25 }
 0x28c   : > { %1872 = vst.msk [vmem:[%s3333_s23 + $0x1c] sm:$0xf] %vm3547_vm13, %v1856_v9 }
 0x28d PF: > { %s17_s24 = sadd.s32 1, %s2092_s24  }
 0x28e   : > { %p14_p4 = scmp.ge.s32.totalorder %s17_s24, 4  }
 0x290   :  { %16 = sbr.rel (!%p14_p4) target bundleno = 1 (0x1), region = 78 }

// kernel: densenet_finetune_forward.11
= control target key start
LH: loop header
LB: loop body
LE: loop exit
PB: predicated region body
PF: predicated region fallthrough
CT: control target
= control target key end

     0   :  { %s2133_s24 = smov 0   ;;  %s3353_s0 = inlined_call_operand.vmem [shape: bf16[2,64,32], index: 0, kind: input, shape index: {}, may-alias: {0,7}]   ;;  %s3354_s1 = inlined_call_operand.vmem [shape: bf16[32,32], index: 1, kind: input, shape index: {}]   ;;  %s3355_s2 = inlined_call_operand.vmem [shape: f32[1,32], index: 2, kind: input, shape index: {}]   ;;  %s3356_s3 = inlined_call_operand.vmem [shape: f32[1,32], index: 3, kind: input, shape index: {}]   ;;  %s3357_s4 = inlined_call_operand.vmem [shape: f32[1,32], index: 4, kind: input, shape index: {}]   ;;  %s3358_s5 = inlined_call_operand.vmem [shape: f32[1,32], index: 5, kind: input, shape index: {}]   ;;  %s3359_s6 = inlined_call_operand.vmem [shape: bf16[288,8], index: 6, kind: input, shape index: {}]   ;;  %s3360_s7 = inlined_call_operand.vmem [shape: bf16[2,64,32], index: 7, kind: output, shape index: {}, may-alias: {0,7}]  }
   0x1 LB: > { %s1922_s25 = sadd.s32 4294967295, %s2086_s24   ;;  %p1926_p0 = scmp.ge.s32.totalorder %s2086_s24, 1  ;;  %s2086_s24 = sphi %s2133_s24, %s17_s24  }
   0x2   : > { %p237_p1 = scmp.lt.s32.totalorder %s2086_s24, 3 }
   0x4   : > { %p238_p2 = pnand %p1926_p0, %p237_p1 }
   0x5   : > { %p269_p3 = scmp.lt.s32.totalorder (!%p238_p2), %s1922_s25, 1  ;;  %s2089_s19 = smov (!%p238_p2), 64  }
   0x6   : > { %241 = sbr.rel (%p238_p2) target bundleno = 652 (0x28c), region = 48  ;;  %s2090_s22 = smov (!%p238_p2), 32  }
   0x7   : > { %s2091_s27 = smov (!%p238_p2), 96   ;;  %s2092_s20 = smov (!%p238_p2), 24  }
   0xb   : > { %v2044_v0 = vld [vmem:[%s3354_s1 + $0x8] sm:$0xff]  ;;  %v2043_v1 = vld [vmem:[%s3354_s1] sm:$0xff]  ;;  %s3539_s25 = smov (!%p269_p3, %s1922_s25), 1  ;;  %vm3361_vm0 = vcmask 261120   ;;  %v445_v44 = vlaneseq  ;;  %v2088_v50 = vmov 0   ;;  %vm3364_vm9 = vcmask 257024  }
   0xc   : > { %369 = vmatpush.bf16.msra.mxu0 %v2044_v0  ;;  %s2037_s30 = sshll.u32 %s3539_s25, 5  ;;  %v2076_v2 = vld [vmem:[%s3355_s2] ss:$0 sm:$0xff]  ;;  %434 = vst.msk [vmem:[#allocation2 + $0x4] sm:$0xf] %vm3364_vm9, %v2088_v50 }
   0xd   : > { %s2155_s10 = scalar_lea.vmem %s3353_s0, %s2037_s30  ;;  %v2077_v6 = vld [vmem:[%s3356_s3] ss:$0 sm:$0xff]  ;;  %v2171_v45 = vshrl.u32 %v445_v44, 7  ;;  %433 = vst.msk [vmem:[#allocation2] sm:$0xf] %vm3364_vm9, %v2088_v50  ;;  %s3326_s23 = scalar_lea.vmem %s3360_s7, %s2037_s30 }
   0xe   : > { %v282_v3 = vld [vmem:[%s2155_s10] sm:$0xff]   ;;  %v284_v9 = vld [vmem:[%s2155_s10 + $0x8] sm:$0xff]   ;;  %v286_v23 = vld [vmem:[%s2155_s10 + $0x10] sm:$0xff]   ;;  %435 = vst.msk [vmem:[#allocation2 + $0x28] sm:$0xf] %vm3364_vm9, %v2088_v50 }
   0xf   : > { %v290_v4 = vunpack.c.l.bf16 %v282_v3  ;;  %v291_v5 = vunpack.c.h.bf16 %v282_v3  ;;  %v292_v14 = vunpack.c.l.bf16 %v284_v9  ;;  %v293_v15 = vunpack.c.h.bf16 %v284_v9  ;;  %v288_v33 = vld [vmem:[%s2155_s10 + $0x18] sm:$0xff]   ;;  %436 = vst.msk [vmem:[#allocation2 + $0x2c] sm:$0xf] %vm3364_vm9, %v2088_v50 }
  0x10   : > { %370 = vmatpush.bf16.msra.mxu0 %v2043_v1  ;;  %v294_v25 = vunpack.c.l.bf16 %v286_v23  ;;  %v295_v26 = vunpack.c.h.bf16 %v286_v23  ;;  %v296_v35 = vunpack.c.l.bf16 %v288_v33  ;;  %v297_v36 = vunpack.c.h.bf16 %v288_v33 }
  0x11   : > { %v302_v7 = vmul.f32 %v2076_v2, %v290_v4  ;;  %v303_v8 = vmul.f32 %v2076_v2, %v291_v5  ;;  %v304_v17 = vmul.f32 %v2076_v2, %v292_v14  ;;  %v305_v18 = vmul.f32 %v2076_v2, %v293_v15 }
  0x12   : > { %v306_v27 = vmul.f32 %v2076_v2, %v294_v25  ;;  %v307_v28 = vmul.f32 %v2076_v2, %v295_v26  ;;  %v308_v37 = vmul.f32 %v2076_v2, %v296_v35  ;;  %v309_v38 = vmul.f32 %v2076_v2, %v297_v36 }
  0x13   : > { %v314_v10 = vadd.f32 %v2077_v6, %v302_v7  ;;  %v315_v11 = vadd.f32 %v2077_v6, %v303_v8  ;;  %v316_v19 = vadd.f32 %v2077_v6, %v304_v17  ;;  %v317_v20 = vadd.f32 %v2077_v6, %v305_v18 }
  0x14   : > { %v318_v29 = vadd.f32 %v2077_v6, %v306_v27  ;;  %v319_v30 = vadd.f32 %v2077_v6, %v307_v28  ;;  %v320_v39 = vadd.f32 %v2077_v6, %v308_v37  ;;  %v321_v40 = vadd.f32 %v2077_v6, %v309_v38 }
  0x15   : > { %v322_v12 = vmax.f32 %v314_v10, 0.0  ;;  %v323_v13 = vmax.f32 %v315_v11, 0.0  ;;  %v324_v21 = vmax.f32 %v316_v19, 0.0  ;;  %v325_v22 = vmax.f32 %v317_v20, 0.0 }
  0x16   : > { %v326_v31 = vmax.f32 %v318_v29, 0.0  ;;  %v327_v32 = vmax.f32 %v319_v30, 0.0  ;;  %v328_v41 = vmax.f32 %v320_v39, 0.0  ;;  %v329_v42 = vmax.f32 %v321_v40, 0.0 }
  0x17   : > { %v330_v16 = vpack.c.bf16 %v323_v13, %v322_v12  ;;  %v331_v24 = vpack.c.bf16 %v325_v22, %v324_v21  ;;  %v447_v46 = vadd.s32 8, %v2171_v45  ;;  %v458_v47 = vand.u32 7, %v2171_v45 }
  0x18   : > { %v332_v34 = vpack.c.bf16 %v327_v32, %v326_v31  ;;  %v333_v43 = vpack.c.bf16 %v329_v42, %v328_v41  ;;  %v448_v53 = vadd.s32 16, %v2171_v45  ;;  %v449_v5 = vadd.s32 24, %v2171_v45 }
  0x19   : > { %1939 = vmatmul.msk.bf16.vlgmr.msra.gmra.mxu0 %vm3361_vm0, %v330_v16  ;;  %v465_v48 = vand.u32 7, %v447_v46  ;;  %vm550_vm1 = vcmp.ge.s32.totalorder %v458_v47, 1  ;;  %vm558_vm3 = vcmp.le.s32.totalorder %v458_v47, 6  ;;  %vm794_vm11 = vsmask.f32 256 }
  0x1a   : > { %vm591_vm2 = vmpackc.low %vm550_vm1, %vm550_vm1  ;;  %v472_v60 = vand.u32 7, %v448_v53  ;;  %vm795_vm12 = vsmask.f32 4368  ;;  %vm3362_vm14 = vsmask.f32 3328  ;;  %v479_v15 = vand.u32 7, %v449_v5 }
  0x1b   : > { %vm559_vm4 = vcmp.le.s32.totalorder %v465_v48, 6  ;;  %vm2175_vm5 = vcmp.ge.s32.totalorder %v465_v48, 1  ;;  %vm778_vm6 = vmpackc.low %vm558_vm3, %vm558_vm3  ;;  %v599_v51 = vsel %vm591_vm2, 65537, %v2088_v50  ;;  %vm608_vm15 = vsmask.f32 7440 }
  0x1c   : > { %vm779_vm7 = vmpackc.low %vm559_vm4, %vm559_vm4  ;;  %v786_v52 = vsel %vm778_vm6, 65537, %v2088_v50  ;;  %v611_v55 = vshll.u32 %v599_v51, 16  ;;  %v614_v56 = vshrl.u32 %v599_v51, 16  ;;  %vm2200_vm10 = vcmp.ge.s32.totalorder %v472_v60, 1  ;;  %v2275_v48 = vld [vmem:[%s3357_s4] ss:$0 sm:$0xff] }
  0x1d   : > { %vm592_vm8 = vmpackc.low %vm2175_vm5, %vm2175_vm5  ;;  %v787_v54 = vsel %vm779_vm7, 65537, %v2088_v50  ;;  %v798_v57 = vshrl.u32 %v786_v52, 16  ;;  %v801_v2 = vshll.u32 %v786_v52, 16  ;;  %vm2205_vm13 = vcmp.le.s32.totalorder %v472_v60, 6 }
  0x1e   : > { %v600_v58 = vsel %vm592_vm8, 65537, %v2088_v50  ;;  %v806_v59 = vshrl.u32 %v787_v54, 16  ;;  %v2193_v61 = vrot.slane %v611_v55, 5  ;;  %v616_v62 = vrot.slane %v614_v56, 4  ;;  %vm593_vm1 = vmpackc.low %vm2200_vm10, %vm2200_vm10 }
  0x1f   : > { %v620_v63 = vshll.u32 %v600_v58, 16  ;;  %v624_v0 = vshrl.u32 %v600_v58, 16  ;;  %v800_v1 = vrot.slane %v798_v57, 7  ;;  %v809_v4 = vshll.u32 %v787_v54, 16  ;;  %vm2212_vm2 = vmor %vm794_vm11, %vm795_vm12  ;;  %v2061_v54 = vld [vmem:[%s3359_s6 + $0x80] sm:$0xff] }
  0x20   : > { %v2197_v3 = vrot.slane %v806_v59, 7  ;;  %v617_v7 = vor.u32 %v616_v62, %v2193_v61  ;;  %vm780_vm3 = vmpackc.low %vm2205_vm13, %vm2205_vm13  ;;  %v2226_v19 = vunpack.c.l.b16 %v2088_v50  ;;  %vm2228_vm5 = vcmp.ge.s32.totalorder %v479_v15, 1  ;;  %v2299_v59 = vld [vmem:[%s3358_s5] ss:$0 sm:$0xff] }
  0x21   : > { %v622_v8 = vrot.slane %v620_v63, 5  ;;  %v626_v9 = vrot.slane %v624_v0, 4  ;;  %v803_v11 = vor.u32 %v801_v2, %v800_v1  ;;  %v804_v13 = vrot.slane %v800_v1, 4  ;;  %vm2221_vm4 = vmor %vm3362_vm14, %vm608_vm15  ;;  %v2310_v0 = vld [vmem:[#allocation2 + $0x4] sm:$0xf] }
  0x22   : > { %v811_v14 = vor.u32 %v809_v4, %v2197_v3  ;;  %v618_v16 = vrot.slane %v617_v7, 4  ;;  %v601_v22 = vsel %vm593_vm1, 65537, %v2088_v50  ;;  %vm2237_vm6 = vcmp.le.s32.totalorder %v479_v15, 6  ;;  %vm594_vm7 = vmpackc.low %vm2228_vm5, %vm2228_vm5 }
  0x23   : > { %v627_v18 = vor.u32 %v626_v9, %v622_v8  ;;  %v868_v20 = vunpack.c.l.b16 %v803_v11  ;;  %v788_v25 = vsel %vm780_vm3, 65537, %v2088_v50  ;;  %v450_v26 = vadd.s32 32, %v2171_v45  ;;  %vm781_vm10 = vmpackc.low %vm2237_vm6, %vm2237_vm6 }
  0x24   : > { %v2235_v23 = vsel %vm2212_vm2, %v804_v13, %v811_v14  ;;  %v2244_v27 = vunpack.c.h.b16 %v2088_v50  ;;  %v869_v28 = vunpack.c.h.b16 %v803_v11  ;;  %v623_v29 = vsel %vm2221_vm4, %v618_v16, %v622_v8  ;;  %v940_v8 = vld [vmem:[#allocation2 + $0x4] sm:$0x8] }
  0x25   : > { %v634_v30 = vshrl.u32 %v601_v22, 16  ;;  %v2251_v31 = vrot.slane %v627_v18, 4  ;;  %vm2254_vm8 = vcmp.ne.s32.totalorder %v868_v20, %v2226_v19  ;;  %v875_v33 = vunpack.c.l.b16 %v2235_v23 }
  0x26   : > { %v815_v35 = vshrl.u32 %v788_v25, 16  ;;  %v690_v36 = vunpack.c.h.b16 %v2193_v61  ;;  %v696_v37 = vunpack.c.l.b16 %v623_v29  ;;  %v630_v38 = vshll.u32 %v601_v22, 16 }
  0x27   : > { %v486_v39 = vand.u32 7, %v450_v26  ;;  %vm873_vm11 = vcmp.ne.s32.totalorder %v869_v28, %v2244_v27  ;;  %v697_v40 = vunpack.c.h.b16 %v623_v29  ;;  %v602_v41 = vsel %vm594_vm7, 65537, %v2088_v50 }
  0x28   : > { %v636_v42 = vrot.slane %v634_v30, 4  ;;  %v644_v44 = vshrl.u32 %v602_v41, 16  ;;  %v451_v46 = vadd.s32 40, %v2171_v45  ;;  %v876_v49 = vunpack.c.h.b16 %v2235_v23  ;;  %vm2287_vm15 = vmpackc.low %vm873_vm11, %vm2254_vm8 }
  0x29   : > { %1940 = vmatmul.msk.bf16.gmra.mxu0 %vm3361_vm0, %v331_v24  ;;  %vm2268_vm12 = vcmp.ge.s32.totalorder %v486_v39, 1  ;;  %v2283_v52 = vrot.slane %v815_v35, 7  ;;  %v818_v53 = vshll.u32 %v788_v25, 16  ;;  %vm2292_vm1 = vcmp.ne.s32.totalorder %v690_v36, %v2244_v27 }
  0x2a   : > { %v632_v56 = vrot.slane %v630_v38, 5  ;;  %v640_v57 = vshll.u32 %v602_v41, 16  ;;  %v493_v58 = vand.u32 7, %v451_v46  ;;  %v813_v60 = vrot.slane %v2197_v3, 4  ;;  %vm595_vm6 = vmpackc.low %vm2268_vm12, %vm2268_vm12 }
  0x2b   : > { %vm2303_vm3 = vcmp.ne.s32.totalorder %v696_v37, %v2226_v19  ;;  %vm562_vm5 = vcmp.le.s32.totalorder %v486_v39, 6  ;;  %vm2313_vm7 = vcmp.ne.s32.totalorder %v697_v40, %v2244_v27  ;;  %v603_v3 = vsel %vm595_vm6, 65537, %v2088_v50 }
  0x2c   : > { %v637_v2 = vor.u32 %v636_v42, %v632_v56  ;;  %vm782_vm8 = vmpackc.low %vm562_vm5, %vm562_vm5  ;;  %v646_v4 = vrot.slane %v644_v44, 4  ;;  %v3394_v6 = vmov 0  ;;  %v820_v7 = vor.u32 %v818_v53, %v2283_v52 }
  0x2d   : > { %v790_v9 = vsel %vm782_vm8, 65537, %v2088_v50  ;;  %vm2329_vm11 = vcmp.ge.s32.totalorder %v493_v58, 1  ;;  %v642_v11 = vrot.slane %v640_v57, 5  ;;  %v650_v14 = vshll.u32 %v603_v3, 16  ;;  %vm2358_vm5 = vmpackc.low %vm2313_vm7, %vm2303_vm3 }
  0x2e   : > { %v833_v13 = vshrl.u32 %v790_v9, 16  ;;  %v654_v15 = vshrl.u32 %v603_v3, 16  ;;  %vm2335_vm12 = vcmp.ne.s32.totalorder %v875_v33, %v2226_v19  ;;  %v931_v21 = vsel %vm2287_vm15, %v2310_v0, 0 }
  0x2f   : > { %v836_v26 = vshll.u32 %v790_v9, 16  ;;  %v647_v28 = vor.u32 %v646_v4, %v642_v11  ;;  %vm563_vm6 = vcmp.le.s32.totalorder %v493_v58, 6  ;;  %v821_v35 = vsel %vm2212_vm2, %v813_v60, %v820_v7 }
  0x30   : > { %v2352_v25 = vrot.slane %v833_v13, 7  ;;  %v656_v33 = vrot.slane %v654_v15, 4  ;;  %v638_v36 = vrot.slane %v637_v2, 4  ;;  %vm783_vm8 = vmpackc.low %vm563_vm6, %vm563_vm6  ;;  %v652_v37 = vrot.slane %v650_v14, 5 }
  0x31   : > { %v822_v39 = vrot.slane %v2283_v52, 4  ;;  %v791_v41 = vsel %vm783_vm8, 65537, %v2088_v50  ;;  %v1013_v51 = vunpack.c.l.b16 %v2310_v0  ;;  %v633_v52 = vsel %vm2221_vm4, %v2251_v31, %v632_v56 }
  0x32   : > { %v838_v44 = vor.u32 %v836_v26, %v2352_v25  ;;  %v657_v46 = vor.u32 %v656_v33, %v652_v37  ;;  %v648_v53 = vrot.slane %v647_v28, 4  ;;  %v1079_v55 = vunpack.c.l.b16 %v931_v21 }
  0x33   : > { %v2382_v57 = vsel %vm2221_vm4, %v638_v36, %v642_v11  ;;  %v842_v60 = vshrl.u32 %v791_v41, 16  ;;  %v883_v1 = vunpack.c.h.b16 %v821_v35  ;;  %v703_v2 = vunpack.c.l.b16 %v633_v52 }
  0x34   : > { %v658_v56 = vrot.slane %v657_v46, 4  ;;  %v710_v7 = vunpack.c.l.b16 %v2382_v57  ;;  %v845_v13 = vshll.u32 %v791_v41, 16  ;;  %v452_v14 = vadd.s32 48, %v2171_v45 }
  0x35   : > { %v2408_v11 = vrot.slane %v842_v60, 7  ;;  %v711_v21 = vunpack.c.h.b16 %v2382_v57 }
  0x37   : > { %v847_v41 = vor.u32 %v845_v13, %v2408_v11 }
  0x39   : > { %1941 = vmatmul.msk.bf16.gmra.mxu0 %vm3361_vm0, %v332_v34  ;;  %v689_v34 = vunpack.c.l.b16 %v2193_v61 }
  0x3b   : > { %vm2279_vm13 = vcmp.ne.s32.totalorder %v689_v34, %v2226_v19 }
  0x49   : > { %1942 = vmatmul.msk.bf16.gmra.mxu0 %vm3361_vm0, %v333_v43  ;;  %v789_v43 = vsel %vm781_vm10, 65537, %v2088_v50  ;;  %vm2323_vm10 = vmpackc.low %vm2292_vm1, %vm2279_vm13  ;;  %vm2340_vm13 = vcmp.ne.s32.totalorder %v876_v49, %v2244_v27 }
  0x4a   : > { %v824_v62 = vshrl.u32 %v789_v43, 16  ;;  %v3395_v6 = vsel %vm2323_vm10, 4294967295, %v3394_v6  ;;  %v827_v23 = vshll.u32 %v789_v43, 16  ;;  %vm596_vm1 = vmpackc.low %vm2329_vm11, %vm2329_vm11  ;;  %v942_v24 = vsel %vm2323_vm10, %v940_v8, 0 }
  0x4b   : > { %v2363_v32 = vsel %vm596_vm1, 65537, %v2088_v50  ;;  %v2384_v58 = vunpack.c.l.b16 %v942_v24  ;;  %v2398_v8 = vsel %vm2221_vm4, %v648_v53, %v652_v37  ;;  %vm2404_vm3 = vmpackc.low %vm2340_vm13, %vm2335_vm12  ;;  %vm2417_vm11 = vcmp.ne.s32.totalorder %v883_v1, %v2244_v27 }
  0x4c   : > { %v826_v22 = vrot.slane %v824_v62, 7  ;;  %v660_v47 = vshll.u32 %v2363_v32, 16  ;;  %v717_v33 = vunpack.c.l.b16 %v2398_v8  ;;  %vm2446_vm12 = vcmp.ne.s32.totalorder %v703_v2, %v2226_v19 }
  0x4e   : > { %v829_v40 = vor.u32 %v827_v23, %v826_v22  ;;  %v831_v43 = vrot.slane %v826_v22, 4  ;;  %v2393_v3 = vrot.slane %v660_v47, 5 }
  0x50   : > { %v830_v62 = vsel %vm2212_vm2, %v822_v39, %v829_v40  ;;  %v2391_v31 = vsel %vm2212_vm2, %v831_v43, %v838_v44  ;;  %v2429_v28 = vsel %vm2221_vm4, %v658_v56, %v2393_v3 }
  0x51   : > { %v889_v10 = vunpack.c.l.b16 %v830_v62  ;;  %v890_v20 = vunpack.c.h.b16 %v830_v62  ;;  %v896_v22 = vunpack.c.l.b16 %v2391_v31  ;;  %v897_v26 = vunpack.c.h.b16 %v2391_v31 }
  0x52   : > { %v725_v53 = vunpack.c.h.b16 %v2429_v28 }
  0x53   : > { %vm2458_vm1 = vcmp.ne.s32.totalorder %v889_v10, %v2226_v19  ;;  %vm2463_vm6 = vcmp.ne.s32.totalorder %v890_v20, %v2244_v27 }
  0x96   : > { %v372_v63 = vpop.f32.mrf.mxu0 }
  0x97   : > { %v396_v5 = vmul.f32 %v2275_v48, %v372_v63  ;;  %v882_v63 = vunpack.c.l.b16 %v821_v35 }
  0x99   : > { %v408_v16 = vadd.f32 %v2299_v59, %v396_v5  ;;  %v704_v5 = vunpack.c.h.b16 %v633_v52  ;;  %vm2412_vm7 = vcmp.ne.s32.totalorder %v882_v63, %v2226_v19 }
  0x9b   : > { %v416_v29 = vmax.f32 %v408_v16, 0.0  ;;  %vm2451_vm13 = vcmp.ne.s32.totalorder %v704_v5, %v2244_v27 }
  0x9d   : > { %v424_v38 = vpack.c.bf16 %v416_v29, %v416_v29  ;;  %v664_v29 = vshrl.u32 %v2363_v32, 16  ;;  %v2442_v32 = vadd.s32 56, %v2171_v45 }
  0x9e   : > { %v374_v42 = vpop.f32.mrf.mxu0 }
  0x9f   : > { %437 = vst.msk [vmem:[#allocation2 + $0x8] sm:$0xf] %vm3364_vm9, %v424_v38  ;;  %v397_v49 = vmul.f32 %v2275_v48, %v374_v42  ;;  %v840_v38 = vrot.slane %v2352_v25, 4  ;;  %v500_v42 = vand.u32 7, %v452_v14  ;;  %v718_v25 = vunpack.c.h.b16 %v2398_v8 }
  0xa0   : > { %v507_v5 = vand.u32 7, %v2442_v32  ;;  %v2062_v32 = vld [vmem:[%s3359_s6 + $0x88] sm:$0xff] }
  0xa1   : > { %v409_v61 = vadd.f32 %v2299_v59, %v397_v49  ;;  %v724_v49 = vunpack.c.l.b16 %v2429_v28  ;;  %vm2468_vm8 = vcmp.le.s32.totalorder %v500_v42, 6  ;;  %vm2500_vm0 = vcmp.ge.s32.totalorder %v500_v42, 1  ;;  %1739 = vmatpush.bf16.msra.mxu3 %v2062_v32 }
  0xa2   : > { %vm2496_vm14 = vcmp.le.s32.totalorder %v507_v5, 6 }
  0xa3   : > { %v417_v4 = vmax.f32 %v409_v61, 0.0  ;;  %v2472_v61 = vrot.slane %v664_v29, 4 }
  0xa5   : > { %v425_v15 = vpack.c.bf16 %v417_v4, %v417_v4  ;;  %v2483_v4 = vsel %vm2212_vm2, %v840_v38, %v847_v41  ;;  %v667_v38 = vor.u32 %v2472_v61, %v2393_v3  ;;  %1740 = vmatpush.bf16.msra.mxu3 %v2061_v54 }
  0xa6   : > { %v377_v23 = vpop.f32.mrf.mxu0  ;;  %v2423_v24 = vld [vmem:[#allocation2 + $0x8] sm:$0xf] }
  0xa7   : > { %438 = vst.msk [vmem:[#allocation2 + $0xc] sm:$0xf] %vm3364_vm9, %v425_v15  ;;  %v398_v35 = vmul.f32 %v2275_v48, %v377_v23  ;;  %v932_v36 = vsel %vm2404_vm3, %v2423_v24, 0  ;;  %v1014_v37 = vunpack.c.l.b16 %v2423_v24  ;;  %v961_v40 = vld [vmem:[#allocation2 + $0x8] sm:$0x8]  ;;  %v952_v56 = vsel %vm2287_vm15, %v2423_v24, 0 }
  0xa8   : > { %v1080_v39 = vunpack.c.l.b16 %v932_v36  ;;  %v963_v1 = vsel %vm2323_vm10, %v961_v40, 0  ;;  %v943_v15 = vsel %vm2358_vm5, %v2423_v24, 0  ;;  %vm3424_vm10 = vmpackc.low %vm2468_vm8, %vm2468_vm8  ;;  %vm2544_vm8 = vcmp.ne.s32.totalorder %v711_v21, %v2244_v27 }
  0xa9   : > { %v410_v43 = vadd.f32 %v2299_v59, %v398_v35  ;;  %v1021_v44 = vpack.c.b16 %v1014_v37, %v1013_v51  ;;  %v1238_v29 = vunpack.c.l.b16 %v963_v1  ;;  %v2520_v42 = vsel %vm3424_vm10, 65537, %v2088_v50 }
  0xaa   : > { %v1088_v45 = vpack.c.b16 %v1080_v39, %v1079_v55  ;;  %vm2539_vm10 = vcmp.ne.s32.totalorder %v710_v7, %v2226_v19 }
  0xab   : > { %v418_v62 = vmax.f32 %v410_v43, 0.0  ;;  %v1026_v55 = vshrl.u32 %v1021_v44, 16  ;;  %v1029_v63 = vshll.u32 %v1021_v44, 16  ;;  %v1196_v44 = vunpack.c.l.b16 %v952_v56 }
  0xac   : > { %v2476_v2 = vrot.slane %v1088_v45, 5 }
  0xad   : > { %v426_v10 = vpack.c.bf16 %v418_v62, %v418_v62  ;;  %v1028_v13 = vrot.slane %v1026_v55, 4  ;;  %v1031_v14 = vrot.slane %v1029_v63, 5  ;;  %v2548_v62 = vunpack.c.l.b16 %v943_v15 }
  0xae   : > { %1103 = vrot.lane.b32.xlu2 %v2476_v2, %s2089_s19  ;;  %v2494_v20 = vld [vmem:[#allocation2 + $0xc] sm:$0xf]  ;;  %v379_v23 = vpop.f32.mrf.mxu0  ;;  %v903_v55 = vunpack.c.l.b16 %v2483_v4  ;;  %v904_v63 = vunpack.c.h.b16 %v2483_v4  ;;  %v849_v15 = vrot.slane %v2408_v11, 4 }
  0xaf   : > { %439 = vst.msk [vmem:[#allocation2 + $0x10] sm:$0xf] %vm3364_vm9, %v426_v10  ;;  %v399_v39 = vmul.f32 %v2275_v48, %v379_v23  ;;  %v2508_v40 = vor.u32 %v1031_v14, %v1028_v13  ;;  %v1015_v41 = vunpack.c.l.b16 %v2494_v20  ;;  %v964_v3 = vsel %vm2358_vm5, %v2494_v20, 0  ;;  %vm2532_vm9 = vmpackc.low %vm2417_vm11, %vm2412_vm7 }
  0xb0   : > { %v953_v43 = vsel %vm2404_vm3, %v2494_v20, 0  ;;  %v1239_v57 = vunpack.c.l.b16 %v964_v3  ;;  %vm597_vm7 = vmpackc.low %vm2500_vm0, %vm2500_vm0  ;;  %v973_v21 = vsel %vm2287_vm15, %v2494_v20, 0  ;;  %v933_v13 = vsel %vm2532_vm9, %v2494_v20, 0 }
  0xb1   : > { %v411_v16 = vadd.f32 %v2299_v59, %v399_v39  ;;  %1060 = vrot.lane.b32.xlu0 %v2508_v40, %s2090_s22  ;;  %v2553_v18 = vpack.c.b16 %v1015_v41, %v1014_v37  ;;  %v1197_v7 = vunpack.c.l.b16 %v953_v43  ;;  %vm785_vm11 = vmpackc.low %vm2496_vm14, %vm2496_vm14  ;;  %v851_v37 = vshrl.u32 %v2520_v42, 16 }
  0xb2   : > { %v1247_v56 = vpack.c.b16 %v1239_v57, %v1238_v29  ;;  %vm2577_vm0 = vmpackc.low %vm2451_vm13, %vm2446_vm12  ;;  %vm2584_vm15 = vcmp.ge.s32.totalorder %v507_v5, 1  ;;  %v2589_v29 = vsel %vm597_vm7, 65537, %v2088_v50  ;;  %v793_v47 = vsel %vm785_vm11, 65537, %v2088_v50 }
  0xb3   : > { %v419_v1 = vmax.f32 %v411_v16, 0.0  ;;  %v1205_v10 = vpack.c.b16 %v1197_v7, %v1196_v44  ;;  %vm2596_vm12 = vmpackc.low %vm2463_vm6, %vm2458_vm1  ;;  %v944_v11 = vsel %vm2577_vm0, %v2494_v20, 0  ;;  %v2609_v5 = vrot.slane %v667_v38, 4 }
  0xb4   : > { %1252 = vrot.lane.b32.xlu1 %v1247_v56, %s2089_s19  ;;  %v1293_v51 = vunpack.c.l.b16 %v973_v21  ;;  %v2613_v32 = vunpack.c.l.b16 %v933_v13  ;;  %v2615_v3 = vrot.slane %v851_v37, 7  ;;  %v854_v43 = vshll.u32 %v2520_v42, 16 }
  0xb5   : > { %v427_v36 = vpack.c.bf16 %v419_v1, %v419_v1  ;;  %vm3437_vm13 = vcmask 257024   ;;  %v2623_v38 = vrot.slane %v1205_v10, 5  ;;  %vm2629_vm14 = vcmp.ne.s32.totalorder %v896_v22, %v2226_v19 }
  0xb6   : > { %v2611_v52 = vld [vmem:[#allocation2 + $0x10] sm:$0xf]  ;;  %v382_v39 = vpop.f32.mrf.mxu0  ;;  %vm2636_vm1 = vcmp.ne.s32.totalorder %v897_v26, %v2244_v27  ;;  %v2646_v22 = vunpack.c.l.b16 %v944_v11  ;;  %v860_v21 = vshrl.u32 %v793_v47, 16  ;;  %vm2657_vm7 = vcmp.ne.s32.totalorder %v717_v33, %v2226_v19 }
  0xb7   : > { %v974_v44 = vsel %vm2404_vm3, %v2611_v52, 0  ;;  %440 = vst.msk [vmem:[#allocation2 + $0x14] sm:$0xf] %vm3437_vm13, %v427_v36  ;;  %v400_v35 = vmul.f32 %v2275_v48, %v382_v39  ;;  %v1016_v16 = vunpack.c.l.b16 %v2611_v52  ;;  %vm598_vm3 = vmpackc.low %vm2584_vm15, %vm2584_vm15  ;;  %v934_v7 = vsel %vm2596_vm12, %v2611_v52, 0 }
  0xb8   : > { %v1294_v42 = vunpack.c.l.b16 %v974_v44  ;;  %v954_v26 = vsel %vm2532_vm9, %v2611_v52, 0  ;;  %v1082_v1 = vunpack.c.l.b16 %v934_v7  ;;  %vm2664_vm11 = vcmp.ne.s32.totalorder %v718_v25, %v2244_v27  ;;  %vm2681_vm13 = vmpackc.low %vm2544_vm8, %vm2539_vm10 }
  0xb9   : > { %v412_v37 = vadd.f32 %v2299_v59, %v400_v35  ;;  %1219 = vrot.lane.b32.xlu0 %v2623_v38, %s2090_s22  ;;  %v1022_v31 = vpack.c.b16 %v1016_v16, %v1015_v41  ;;  %v856_v41 = vor.u32 %v854_v43, %v2615_v3  ;;  %v863_v54 = vshll.u32 %v793_v47, 16 }
  0xba   : > { %v1302_v56 = vpack.c.b16 %v1294_v42, %v1293_v51  ;;  %v2675_v33 = vsel %vm598_vm3, 65537, %v2088_v50  ;;  %vm2686_vm6 = vcmp.ne.s32.totalorder %v903_v55, %v2226_v19  ;;  %vm2691_vm15 = vcmp.ne.s32.totalorder %v904_v63, %v2244_v27  ;;  %vm2748_vm3 = vmpackc.low %vm2636_vm1, %vm2629_vm14 }
  0xbb   : > { %v420_v36 = vmax.f32 %v412_v37, 0.0  ;;  %v1034_v11 = vshrl.u32 %v1022_v31, 16  ;;  %v1037_v51 = vshll.u32 %v1022_v31, 16  ;;  %v858_v23 = vrot.slane %v2615_v3, 4  ;;  %vm2803_vm1 = vmpackc.low %vm2691_vm15, %vm2686_vm6 }
  0xbc   : > { %v2696_v47 = vrot.slane %v1302_v56, 5  ;;  %v1198_v60 = vunpack.c.l.b16 %v954_v26  ;;  %v945_v61 = vsel %vm2681_vm13, %v2611_v52, 0  ;;  %v2701_v39 = vrot.slane %v860_v21, 7 }
  0xbd   : > { %v428_v55 = vpack.c.bf16 %v420_v36, %v420_v36  ;;  %v1036_v43 = vrot.slane %v1034_v11, 4  ;;  %v1039_v44 = vrot.slane %v1037_v51, 5  ;;  %v1089_v35 = vpack.c.b16 %v1082_v1, %v2613_v32 }
  0xbe   : > { %v384_v63 = vpop.f32.mrf.mxu0  ;;  %v2704_v42 = vld [vmem:[#allocation2 + $0x14] sm:$0xf]  ;;  %v965_v3 = vsel %vm2577_vm0, %v2611_v52, 0  ;;  %v1456_v7 = vshrl.u32 %v2696_v47, 16  ;;  %v1459_v37 = vshll.u32 %v2696_v47, 16  ;;  %v2713_v21 = vsel %vm2212_vm2, %v849_v15, %v856_v41 }
  0xbf   : > { %vm3452_vm10 = vcmask 257024   ;;  %v401_v31 = vmul.f32 %v2275_v48, %v384_v63  ;;  %v2717_v32 = vor.u32 %v1039_v44, %v1036_v43  ;;  %v1017_v26 = vunpack.c.l.b16 %v2704_v42 }
  0xc0   : > { %441 = vst.msk [vmem:[#allocation2 + $0x18] sm:$0xf] %vm3452_vm10, %v428_v55  ;;  %v955_v1 = vsel %vm2596_vm12, %v2704_v42, 0  ;;  %v966_v36 = vsel %vm2681_vm13, %v2704_v42, 0  ;;  %v2726_v11 = vunpack.c.l.b16 %v945_v61  ;;  %v865_v15 = vor.u32 %v863_v54, %v2701_v39 }
  0xc1   : > { %v1199_v56 = vunpack.c.l.b16 %v955_v1  ;;  %v413_v41 = vadd.f32 %v2299_v59, %v401_v31  ;;  %1274 = vrot.lane.b32.xlu2 %v2717_v32, %s2091_s27  ;;  %v2732_v51 = vpack.c.b16 %v1017_v26, %v1016_v16  ;;  %vm3453_vm8 = vsmask.f32 3328 }
  0xc2   : > { %v1041_v55 = vsel %vm3453_vm8, %v2508_v40, %v2717_v32  ;;  %v2737_v43 = vrot.slane %v1089_v35, 5  ;;  %v1241_v44 = vunpack.c.l.b16 %v966_v36  ;;  %v2740_v63 = vrot.slane %v1456_v7, 3 }
  0xc3   : > { %1062 = vrot.lane.b32.xlu1 %v1041_v55, %s2090_s22  ;;  %v1206_v61 = vpack.c.b16 %v1199_v56, %v1198_v60  ;;  %v2742_v54 = vrot.slane %v1459_v37, 4  ;;  %vm2755_vm10 = vcmp.ne.s32.totalorder %v724_v49, %v2226_v19  ;;  %vm2762_vm8 = vcmp.ne.s32.totalorder %v725_v53, %v2244_v27 }
  0xc4   : > { %v421_v57 = vmax.f32 %v413_v41, 0.0  ;;  %v975_v9 = vsel %vm2532_vm9, %v2704_v42, 0  ;;  %v1240_v35 = vunpack.c.l.b16 %v965_v3  ;;  %v670_v7 = vshll.u32 %v2589_v29, 16  ;;  %vm2784_vm9 = vmpackc.low %vm2664_vm11, %vm2657_vm7 }
  0xc5   : > { %v2770_v37 = vrot.slane %v1206_v61, 5  ;;  %v866_v28 = vsel %vm2212_vm2, %v858_v23, %v865_v15  ;;  %v910_v53 = vunpack.c.l.b16 %v2713_v21  ;;  %vm3460_vm14 = vcmask 1042432   ;;  %vm2853_vm15 = vmpackc.low %vm2762_vm8, %vm2755_vm10 }
  0xc6   : > { %v429_v31 = vpack.c.bf16 %v421_v57, %v421_v57  ;;  %v1096_v1 = vsel %vm3460_vm14, %v2476_v2, %v2737_v43  ;;  %v935_v12 = vsel %vm2748_vm3, %v2704_v42, 0  ;;  %v911_v23 = vunpack.c.h.b16 %v2713_v21  ;;  %v387_v3 = vpop.f32.mrf.mxu0  ;;  %vm3463_vm2 = vmmov %vm3460_vm14 }
  0xc7   : > { %v1212_v56 = vsel %vm3463_vm2, %v2623_v38, %v2770_v37  ;;  %v1295_v2 = vunpack.c.l.b16 %v975_v9  ;;  %v2795_v36 = vld [vmem:[#allocation2 + $0x18] sm:$0xf]  ;;  %v1248_v10 = vpack.c.b16 %v1241_v44, %v1240_v35  ;;  %vm3466_vm7 = vcmask 257024  }
  0xc8   : > { %442 = vst.msk [vmem:[#allocation2 + $0x1c] sm:$0xf] %vm3466_vm7, %v429_v31  ;;  %v402_v21 = vmul.f32 %v2275_v48, %v387_v3  ;;  %1221 = vrot.lane.b32.xlu0 %v1212_v56, %s2090_s22  ;;  %v976_v38 = vsel %vm2596_vm12, %v2795_v36, 0  ;;  %v3365_v41 = vunpack.c.l.b16 %v2795_v36  ;;  %v946_v25 = vsel %vm2784_vm9, %v2704_v42, 0 }
  0xc9   : > { %v1296_v50 = vunpack.c.l.b16 %v976_v38  ;;  %v956_v55 = vsel %vm2748_vm3, %v2795_v36, 0  ;;  %v2820_v61 = vunpack.c.l.b16 %v935_v12  ;;  %v917_v44 = vunpack.c.l.b16 %v866_v28 }
  0xca   : > { %v414_v57 = vadd.f32 %v2299_v59, %v402_v21  ;;  %v1023_v46 = vpack.c.b16 %v3365_v41, %v1017_v26  ;;  %v967_v9 = vsel %vm2784_vm9, %v2795_v36, 0  ;;  %v936_v35 = vsel %vm2803_vm1, %v2795_v36, 0 }
  0xcb   : > { %1254 = vrot.lane.b32.xlu1 %v1248_v10, %s2089_s19  ;;  %v1303_v31 = vpack.c.b16 %v1296_v50, %v1295_v2  ;;  %vm1424_vm12 = vsmask.f32 4352  ;;  %v918_v12 = vunpack.c.h.b16 %v866_v28  ;;  %v2832_v3 = vunpack.c.l.b16 %v946_v25 }
  0xcc   : > { %v674_v56 = vshrl.u32 %v2589_v29, 16  ;;  %v422_v21 = vmax.f32 %v414_v57, 0.0  ;;  %v1043_v38 = vshrl.u32 %v1023_v46, 16  ;;  %v1046_v26 = vshll.u32 %v1023_v46, 16 }
  0xcd   : > { %v672_v34 = vrot.slane %v670_v7, 5  ;;  %v2835_v41 = vrot.slane %v1303_v31, 5  ;;  %v1200_v49 = vunpack.c.l.b16 %v956_v55  ;;  %v2837_v13 = vunpack.c.l.b16 %v967_v9 }
  0xce   : > { %v1084_v14 = vunpack.c.l.b16 %v936_v35  ;;  %vm2840_vm6 = vcmp.ne.s32.totalorder %v910_v53, %v2226_v19  ;;  %vm2845_vm11 = vcmp.ne.s32.totalorder %v911_v23, %v2244_v27  ;;  %v430_v29 = vpack.c.bf16 %v422_v21, %v422_v21  ;;  %v389_v23 = vpop.f32.mrf.mxu0  ;;  %v2880_v35 = vld [vmem:[#allocation2 + $0x28] sm:$0xf] }
  0xcf   : > { %v1045_v2 = vrot.slane %v1043_v38, 4  ;;  %v1048_v25 = vrot.slane %v1046_v26, 5  ;;  %vm2858_vm14 = vcmp.ne.s32.totalorder %v917_v44, %v2226_v19  ;;  %v1309_v50 = vsel %vm3463_vm2, %v2696_v47, %v2835_v41  ;;  %v2865_v55 = vld [vmem:[#allocation2 + $0x1c] sm:$0xf] }
  0xd0   : > { %vm2868_vm7 = vcmp.ne.s32.totalorder %v918_v12, %v2244_v27  ;;  %v947_v60 = vsel %vm2853_vm15, %v2795_v36, 0  ;;  %v676_v44 = vrot.slane %v674_v56, 4  ;;  %vm3477_vm10 = vcmask 257024   ;;  %1105 = vrot.lane.b32.xlu0 %v1096_v1, %s2089_s19 }
  0xd1   : > { %443 = vst.msk [vmem:[#allocation2 + $0x20] sm:$0xf] %vm3477_vm10, %v430_v29  ;;  %v403_v57 = vmul.f32 %v2275_v48, %v389_v23  ;;  %v2878_v46 = vor.u32 %v1048_v25, %v1045_v2  ;;  %v1464_v47 = vshrl.u32 %v1309_v50, 16  ;;  %v1467_v9 = vshll.u32 %v1309_v50, 16  ;;  %vm2902_vm2 = vmpackc.low %vm2868_vm7, %vm2858_vm14 }
  0xd2   : > { %v957_v31 = vsel %vm2803_vm1, %v2865_v55, 0  ;;  %v968_v12 = vsel %vm2853_vm15, %v2865_v55, 0  ;;  %v1090_v56 = vpack.c.b16 %v1084_v14, %v2820_v61  ;;  %v673_v48 = vsel %vm2221_vm4, %v2609_v5, %v672_v34  ;;  %vm3484_vm14 = vmmov %vm3477_vm10 }
  0xd3   : > { %v415_v1 = vadd.f32 %v2299_v59, %v403_v57  ;;  %vm3478_vm8 = vsmask.f32 3328  ;;  %v1466_v38 = vrot.slane %v1464_v47, 3  ;;  %v1469_v26 = vrot.slane %v1467_v9, 4  ;;  %vm2948_vm7 = vmpackc.low %vm2845_vm11, %vm2840_vm6 }
  0xd4   : > { %v2896_v21 = vsel %vm3478_vm8, %v2717_v32, %v2878_v46  ;;  %v3481_v14 = vpack.c.b16 %v2548_v62, %v2384_v58  ;;  %v977_v59 = vsel %vm2748_vm3, %v2865_v55, 0  ;;  %v1201_v5 = vunpack.c.l.b16 %v957_v31 }
  0xd5   : > { %1276 = vrot.lane.b32.xlu2 %v2896_v21, %s2091_s27  ;;  %v1243_v32 = vunpack.c.l.b16 %v968_v12  ;;  %v980_v61 = vsel %vm2902_vm2, %v2880_v35, 0  ;;  %v423_v2 = vmax.f32 %v415_v1, 0.0  ;;  %v2918_v25 = vor.u32 %v1469_v26, %v1466_v38 }
  0xd6   : > { %1136 = vrot.lane.b32.xlu1 %v3481_v14, %s2091_s27  ;;  %v677_v53 = vor.u32 %v676_v44, %v672_v34  ;;  %v680_v58 = vshll.u32 %v2675_v33, 16  ;;  %v1207_v62 = vpack.c.b16 %v1201_v5, %v1200_v49  ;;  %v2921_v23 = vunpack.c.l.b16 %v947_v60 }
  0xd7   : > { %v731_v50 = vunpack.c.l.b16 %v673_v48  ;;  %v732_v40 = vunpack.c.h.b16 %v673_v48  ;;  %v431_v57 = vpack.c.bf16 %v423_v2, %v423_v2  ;;  %v3482_v16 = vor.u32 %v2742_v54, %v2740_v63 }
  0xd8   : > { %v678_v9 = vrot.slane %v677_v53, 4  ;;  %v2928_v31 = vrot.slane %v680_v58, 5  ;;  %vm3483_vm3 = vcmask 261120   ;;  %v2931_v34 = vrot.slane %v1207_v62, 5  ;;  %v2933_v49 = vld [vmem:[#allocation2 + $0x20] sm:$0xf] }
  0xd9   : > { %v1471_v47 = vsel %vm1424_vm12, %v3482_v16, %v2918_v25  ;;  %v1297_v44 = vunpack.c.l.b16 %v977_v59  ;;  %v2935_v60 = vrot.slane %v1090_v56, 5  ;;  %v1019_v12 = vunpack.c.l.b16 %v2865_v55  ;;  %444 = vst.msk [vmem:[#allocation2 + $0x24] sm:$0xf] %vm3484_vm14, %v431_v57 }
  0xda   : > { %2015 = vmatmul.msk.bf16.vlgmr.msra.gmra.mxu3 %vm3483_vm3, %v1471_v47  ;;  %v978_v63 = vsel %vm2803_vm1, %v2933_v49, 0  ;;  %v1249_v54 = vpack.c.b16 %v1243_v32, %v2837_v13  ;;  %v1020_v48 = vunpack.c.l.b16 %v2933_v49  ;;  %v683_v56 = vsel %vm2221_vm4, %v678_v9, %v2928_v31 }
  0xdb   : > { %vm3487_vm10 = vcmask 1042432   ;;  %v1298_v38 = vunpack.c.l.b16 %v978_v63  ;;  %v958_v13 = vsel %vm2948_vm7, %v2933_v49, 0  ;;  %v738_v10 = vunpack.c.l.b16 %v683_v56 }
  0xdc   : > { %v1214_v15 = vsel %vm3487_vm10, %v2770_v37, %v2931_v34  ;;  %v1024_v28 = vpack.c.b16 %v1020_v48, %v1019_v12  ;;  %vm735_vm1 = vcmp.ne.s32.totalorder %v731_v50, %v2226_v19  ;;  %vm736_vm4 = vcmp.ne.s32.totalorder %v732_v40, %v2244_v27  ;;  %vm3489_vm6 = vmmov %vm3487_vm10 }
  0xdd   : > { %1223 = vrot.lane.b32.xlu0 %v1214_v15, %s2090_s22  ;;  %v739_v17 = vunpack.c.h.b16 %v683_v56  ;;  %v3488_v37 = vpack.c.b16 %v2726_v11, %v2646_v22  ;;  %v1098_v26 = vsel %vm3489_vm6, %v2737_v43, %v2935_v60  ;;  %v1304_v14 = vpack.c.b16 %v1298_v38, %v1297_v44  ;;  %vm2980_vm11 = vmpackc.low %vm736_vm4, %vm735_vm1 }
  0xde   : > { %1256 = vrot.lane.b32.xlu1 %v1249_v54, %s2089_s19  ;;  %v1300_v59 = vunpack.c.l.b16 %v980_v61  ;;  %v1263_v5 = vunpack.c.l.b16 %v2880_v35  ;;  %v1052_v32 = vshrl.u32 %v1024_v28, 16  ;;  %v1055_v2 = vshll.u32 %v1024_v28, 16  ;;  %vm3496_vm14 = vmmov %vm3489_vm6 }
  0xdf   : > { %1138 = vrot.lane.b32.xlu2 %v3488_v37, %s2091_s27  ;;  %v1202_v53 = vunpack.c.l.b16 %v958_v13  ;;  %v938_v58 = vsel %vm2902_vm2, %v2933_v49, 0  ;;  %v1310_v62 = vrot.slane %v1304_v14, 5  ;;  %vm2985_vm8 = vcmp.ne.s32.totalorder %v738_v10, %v2226_v19 }
  0xe0   : > { %vm2990_vm3 = vcmp.ne.s32.totalorder %v739_v17, %v2244_v27  ;;  %v867_v61 = vrot.slane %v2701_v39, 4  ;;  %v1054_v50 = vrot.slane %v1052_v32, 4  ;;  %v1057_v40 = vrot.slane %v1055_v2, 5  ;;  %v3003_v9 = vld [vmem:[#allocation2 + $0x24] sm:$0xf] }
  0xe1   : > { %v969_v57 = vsel %vm2980_vm11, %v2933_v49, 0  ;;  %v937_v16 = vsel %vm2948_vm7, %v2865_v55, 0  ;;  %v1311_v47 = vsel %vm3496_vm14, %v2835_v41, %v1310_v62  ;;  %v1086_v44 = vunpack.c.l.b16 %v938_v58  ;;  %vm3014_vm10 = vmpackc.low %vm2990_vm3, %vm2985_vm8 }
  0xe2   : > { %v924_v63 = vunpack.c.l.b16 %v867_v61  ;;  %v925_v54 = vunpack.c.h.b16 %v867_v61  ;;  %v3005_v56 = vor.u32 %v1057_v40, %v1054_v50  ;;  %v1489_v39 = vshrl.u32 %v1311_v47, 16  ;;  %vm3503_vm8 = vmmov %vm3496_vm14 }
  0xe3   : > { %v1492_v15 = vshll.u32 %v1311_v47, 16  ;;  %v959_v38 = vsel %vm2902_vm2, %v3003_v9, 0  ;;  %v979_v41 = vsel %vm2948_vm7, %v3003_v9, 0  ;;  %v970_v28 = vsel %vm3014_vm10, %v3003_v9, 0  ;;  %vm3504_vm3 = vmmov %vm3503_vm8 }
  0xe4   : > { %v1203_v10 = vunpack.c.l.b16 %v959_v38  ;;  %v1147_v29 = vunpack.c.l.b16 %v3003_v9  ;;  %vm3499_vm2 = vsmask.f32 3328  ;;  %v1491_v37 = vrot.slane %v1489_v39, 3 }
  0xe5   : > { %1064 = vrot.lane.b32.xlu0 %v2896_v21, %s2090_s22  ;;  %v3030_v17 = vsel %vm3499_vm2, %v2878_v46, %v3005_v56  ;;  %v1494_v14 = vrot.slane %v1492_v15, 4  ;;  %v1299_v32 = vunpack.c.l.b16 %v979_v41  ;;  %v1245_v2 = vunpack.c.l.b16 %v970_v28  ;;  %v951_v21 = vld [vmem:[#allocation2 + $0x28] sm:$0x1]  ;;  %v972_v46 = vld [vmem:[#allocation2 + $0x2c] sm:$0x1]  ;;  %vm3506_vm2 = vmmov %vm3504_vm3 }
  0xe6   : > { %1107 = vrot.lane.b32.xlu1 %v1098_v26, %s2089_s19  ;;  %v1208_v1 = vpack.c.b16 %v1203_v10, %v1202_v53  ;;  %v1264_v58 = vpack.c.b16 %v1263_v5, %v1147_v29  ;;  %v1085_v11 = vunpack.c.l.b16 %v937_v16  ;;  %vm928_vm7 = vcmp.ne.s32.totalorder %v924_v63, %v2226_v19 }
  0xe7   : > { %1278 = vrot.lane.b32.xlu2 %v3030_v17, %s2091_s27  ;;  %v3037_v43 = vor.u32 %v1494_v14, %v1491_v37  ;;  %v1305_v61 = vpack.c.b16 %v1300_v59, %v1299_v32  ;;  %vm929_vm1 = vcmp.ne.s32.totalorder %v925_v54, %v2244_v27  ;;  %v1244_v26 = vunpack.c.l.b16 %v969_v57 }
  0xe8   : > { %v3041_v50 = vrot.slane %v1208_v1, 5  ;;  %v1266_v40 = vshrl.u32 %v1264_v58, 16  ;;  %v1269_v47 = vshll.u32 %v1264_v58, 16  ;;  %vm3043_vm4 = vmpackc.low %vm929_vm1, %vm928_vm7  ;;  %v1091_v16 = vpack.c.b16 %v1086_v44, %v1085_v11 }
  0xe9   : > { %v1496_v5 = vsel %vm1424_vm12, %v2918_v25, %v3037_v43  ;;  %v3050_v59 = vrot.slane %v1305_v61, 5  ;;  %v960_v63 = vsel %vm3043_vm4, %v951_v21, 0  ;;  %vm3502_vm6 = vcmask 261120   ;;  %v761_v61 = vld [vmem:[#allocation2 + $0x24] sm:$0x1] }
  0xea   : > { %2016 = vmatmul.msk.bf16.gmra.mxu3 %vm3502_vm6, %v1496_v5  ;;  %v1216_v57 = vsel %vm3503_vm8, %v2931_v34, %v3041_v50  ;;  %v1133_v54 = vpack.c.b16 %v2921_v23, %v2832_v3  ;;  %v1250_v39 = vpack.c.b16 %v1245_v2, %v1244_v26  ;;  %v981_v15 = vsel %vm3043_vm4, %v972_v46, 0  ;;  %v3068_v3 = vld [vmem:[#allocation2] sm:$0x8] }
  0xeb   : > { %v1268_v25 = vrot.slane %v1266_v40, 4  ;;  %v1271_v44 = vrot.slane %v1269_v47, 5  ;;  %v1313_v38 = vsel %vm3504_vm3, %v1310_v62, %v3050_v59  ;;  %v1204_v41 = vunpack.c.l.b16 %v960_v63 }
  0xec   : > { %v1514_v10 = vshrl.u32 %v1313_v38, 16  ;;  %v1517_v28 = vshll.u32 %v1313_v38, 16  ;;  %v1301_v37 = vunpack.c.l.b16 %v981_v15  ;;  %v684_v14 = vshrl.u32 %v2675_v33, 16 }
  0xed   : > { %1225 = vrot.lane.b32.xlu0 %v1216_v57, %s2090_s22  ;;  %v3066_v34 = vrot.slane %v1091_v16, 5  ;;  %v948_v23 = vsel %vm2980_vm11, %v2865_v55, 0  ;;  %v3075_v32 = vor.u32 %v1271_v44, %v1268_v25  ;;  %v1209_v1 = vpack.c.b16 %v1204_v41, %v1204_v41 }
  0xee   : > { %1258 = vrot.lane.b32.xlu1 %v1250_v39, %s2089_s19  ;;  %v686_v62 = vrot.slane %v684_v14, 4  ;;  %v949_v33 = vsel %vm3014_vm10, %v2933_v49, 0  ;;  %v1516_v2 = vrot.slane %v1514_v10, 3  ;;  %v1519_v58 = vrot.slane %v1517_v28, 4 }
  0xef   : > { %1140 = vrot.lane.b32.xlu2 %v1133_v54, %s2091_s27  ;;  %v1306_v11 = vpack.c.b16 %v1301_v37, %v1301_v37  ;;  %vm3505_vm14 = vnez %v3395_v6  ;;  %v1100_v26 = vsel %vm3506_vm2, %v2935_v60, %v3066_v34  ;;  %v1128_v40 = vunpack.c.l.b16 %v948_v23 }
  0xf0   : > { %v687_v21 = vor.u32 %v686_v62, %v2928_v31  ;;  %v752_v46 = vsel %vm3505_vm14, %v3068_v3, 0  ;;  %v1153_v47 = vshrl.u32 %v2553_v18, 16  ;;  %v1129_v5 = vunpack.c.l.b16 %v949_v33 }
  0xf1   : > { %v1156_v63 = vshll.u32 %v2553_v18, 16  ;;  %v754_v31 = vsel %vm2577_vm0, %v2423_v24, 0  ;;  %vm3507_vm7 = vsmask.f32 3328  ;;  %v1217_v57 = vrot.slane %v1209_v1, 5 }
  0xf2   : > { %v688_v16 = vrot.slane %v687_v21, 4  ;;  %v1273_v6 = vsel %vm3507_vm7, %v3005_v56, %v3075_v32  ;;  %v939_v54 = vsel %vm3043_vm4, %v761_v61, 0  ;;  %v755_v60 = vsel %vm2681_vm13, %v2494_v20, 0  ;;  %vm3510_vm4 = vmmov %vm3506_vm2 }
  0xf3   : > { %v3100_v39 = vor.u32 %v1519_v58, %v1516_v2  ;;  %v1314_v15 = vrot.slane %v1306_v11, 5  ;;  %v1155_v24 = vrot.slane %v1153_v47, 4  ;;  %v3104_v4 = vunpack.c.l.b16 %v754_v31 }
  0xf4   : > { %v745_v18 = vunpack.c.l.b16 %v688_v16  ;;  %v746_v25 = vunpack.c.h.b16 %v688_v16  ;;  %v3106_v44 = vunpack.c.l.b16 %v755_v60  ;;  %v1161_v53 = vshrl.u32 %v2732_v51, 16 }
  0xf5   : > { %1066 = vrot.lane.b32.xlu0 %v3030_v17, %s2090_s22  ;;  %v1158_v20 = vrot.slane %v1156_v63, 5  ;;  %v1164_v8 = vshll.u32 %v2732_v51, 16  ;;  %v756_v10 = vsel %vm2784_vm9, %v2611_v52, 0  ;;  %v1087_v51 = vunpack.c.l.b16 %v939_v54  ;;  %vm3511_vm9 = vmmov %vm3502_vm6 }
  0xf6   : > { %1109 = vrot.lane.b32.xlu1 %v1100_v26, %s2089_s19  ;;  %vm749_vm0 = vcmp.ne.s32.totalorder %v745_v18, %v2226_v19  ;;  %vm750_vm13 = vcmp.ne.s32.totalorder %v746_v25, %v2244_v27  ;;  %v1001_v38 = vpack.c.b16 %v3106_v44, %v3104_v4  ;;  %v1163_v41 = vrot.slane %v1161_v53, 4  ;;  %vm3513_vm6 = vmmov %vm3507_vm7 }
  0xf7   : > { %1280 = vrot.lane.b32.xlu2 %v1273_v6, %s2091_s27  ;;  %vm3114_vm1 = vmpackc.low %vm750_vm13, %vm749_vm0  ;;  %v757_v19 = vsel %vm2853_vm15, %v2704_v42, 0  ;;  %v1315_v28 = vsel %vm3510_vm4, %v3050_v59, %v1314_v15  ;;  %v1166_v37 = vrot.slane %v1164_v8, 5  ;;  %v1521_v14 = vsel %vm1424_vm12, %v3037_v43, %v3100_v39 }
  0xf8   : > { %v971_v27 = vsel %vm3114_vm1, %v2880_v35, 0  ;;  %v3134_v45 = vunpack.c.l.b16 %v756_v10  ;;  %v3136_v52 = vunpack.c.l.b16 %v757_v19  ;;  %v3139_v42 = vor.u32 %v1158_v20, %v1155_v24  ;;  %vm3512_vm15 = vmmov %vm3506_vm2  ;;  %v2057_v10 = vld [vmem:[%s3359_s6 + $0x60] sm:$0xff]  ;;  %v2050_v19 = vld [vmem:[%s3359_s6 + $0x28] sm:$0xff] }
  0xf9   : > { %v1246_v3 = vunpack.c.l.b16 %v971_v27  ;;  %v1167_v7 = vor.u32 %v1166_v37, %v1163_v41  ;;  %v758_v35 = vsel %vm2980_vm11, %v2795_v36, 0  ;;  %v759_v59 = vsel %vm3014_vm10, %v2865_v55, 0  ;;  %vm3516_vm11 = vmmov %vm3513_vm6  ;;  %v2052_v41 = vld [vmem:[%s3359_s6 + $0x38] sm:$0xff] }
  0xfa   : > { %2017 = vmatmul.msk.bf16.gmra.mxu3 %vm3511_vm9, %v1521_v14  ;;  %v1218_v43 = vsel %vm3512_vm15, %v3041_v50, %v1217_v57  ;;  %v1134_v23 = vpack.c.b16 %v1129_v5, %v1128_v40  ;;  %v1002_v1 = vpack.c.b16 %v3136_v52, %v3134_v45  ;;  %v3514_v2 = vunpack.c.l.b16 %v2795_v36  ;;  %vm3518_vm10 = vmmov %vm3511_vm9  ;;  %1675 = vmatpush.bf16.msra.mxu1 %v2052_v41  ;;  %v2056_v27 = vld [vmem:[%s3359_s6 + $0x58] sm:$0xff] }
  0xfb   : > { %v1251_v62 = vpack.c.b16 %v1246_v3, %v1246_v3  ;;  %v3153_v33 = vsel %vm3513_vm6, %v3139_v42, %v1167_v7  ;;  %v3159_v58 = vunpack.c.l.b16 %v758_v35  ;;  %v3161_v13 = vunpack.c.l.b16 %v759_v59  ;;  %vm3519_vm8 = vmmov %vm3513_vm6  ;;  %v2048_v14 = vld [vmem:[%s3359_s6 + $0x18] sm:$0xff]  ;;  %v2054_v3 = vld [vmem:[%s3359_s6 + $0x48] sm:$0xff] }
  0xfc   : > { %v1150_v22 = vpack.c.b16 %v1019_v12, %v3514_v2  ;;  %v1092_v50 = vpack.c.b16 %v1087_v51, %v1087_v51  ;;  %v1539_v11 = vshrl.u32 %v1315_v28, 16  ;;  %v1542_v21 = vshll.u32 %v1315_v28, 16  ;;  %v2049_v51 = vld [vmem:[%s3359_s6 + $0x20] sm:$0xff]  ;;  %v2055_v28 = vld [vmem:[%s3359_s6 + $0x50] sm:$0xff]  ;;  %vm3520_vm3 = vmmov %vm3511_vm9 }
  0xfd   : > { %1227 = vrot.lane.b32.xlu0 %v1218_v43, %s2090_s22  ;;  %v1003_v36 = vpack.c.b16 %v3161_v13, %v3159_v58  ;;  %v3168_v55 = vunpack.c.l.b16 %v752_v46  ;;  %v3515_v12 = vsel %vm2358_vm5, %v2310_v0, 0  ;;  %v760_v30 = vsel %vm3114_vm1, %v2933_v49, 0  ;;  %vm3517_vm5 = vmmov %vm3506_vm2  ;;  %v2047_v35 = vld [vmem:[%s3359_s6 + $0x10] sm:$0xff]  ;;  %v2053_v59 = vld [vmem:[%s3359_s6 + $0x40] sm:$0xff] }
  0xfe   : > { %1260 = vrot.lane.b32.xlu1 %v1251_v62, %s2089_s19  ;;  %v1170_v61 = vshrl.u32 %v1150_v22, 16  ;;  %v1173_v26 = vshll.u32 %v1150_v22, 16  ;;  %v3174_v40 = vunpack.c.l.b16 %v3515_v12  ;;  %v1101_v16 = vrot.slane %v1092_v50, 5  ;;  %v2045_v2 = vld [vmem:[%s3359_s6] sm:$0xff]  ;;  %vm3521_vm7 = vmmov %vm3520_vm3 }
  0xff   : > { %1142 = vrot.lane.b32.xlu2 %v1134_v23, %s2091_s27  ;;  %v1541_v63 = vrot.slane %v1539_v11, 3  ;;  %v1544_v31 = vrot.slane %v1542_v21, 4  ;;  %v950_v60 = vsel %vm3114_vm1, %v3003_v9, 0  ;;  %v1151_v25 = vpack.c.b16 %v1147_v29, %v1020_v48  ;;  %v2058_v48 = vld [vmem:[%s3359_s6 + $0x68] sm:$0xff]  ;;  %v2051_v29 = vld [vmem:[%s3359_s6 + $0x30] sm:$0xff]  ;;  %vm3522_vm0 = vmmov %vm3520_vm3 }
 0x100   : > { %v1172_v47 = vrot.slane %v1170_v61, 4  ;;  %v1175_v5 = vrot.slane %v1173_v26, 5  ;;  %v1000_v6 = vpack.c.b16 %v3174_v40, %v3168_v55  ;;  %v1102_v0 = vsel %vm3517_vm5, %v3066_v34, %v1101_v16  ;;  %1676 = vmatpush.bf16.msra.mxu1 %v2051_v29  ;;  %v2046_v23 = vld [vmem:[%s3359_s6 + $0x8] sm:$0xff]  ;;  %vm3523_vm13 = vmmov %vm3522_vm0 }
 0x101   : > { %v1545_v46 = vor.u32 %v1544_v31, %v1541_v63  ;;  %v1130_v15 = vunpack.c.l.b16 %v950_v60  ;;  %v1182_v24 = vshll.u32 %v1151_v25, 16  ;;  %vm1331_vm14 = vcmask 523264   ;;  %vm3524_vm4 = vmmov %vm3522_vm0 }
 0x102   : > { %v1176_v57 = vor.u32 %v1175_v5, %v1172_v47  ;;  %vm1342_vm2 = vcmask 785408   ;;  %vm3525_vm9 = vmmov %vm3522_vm0  ;;  %vm3530_vm1 = vcmask 257024  }
 0x103   : > { %v1546_v18 = vsel %vm1424_vm12, %v3100_v39, %v1545_v46  ;;  %v1135_v34 = vpack.c.b16 %v1130_v15, %v1130_v15  ;;  %v1179_v39 = vshrl.u32 %v1151_v25, 16  ;;  %v1184_v20 = vrot.slane %v1182_v24, 5  ;;  %vm3526_vm15 = vmmov %vm3522_vm0 }
 0x104   : > { %v3179_v54 = vsel %vm3516_vm11, %v1167_v7, %v1176_v57  ;;  %1677 = vmatpush.bf16.msra.mxu1 %v2050_v19  ;;  %vm3527_vm6 = vmmov %vm3522_vm0 }
 0x105   : > { %1068 = vrot.lane.b32.xlu0 %v3005_v56, %s2090_s22  ;;  %v2060_v56 = vld [vmem:[%s3359_s6 + $0x78] sm:$0xff]  ;;  %v1181_v53 = vrot.slane %v1179_v39, 4  ;;  %vm3528_vm11 = vmmov %vm3522_vm0 }
 0x106   : > { %1111 = vrot.lane.b32.xlu1 %v1102_v0, %s2089_s19  ;;  %1704 = vmatpush.bf16.msra.mxu2 %v2060_v56  ;;  %vm3529_vm5 = vmmov %vm3522_vm0 }
 0x107   : > { %1282 = vrot.lane.b32.xlu2 %v3075_v32, %s2091_s27  ;;  %v2059_v32 = vld [vmem:[%s3359_s6 + $0x70] sm:$0xff]  ;;  %v3208_v8 = vor.u32 %v1184_v20, %v1181_v53 }
 0x108   : > { %1678 = vmatpush.bf16.msra.mxu1 %v2049_v51  ;;  %v1104_v37 = vpop.permute.xlu2 %1103 }
 0x109   : > { %v3218_v9 = vsel %vm3519_vm8, %v1176_v57, %v3208_v8  ;;  %vm3532_vm8 = vmmov %vm3530_vm1 }
 0x10a   : > { %2018 = vmatmul.msk.bf16.gmra.mxu3 %vm3518_vm10, %v1546_v18  ;;  %1705 = vmatpush.bf16.msra.mxu2 %v2059_v32  ;;  %vm3531_vm10 = vmmov %vm3530_vm1 }
 0x10c   : > { %1679 = vmatpush.bf16.msra.mxu1 %v2048_v14 }
 0x10e   : > { %1706 = vmatpush.bf16.msra.mxu2 %v2058_v48 }
 0x10f   : > { %1144 = vrot.lane.b32.xlu2 %v1135_v34, %s2091_s27 }
 0x110   : > { %1680 = vmatpush.bf16.msra.mxu1 %v2047_v35 }
 0x112   : > { %1707 = vmatpush.bf16.msra.mxu2 %v2057_v10 }
 0x114   : > { %1681 = vmatpush.bf16.msra.mxu1 %v2046_v23 }
 0x116   : > { %1708 = vmatpush.bf16.msra.mxu2 %v2056_v27 }
 0x118   : > { %1682 = vmatpush.bf16.msra.mxu1 %v2045_v2 }
 0x11a   : > { %1709 = vmatpush.bf16.msra.mxu2 %v2055_v28 }
 0x11b   : > { %v1275_v43 = vpop.permute.xlu2 %1274 }
 0x11e   : > { %1710 = vmatpush.bf16.msra.mxu2 %v2054_v3 }
 0x122   : > { %1711 = vmatpush.bf16.msra.mxu2 %v2053_v59 }
 0x123   : > { %v1061_v7 = vpop.permute.xlu0 %1060 }
 0x124   : > { %v1318_v18 = vsel %vm3522_vm0, %v1000_v6, %v1061_v7  ;;  %vm3537_vm0 = vmmov %vm3530_vm1 }
 0x125   : > { %v1333_v55 = vsel %vm1331_vm14, %v1318_v18, %v1104_v37 }
 0x126   : > { %v1253_v62 = vpop.permute.xlu1 %1252 }
 0x12b   : > { %v1220_v22 = vpop.permute.xlu0 %1219 }
 0x12c   : > { %v1355_v11 = vsel %vm3520_vm3, %v3139_v42, %v1220_v22  ;;  %vm3533_vm3 = vmmov %vm3530_vm1 }
 0x12d   : > { %v1369_v61 = vsel %vm1331_vm14, %v1355_v11, %v1253_v62 }
 0x12e   : > { %v1379_v26 = vsel %vm1342_vm2, %v1369_v61, %v1275_v43 }
 0x12f   : > { %v1277_v50 = vpop.permute.xlu2 %1276  ;;  %v1440_v5 = vshrl.u32 %v1379_v26, 16  ;;  %v1443_v16 = vshll.u32 %v1379_v26, 16 }
 0x131   : > { %v1442_v60 = vrot.slane %v1440_v5, 3  ;;  %v1445_v15 = vrot.slane %v1443_v16, 4 }
 0x133   : > { %v1446_v53 = vor.u32 %v1445_v15, %v1442_v60 }
 0x135   : > { %v1063_v21 = vpop.permute.xlu1 %1062 }
 0x136   : > { %v1321_v56 = vsel %vm3523_vm13, %v1001_v38, %v1063_v21 }
 0x139   : > { %v1139_v12 = vpop.permute.xlu2 %1138 }
 0x13a   : > { %v1222_v47 = vpop.permute.xlu0 %1221 }
 0x13b   : > { %v1358_v63 = vsel %vm3521_vm7, %v3153_v33, %v1222_v47  ;;  %vm3536_vm7 = vmmov %vm3530_vm1 }
 0x13d   : > { %v1255_v31 = vpop.permute.xlu1 %1254 }
 0x13e   : > { %v1371_v57 = vsel %vm1331_vm14, %v1358_v63, %v1255_v31 }
 0x13f   : > { %v1381_v0 = vsel %vm1342_vm2, %v1371_v57, %v1277_v50 }
 0x140   : > { %v1447_v42 = vshrl.u32 %v1381_v0, 16  ;;  %v1450_v46 = vshll.u32 %v1381_v0, 16 }
 0x141   : > { %v1279_v39 = vpop.permute.xlu2 %1278 }
 0x142   : > { %v1449_v33 = vrot.slane %v1447_v42, 3  ;;  %v1452_v34 = vrot.slane %v1450_v46, 4  ;;  %v1106_v25 = vpop.permute.xlu0 %1105 }
 0x143   : > { %v1335_v32 = vsel %vm1331_vm14, %v1321_v56, %v1106_v25 }
 0x144   : > { %v1346_v24 = vsel %vm1342_vm2, %v1335_v32, %v1139_v12  ;;  %v1453_v20 = vor.u32 %v1452_v34, %v1449_v33 }
 0x145   : > { %v1432_v41 = vshrl.u32 %v1346_v24, 16  ;;  %v1435_v48 = vshll.u32 %v1346_v24, 16 }
 0x146   : > { %v1454_v4 = vsel %vm1424_vm12, %v1446_v53, %v1453_v20 }
 0x147   : > { %v1434_v44 = vrot.slane %v1432_v41, 3  ;;  %v1437_v38 = vrot.slane %v1435_v48, 4  ;;  %1712 = vmatmul.bf16.vlgmr.msra.gmra.mxu2 %v1454_v4 }
 0x148   : > { %v1137_v40 = vpop.permute.xlu1 %1136 }
 0x149   : > { %v1344_v6 = vsel %vm1342_vm2, %v1333_v55, %v1137_v40  ;;  %v1438_v28 = vor.u32 %v1437_v38, %v1434_v44  ;;  %v1141_v35 = vpop.permute.xlu2 %1140 }
 0x14a   : > { %v1425_v29 = vshrl.u32 %v1344_v6, 16  ;;  %v1428_v10 = vshll.u32 %v1344_v6, 16 }
 0x14c   : > { %v1427_v19 = vrot.slane %v1425_v29, 3  ;;  %v1430_v27 = vrot.slane %v1428_v10, 4  ;;  %v999_v29 = vunpack.c.l.b16 %v760_v30 }
 0x14e   : > { %v1431_v51 = vor.u32 %v1430_v27, %v1427_v19 }
 0x14f   : > { %v1224_v14 = vpop.permute.xlu0 %1223 }
 0x150   : > { %v1361_v3 = vsel %vm3524_vm4, %v3179_v54, %v1224_v14  ;;  %v1257_v7 = vpop.permute.xlu1 %1256  ;;  %v1439_v37 = vsel %vm1424_vm12, %v1431_v51, %v1438_v28 }
 0x151   : > { %v1373_v59 = vsel %vm1331_vm14, %v1361_v3, %v1257_v7  ;;  %1683 = vmatmul.bf16.vlgmr.msra.gmra.mxu1 %v1439_v37  ;;  %v1281_v47 = vpop.permute.xlu2 %1280 }
 0x152   : > { %v1383_v43 = vsel %vm1342_vm2, %v1373_v59, %v1279_v39 }
 0x153   : > { %v1480_v23 = vshrl.u32 %v1383_v43, 16  ;;  %v1483_v62 = vshll.u32 %v1383_v43, 16 }
 0x155   : > { %v1482_v2 = vrot.slane %v1480_v23, 3  ;;  %v1485_v22 = vrot.slane %v1483_v62, 4 }
 0x157   : > { %v1065_v50 = vpop.permute.xlu0 %1064  ;;  %v1486_v11 = vor.u32 %v1485_v22, %v1482_v2 }
 0x158   : > { %v1324_v54 = vsel %vm3525_vm9, %v1002_v1, %v1065_v50  ;;  %v1108_v21 = vpop.permute.xlu1 %1107 }
 0x159   : > { %v1337_v61 = vsel %vm1331_vm14, %v1324_v54, %v1108_v21  ;;  %v1487_v26 = vsel %vm1424_vm12, %v1453_v20, %v1486_v11  ;;  %v1143_v18 = vpop.permute.xlu2 %1142 }
 0x15a   : > { %v1348_v12 = vsel %vm1342_vm2, %v1337_v61, %v1141_v35  ;;  %1717 = vmatmul.bf16.gmra.mxu2 %v1487_v26 }
 0x15b   : > { %v1472_v5 = vshrl.u32 %v1348_v12, 16  ;;  %v1475_v16 = vshll.u32 %v1348_v12, 16 }
 0x15d   : > { %v1474_v63 = vrot.slane %v1472_v5, 3  ;;  %v1477_v31 = vrot.slane %v1475_v16, 4  ;;  %v1742_v22 = vpop.f32.mrf.mxu3 }
 0x15f   : > { %v1226_v57 = vpop.permute.xlu0 %1225  ;;  %v1478_v0 = vor.u32 %v1477_v31, %v1474_v63 }
 0x160   : > { %v1364_v45 = vsel %vm3526_vm15, %v3218_v9, %v1226_v57  ;;  %v1259_v52 = vpop.permute.xlu1 %1258 }
 0x161   : > { %v1375_v1 = vsel %vm1331_vm14, %v1364_v45, %v1259_v52  ;;  %v1479_v42 = vsel %vm1424_vm12, %v1438_v28, %v1478_v0  ;;  %v1283_v40 = vpop.permute.xlu2 %1282  ;;  %v1004_v28 = vpack.c.b16 %v999_v29, %v999_v29 }
 0x162   : > { %v1385_v46 = vsel %vm1342_vm2, %v1375_v1, %v1281_v47  ;;  %1688 = vmatmul.bf16.gmra.mxu1 %v1479_v42 }
 0x163   : > { %v1505_v60 = vshrl.u32 %v1385_v46, 16  ;;  %v1508_v15 = vshll.u32 %v1385_v46, 16 }
 0x165   : > { %v1507_v56 = vrot.slane %v1505_v60, 3  ;;  %v1510_v33 = vrot.slane %v1508_v15, 4  ;;  %v1744_v50 = vpop.f32.mrf.mxu3 }
 0x167   : > { %v1067_v34 = vpop.permute.xlu0 %1066  ;;  %v1511_v25 = vor.u32 %v1510_v33, %v1507_v56 }
 0x168   : > { %v1327_v9 = vsel %vm3527_vm6, %v1003_v36, %v1067_v34  ;;  %v1110_v32 = vpop.permute.xlu1 %1109 }
 0x169   : > { %v1339_v39 = vsel %vm1331_vm14, %v1327_v9, %v1110_v32  ;;  %v1512_v24 = vsel %vm1424_vm12, %v1486_v11, %v1511_v25  ;;  %v1145_v37 = vpop.permute.xlu2 %1144 }
 0x16a   : > { %v1350_v53 = vsel %vm1342_vm2, %v1339_v39, %v1143_v18  ;;  %1722 = vmatmul.bf16.gmra.mxu2 %v1512_v24 }
 0x16b   : > { %v1497_v20 = vshrl.u32 %v1350_v53, 16  ;;  %v1500_v41 = vshll.u32 %v1350_v53, 16 }
 0x16d   : > { %v1499_v48 = vrot.slane %v1497_v20, 3  ;;  %v1502_v55 = vrot.slane %v1500_v41, 4  ;;  %v1747_v47 = vpop.f32.mrf.mxu3 }
 0x16f   : > { %v1228_v6 = vpop.permute.xlu0 %1227  ;;  %v1503_v4 = vor.u32 %v1502_v55, %v1499_v48 }
 0x170   : > { %v1367_v58 = vsel %vm3528_vm11, %v3208_v8, %v1228_v6  ;;  %v1261_v13 = vpop.permute.xlu1 %1260 }
 0x171   : > { %v1377_v36 = vsel %vm1331_vm14, %v1367_v58, %v1261_v13  ;;  %v1504_v44 = vsel %vm1424_vm12, %v1478_v0, %v1503_v4 }
 0x172   : > { %v1387_v38 = vsel %vm1342_vm2, %v1377_v36, %v1283_v40  ;;  %1693 = vmatmul.bf16.gmra.mxu1 %v1504_v44 }
 0x173   : > { %v1530_v10 = vshrl.u32 %v1387_v38, 16  ;;  %v1533_v19 = vshll.u32 %v1387_v38, 16 }
 0x175   : > { %v1532_v27 = vrot.slane %v1530_v10, 3  ;;  %v1535_v51 = vrot.slane %v1533_v19, 4  ;;  %v1749_v42 = vpop.f32.mrf.mxu3 }
 0x177   : > { %v1069_v14 = vpop.permute.xlu0 %1068  ;;  %v1536_v8 = vor.u32 %v1535_v51, %v1532_v27 }
 0x178   : > { %v1330_v3 = vsel %vm3529_vm5, %v1004_v28, %v1069_v14  ;;  %v1112_v7 = vpop.permute.xlu1 %1111 }
 0x179   : > { %v1341_v35 = vsel %vm1331_vm14, %v1330_v3, %v1112_v7  ;;  %v1537_v59 = vsel %vm1424_vm12, %v1511_v25, %v1536_v8  ;;  %vm3534_vm14 = vmmov %vm3530_vm1 }
 0x17a   : > { %v1352_v17 = vsel %vm1342_vm2, %v1341_v35, %v1145_v37  ;;  %1727 = vmatmul.bf16.gmra.mxu2 %v1537_v59  ;;  %vm3535_vm2 = vmmov %vm3530_vm1 }
 0x17b   : > { %v1522_v49 = vshrl.u32 %v1352_v17, 16  ;;  %v1525_v30 = vshll.u32 %v1352_v17, 16 }
 0x17d   : > { %v1524_v43 = vrot.slane %v1522_v49, 3  ;;  %v1527_v23 = vrot.slane %v1525_v30, 4  ;;  %v1752_v25 = vpop.f32.mrf.mxu3 }
 0x17f   : > { %v1528_v62 = vor.u32 %v1527_v23, %v1524_v43  ;;  %v2039_v43 = vld [vmem:[%s2155_s10] sm:$0xff] }
 0x181   : > { %v1529_v2 = vsel %vm1424_vm12, %v1503_v4, %v1528_v62  ;;  %vm1818_vm12 = vcmask 195584  }
 0x182   : > { %1698 = vmatmul.bf16.gmra.mxu1 %v1529_v2 }
 0x185   : > { %v1754_v48 = vpop.f32.mrf.mxu3 }
 0x18d   : > { %v1757_v10 = vpop.f32.mrf.mxu3 }
 0x195   : > { %v1759_v7 = vpop.f32.mrf.mxu3 }
 0x1ca   : > { %v1713_v11 = vpop.f32.mrf.mxu2 }
 0x1ce   : > { %v1684_v54 = vpop.f32.mrf.mxu1 }
 0x1cf   : > { %v1714_v21 = vadd.f32 %v1713_v11, %v1684_v54  ;;  %v2040_v11 = vld [vmem:[%s2155_s10 + $0x8] sm:$0xff]  ;;  %v2042_v54 = vld [vmem:[%s2155_s10 + $0x18] sm:$0xff] }
 0x1d1   : > { %v1743_v61 = vadd.f32 %v1742_v22, %v1714_v21 }
 0x1d2   : > { %v1715_v26 = vpop.f32.mrf.mxu2 }
 0x1d3   : > { %v1762_v16 = vpack.c.bf16 %v1743_v61, %v1743_v61 }
 0x1d5   : > { %v1798_v57 = vunpack.c.l.b16 %v1762_v16 }
 0x1d6   : > { %v1686_v12 = vpop.f32.mrf.mxu1 }
 0x1d7   : > { %v1716_v5 = vadd.f32 %v1715_v26, %v1686_v12 }
 0x1d9   : > { %v1745_v63 = vadd.f32 %v1744_v50, %v1716_v5  ;;  %v2041_v50 = vld [vmem:[%s2155_s10 + $0x10] sm:$0xff] }
 0x1db   : > { %v1763_v31 = vpack.c.bf16 %v1745_v63, %v1745_v63 }
 0x1dd   : > { %v1799_v0 = vunpack.c.l.b16 %v1763_v31  ;;  %v1718_v45 = vpop.f32.mrf.mxu2 }
 0x1df   : > { %v1689_v52 = vpop.f32.mrf.mxu1  ;;  %v1806_v1 = vpack.c.b16 %v1799_v0, %v1798_v57 }
 0x1e0   : > { %v1719_v46 = vadd.f32 %v1718_v45, %v1689_v52 }
 0x1e1   : > { %1810 = vrot.lane.b32.xlu0 %v1806_v1, %s2092_s20 }
 0x1e2   : > { %v1748_v15 = vadd.f32 %v1747_v47, %v1719_v46 }
 0x1e4   : > { %v1764_v33 = vpack.c.bf16 %v1748_v15, %v1748_v15 }
 0x1e5   : > { %v1720_v60 = vpop.f32.mrf.mxu2 }
 0x1e6   : > { %v1800_v39 = vunpack.c.l.b16 %v1764_v33 }
 0x1e7   : > { %v1691_v18 = vpop.f32.mrf.mxu1 }
 0x1e8   : > { %v1721_v56 = vadd.f32 %v1720_v60, %v1691_v18 }
 0x1ea   : > { %v1750_v34 = vadd.f32 %v1749_v42, %v1721_v56 }
 0x1ec   : > { %v1765_v9 = vpack.c.bf16 %v1750_v34, %v1750_v34 }
 0x1ed   : > { %v1723_v32 = vpop.f32.mrf.mxu2 }
 0x1ee   : > { %v1801_v24 = vunpack.c.l.b16 %v1765_v9 }
 0x1ef   : > { %v1694_v53 = vpop.f32.mrf.mxu1 }
 0x1f0   : > { %v1807_v20 = vpack.c.b16 %v1801_v24, %v1800_v39  ;;  %v1724_v41 = vadd.f32 %v1723_v32, %v1694_v53 }
 0x1f2   : > { %1812 = vrot.lane.b32.xlu1 %v1807_v20, %s2092_s20  ;;  %v1753_v40 = vadd.f32 %v1752_v25, %v1724_v41 }
 0x1f4   : > { %v1766_v58 = vpack.c.bf16 %v1753_v40, %v1753_v40 }
 0x1f5   : > { %v1725_v55 = vpop.f32.mrf.mxu2 }
 0x1f6   : > { %v1802_v38 = vunpack.c.l.b16 %v1766_v58 }
 0x1f7   : > { %v1696_v6 = vpop.f32.mrf.mxu1 }
 0x1f8   : > { %v1726_v4 = vadd.f32 %v1725_v55, %v1696_v6 }
 0x1fa   : > { %v1755_v13 = vadd.f32 %v1754_v48, %v1726_v4 }
 0x1fc   : > { %v1767_v36 = vpack.c.bf16 %v1755_v13, %v1755_v13 }
 0x1fd   : > { %v1728_v44 = vpop.f32.mrf.mxu2 }
 0x1fe   : > { %v1803_v29 = vunpack.c.l.b16 %v1767_v36 }
 0x1ff   : > { %v1699_v19 = vpop.f32.mrf.mxu1 }
 0x200   : > { %v1808_v27 = vpack.c.b16 %v1803_v29, %v1802_v38  ;;  %v1729_v51 = vadd.f32 %v1728_v44, %v1699_v19 }
 0x202   : > { %1814 = vrot.lane.b32.xlu2 %v1808_v27, %s2092_s20  ;;  %v1758_v28 = vadd.f32 %v1757_v10, %v1729_v51 }
 0x204   : > { %v1768_v37 = vpack.c.bf16 %v1758_v28, %v1758_v28 }
 0x205   : > { %v1730_v14 = vpop.f32.mrf.mxu2 }
 0x206   : > { %v1804_v17 = vunpack.c.l.b16 %v1768_v37 }
 0x207   : > { %v1701_v8 = vpop.f32.mrf.mxu1 }
 0x208   : > { %v1731_v3 = vadd.f32 %v1730_v14, %v1701_v8 }
 0x20a   : > { %v1760_v35 = vadd.f32 %v1759_v7, %v1731_v3 }
 0x20c   : > { %v1769_v59 = vpack.c.bf16 %v1760_v35, %v1760_v35 }
 0x20e   : > { %v1805_v49 = vunpack.c.l.b16 %v1769_v59 }
 0x210   : > { %v1809_v30 = vpack.c.b16 %v1805_v49, %v1804_v17 }
 0x212   : > { %1816 = vrot.lane.b32.xlu0 %v1809_v30, %s2092_s20 }
 0x253   : > { %v1811_v23 = vpop.permute.xlu0 %1810 }
 0x254   : > { %v1821_v62 = vsel %vm1818_vm12, %v2039_v43, %v1811_v23 }
 0x255   : > { %v1835_v2 = vunpack.c.l.b16 %v1821_v62  ;;  %v1836_v22 = vunpack.c.h.b16 %v1821_v62 }
 0x257   : > { %v1843_v21 = vpack.c.b16 %v1835_v2, %v1835_v2  ;;  %v1844_v61 = vpack.c.b16 %v1836_v22, %v1836_v22 }
 0x259   : > { %1859 = vst.msk [vmem:[%s3326_s23] sm:$0xf] %vm3530_vm1, %v1843_v21 }
 0x25a   : > { %1860 = vst.msk [vmem:[%s3326_s23 + $0x4] sm:$0xf] %vm3531_vm10, %v1844_v61 }
 0x25c   : > { %v1815_v26 = vpop.permute.xlu2 %1814 }
 0x25d   : > { %v1827_v12 = vsel %vm1818_vm12, %v2041_v50, %v1815_v26 }
 0x25e   : > { %v1839_v47 = vunpack.c.l.b16 %v1827_v12  ;;  %v1840_v5 = vunpack.c.h.b16 %v1827_v12 }
 0x260   : > { %v1847_v16 = vpack.c.b16 %v1839_v47, %v1839_v47  ;;  %v1848_v63 = vpack.c.b16 %v1840_v5, %v1840_v5 }
 0x262   : > { %1863 = vst.msk [vmem:[%s3326_s23 + $0x10] sm:$0xf] %vm3532_vm8, %v1847_v16 }
 0x263   : > { %1864 = vst.msk [vmem:[%s3326_s23 + $0x14] sm:$0xf] %vm3533_vm3, %v1848_v63 }
 0x264   : > { %v1813_v31 = vpop.permute.xlu1 %1812 }
 0x265   : > { %v1824_v57 = vsel %vm1818_vm12, %v2040_v11, %v1813_v31 }
 0x266   : > { %v1837_v0 = vunpack.c.l.b16 %v1824_v57  ;;  %v1838_v45 = vunpack.c.h.b16 %v1824_v57 }
 0x268   : > { %v1845_v52 = vpack.c.b16 %v1837_v0, %v1837_v0  ;;  %v1846_v1 = vpack.c.b16 %v1838_v45, %v1838_v45 }
 0x26a   : > { %1861 = vst.msk [vmem:[%s3326_s23 + $0x8] sm:$0xf] %vm3534_vm14, %v1845_v52 }
 0x26b   : > { %1862 = vst.msk [vmem:[%s3326_s23 + $0xc] sm:$0xf] %vm3535_vm2, %v1846_v1 }
 0x284   : > { %v1817_v42 = vpop.permute.xlu0 %1816 }
 0x285   : > { %v1830_v46 = vsel %vm1818_vm12, %v2042_v54, %v1817_v42 }
 0x286   : > { %v1841_v60 = vunpack.c.l.b16 %v1830_v46  ;;  %v1842_v15 = vunpack.c.h.b16 %v1830_v46 }
 0x288   : > { %v1849_v18 = vpack.c.b16 %v1841_v60, %v1841_v60  ;;  %v1850_v56 = vpack.c.b16 %v1842_v15, %v1842_v15 }
 0x28a   : > { %1865 = vst.msk [vmem:[%s3326_s23 + $0x18] sm:$0xf] %vm3536_vm7, %v1849_v18 }
 0x28b   : > { %1866 = vst.msk [vmem:[%s3326_s23 + $0x1c] sm:$0xf] %vm3537_vm0, %v1850_v56 }
 0x28c PF: > { %s17_s24 = sadd.s32 1, %s2086_s24  }
 0x28d   : > { %p14_p4 = scmp.ge.s32.totalorder %s17_s24, 4  }
 0x28f   :  { %16 = sbr.rel (!%p14_p4) target bundleno = 1 (0x1), region = 78 }

// kernel: densenet_finetune_forward.13
= control target key start
LH: loop header
LB: loop body
LE: loop exit
PB: predicated region body
PF: predicated region fallthrough
CT: control target
= control target key end

     0   :  { %s1271_s24 = smov 0   ;;  %s1712_s0 = inlined_call_operand.vmem [shape: bf16[2,16,32], index: 0, kind: input, shape index: {}, may-alias: {0,7}]   ;;  %s1713_s1 = inlined_call_operand.vmem [shape: bf16[32,32], index: 1, kind: input, shape index: {}]   ;;  %s1714_s2 = inlined_call_operand.vmem [shape: f32[1,32], index: 2, kind: input, shape index: {}]   ;;  %s1715_s3 = inlined_call_operand.vmem [shape: f32[1,32], index: 3, kind: input, shape index: {}]   ;;  %s1716_s4 = inlined_call_operand.vmem [shape: f32[1,32], index: 4, kind: input, shape index: {}]   ;;  %s1717_s5 = inlined_call_operand.vmem [shape: f32[1,32], index: 5, kind: input, shape index: {}]   ;;  %s1718_s6 = inlined_call_operand.vmem [shape: bf16[288,8], index: 6, kind: input, shape index: {}]   ;;  %s1719_s7 = inlined_call_operand.vmem [shape: bf16[2,16,32], index: 7, kind: output, shape index: {}, may-alias: {0,7}]  }
   0x1 LB: > { %s1081_s25 = sadd.s32 4294967295, %s1224_s24   ;;  %p1085_p0 = scmp.ge.s32.totalorder %s1224_s24, 1  ;;  %s1224_s24 = sphi %s1271_s24, %s17_s24  }
   0x2   : > { %p237_p1 = scmp.lt.s32.totalorder %s1224_s24, 3 }
   0x4   : > { %p238_p2 = pnand %p1085_p0, %p237_p1 }
   0x5   : > { %p269_p3 = scmp.lt.s32.totalorder (!%p238_p2), %s1081_s25, 1  ;;  %s1227_s15 = smov (!%p238_p2), 64  }
   0x6   : > { %241 = sbr.rel (%p238_p2) target bundleno = 598 (0x256), region = 48  ;;  %s1228_s16 = smov (!%p238_p2), 96  }
   0x7   : > { %s1229_s27 = smov (!%p238_p2), 32   ;;  %s1230_s20 = smov (!%p238_p2), 16  }
   0xb   : > { %v1182_v0 = vld [vmem:[%s1713_s1 + $0x8] sm:$0xff]  ;;  %v1181_v1 = vld [vmem:[%s1713_s1] sm:$0xff]  ;;  %s1797_s25 = smov (!%p269_p3, %s1081_s25), 1  ;;  %vm1720_vm0 = vcmask 261120   ;;  %v358_v14 = vlaneseq  ;;  %v1226_v19 = vmov 0   ;;  %vm1721_vm4 = vcmask 257024  }
   0xc   : > { %327 = vmatpush.bf16.msra.mxu0 %v1182_v0  ;;  %s1178_s30 = sshll.u32 %s1797_s25, 3  ;;  %v1214_v2 = vld [vmem:[%s1714_s2] ss:$0 sm:$0xff]  ;;  %353 = vst.msk [vmem:[#allocation2 + $0x4] sm:$0xf] %vm1721_vm4, %v1226_v19  ;;  %v1319_v32 = vunpack.c.l.b16 %v1226_v19  ;;  %v1321_v33 = vunpack.c.h.b16 %v1226_v19  ;;  %v1731_v38 = vmov 0 }
   0xd   : > { %s1293_s10 = scalar_lea.vmem %s1712_s0, %s1178_s30  ;;  %v1215_v6 = vld [vmem:[%s1715_s3] ss:$0 sm:$0xff]  ;;  %v359_v15 = vshrl.u32 %v358_v14, 7  ;;  %354 = vst.msk [vmem:[#allocation2 + $0x10] sm:$0xf] %vm1721_vm4, %v1226_v19  ;;  %v1739_v30 = vmov 0  ;;  %s278_s23 = scalar_lea.vmem %s1719_s7, %s1178_s30 }
   0xe   : > { %v282_v3 = vld [vmem:[%s1293_s10] sm:$0xff]   ;;  %vm400_vm13 = vsmask.f32 1280  ;;  %vm401_vm14 = vsmask.f32 5392 }
   0xf   : > { %v284_v4 = vunpack.c.l.bf16 %v282_v3  ;;  %v285_v5 = vunpack.c.h.bf16 %v282_v3  ;;  %v360_v16 = vadd.s32 8, %v359_v15  ;;  %v365_v17 = vand.u32 3, %v359_v15  ;;  %vm402_vm15 = vmor %vm400_vm13, %vm401_vm14  ;;  %v1216_v63 = vld [vmem:[%s1716_s4] ss:$0 sm:$0xff] }
  0x10   : > { %328 = vmatpush.bf16.msra.mxu0 %v1181_v1  ;;  %v1347_v3 = vld [vmem:[%s1717_s5] ss:$0 sm:$0xff] }
  0x11   : > { %v290_v7 = vmul.f32 %v1214_v2, %v284_v4  ;;  %v291_v8 = vmul.f32 %v1214_v2, %v285_v5  ;;  %v372_v18 = vand.u32 3, %v360_v16  ;;  %vm385_vm3 = vcmp.ge.s32.totalorder %v365_v17, 1 }
  0x12   : > { %vm396_vm5 = vmpackc.low %vm385_vm3, %vm385_vm3  ;;  %vm1313_vm8 = vcmp.le.s32.totalorder %v365_v17, 2  ;;  %vm541_vm3 = vsmask.f32 256 }
  0x13   : > { %v296_v9 = vadd.f32 %v1215_v6, %v290_v7  ;;  %v297_v10 = vadd.f32 %v1215_v6, %v291_v8  ;;  %vm386_vm1 = vcmp.ge.s32.totalorder %v372_v18, 1  ;;  %vm388_vm6 = vcmp.le.s32.totalorder %v372_v18, 2  ;;  %vm452_vm11 = vmpackc.low %vm1313_vm8, %vm1313_vm8 }
  0x14   : > { %vm397_vm2 = vmpackc.low %vm386_vm1, %vm386_vm1  ;;  %v398_v26 = vsel %vm396_vm5, 65537, %v1226_v19  ;;  %v576_v39 = vld [vmem:[#allocation2 + $0x10] sm:$0x3]  ;;  %v454_v45 = vsel %vm452_vm11, 65537, %v1226_v19  ;;  %vm456_vm1 = vsmask.f32 2304 }
  0x15   : > { %v298_v11 = vmax.f32 %v296_v9, 0.0  ;;  %v299_v12 = vmax.f32 %v297_v10, 0.0  ;;  %v1303_v20 = vsel %vm397_vm2, 65537, %v1226_v19  ;;  %vm453_vm7 = vmpackc.low %vm388_vm6, %vm388_vm6  ;;  %v404_v28 = vshrl.u32 %v398_v26, 16  ;;  %v1200_v10 = vld [vmem:[%s1718_s6 + $0x88] sm:$0xff] }
  0x16   : > { %v413_v21 = vshrl.u32 %v1303_v20, 16  ;;  %v416_v22 = vshll.u32 %v1303_v20, 16  ;;  %v407_v29 = vshll.u32 %v398_v26, 16  ;;  %v1317_v31 = vsel %vm453_vm7, 65537, %v1226_v19  ;;  %988 = vmatpush.bf16.msra.mxu3 %v1200_v10 }
  0x17   : > { %v300_v13 = vpack.c.bf16 %v299_v12, %v298_v11  ;;  %v469_v36 = vshrl.u32 %v1317_v31, 16  ;;  %v472_v37 = vshll.u32 %v1317_v31, 16  ;;  %v406_v40 = vrot.slane %v404_v28, 6  ;;  %v581_v31 = vld [vmem:[#allocation2 + $0x10] sm:$0x7] }
  0x18   : > { %v415_v23 = vrot.slane %v413_v21, 6  ;;  %v418_v24 = vrot.slane %v416_v22, 7  ;;  %v409_v41 = vrot.slane %v407_v29, 7  ;;  %v695_v43 = vunpack.c.l.b16 %v576_v39 }
  0x19   : > { %1098 = vmatmul.msk.bf16.vlgmr.msra.gmra.mxu0 %vm1720_vm0, %v300_v13  ;;  %v471_v46 = vrot.slane %v469_v36, 5  ;;  %v474_v47 = vrot.slane %v472_v37, 6  ;;  %v460_v53 = vshrl.u32 %v454_v45, 16  ;;  %v463_v54 = vshll.u32 %v454_v45, 16 }
  0x1a   : > { %v419_v25 = vor.u32 %v418_v24, %v415_v23  ;;  %v697_v48 = vpack.c.b16 %v695_v43, %v695_v43  ;;  %v410_v50 = vor.u32 %v409_v41, %v406_v40  ;;  %v508_v4 = vrot.slane %v404_v28, 4 }
  0x1b   : > { %v475_v55 = vor.u32 %v474_v47, %v471_v46  ;;  %v462_v60 = vrot.slane %v460_v53, 5  ;;  %v465_v61 = vrot.slane %v463_v54, 6  ;;  %v544_v62 = vrot.slane %v460_v53, 7 }
  0x1c   : > { %v421_v27 = vrot.slane %v419_v25, 4  ;;  %v706_v51 = vshll.u32 %v697_v48, 16  ;;  %v710_v52 = vshrl.u32 %v697_v48, 16  ;;  %v411_v57 = vrot.slane %v410_v50, 4 }
  0x1d   : > { %v477_v58 = vrot.slane %v475_v55, 4  ;;  %v466_v5 = vor.u32 %v465_v61, %v462_v60  ;;  %v547_v6 = vrot.slane %v469_v36, 7  ;;  %v1349_v7 = vrot.slane %v407_v29, 5 }
  0x1e   : > { %v436_v34 = vunpack.c.l.b16 %v421_v27  ;;  %v437_v35 = vunpack.c.h.b16 %v421_v27  ;;  %v1337_v56 = vrot.slane %v706_v51, 1  ;;  %v420_v0 = vsel %vm402_vm15, %v411_v57, %v419_v25 }
  0x1f   : > { %v492_v1 = vunpack.c.l.b16 %v477_v58  ;;  %v493_v2 = vunpack.c.h.b16 %v477_v58  ;;  %v422_v8 = vunpack.c.l.b16 %v410_v50  ;;  %v1351_v9 = vor.u32 %v544_v62, %v463_v54 }
  0x20   : > { %vm440_vm9 = vcmp.ne.s32.totalorder %v436_v34, %v1319_v32  ;;  %vm441_vm10 = vcmp.ne.s32.totalorder %v437_v35, %v1321_v33  ;;  %v712_v59 = vor.u32 %v710_v52, %v1337_v56  ;;  %vm457_vm2 = vsmask.f32 6416  ;;  %v389_v52 = vld [vmem:[#allocation2 + $0x4] sm:$0xe] }
  0x21   : > { %vm1330_vm12 = vmpackc.low %vm441_vm10, %vm440_vm9  ;;  %v423_v12 = vunpack.c.h.b16 %v410_v50  ;;  %v429_v13 = vunpack.c.l.b16 %v420_v0  ;;  %vm542_vm5 = vsmask.f32 4368  ;;  %v430_v15 = vunpack.c.h.b16 %v420_v0 }
  0x22   : > { %v1732_v38 = vsel %vm1330_vm12, 4294967295, %v1731_v38  ;;  %v579_v42 = vsel %vm1330_vm12, %v576_v39, 0  ;;  %715 = vrot.lane.b32.xlu2 %v712_v59, %s1228_s16  ;;  %vm496_vm6 = vcmp.ne.s32.totalorder %v492_v1, %v1319_v32  ;;  %vm497_vm7 = vcmp.ne.s32.totalorder %v493_v2, %v1321_v33  ;;  %vm1358_vm8 = vmor %vm456_vm1, %vm457_vm2  ;;  %v1199_v39 = vld [vmem:[%s1718_s6 + $0x80] sm:$0xff] }
  0x23   : > { %v685_v44 = vunpack.c.l.b16 %v579_v42  ;;  %v546_v16 = vrot.slane %v544_v62, 4  ;;  %v548_v17 = vor.u32 %v547_v6, %v472_v37  ;;  %v467_v19 = vrot.slane %v466_v5, 4  ;;  %vm543_vm10 = vmor %vm541_vm3, %vm542_vm5  ;;  %989 = vmatpush.bf16.msra.mxu3 %v1199_v39 }
  0x24   : > { %v550_v23 = vrot.slane %v547_v6, 4  ;;  %vm1364_vm9 = vcmp.ne.s32.totalorder %v422_v8, %v1319_v32  ;;  %v1735_v25 = vmov 0  ;;  %vm1369_vm11 = vcmp.ne.s32.totalorder %v423_v12, %v1321_v33  ;;  %vm1374_vm13 = vmpackc.low %vm497_vm7, %vm496_vm6 }
  0x25   : > { %v687_v49 = vpack.c.b16 %v685_v44, %v685_v44  ;;  %v1736_v25 = vsel %vm1364_vm9, 4294967295, %v1735_v25  ;;  %v1737_v26 = vmov 0  ;;  %v551_v27 = vunpack.c.l.b16 %v1351_v9  ;;  %vm1722_vm6 = vmpackc.low %vm1369_vm11, %vm1364_vm9 }
  0x26   : > { %v1738_v26 = vsel %vm1369_vm11, 4294967295, %v1737_v26  ;;  %v478_v28 = vunpack.c.l.b16 %v466_v5  ;;  %v479_v29 = vunpack.c.h.b16 %v466_v5  ;;  %v1740_v30 = vsel %vm1374_vm13, 4294967295, %v1739_v30  ;;  %v1460_v5 = vld [vmem:[#allocation2 + $0x4] sm:$0xc] }
  0x27   : > { %690 = vrot.lane.b32.xlu1 %v687_v49, %s1227_s15  ;;  %vm1379_vm14 = vcmp.ne.s32.totalorder %v429_v13, %v1319_v32  ;;  %vm1384_vm15 = vcmp.ne.s32.totalorder %v430_v15, %v1321_v33  ;;  %v552_v37 = vunpack.c.h.b16 %v1351_v9  ;;  %v549_v40 = vsel %vm543_vm10, %v546_v16, %v548_v17  ;;  %v502_v15 = vld [vmem:[#allocation2 + $0x4] sm:$0x8] }
  0x28   : > { %v476_v41 = vsel %vm1358_vm8, %v467_v19, %v475_v55  ;;  %v565_v42 = vunpack.c.l.b16 %v550_v23  ;;  %v509_v43 = vor.u32 %v508_v4, %v1349_v7  ;;  %v584_v45 = vsel %vm1374_vm13, %v581_v31, 0 }
  0x29   : > { %v566_v46 = vunpack.c.h.b16 %v550_v23  ;;  %v513_v47 = vrot.slane %v413_v21, 4  ;;  %vm1400_vm1 = vcmp.ne.s32.totalorder %v478_v28, %v1319_v32  ;;  %vm1405_vm2 = vcmp.ne.s32.totalorder %v479_v29, %v1321_v33 }
  0x2a   : > { %vm504_vm3 = vsmask.f32 3328  ;;  %vm505_vm5 = vsmask.f32 7440  ;;  %v485_v21 = vunpack.c.l.b16 %v476_v41  ;;  %v486_v53 = vunpack.c.h.b16 %v476_v41 }
  0x2b   : > { %v511_v54 = vrot.slane %v416_v22, 5  ;;  %v722_v55 = vunpack.c.l.b16 %v584_v45  ;;  %v510_v57 = vrot.slane %v509_v43, 4  ;;  %v516_v58 = vunpack.c.l.b16 %v1349_v7  ;;  %vm1423_vm10 = vmor %vm504_vm3, %vm505_vm5 }
  0x2c   : > { %v517_v59 = vunpack.c.h.b16 %v1349_v7  ;;  %vm569_vm7 = vcmp.ne.s32.totalorder %v565_v42, %v1319_v32  ;;  %vm570_vm8 = vcmp.ne.s32.totalorder %v566_v46, %v1321_v33  ;;  %v443_v22 = vsel %vm1722_vm6, %v389_v52, 0  ;;  %v540_v7 = vld [vmem:[#allocation2 + $0x10] sm:$0x1] }
  0x2d   : > { %v514_v20 = vor.u32 %v513_v47, %v511_v54  ;;  %v558_v0 = vunpack.c.l.b16 %v549_v40  ;;  %vm1446_vm5 = vcmp.ne.s32.totalorder %v485_v21, %v1319_v32  ;;  %vm1451_vm0 = vcmp.ne.s32.totalorder %v486_v53, %v1321_v33  ;;  %vm1466_vm3 = vmpackc.low %vm570_vm8, %vm569_vm7 }
  0x2e   : > { %vm1456_vm6 = vcmp.ne.s32.totalorder %v552_v37, %v1321_v33  ;;  %v559_v4 = vunpack.c.h.b16 %v549_v40  ;;  %v724_v6 = vpack.c.b16 %v722_v55, %v722_v55  ;;  %v512_v9 = vsel %vm1423_vm10, %v510_v57, %v511_v54  ;;  %vm1728_vm7 = vmpackc.low %vm1451_vm0, %vm1446_vm5 }
  0x2f   : > { %vm1473_vm13 = vcmp.ne.s32.totalorder %v516_v58, %v1319_v32  ;;  %vm1478_vm12 = vcmp.ne.s32.totalorder %v517_v59, %v1321_v33  ;;  %vm1765_vm8 = vcmask 257024   ;;  %vm1766_vm10 = vmpackc.low %vm1384_vm15, %vm1379_vm14  ;;  %vm1500_vm11 = vcmp.ne.s32.totalorder %v558_v0, %v1319_v32 }
  0x30   : > { %v574_v19 = vsel %vm1466_vm3, %v540_v7, 0  ;;  %v1517_v28 = vrot.slane %v724_v6, 1  ;;  %vm522_vm9 = vmpackc.low %vm1478_vm12, %vm1473_vm13  ;;  %v523_v29 = vunpack.c.l.b16 %v512_v9  ;;  %v588_v31 = vunpack.c.l.b16 %v443_v22 }
  0x31   : > { %v524_v37 = vunpack.c.h.b16 %v512_v9  ;;  %v596_v41 = vunpack.c.l.b16 %v1460_v5  ;;  %v1530_v43 = vunpack.c.l.b16 %v574_v19  ;;  %vm1772_vm12 = vnez %v1738_v26 }
  0x32   : > { %vm1773_vm13 = vnez %v1736_v25  ;;  %v833_v26 = vshrl.u32 %v1517_v28, 16  ;;  %v836_v49 = vshll.u32 %v1517_v28, 16 }
  0x33   : > { %vm1774_vm3 = vmpackc.low %vm1772_vm12, %vm1773_vm13  ;;  %vm629_vm13 = vcmask 1046528   ;;  %v671_v2 = vpack.c.b16 %v1530_v43, %v1530_v43 }
  0x34   : > { %v835_v13 = vrot.slane %v833_v26, 1 }
  0x35   : > { %v674_v43 = vrot.slane %v671_v2, 7  ;;  %v1185_v2 = vld [vmem:[%s1718_s6 + $0x10] sm:$0xff] }
  0x96   : > { %v330_v11 = vpop.f32.mrf.mxu0 }
  0x97   : > { %v339_v14 = vmul.f32 %v1216_v63, %v330_v11  ;;  %v515_v11 = vrot.slane %v514_v20, 4 }
  0x99   : > { %v345_v24 = vadd.f32 %v1347_v3, %v339_v14  ;;  %v530_v39 = vunpack.c.l.b16 %v515_v11  ;;  %v531_v40 = vunpack.c.h.b16 %v515_v11 }
  0x9b   : > { %v347_v34 = vmax.f32 %v345_v24, 0.0 }
  0x9d   : > { %v349_v44 = vpack.c.bf16 %v347_v34, %v347_v34 }
  0x9e   : > { %v332_v48 = vpop.f32.mrf.mxu0 }
  0x9f   : > { %356 = vst.msk [vmem:[#allocation2 + $0x8] sm:$0xf] %vm1721_vm4, %v349_v44  ;;  %v340_v51 = vmul.f32 %v1216_v63, %v332_v48  ;;  %vm1437_vm4 = vcmp.ne.s32.totalorder %v551_v27, %v1319_v32  ;;  %v1548_v48 = vsel %vm522_vm9, %v502_v15, 0  ;;  %vm1564_vm9 = vcmp.ne.s32.totalorder %v524_v37, %v1321_v33 }
  0xa1   : > { %v346_v60 = vadd.f32 %v1347_v3, %v340_v51 }
  0xa3   : > { %v348_v63 = vmax.f32 %v346_v60, 0.0 }
  0xa5   : > { %v350_v10 = vpack.c.bf16 %v348_v63, %v348_v63 }
  0xa6   : > { %v1482_v14 = vld [vmem:[#allocation2 + $0x8] sm:$0xf] }
  0xa7   : > { %357 = vst.msk [vmem:[#allocation2 + $0xc] sm:$0xf] %vm1765_vm8, %v350_v10  ;;  %v444_v16 = vsel %vm1766_vm10, %v1482_v14, 0  ;;  %vm1769_vm8 = vmpackc.low %vm1405_vm2, %vm1400_vm1  ;;  %v575_v23 = vld [vmem:[#allocation2 + $0x8] sm:$0xe]  ;;  %vm1513_vm10 = vcmp.ne.s32.totalorder %v559_v4, %v1321_v33  ;;  %v500_v34 = vsel %vm1728_vm7, %v1482_v14, 0 }
  0xa8   : > { %v499_v18 = vsel %vm1769_vm8, %v1460_v5, 0  ;;  %v580_v27 = vld [vmem:[#allocation2 + $0x8] sm:$0xc]  ;;  %v589_v44 = vunpack.c.l.b16 %v444_v16  ;;  %v577_v45 = vsel %vm1774_vm3, %v575_v23, 0  ;;  %vm1775_vm8 = vmpackc.low %vm1456_vm6, %vm1437_vm4  ;;  %v625_v25 = vunpack.c.l.b16 %v500_v34 }
  0xa9   : > { %v624_v42 = vunpack.c.l.b16 %v499_v18  ;;  %v572_v46 = vsel %vm1775_vm8, %v1482_v14, 0  ;;  %vm1776_vm7 = vmpackc.low %vm1405_vm2, %vm1400_vm1  ;;  %vm1556_vm4 = vcmp.ne.s32.totalorder %v523_v29, %v1319_v32  ;;  %vm1569_vm1 = vcmp.ne.s32.totalorder %v530_v39, %v1319_v32 }
  0xaa   : > { %v582_v47 = vsel %vm1776_vm7, %v580_v27, 0  ;;  %vm564_vm12 = vmpackc.low %vm1513_vm10, %vm1500_vm11  ;;  %v1560_v50 = vpack.c.b16 %v589_v44, %v588_v31  ;;  %vm1574_vm2 = vcmp.ne.s32.totalorder %v531_v40, %v1321_v33  ;;  %v683_v57 = vunpack.c.l.b16 %v577_v45 }
  0xab   : > { %v667_v58 = vunpack.c.l.b16 %v572_v46  ;;  %v720_v60 = vunpack.c.l.b16 %v582_v47  ;;  %v694_v61 = vunpack.c.l.b16 %v580_v27  ;;  %vm1785_vm6 = vnez %v1732_v38  ;;  %vm1786_vm7 = vmpackc.low %vm1384_vm15, %vm1379_vm14 }
  0xac   : > { %vm1787_vm3 = vnez %v1740_v30  ;;  %v627_v3 = vpack.c.b16 %v625_v25, %v624_v42  ;;  %vm1788_vm8 = vmpackc.low %vm1451_vm0, %vm1446_vm5  ;;  %v597_v30 = vunpack.c.l.b16 %v1482_v14  ;;  %v838_v18 = vrot.slane %v836_v49, 2 }
  0xad   : > { %vm536_vm11 = vmpackc.low %vm1574_vm2, %vm1569_vm1  ;;  %v640_v44 = vunpack.c.l.b16 %v1548_v48  ;;  %vm672_vm14 = vcmask 1040384   ;;  %vm793_vm15 = vsmask.f32 6400  ;;  %vm601_vm5 = vsmask.f32 7424 }
  0xae   : > { %v1578_v54 = vld [vmem:[#allocation2 + $0xc] sm:$0x3]  ;;  %vm529_vm0 = vmpackc.low %vm1564_vm9, %vm1556_vm4  ;;  %v630_v16 = vrot.slane %v627_v3, 1  ;;  %v599_v29 = vpack.c.b16 %v597_v30, %v596_v41  ;;  %v839_v25 = vor.u32 %v838_v18, %v835_v13  ;;  %vm1789_vm10 = vcmask 261120   ;;  %v1190_v3 = vld [vmem:[%s1718_s6 + $0x38] sm:$0xff] }
  0xaf   : > { %v503_v55 = vld [vmem:[#allocation2 + $0xc] sm:$0xf]  ;;  %v445_v32 = vsel %vm1785_vm6, %v1578_v54, 0  ;;  %v598_v20 = vunpack.c.l.b16 %v1578_v54  ;;  %v538_v27 = vsel %vm529_vm0, %v1482_v14, 0  ;;  %954 = vmatpush.bf16.msra.mxu1 %v1190_v3  ;;  %vm1790_vm4 = vmmov %vm1789_vm10  ;;  %vm739_vm9 = vcmask 785408  }
  0xb0   : > { %v447_v59 = vld [vmem:[#allocation2 + $0xc] sm:$0x7]  ;;  %v578_v33 = vsel %vm1786_vm7, %v503_v55, 0  ;;  %v573_v22 = vsel %vm564_vm12, %v503_v55, 0  ;;  %v583_v35 = vsel %vm1788_vm8, %v503_v55, 0  ;;  %v654_v5 = vunpack.c.l.b16 %v503_v55  ;;  %vm1791_vm1 = vmmov %vm1790_vm4 }
  0xb1   : > { %v684_v62 = vunpack.c.l.b16 %v578_v33  ;;  %v668_v63 = vunpack.c.l.b16 %v573_v22  ;;  %v501_v0 = vsel %vm1787_vm3, %v447_v59, 0  ;;  %v600_v4 = vpack.c.b16 %v598_v20, %v598_v20  ;;  %vm1792_vm2 = vmmov %vm1791_vm1 }
  0xb2   : > { %v626_v36 = vunpack.c.l.b16 %v501_v0  ;;  %v721_v8 = vunpack.c.l.b16 %v583_v35  ;;  %v696_v1 = vpack.c.b16 %v654_v5, %v694_v61  ;;  %v539_v15 = vsel %vm536_vm11, %v503_v55, 0  ;;  %v1195_v0 = vld [vmem:[%s1718_s6 + $0x60] sm:$0xff]  ;;  %v1189_v35 = vld [vmem:[%s1718_s6 + $0x30] sm:$0xff]  ;;  %vm1793_vm7 = vmmov %vm1791_vm1 }
  0xb3   : > { %v686_v6 = vpack.c.b16 %v684_v62, %v683_v57  ;;  %v670_v7 = vpack.c.b16 %v668_v63, %v667_v58  ;;  %v610_v10 = vshll.u32 %v600_v4, 16  ;;  %v642_v37 = vunpack.c.l.b16 %v539_v15  ;;  %v1197_v62 = vld [vmem:[%s1718_s6 + $0x70] sm:$0xff]  ;;  %v1196_v63 = vld [vmem:[%s1718_s6 + $0x68] sm:$0xff]  ;;  %955 = vmatpush.bf16.msra.mxu1 %v1189_v35 }
  0xb4   : > { %v628_v9 = vpack.c.b16 %v626_v36, %v626_v36  ;;  %v723_v12 = vpack.c.b16 %v721_v8, %v720_v60  ;;  %v701_v19 = vshll.u32 %v696_v1, 16  ;;  %v1616_v39 = vpack.c.b16 %v654_v5, %v597_v30  ;;  %v1193_v36 = vld [vmem:[%s1718_s6 + $0x50] sm:$0xff]  ;;  %v1188_v5 = vld [vmem:[%s1718_s6 + $0x28] sm:$0xff]  ;;  %v1191_v8 = vld [vmem:[%s1718_s6 + $0x40] sm:$0xff]  ;;  %v716_v30 = vpop.permute.xlu2 %715 }
  0xb5   : > { %688 = vrot.lane.b32.xlu1 %v686_v6, %s1227_s15  ;;  %v673_v11 = vrot.slane %v670_v7, 7  ;;  %v612_v24 = vrot.slane %v610_v10, 1  ;;  %v614_v42 = vshrl.u32 %v600_v4, 16  ;;  %v699_v47 = vshrl.u32 %v696_v1, 16  ;;  %v1194_v4 = vld [vmem:[%s1718_s6 + $0x58] sm:$0xff]  ;;  %v1192_v6 = vld [vmem:[%s1718_s6 + $0x48] sm:$0xff]  ;;  %v691_v10 = vpop.permute.xlu1 %690 }
  0xb6   : > { %v631_v17 = vrot.slane %v628_v9, 1  ;;  %v725_v23 = vrot.slane %v723_v12, 1  ;;  %v703_v34 = vrot.slane %v701_v19, 1  ;;  %v641_v14 = vunpack.c.l.b16 %v538_v27  ;;  %v1187_v7 = vld [vmem:[%s1718_s6 + $0x20] sm:$0xff]  ;;  %v1186_v9 = vld [vmem:[%s1718_s6 + $0x18] sm:$0xff] }
  0xb7   : > { %676 = vrot.lane.b32.xlu0 %v673_v11, %s1229_s27  ;;  %v616_v41 = vor.u32 %v614_v42, %v612_v24  ;;  %v605_v26 = vshll.u32 %v599_v29, 16  ;;  %v644_v21 = vpack.c.b16 %v642_v37, %v642_v37  ;;  %v675_v53 = vsel %vm672_vm14, %v673_v11, %v674_v43  ;;  %956 = vmatpush.bf16.msra.mxu1 %v1188_v5  ;;  %v1183_v19 = vld [vmem:[%s1718_s6] sm:$0xff] }
  0xb8   : > { %v632_v31 = vsel %vm629_vm13, %v630_v16, %v631_v17  ;;  %v727_v40 = vsel %vm629_vm13, %v725_v23, %v1517_v28  ;;  %v704_v52 = vor.u32 %v703_v34, %v699_v47  ;;  %v643_v55 = vpack.c.b16 %v641_v14, %v640_v44  ;;  %v1184_v16 = vld [vmem:[%s1718_s6 + $0x8] sm:$0xff] }
  0xb9   : > { %633 = vrot.lane.b32.xlu2 %v632_v31, %s1227_s15  ;;  %v825_v45 = vshrl.u32 %v727_v40, 16  ;;  %v828_v46 = vshll.u32 %v727_v40, 16  ;;  %v647_v58 = vrot.slane %v644_v21, 2  ;;  %v607_v59 = vrot.slane %v605_v26, 1 }
  0xba   : > { %v709_v57 = vsel %vm601_vm5, %v704_v52, %v1337_v56  ;;  %vm645_vm12 = vcmask 1045504   ;;  %v646_v60 = vrot.slane %v643_v55, 2  ;;  %v603_v61 = vshrl.u32 %v599_v29, 16  ;;  %v1198_v56 = vld [vmem:[%s1718_s6 + $0x78] sm:$0xff] }
  0xbb   : > { %v827_v51 = vrot.slane %v825_v45, 1  ;;  %v830_v49 = vrot.slane %v828_v46, 2  ;;  %968 = vmatpush.bf16.msra.mxu2 %v1198_v56  ;;  %957 = vmatpush.bf16.msra.mxu1 %v1187_v7  ;;  %v657_v1 = vshrl.u32 %v1616_v39, 16  ;;  %v660_v11 = vshll.u32 %v1616_v39, 16 }
  0xbc   : > { %v648_v20 = vsel %vm645_vm12, %v646_v60, %v647_v58  ;;  %v608_v33 = vor.u32 %v607_v59, %v603_v61  ;;  %vm734_vm13 = vcmask 523264   ;;  %v590_v21 = vunpack.c.l.b16 %v445_v32 }
  0xbd   : > { %619 = vrot.lane.b32.xlu1 %v616_v41, %s1229_s27  ;;  %v831_v28 = vor.u32 %v830_v49, %v827_v51  ;;  %v659_v13 = vrot.slane %v657_v1, 6  ;;  %v662_v15 = vrot.slane %v660_v11, 7  ;;  %vm1010_vm6 = vcmask 130048  }
  0xbe   : > { %v613_v22 = vsel %vm601_vm5, %v608_v33, %v612_v24  ;;  %vm1014_vm3 = vcmask 195584   ;;  %vm1794_vm8 = vcmask 257024  }
  0xbf   : > { %678 = vrot.lane.b32.xlu0 %v675_v53, %s1229_s27  ;;  %v840_v48 = vsel %vm793_vm15, %v831_v28, %v839_v25  ;;  %969 = vmatpush.bf16.msra.mxu2 %v1197_v62  ;;  %v663_v18 = vor.u32 %v662_v15, %v659_v13  ;;  %v1180_v15 = vld [vmem:[%s1293_s10] sm:$0xff]  ;;  %vm1795_vm11 = vmmov %vm1794_vm8 }
  0xc0   : > { %1171 = vmatmul.msk.bf16.vlgmr.msra.gmra.mxu3 %vm1789_vm10, %v840_v48  ;;  %958 = vmatpush.bf16.msra.mxu1 %v1186_v9 }
  0xc1   : > { %713 = vrot.lane.b32.xlu2 %v709_v57, %s1228_s16  ;;  %v592_v57 = vpack.c.b16 %v590_v21, %v590_v21 }
  0xc3   : > { %970 = vmatpush.bf16.msra.mxu2 %v1196_v63 }
  0xc4   : > { %959 = vmatpush.bf16.msra.mxu1 %v1185_v2 }
  0xc5   : > { %649 = vrot.lane.b32.xlu1 %v648_v20, %s1228_s16 }
  0xc7   : > { %617 = vrot.lane.b32.xlu0 %v613_v22, %s1229_s27  ;;  %971 = vmatpush.bf16.msra.mxu2 %v1195_v0 }
  0xc8   : > { %960 = vmatpush.bf16.msra.mxu1 %v1184_v16 }
  0xc9   : > { %651 = vrot.lane.b32.xlu2 %v647_v58, %s1228_s16 }
  0xcb   : > { %972 = vmatpush.bf16.msra.mxu2 %v1194_v4 }
  0xcc   : > { %961 = vmatpush.bf16.msra.mxu1 %v1183_v19 }
  0xcf   : > { %635 = vrot.lane.b32.xlu0 %v631_v17, %s1227_s15  ;;  %973 = vmatpush.bf16.msra.mxu2 %v1193_v36 }
  0xd3   : > { %974 = vmatpush.bf16.msra.mxu2 %v1192_v6 }
  0xd7   : > { %975 = vmatpush.bf16.msra.mxu2 %v1191_v8 }
 0x113   : > { %v634_v12 = vpop.permute.xlu2 %633 }
 0x11b   : > { %v714_v29 = vpop.permute.xlu2 %713 }
 0x127   : > { %v689_v17 = vpop.permute.xlu1 %688 }
 0x129   : > { %v677_v23 = vpop.permute.xlu0 %676 }
 0x12a   : > { %v746_v24 = vsel %vm1790_vm4, %v663_v18, %v677_v23 }
 0x12b   : > { %v750_v27 = vsel %vm734_vm13, %v746_v24, %v689_v17 }
 0x12c   : > { %v754_v31 = vsel %vm739_vm9, %v750_v27, %v714_v29 }
 0x12d   : > { %v809_v34 = vshrl.u32 %v754_v31, 16  ;;  %v812_v37 = vshll.u32 %v754_v31, 16 }
 0x12f   : > { %v620_v40 = vpop.permute.xlu1 %619  ;;  %v811_v47 = vrot.slane %v809_v34, 1  ;;  %v814_v14 = vrot.slane %v812_v37, 2 }
 0x130   : > { %v733_v60 = vsel %vm1793_vm7, %v592_v57, %v620_v40 }
 0x131   : > { %v679_v39 = vpop.permute.xlu0 %678  ;;  %v815_v51 = vor.u32 %v814_v14, %v811_v47 }
 0x132   : > { %v748_v42 = vsel %vm1791_vm1, %v663_v18, %v679_v39 }
 0x133   : > { %v752_v43 = vsel %vm734_vm13, %v748_v42, %v691_v10 }
 0x134   : > { %v756_v44 = vsel %vm739_vm9, %v752_v43, %v716_v30 }
 0x135   : > { %v816_v45 = vshrl.u32 %v756_v44, 16  ;;  %v819_v46 = vshll.u32 %v756_v44, 16 }
 0x137   : > { %v818_v41 = vrot.slane %v816_v45, 1  ;;  %v821_v25 = vrot.slane %v819_v46, 2  ;;  %v650_v55 = vpop.permute.xlu1 %649 }
 0x139   : > { %v618_v26 = vpop.permute.xlu0 %617  ;;  %v822_v49 = vor.u32 %v821_v25, %v818_v41 }
 0x13a   : > { %v730_v52 = vsel %vm1792_vm2, %v1560_v50, %v618_v26  ;;  %v652_v50 = vpop.permute.xlu2 %651 }
 0x13b   : > { %v736_v28 = vsel %vm734_vm13, %v730_v52, %v634_v12  ;;  %v823_v53 = vsel %vm793_vm15, %v815_v51, %v822_v49 }
 0x13c   : > { %976 = vmatmul.bf16.vlgmr.msra.gmra.mxu2 %v823_v53  ;;  %v741_v48 = vsel %vm739_vm9, %v736_v28, %v650_v55 }
 0x13d   : > { %v794_v58 = vshrl.u32 %v741_v48, 16  ;;  %v797_v59 = vshll.u32 %v741_v48, 16 }
 0x13f   : > { %v796_v33 = vrot.slane %v794_v58, 1  ;;  %v799_v22 = vrot.slane %v797_v59, 2 }
 0x141   : > { %v636_v61 = vpop.permute.xlu0 %635  ;;  %v800_v63 = vor.u32 %v799_v22, %v796_v33 }
 0x142   : > { %v738_v38 = vsel %vm734_vm13, %v733_v60, %v636_v61 }
 0x143   : > { %v743_v54 = vsel %vm739_vm9, %v738_v38, %v652_v50  ;;  %v991_v35 = vpop.f32.mrf.mxu3 }
 0x144   : > { %v801_v32 = vshrl.u32 %v743_v54, 16  ;;  %v804_v20 = vshll.u32 %v743_v54, 16 }
 0x146   : > { %v803_v56 = vrot.slane %v801_v32, 1  ;;  %v806_v62 = vrot.slane %v804_v20, 2 }
 0x148   : > { %v807_v0 = vor.u32 %v806_v62, %v803_v56 }
 0x14a   : > { %v808_v3 = vsel %vm793_vm15, %v800_v63, %v807_v0 }
 0x14b   : > { %962 = vmatmul.bf16.vlgmr.msra.gmra.mxu1 %v808_v3  ;;  %v993_v9 = vpop.f32.mrf.mxu3 }
 0x1bf   : > { %v977_v4 = vpop.f32.mrf.mxu2 }
 0x1c7   : > { %v979_v7 = vpop.f32.mrf.mxu2 }
 0x1c8   : > { %v963_v36 = vpop.f32.mrf.mxu1 }
 0x1c9   : > { %v978_v5 = vadd.f32 %v977_v4, %v963_v36 }
 0x1cb   : > { %v992_v6 = vadd.f32 %v991_v35, %v978_v5 }
 0x1cd   : > { %v996_v10 = vpack.c.bf16 %v992_v6, %v992_v6 }
 0x1cf   : > { %v1005_v11 = vunpack.c.l.b16 %v996_v10 }
 0x1d0   : > { %v965_v8 = vpop.f32.mrf.mxu1 }
 0x1d1   : > { %v980_v30 = vadd.f32 %v979_v7, %v965_v8 }
 0x1d3   : > { %v994_v2 = vadd.f32 %v993_v9, %v980_v30 }
 0x1d5   : > { %v997_v1 = vpack.c.bf16 %v994_v2, %v994_v2 }
 0x1d7   : > { %v1006_v12 = vunpack.c.l.b16 %v997_v1 }
 0x1d9   : > { %v1007_v13 = vpack.c.b16 %v1006_v12, %v1005_v11 }
 0x1db   : > { %1008 = vrot.lane.b32.xlu0 %v1007_v13, %s1230_s20 }
 0x24d   : > { %v1009_v16 = vpop.permute.xlu0 %1008 }
 0x24e   : > { %v1013_v17 = vsel %vm1010_vm6, %v1180_v15, %v1009_v16 }
 0x24f   : > { %v1016_v18 = vsel %vm1014_vm3, %v1013_v17, 0 }
 0x250   : > { %v1018_v19 = vunpack.c.l.b16 %v1016_v18  ;;  %v1019_v23 = vunpack.c.h.b16 %v1016_v18 }
 0x252   : > { %v1020_v24 = vpack.c.b16 %v1018_v19, %v1018_v19  ;;  %v1021_v27 = vpack.c.b16 %v1019_v23, %v1019_v23 }
 0x254   : > { %1024 = vst.msk [vmem:[%s278_s23] sm:$0xf] %vm1794_vm8, %v1020_v24 }
 0x255   : > { %1025 = vst.msk [vmem:[%s278_s23 + $0x4] sm:$0xf] %vm1795_vm11, %v1021_v27 }
 0x256 PF: > { %s17_s24 = sadd.s32 1, %s1224_s24  }
 0x257   : > { %p14_p4 = scmp.ge.s32.totalorder %s17_s24, 4  }
 0x259   :  { %16 = sbr.rel (!%p14_p4) target bundleno = 1 (0x1), region = 78 }

// kernel: densenet_finetune_forward.14
= control target key start
LH: loop header
LB: loop body
LE: loop exit
PB: predicated region body
PF: predicated region fallthrough
CT: control target
= control target key end

     0   :  { %s1268_s24 = smov 0   ;;  %s1709_s0 = inlined_call_operand.vmem [shape: bf16[2,16,32], index: 0, kind: input, shape index: {}, may-alias: {0,7}]   ;;  %s1710_s1 = inlined_call_operand.vmem [shape: bf16[32,32], index: 1, kind: input, shape index: {}]   ;;  %s1711_s2 = inlined_call_operand.vmem [shape: f32[1,32], index: 2, kind: input, shape index: {}]   ;;  %s1712_s3 = inlined_call_operand.vmem [shape: f32[1,32], index: 3, kind: input, shape index: {}]   ;;  %s1713_s4 = inlined_call_operand.vmem [shape: f32[1,32], index: 4, kind: input, shape index: {}]   ;;  %s1714_s5 = inlined_call_operand.vmem [shape: f32[1,32], index: 5, kind: input, shape index: {}]   ;;  %s1715_s6 = inlined_call_operand.vmem [shape: bf16[288,8], index: 6, kind: input, shape index: {}]   ;;  %s1716_s7 = inlined_call_operand.vmem [shape: bf16[2,16,32], index: 7, kind: output, shape index: {}, may-alias: {0,7}]  }
   0x1 LB: > { %s1078_s25 = sadd.s32 4294967295, %s1221_s24   ;;  %p1082_p0 = scmp.ge.s32.totalorder %s1221_s24, 1  ;;  %s1221_s24 = sphi %s1268_s24, %s17_s24  }
   0x2   : > { %p237_p1 = scmp.lt.s32.totalorder %s1221_s24, 3 }
   0x4   : > { %p238_p2 = pnand %p1082_p0, %p237_p1 }
   0x5   : > { %p269_p3 = scmp.lt.s32.totalorder (!%p238_p2), %s1078_s25, 1  ;;  %s1224_s15 = smov (!%p238_p2), 64  }
   0x6   : > { %241 = sbr.rel (%p238_p2) target bundleno = 597 (0x255), region = 48  ;;  %s1225_s16 = smov (!%p238_p2), 96  }
   0x7   : > { %s1226_s27 = smov (!%p238_p2), 32   ;;  %s1227_s20 = smov (!%p238_p2), 24  }
   0xb   : > { %v1179_v0 = vld [vmem:[%s1710_s1 + $0x8] sm:$0xff]  ;;  %v1178_v1 = vld [vmem:[%s1710_s1] sm:$0xff]  ;;  %s1794_s25 = smov (!%p269_p3, %s1078_s25), 1  ;;  %vm1717_vm0 = vcmask 261120   ;;  %v358_v14 = vlaneseq  ;;  %v1223_v19 = vmov 0   ;;  %vm1718_vm4 = vcmask 257024  }
   0xc   : > { %327 = vmatpush.bf16.msra.mxu0 %v1179_v0  ;;  %s1175_s30 = sshll.u32 %s1794_s25, 3  ;;  %v1211_v2 = vld [vmem:[%s1711_s2] ss:$0 sm:$0xff]  ;;  %353 = vst.msk [vmem:[#allocation2 + $0x4] sm:$0xf] %vm1718_vm4, %v1223_v19  ;;  %v1316_v32 = vunpack.c.l.b16 %v1223_v19  ;;  %v1318_v33 = vunpack.c.h.b16 %v1223_v19  ;;  %v1728_v38 = vmov 0 }
   0xd   : > { %s1290_s10 = scalar_lea.vmem %s1709_s0, %s1175_s30  ;;  %v1212_v6 = vld [vmem:[%s1712_s3] ss:$0 sm:$0xff]  ;;  %v359_v15 = vshrl.u32 %v358_v14, 7  ;;  %354 = vst.msk [vmem:[#allocation2 + $0x10] sm:$0xf] %vm1718_vm4, %v1223_v19  ;;  %v1736_v30 = vmov 0  ;;  %s278_s23 = scalar_lea.vmem %s1716_s7, %s1175_s30 }
   0xe   : > { %v282_v3 = vld [vmem:[%s1290_s10] sm:$0xff]   ;;  %vm400_vm13 = vsmask.f32 1280  ;;  %vm401_vm14 = vsmask.f32 5392 }
   0xf   : > { %v284_v4 = vunpack.c.l.bf16 %v282_v3  ;;  %v285_v5 = vunpack.c.h.bf16 %v282_v3  ;;  %v360_v16 = vadd.s32 8, %v359_v15  ;;  %v365_v17 = vand.u32 3, %v359_v15  ;;  %vm402_vm15 = vmor %vm400_vm13, %vm401_vm14  ;;  %v1213_v63 = vld [vmem:[%s1713_s4] ss:$0 sm:$0xff] }
  0x10   : > { %328 = vmatpush.bf16.msra.mxu0 %v1178_v1  ;;  %v1344_v3 = vld [vmem:[%s1714_s5] ss:$0 sm:$0xff] }
  0x11   : > { %v290_v7 = vmul.f32 %v1211_v2, %v284_v4  ;;  %v291_v8 = vmul.f32 %v1211_v2, %v285_v5  ;;  %v372_v18 = vand.u32 3, %v360_v16  ;;  %vm385_vm3 = vcmp.ge.s32.totalorder %v365_v17, 1 }
  0x12   : > { %vm396_vm5 = vmpackc.low %vm385_vm3, %vm385_vm3  ;;  %vm1310_vm8 = vcmp.le.s32.totalorder %v365_v17, 2  ;;  %vm541_vm3 = vsmask.f32 256 }
  0x13   : > { %v296_v9 = vadd.f32 %v1212_v6, %v290_v7  ;;  %v297_v10 = vadd.f32 %v1212_v6, %v291_v8  ;;  %vm386_vm1 = vcmp.ge.s32.totalorder %v372_v18, 1  ;;  %vm388_vm6 = vcmp.le.s32.totalorder %v372_v18, 2  ;;  %vm452_vm11 = vmpackc.low %vm1310_vm8, %vm1310_vm8 }
  0x14   : > { %vm397_vm2 = vmpackc.low %vm386_vm1, %vm386_vm1  ;;  %v398_v26 = vsel %vm396_vm5, 65537, %v1223_v19  ;;  %v576_v39 = vld [vmem:[#allocation2 + $0x10] sm:$0x3]  ;;  %v454_v45 = vsel %vm452_vm11, 65537, %v1223_v19  ;;  %vm456_vm1 = vsmask.f32 2304 }
  0x15   : > { %v298_v11 = vmax.f32 %v296_v9, 0.0  ;;  %v299_v12 = vmax.f32 %v297_v10, 0.0  ;;  %v1300_v20 = vsel %vm397_vm2, 65537, %v1223_v19  ;;  %vm453_vm7 = vmpackc.low %vm388_vm6, %vm388_vm6  ;;  %v404_v28 = vshrl.u32 %v398_v26, 16  ;;  %v1197_v10 = vld [vmem:[%s1715_s6 + $0x88] sm:$0xff] }
  0x16   : > { %v413_v21 = vshrl.u32 %v1300_v20, 16  ;;  %v416_v22 = vshll.u32 %v1300_v20, 16  ;;  %v407_v29 = vshll.u32 %v398_v26, 16  ;;  %v1314_v31 = vsel %vm453_vm7, 65537, %v1223_v19  ;;  %988 = vmatpush.bf16.msra.mxu3 %v1197_v10 }
  0x17   : > { %v300_v13 = vpack.c.bf16 %v299_v12, %v298_v11  ;;  %v469_v36 = vshrl.u32 %v1314_v31, 16  ;;  %v472_v37 = vshll.u32 %v1314_v31, 16  ;;  %v406_v40 = vrot.slane %v404_v28, 6  ;;  %v581_v31 = vld [vmem:[#allocation2 + $0x10] sm:$0x7] }
  0x18   : > { %v415_v23 = vrot.slane %v413_v21, 6  ;;  %v418_v24 = vrot.slane %v416_v22, 7  ;;  %v409_v41 = vrot.slane %v407_v29, 7  ;;  %v695_v43 = vunpack.c.l.b16 %v576_v39 }
  0x19   : > { %1095 = vmatmul.msk.bf16.vlgmr.msra.gmra.mxu0 %vm1717_vm0, %v300_v13  ;;  %v471_v46 = vrot.slane %v469_v36, 5  ;;  %v474_v47 = vrot.slane %v472_v37, 6  ;;  %v460_v53 = vshrl.u32 %v454_v45, 16  ;;  %v463_v54 = vshll.u32 %v454_v45, 16 }
  0x1a   : > { %v419_v25 = vor.u32 %v418_v24, %v415_v23  ;;  %v697_v48 = vpack.c.b16 %v695_v43, %v695_v43  ;;  %v410_v50 = vor.u32 %v409_v41, %v406_v40  ;;  %v508_v4 = vrot.slane %v404_v28, 4 }
  0x1b   : > { %v475_v55 = vor.u32 %v474_v47, %v471_v46  ;;  %v462_v60 = vrot.slane %v460_v53, 5  ;;  %v465_v61 = vrot.slane %v463_v54, 6  ;;  %v544_v62 = vrot.slane %v460_v53, 7 }
  0x1c   : > { %v421_v27 = vrot.slane %v419_v25, 4  ;;  %v706_v51 = vshll.u32 %v697_v48, 16  ;;  %v710_v52 = vshrl.u32 %v697_v48, 16  ;;  %v411_v57 = vrot.slane %v410_v50, 4 }
  0x1d   : > { %v477_v58 = vrot.slane %v475_v55, 4  ;;  %v466_v5 = vor.u32 %v465_v61, %v462_v60  ;;  %v547_v6 = vrot.slane %v469_v36, 7  ;;  %v1346_v7 = vrot.slane %v407_v29, 5 }
  0x1e   : > { %v436_v34 = vunpack.c.l.b16 %v421_v27  ;;  %v437_v35 = vunpack.c.h.b16 %v421_v27  ;;  %v1334_v56 = vrot.slane %v706_v51, 1  ;;  %v420_v0 = vsel %vm402_vm15, %v411_v57, %v419_v25 }
  0x1f   : > { %v492_v1 = vunpack.c.l.b16 %v477_v58  ;;  %v493_v2 = vunpack.c.h.b16 %v477_v58  ;;  %v422_v8 = vunpack.c.l.b16 %v410_v50  ;;  %v1348_v9 = vor.u32 %v544_v62, %v463_v54 }
  0x20   : > { %vm440_vm9 = vcmp.ne.s32.totalorder %v436_v34, %v1316_v32  ;;  %vm441_vm10 = vcmp.ne.s32.totalorder %v437_v35, %v1318_v33  ;;  %v712_v59 = vor.u32 %v710_v52, %v1334_v56  ;;  %vm457_vm2 = vsmask.f32 6416  ;;  %v389_v52 = vld [vmem:[#allocation2 + $0x4] sm:$0xe] }
  0x21   : > { %vm1327_vm12 = vmpackc.low %vm441_vm10, %vm440_vm9  ;;  %v423_v12 = vunpack.c.h.b16 %v410_v50  ;;  %v429_v13 = vunpack.c.l.b16 %v420_v0  ;;  %vm542_vm5 = vsmask.f32 4368  ;;  %v430_v15 = vunpack.c.h.b16 %v420_v0 }
  0x22   : > { %v1729_v38 = vsel %vm1327_vm12, 4294967295, %v1728_v38  ;;  %v579_v42 = vsel %vm1327_vm12, %v576_v39, 0  ;;  %715 = vrot.lane.b32.xlu2 %v712_v59, %s1225_s16  ;;  %vm496_vm6 = vcmp.ne.s32.totalorder %v492_v1, %v1316_v32  ;;  %vm497_vm7 = vcmp.ne.s32.totalorder %v493_v2, %v1318_v33  ;;  %vm1355_vm8 = vmor %vm456_vm1, %vm457_vm2  ;;  %v1196_v39 = vld [vmem:[%s1715_s6 + $0x80] sm:$0xff] }
  0x23   : > { %v685_v44 = vunpack.c.l.b16 %v579_v42  ;;  %v546_v16 = vrot.slane %v544_v62, 4  ;;  %v548_v17 = vor.u32 %v547_v6, %v472_v37  ;;  %v467_v19 = vrot.slane %v466_v5, 4  ;;  %vm543_vm10 = vmor %vm541_vm3, %vm542_vm5  ;;  %989 = vmatpush.bf16.msra.mxu3 %v1196_v39 }
  0x24   : > { %v550_v23 = vrot.slane %v547_v6, 4  ;;  %vm1361_vm9 = vcmp.ne.s32.totalorder %v422_v8, %v1316_v32  ;;  %v1732_v25 = vmov 0  ;;  %vm1366_vm11 = vcmp.ne.s32.totalorder %v423_v12, %v1318_v33  ;;  %vm1371_vm13 = vmpackc.low %vm497_vm7, %vm496_vm6 }
  0x25   : > { %v687_v49 = vpack.c.b16 %v685_v44, %v685_v44  ;;  %v1733_v25 = vsel %vm1361_vm9, 4294967295, %v1732_v25  ;;  %v1734_v26 = vmov 0  ;;  %v551_v27 = vunpack.c.l.b16 %v1348_v9  ;;  %vm1719_vm6 = vmpackc.low %vm1366_vm11, %vm1361_vm9 }
  0x26   : > { %v1735_v26 = vsel %vm1366_vm11, 4294967295, %v1734_v26  ;;  %v478_v28 = vunpack.c.l.b16 %v466_v5  ;;  %v479_v29 = vunpack.c.h.b16 %v466_v5  ;;  %v1737_v30 = vsel %vm1371_vm13, 4294967295, %v1736_v30  ;;  %v1457_v5 = vld [vmem:[#allocation2 + $0x4] sm:$0xc] }
  0x27   : > { %690 = vrot.lane.b32.xlu1 %v687_v49, %s1224_s15  ;;  %vm1376_vm14 = vcmp.ne.s32.totalorder %v429_v13, %v1316_v32  ;;  %vm1381_vm15 = vcmp.ne.s32.totalorder %v430_v15, %v1318_v33  ;;  %v552_v37 = vunpack.c.h.b16 %v1348_v9  ;;  %v549_v40 = vsel %vm543_vm10, %v546_v16, %v548_v17  ;;  %v502_v15 = vld [vmem:[#allocation2 + $0x4] sm:$0x8] }
  0x28   : > { %v476_v41 = vsel %vm1355_vm8, %v467_v19, %v475_v55  ;;  %v565_v42 = vunpack.c.l.b16 %v550_v23  ;;  %v509_v43 = vor.u32 %v508_v4, %v1346_v7  ;;  %v584_v45 = vsel %vm1371_vm13, %v581_v31, 0 }
  0x29   : > { %v566_v46 = vunpack.c.h.b16 %v550_v23  ;;  %v513_v47 = vrot.slane %v413_v21, 4  ;;  %vm1397_vm1 = vcmp.ne.s32.totalorder %v478_v28, %v1316_v32  ;;  %vm1402_vm2 = vcmp.ne.s32.totalorder %v479_v29, %v1318_v33 }
  0x2a   : > { %vm504_vm3 = vsmask.f32 3328  ;;  %vm505_vm5 = vsmask.f32 7440  ;;  %v485_v21 = vunpack.c.l.b16 %v476_v41  ;;  %v486_v53 = vunpack.c.h.b16 %v476_v41 }
  0x2b   : > { %v511_v54 = vrot.slane %v416_v22, 5  ;;  %v722_v55 = vunpack.c.l.b16 %v584_v45  ;;  %v510_v57 = vrot.slane %v509_v43, 4  ;;  %v516_v58 = vunpack.c.l.b16 %v1346_v7  ;;  %vm1420_vm10 = vmor %vm504_vm3, %vm505_vm5 }
  0x2c   : > { %v517_v59 = vunpack.c.h.b16 %v1346_v7  ;;  %vm569_vm7 = vcmp.ne.s32.totalorder %v565_v42, %v1316_v32  ;;  %vm570_vm8 = vcmp.ne.s32.totalorder %v566_v46, %v1318_v33  ;;  %v443_v22 = vsel %vm1719_vm6, %v389_v52, 0  ;;  %v540_v7 = vld [vmem:[#allocation2 + $0x10] sm:$0x1] }
  0x2d   : > { %v514_v20 = vor.u32 %v513_v47, %v511_v54  ;;  %v558_v0 = vunpack.c.l.b16 %v549_v40  ;;  %vm1443_vm5 = vcmp.ne.s32.totalorder %v485_v21, %v1316_v32  ;;  %vm1448_vm0 = vcmp.ne.s32.totalorder %v486_v53, %v1318_v33  ;;  %vm1463_vm3 = vmpackc.low %vm570_vm8, %vm569_vm7 }
  0x2e   : > { %vm1453_vm6 = vcmp.ne.s32.totalorder %v552_v37, %v1318_v33  ;;  %v559_v4 = vunpack.c.h.b16 %v549_v40  ;;  %v724_v6 = vpack.c.b16 %v722_v55, %v722_v55  ;;  %v512_v9 = vsel %vm1420_vm10, %v510_v57, %v511_v54  ;;  %vm1725_vm7 = vmpackc.low %vm1448_vm0, %vm1443_vm5 }
  0x2f   : > { %vm1470_vm13 = vcmp.ne.s32.totalorder %v516_v58, %v1316_v32  ;;  %vm1475_vm12 = vcmp.ne.s32.totalorder %v517_v59, %v1318_v33  ;;  %vm1762_vm8 = vcmask 257024   ;;  %vm1763_vm10 = vmpackc.low %vm1381_vm15, %vm1376_vm14  ;;  %vm1497_vm11 = vcmp.ne.s32.totalorder %v558_v0, %v1316_v32 }
  0x30   : > { %v574_v19 = vsel %vm1463_vm3, %v540_v7, 0  ;;  %v1514_v28 = vrot.slane %v724_v6, 1  ;;  %vm522_vm9 = vmpackc.low %vm1475_vm12, %vm1470_vm13  ;;  %v523_v29 = vunpack.c.l.b16 %v512_v9  ;;  %v588_v31 = vunpack.c.l.b16 %v443_v22 }
  0x31   : > { %v524_v37 = vunpack.c.h.b16 %v512_v9  ;;  %v596_v41 = vunpack.c.l.b16 %v1457_v5  ;;  %v1527_v43 = vunpack.c.l.b16 %v574_v19  ;;  %vm1769_vm12 = vnez %v1735_v26 }
  0x32   : > { %vm1770_vm13 = vnez %v1733_v25  ;;  %v833_v26 = vshrl.u32 %v1514_v28, 16  ;;  %v836_v49 = vshll.u32 %v1514_v28, 16 }
  0x33   : > { %vm1771_vm3 = vmpackc.low %vm1769_vm12, %vm1770_vm13  ;;  %vm629_vm13 = vcmask 1046528   ;;  %v671_v2 = vpack.c.b16 %v1527_v43, %v1527_v43 }
  0x34   : > { %v835_v13 = vrot.slane %v833_v26, 1 }
  0x35   : > { %v674_v43 = vrot.slane %v671_v2, 7  ;;  %v1182_v2 = vld [vmem:[%s1715_s6 + $0x10] sm:$0xff] }
  0x96   : > { %v330_v11 = vpop.f32.mrf.mxu0 }
  0x97   : > { %v339_v14 = vmul.f32 %v1213_v63, %v330_v11  ;;  %v515_v11 = vrot.slane %v514_v20, 4 }
  0x99   : > { %v345_v24 = vadd.f32 %v1344_v3, %v339_v14  ;;  %v530_v39 = vunpack.c.l.b16 %v515_v11  ;;  %v531_v40 = vunpack.c.h.b16 %v515_v11 }
  0x9b   : > { %v347_v34 = vmax.f32 %v345_v24, 0.0 }
  0x9d   : > { %v349_v44 = vpack.c.bf16 %v347_v34, %v347_v34 }
  0x9e   : > { %v332_v48 = vpop.f32.mrf.mxu0 }
  0x9f   : > { %356 = vst.msk [vmem:[#allocation2 + $0x8] sm:$0xf] %vm1718_vm4, %v349_v44  ;;  %v340_v51 = vmul.f32 %v1213_v63, %v332_v48  ;;  %vm1434_vm4 = vcmp.ne.s32.totalorder %v551_v27, %v1316_v32  ;;  %v1545_v48 = vsel %vm522_vm9, %v502_v15, 0  ;;  %vm1561_vm9 = vcmp.ne.s32.totalorder %v524_v37, %v1318_v33 }
  0xa1   : > { %v346_v60 = vadd.f32 %v1344_v3, %v340_v51 }
  0xa3   : > { %v348_v63 = vmax.f32 %v346_v60, 0.0 }
  0xa5   : > { %v350_v10 = vpack.c.bf16 %v348_v63, %v348_v63 }
  0xa6   : > { %v1479_v14 = vld [vmem:[#allocation2 + $0x8] sm:$0xf] }
  0xa7   : > { %357 = vst.msk [vmem:[#allocation2 + $0xc] sm:$0xf] %vm1762_vm8, %v350_v10  ;;  %v444_v16 = vsel %vm1763_vm10, %v1479_v14, 0  ;;  %vm1766_vm8 = vmpackc.low %vm1402_vm2, %vm1397_vm1  ;;  %v575_v23 = vld [vmem:[#allocation2 + $0x8] sm:$0xe]  ;;  %vm1510_vm10 = vcmp.ne.s32.totalorder %v559_v4, %v1318_v33  ;;  %v500_v34 = vsel %vm1725_vm7, %v1479_v14, 0 }
  0xa8   : > { %v499_v18 = vsel %vm1766_vm8, %v1457_v5, 0  ;;  %v580_v27 = vld [vmem:[#allocation2 + $0x8] sm:$0xc]  ;;  %v589_v44 = vunpack.c.l.b16 %v444_v16  ;;  %v577_v45 = vsel %vm1771_vm3, %v575_v23, 0  ;;  %vm1772_vm8 = vmpackc.low %vm1453_vm6, %vm1434_vm4  ;;  %v625_v25 = vunpack.c.l.b16 %v500_v34 }
  0xa9   : > { %v624_v42 = vunpack.c.l.b16 %v499_v18  ;;  %v572_v46 = vsel %vm1772_vm8, %v1479_v14, 0  ;;  %vm1773_vm7 = vmpackc.low %vm1402_vm2, %vm1397_vm1  ;;  %vm1553_vm4 = vcmp.ne.s32.totalorder %v523_v29, %v1316_v32  ;;  %vm1566_vm1 = vcmp.ne.s32.totalorder %v530_v39, %v1316_v32 }
  0xaa   : > { %v582_v47 = vsel %vm1773_vm7, %v580_v27, 0  ;;  %vm564_vm12 = vmpackc.low %vm1510_vm10, %vm1497_vm11  ;;  %v1557_v50 = vpack.c.b16 %v589_v44, %v588_v31  ;;  %vm1571_vm2 = vcmp.ne.s32.totalorder %v531_v40, %v1318_v33  ;;  %v683_v57 = vunpack.c.l.b16 %v577_v45 }
  0xab   : > { %v667_v58 = vunpack.c.l.b16 %v572_v46  ;;  %v720_v60 = vunpack.c.l.b16 %v582_v47  ;;  %v694_v61 = vunpack.c.l.b16 %v580_v27  ;;  %vm1782_vm6 = vnez %v1729_v38  ;;  %vm1783_vm7 = vmpackc.low %vm1381_vm15, %vm1376_vm14 }
  0xac   : > { %vm1784_vm3 = vnez %v1737_v30  ;;  %v627_v3 = vpack.c.b16 %v625_v25, %v624_v42  ;;  %vm1785_vm8 = vmpackc.low %vm1448_vm0, %vm1443_vm5  ;;  %v597_v30 = vunpack.c.l.b16 %v1479_v14  ;;  %v838_v18 = vrot.slane %v836_v49, 2 }
  0xad   : > { %vm536_vm11 = vmpackc.low %vm1571_vm2, %vm1566_vm1  ;;  %v640_v44 = vunpack.c.l.b16 %v1545_v48  ;;  %vm672_vm14 = vcmask 1040384   ;;  %vm793_vm15 = vsmask.f32 6400  ;;  %vm601_vm5 = vsmask.f32 7424 }
  0xae   : > { %v1575_v54 = vld [vmem:[#allocation2 + $0xc] sm:$0x3]  ;;  %vm529_vm0 = vmpackc.low %vm1561_vm9, %vm1553_vm4  ;;  %v630_v16 = vrot.slane %v627_v3, 1  ;;  %v599_v29 = vpack.c.b16 %v597_v30, %v596_v41  ;;  %v839_v25 = vor.u32 %v838_v18, %v835_v13  ;;  %vm1786_vm10 = vcmask 261120   ;;  %v1187_v3 = vld [vmem:[%s1715_s6 + $0x38] sm:$0xff] }
  0xaf   : > { %v503_v55 = vld [vmem:[#allocation2 + $0xc] sm:$0xf]  ;;  %v445_v32 = vsel %vm1782_vm6, %v1575_v54, 0  ;;  %v598_v20 = vunpack.c.l.b16 %v1575_v54  ;;  %v538_v27 = vsel %vm529_vm0, %v1479_v14, 0  ;;  %954 = vmatpush.bf16.msra.mxu1 %v1187_v3  ;;  %vm1787_vm4 = vmmov %vm1786_vm10  ;;  %vm739_vm9 = vcmask 785408  }
  0xb0   : > { %v447_v59 = vld [vmem:[#allocation2 + $0xc] sm:$0x7]  ;;  %v578_v33 = vsel %vm1783_vm7, %v503_v55, 0  ;;  %v573_v22 = vsel %vm564_vm12, %v503_v55, 0  ;;  %v583_v35 = vsel %vm1785_vm8, %v503_v55, 0  ;;  %v654_v5 = vunpack.c.l.b16 %v503_v55  ;;  %vm1788_vm1 = vmmov %vm1787_vm4 }
  0xb1   : > { %v684_v62 = vunpack.c.l.b16 %v578_v33  ;;  %v668_v63 = vunpack.c.l.b16 %v573_v22  ;;  %v501_v0 = vsel %vm1784_vm3, %v447_v59, 0  ;;  %v600_v4 = vpack.c.b16 %v598_v20, %v598_v20  ;;  %vm1789_vm2 = vmmov %vm1788_vm1 }
  0xb2   : > { %v626_v36 = vunpack.c.l.b16 %v501_v0  ;;  %v721_v8 = vunpack.c.l.b16 %v583_v35  ;;  %v696_v1 = vpack.c.b16 %v654_v5, %v694_v61  ;;  %v539_v15 = vsel %vm536_vm11, %v503_v55, 0  ;;  %v1192_v0 = vld [vmem:[%s1715_s6 + $0x60] sm:$0xff]  ;;  %v1186_v35 = vld [vmem:[%s1715_s6 + $0x30] sm:$0xff]  ;;  %vm1790_vm7 = vmmov %vm1788_vm1 }
  0xb3   : > { %v686_v6 = vpack.c.b16 %v684_v62, %v683_v57  ;;  %v670_v7 = vpack.c.b16 %v668_v63, %v667_v58  ;;  %v610_v10 = vshll.u32 %v600_v4, 16  ;;  %v642_v37 = vunpack.c.l.b16 %v539_v15  ;;  %v1194_v62 = vld [vmem:[%s1715_s6 + $0x70] sm:$0xff]  ;;  %v1193_v63 = vld [vmem:[%s1715_s6 + $0x68] sm:$0xff]  ;;  %955 = vmatpush.bf16.msra.mxu1 %v1186_v35 }
  0xb4   : > { %v628_v9 = vpack.c.b16 %v626_v36, %v626_v36  ;;  %v723_v12 = vpack.c.b16 %v721_v8, %v720_v60  ;;  %v701_v19 = vshll.u32 %v696_v1, 16  ;;  %v1613_v39 = vpack.c.b16 %v654_v5, %v597_v30  ;;  %v1190_v36 = vld [vmem:[%s1715_s6 + $0x50] sm:$0xff]  ;;  %v1185_v5 = vld [vmem:[%s1715_s6 + $0x28] sm:$0xff]  ;;  %v1188_v8 = vld [vmem:[%s1715_s6 + $0x40] sm:$0xff]  ;;  %v716_v30 = vpop.permute.xlu2 %715 }
  0xb5   : > { %688 = vrot.lane.b32.xlu1 %v686_v6, %s1224_s15  ;;  %v673_v11 = vrot.slane %v670_v7, 7  ;;  %v612_v24 = vrot.slane %v610_v10, 1  ;;  %v614_v42 = vshrl.u32 %v600_v4, 16  ;;  %v699_v47 = vshrl.u32 %v696_v1, 16  ;;  %v1191_v4 = vld [vmem:[%s1715_s6 + $0x58] sm:$0xff]  ;;  %v1189_v6 = vld [vmem:[%s1715_s6 + $0x48] sm:$0xff]  ;;  %v691_v10 = vpop.permute.xlu1 %690 }
  0xb6   : > { %v631_v17 = vrot.slane %v628_v9, 1  ;;  %v725_v23 = vrot.slane %v723_v12, 1  ;;  %v703_v34 = vrot.slane %v701_v19, 1  ;;  %v641_v14 = vunpack.c.l.b16 %v538_v27  ;;  %v1184_v7 = vld [vmem:[%s1715_s6 + $0x20] sm:$0xff]  ;;  %v1183_v9 = vld [vmem:[%s1715_s6 + $0x18] sm:$0xff] }
  0xb7   : > { %676 = vrot.lane.b32.xlu0 %v673_v11, %s1226_s27  ;;  %v616_v41 = vor.u32 %v614_v42, %v612_v24  ;;  %v605_v26 = vshll.u32 %v599_v29, 16  ;;  %v644_v21 = vpack.c.b16 %v642_v37, %v642_v37  ;;  %v675_v53 = vsel %vm672_vm14, %v673_v11, %v674_v43  ;;  %956 = vmatpush.bf16.msra.mxu1 %v1185_v5  ;;  %v1180_v19 = vld [vmem:[%s1715_s6] sm:$0xff] }
  0xb8   : > { %v632_v31 = vsel %vm629_vm13, %v630_v16, %v631_v17  ;;  %v727_v40 = vsel %vm629_vm13, %v725_v23, %v1514_v28  ;;  %v704_v52 = vor.u32 %v703_v34, %v699_v47  ;;  %v643_v55 = vpack.c.b16 %v641_v14, %v640_v44  ;;  %v1181_v16 = vld [vmem:[%s1715_s6 + $0x8] sm:$0xff] }
  0xb9   : > { %633 = vrot.lane.b32.xlu2 %v632_v31, %s1224_s15  ;;  %v825_v45 = vshrl.u32 %v727_v40, 16  ;;  %v828_v46 = vshll.u32 %v727_v40, 16  ;;  %v647_v58 = vrot.slane %v644_v21, 2  ;;  %v607_v59 = vrot.slane %v605_v26, 1 }
  0xba   : > { %v709_v57 = vsel %vm601_vm5, %v704_v52, %v1334_v56  ;;  %vm645_vm12 = vcmask 1045504   ;;  %v646_v60 = vrot.slane %v643_v55, 2  ;;  %v603_v61 = vshrl.u32 %v599_v29, 16  ;;  %v1195_v56 = vld [vmem:[%s1715_s6 + $0x78] sm:$0xff] }
  0xbb   : > { %v827_v51 = vrot.slane %v825_v45, 1  ;;  %v830_v49 = vrot.slane %v828_v46, 2  ;;  %968 = vmatpush.bf16.msra.mxu2 %v1195_v56  ;;  %957 = vmatpush.bf16.msra.mxu1 %v1184_v7  ;;  %v657_v1 = vshrl.u32 %v1613_v39, 16  ;;  %v660_v11 = vshll.u32 %v1613_v39, 16 }
  0xbc   : > { %v648_v20 = vsel %vm645_vm12, %v646_v60, %v647_v58  ;;  %v608_v33 = vor.u32 %v607_v59, %v603_v61  ;;  %vm734_vm13 = vcmask 523264   ;;  %v590_v21 = vunpack.c.l.b16 %v445_v32 }
  0xbd   : > { %619 = vrot.lane.b32.xlu1 %v616_v41, %s1226_s27  ;;  %v831_v28 = vor.u32 %v830_v49, %v827_v51  ;;  %v659_v13 = vrot.slane %v657_v1, 6  ;;  %v662_v15 = vrot.slane %v660_v11, 7  ;;  %vm1010_vm6 = vcmask 195584  }
  0xbe   : > { %v613_v22 = vsel %vm601_vm5, %v608_v33, %v612_v24  ;;  %vm1791_vm3 = vcmask 257024  }
  0xbf   : > { %678 = vrot.lane.b32.xlu0 %v675_v53, %s1226_s27  ;;  %v840_v48 = vsel %vm793_vm15, %v831_v28, %v839_v25  ;;  %969 = vmatpush.bf16.msra.mxu2 %v1194_v62  ;;  %v663_v18 = vor.u32 %v662_v15, %v659_v13  ;;  %v1177_v15 = vld [vmem:[%s1290_s10] sm:$0xff]  ;;  %vm1792_vm8 = vmmov %vm1791_vm3 }
  0xc0   : > { %1168 = vmatmul.msk.bf16.vlgmr.msra.gmra.mxu3 %vm1786_vm10, %v840_v48  ;;  %958 = vmatpush.bf16.msra.mxu1 %v1183_v9 }
  0xc1   : > { %713 = vrot.lane.b32.xlu2 %v709_v57, %s1225_s16  ;;  %v592_v57 = vpack.c.b16 %v590_v21, %v590_v21 }
  0xc3   : > { %970 = vmatpush.bf16.msra.mxu2 %v1193_v63 }
  0xc4   : > { %959 = vmatpush.bf16.msra.mxu1 %v1182_v2 }
  0xc5   : > { %649 = vrot.lane.b32.xlu1 %v648_v20, %s1225_s16 }
  0xc7   : > { %617 = vrot.lane.b32.xlu0 %v613_v22, %s1226_s27  ;;  %971 = vmatpush.bf16.msra.mxu2 %v1192_v0 }
  0xc8   : > { %960 = vmatpush.bf16.msra.mxu1 %v1181_v16 }
  0xc9   : > { %651 = vrot.lane.b32.xlu2 %v647_v58, %s1225_s16 }
  0xcb   : > { %972 = vmatpush.bf16.msra.mxu2 %v1191_v4 }
  0xcc   : > { %961 = vmatpush.bf16.msra.mxu1 %v1180_v19 }
  0xcf   : > { %635 = vrot.lane.b32.xlu0 %v631_v17, %s1224_s15  ;;  %973 = vmatpush.bf16.msra.mxu2 %v1190_v36 }
  0xd3   : > { %974 = vmatpush.bf16.msra.mxu2 %v1189_v6 }
  0xd7   : > { %975 = vmatpush.bf16.msra.mxu2 %v1188_v8 }
 0x113   : > { %v634_v12 = vpop.permute.xlu2 %633 }
 0x11b   : > { %v714_v29 = vpop.permute.xlu2 %713 }
 0x127   : > { %v689_v17 = vpop.permute.xlu1 %688 }
 0x129   : > { %v677_v23 = vpop.permute.xlu0 %676 }
 0x12a   : > { %v746_v24 = vsel %vm1787_vm4, %v663_v18, %v677_v23 }
 0x12b   : > { %v750_v27 = vsel %vm734_vm13, %v746_v24, %v689_v17 }
 0x12c   : > { %v754_v31 = vsel %vm739_vm9, %v750_v27, %v714_v29 }
 0x12d   : > { %v809_v34 = vshrl.u32 %v754_v31, 16  ;;  %v812_v37 = vshll.u32 %v754_v31, 16 }
 0x12f   : > { %v620_v40 = vpop.permute.xlu1 %619  ;;  %v811_v47 = vrot.slane %v809_v34, 1  ;;  %v814_v14 = vrot.slane %v812_v37, 2 }
 0x130   : > { %v733_v60 = vsel %vm1790_vm7, %v592_v57, %v620_v40 }
 0x131   : > { %v679_v39 = vpop.permute.xlu0 %678  ;;  %v815_v51 = vor.u32 %v814_v14, %v811_v47 }
 0x132   : > { %v748_v42 = vsel %vm1788_vm1, %v663_v18, %v679_v39 }
 0x133   : > { %v752_v43 = vsel %vm734_vm13, %v748_v42, %v691_v10 }
 0x134   : > { %v756_v44 = vsel %vm739_vm9, %v752_v43, %v716_v30 }
 0x135   : > { %v816_v45 = vshrl.u32 %v756_v44, 16  ;;  %v819_v46 = vshll.u32 %v756_v44, 16 }
 0x137   : > { %v818_v41 = vrot.slane %v816_v45, 1  ;;  %v821_v25 = vrot.slane %v819_v46, 2  ;;  %v650_v55 = vpop.permute.xlu1 %649 }
 0x139   : > { %v618_v26 = vpop.permute.xlu0 %617  ;;  %v822_v49 = vor.u32 %v821_v25, %v818_v41 }
 0x13a   : > { %v730_v52 = vsel %vm1789_vm2, %v1557_v50, %v618_v26  ;;  %v652_v50 = vpop.permute.xlu2 %651 }
 0x13b   : > { %v736_v28 = vsel %vm734_vm13, %v730_v52, %v634_v12  ;;  %v823_v53 = vsel %vm793_vm15, %v815_v51, %v822_v49 }
 0x13c   : > { %976 = vmatmul.bf16.vlgmr.msra.gmra.mxu2 %v823_v53  ;;  %v741_v48 = vsel %vm739_vm9, %v736_v28, %v650_v55 }
 0x13d   : > { %v794_v58 = vshrl.u32 %v741_v48, 16  ;;  %v797_v59 = vshll.u32 %v741_v48, 16 }
 0x13f   : > { %v796_v33 = vrot.slane %v794_v58, 1  ;;  %v799_v22 = vrot.slane %v797_v59, 2 }
 0x141   : > { %v636_v61 = vpop.permute.xlu0 %635  ;;  %v800_v63 = vor.u32 %v799_v22, %v796_v33 }
 0x142   : > { %v738_v38 = vsel %vm734_vm13, %v733_v60, %v636_v61 }
 0x143   : > { %v743_v54 = vsel %vm739_vm9, %v738_v38, %v652_v50  ;;  %v991_v35 = vpop.f32.mrf.mxu3 }
 0x144   : > { %v801_v32 = vshrl.u32 %v743_v54, 16  ;;  %v804_v20 = vshll.u32 %v743_v54, 16 }
 0x146   : > { %v803_v56 = vrot.slane %v801_v32, 1  ;;  %v806_v62 = vrot.slane %v804_v20, 2 }
 0x148   : > { %v807_v0 = vor.u32 %v806_v62, %v803_v56 }
 0x14a   : > { %v808_v3 = vsel %vm793_vm15, %v800_v63, %v807_v0 }
 0x14b   : > { %962 = vmatmul.bf16.vlgmr.msra.gmra.mxu1 %v808_v3  ;;  %v993_v9 = vpop.f32.mrf.mxu3 }
 0x1bf   : > { %v977_v4 = vpop.f32.mrf.mxu2 }
 0x1c7   : > { %v979_v7 = vpop.f32.mrf.mxu2 }
 0x1c8   : > { %v963_v36 = vpop.f32.mrf.mxu1 }
 0x1c9   : > { %v978_v5 = vadd.f32 %v977_v4, %v963_v36 }
 0x1cb   : > { %v992_v6 = vadd.f32 %v991_v35, %v978_v5 }
 0x1cd   : > { %v996_v10 = vpack.c.bf16 %v992_v6, %v992_v6 }
 0x1cf   : > { %v1005_v11 = vunpack.c.l.b16 %v996_v10 }
 0x1d0   : > { %v965_v8 = vpop.f32.mrf.mxu1 }
 0x1d1   : > { %v980_v30 = vadd.f32 %v979_v7, %v965_v8 }
 0x1d3   : > { %v994_v2 = vadd.f32 %v993_v9, %v980_v30 }
 0x1d5   : > { %v997_v1 = vpack.c.bf16 %v994_v2, %v994_v2 }
 0x1d7   : > { %v1006_v12 = vunpack.c.l.b16 %v997_v1 }
 0x1d9   : > { %v1007_v13 = vpack.c.b16 %v1006_v12, %v1005_v11 }
 0x1db   : > { %1008 = vrot.lane.b32.xlu0 %v1007_v13, %s1227_s20 }
 0x24d   : > { %v1009_v16 = vpop.permute.xlu0 %1008 }
 0x24e   : > { %v1013_v17 = vsel %vm1010_vm6, %v1177_v15, %v1009_v16 }
 0x24f   : > { %v1015_v18 = vunpack.c.l.b16 %v1013_v17  ;;  %v1016_v19 = vunpack.c.h.b16 %v1013_v17 }
 0x251   : > { %v1017_v23 = vpack.c.b16 %v1015_v18, %v1015_v18  ;;  %v1018_v24 = vpack.c.b16 %v1016_v19, %v1016_v19 }
 0x253   : > { %1021 = vst.msk [vmem:[%s278_s23] sm:$0xf] %vm1791_vm3, %v1017_v23 }
 0x254   : > { %1022 = vst.msk [vmem:[%s278_s23 + $0x4] sm:$0xf] %vm1792_vm8, %v1018_v24 }
 0x255 PF: > { %s17_s24 = sadd.s32 1, %s1221_s24  }
 0x256   : > { %p14_p4 = scmp.ge.s32.totalorder %s17_s24, 4  }
 0x258   :  { %16 = sbr.rel (!%p14_p4) target bundleno = 1 (0x1), region = 78 }

// kernel: densenet_finetune_forward.15
= control target key start
LH: loop header
LB: loop body
LE: loop exit
PB: predicated region body
PF: predicated region fallthrough
CT: control target
= control target key end

     0   :  { %v194_v7 = vmov 16.0   ;;  %s255_s0 = inlined_call_operand.vmem [shape: bf16[2,16,32], index: 0, kind: input, shape index: {}]   ;;  %s256_s1 = inlined_call_operand.vmem [shape: f32[1,1,32], index: 1, kind: input, shape index: {}]   ;;  %s257_s2 = inlined_call_operand.vmem [shape: f32[1,1,32], index: 2, kind: input, shape index: {}]   ;;  %s258_s3 = inlined_call_operand.vmem [shape: bf16[32,5], index: 3, kind: input, shape index: {}]   ;;  %s259_s4 = inlined_call_operand.vmem [shape: f32[1,5], index: 4, kind: input, shape index: {}]   ;;  %s260_s5 = inlined_call_operand.hbm [shape: f32[2,5], index: 5, kind: output, shape index: {}]  }
   0x1   :  { %v151_v0 = vld [vmem:[%s258_s3 + $0x8] sm:$0xff]  ;;  %v150_v1 = vld [vmem:[%s258_s3] sm:$0xff]  ;;  %166 = vrcp.f32 %v194_v7 }
   0x2   :  { %v153_v2 = vld [vmem:[%s255_s0] sm:$0xff]   ;;  %v160_v5 = vld [vmem:[%s255_s0 + $0x8] sm:$0xff]   ;;  %116 = vmatpush.bf16.msra.mxu0 %v151_v0 }
   0x3   :  { %v154_v3 = vunpack.c.l.bf16 %v153_v2  ;;  %v155_v4 = vunpack.c.h.bf16 %v153_v2  ;;  %v163_v6 = vld [vmem:[%s256_s1] ss:$0 sm:$0xff]  ;;  %v158_v8 = vunpack.c.l.bf16 %v160_v5  ;;  %v159_v9 = vunpack.c.h.bf16 %v160_v5 }
   0x4   :  { %v164_v10 = vld [vmem:[%s257_s2] ss:$0 sm:$0xff] }
   0x5   :  { %v34_v11 = vmul.f32 %v163_v6, %v154_v3  ;;  %v35_v12 = vmul.f32 %v163_v6, %v155_v4 }
   0x6   :  { %10 = vsyncpa [#allocation3], 0  ;;  %v36_v13 = vmul.f32 %v163_v6, %v158_v8  ;;  %v37_v14 = vmul.f32 %v163_v6, %v159_v9  ;;  %117 = vmatpush.bf16.msra.mxu0 %v150_v1  ;;  %vm50_vm0 = vcmask 261120   ;;  %vm92_vm2 = vcmask 1041409   ;;  %v165_v55 = vld [vmem:[%s259_s4] ss:$0 sm:$0xff] }
   0x7   :  { %v42_v15 = vadd.f32 %v164_v10, %v34_v11  ;;  %v43_v16 = vadd.f32 %v164_v10, %v35_v12  ;;  %v167_v19 = vpop.eup %166  ;;  %s195_s2 = smov [#allocation2]   ;;  %s132_s7 = sshll.u32 %s260_s5, 4  ;;  %vm123_vm3 = vcmask 33792   ;;  %s133_s7 = int_to_ptr.hbm [resolvable:$true] %s132_s7 }
   0x8   :  { %v44_v17 = vadd.f32 %v164_v10, %v36_v13  ;;  %v45_v18 = vadd.f32 %v164_v10, %v37_v14  ;;  %v70_v24 = vmul.f32 16.0, %v167_v19  ;;  %vm74_vm1 = vweird.f32 %v167_v19  ;;  %s130_s29 = sshll.u32 %s195_s2, 4  ;;  %s131_s29 = int_to_ptr.vmem [resolvable:$true] %s130_s29 }
   0x9   :  { %v46_v20 = vmax.f32 %v42_v15, 0.0  ;;  %v47_v21 = vmax.f32 %v43_v16, 0.0 }
   0xa   :  { %v48_v22 = vmax.f32 %v44_v17, 0.0  ;;  %v49_v23 = vmax.f32 %v45_v18, 0.0  ;;  %v71_v30 = vsub.f32 1.0, %v70_v24 }
   0xb   :  { %v51_v25 = vsel %vm50_vm0, %v46_v20, 0.0  ;;  %v52_v26 = vsel %vm50_vm0, %v47_v21, 0.0 }
   0xc   :  { %v53_v27 = vadd.f32 %v52_v26, %v51_v25  ;;  %v60_v28 = vsel %vm50_vm0, %v48_v22, 0.0  ;;  %v61_v29 = vsel %vm50_vm0, %v49_v23, 0.0  ;;  %v72_v34 = vmul.f32 %v167_v19, %v71_v30 }
   0xd   :  { %v62_v31 = vadd.f32 %v61_v29, %v60_v28 }
   0xe   :  { %v54_v32 = vrot.slane %v53_v27, 4  ;;  %v73_v39 = vadd.f32 %v167_v19, %v72_v34 }
   0xf   :  { %v63_v33 = vrot.slane %v62_v31, 4 }
  0x10   :  { %v55_v35 = vadd.f32 %v54_v32, %v53_v27  ;;  %v75_v44 = vsel %vm74_vm1, %v167_v19, %v73_v39 }
  0x11   :  { %v64_v36 = vadd.f32 %v63_v33, %v62_v31 }
  0x12   :  { %v56_v37 = vrot.slane %v55_v35, 2 }
  0x13   :  { %v65_v38 = vrot.slane %v64_v36, 2 }
  0x14   :  { %v57_v40 = vadd.f32 %v56_v37, %v55_v35 }
  0x15   :  { %v66_v41 = vadd.f32 %v65_v38, %v64_v36 }
  0x16   :  { %v58_v42 = vrot.slane %v57_v40, 1 }
  0x17   :  { %v67_v43 = vrot.slane %v66_v41, 1 }
  0x18   :  { %v59_v45 = vadd.f32 %v58_v42, %v57_v40 }
  0x19   :  { %v68_v46 = vadd.f32 %v67_v43, %v66_v41 }
  0x1a   :  { %v76_v47 = vmul.f32 %v75_v44, %v59_v45 }
  0x1b   :  { %v77_v48 = vmul.f32 %v75_v44, %v68_v46 }
  0x1c   :  { %v78_v49 = vpack.c.bf16 %v76_v47, %v76_v47 }
  0x1d   :  { %v79_v50 = vpack.c.bf16 %v77_v48, %v77_v48 }
  0x1e   :  { %v90_v51 = vunpack.c.l.b16 %v78_v49 }
  0x1f   :  { %v91_v52 = vunpack.c.l.b16 %v79_v50 }
  0x21   :  { %v93_v53 = vsel %vm92_vm2, %v91_v52, %v90_v51 }
  0x22   :  { %v94_v54 = vpack.c.b16 %v93_v53, %v93_v53 }
  0x24   :  { %149 = vmatmul.msk.bf16.vlgmr.msra.gmra.mxu0 %vm50_vm0, %v94_v54 }
  0xa1   :  { %v119_v56 = vpop.f32.mrf.mxu0 }
  0xa2   :  { %v120_v57 = vadd.f32 %v165_v55, %v119_v56 }
  0xa4   :  { %124 = vst.msk [vmem:[#allocation2] sm:$0x3] %vm123_vm3, %v120_v57 }
  0xa5   :  { %135 = dma.vmem_to_hbm [thread:$0]  %s131_s29, 32, %s133_s7, [#allocation3]  }
  0xa9   :  { %v121_v58 = vpop.f32.mrf.mxu0 }
  0xaa   :  { %192 = dma.done.wait [#allocation3], 32  }
  0xab   :  { %193 = vsyncadd [#allocation3], 4294967264 }
  0xac   :  { %140 = vsyncpa [#allocation3], 1 }

</bundles_post_ra>
